<compile_context>
chip_gen: v6e
topology: v6e:2x2x1
jax: 0.10.0
libtpu: 0.0.40
codegen_flags: <defaults>
</compile_context>

<pallas_src>
import functools
import math

import jax
import jax.numpy as jnp
from jax.experimental import pallas as pl
from jax.experimental.pallas import tpu as pltpu

# ----------------------------- configuration --------------------------------
NUM_CHARS = 40
HIDDEN = 32            # hidden_channels (= hidden_channels_enc = hidden_channels_dec)
FILTER = 64            # filter_channels (encoder FFN)
FILTER_DP = 64         # filter_channels_dp (duration predictor)
OUT_CH = 16            # out_channels (mel channels)
KERNEL = 3             # encoder kernel_size
NUM_HEADS = 2
NUM_LAYERS_ENC = 2     # constructor arg (default 6, shrunk for the demo)
NUM_FLOW_BLOCKS = 3    # constructor arg (default 12, shrunk for the demo)
KERNEL_DEC = 5
DILATION_RATE = 1      # constructor arg
NUM_BLOCK_LAYERS = 2   # constructor arg
NUM_SPLITS = 4
NUM_SQZ = 2

B = 2
T_X = 8
T_Y = 16

MAXPAD_ENC = (KERNEL - 1) // 2
MAXPAD_DEC = (KERNEL_DEC - 1) // 2

assert DILATION_RATE == 1, "fused conv helper assumes dilation 1"


# ========================== shared in-kernel helpers =========================
def _ln(v, g, b, eps=1e-4):
    """LayerNorm over the channel (sublane) axis of a (C, N) tile."""
    mu = jnp.mean(v, axis=0, keepdims=True)
    var = jnp.mean((v - mu) ** 2, axis=0, keepdims=True)
    return (v - mu) * jax.lax.rsqrt(var + eps) * g + b


def _conv_same(x, w_flat, bias, shift_tab, k_size, maxpad):
    """'same' Conv1d over the flattened (C, B*T) layout: im2col + one matmul.

    shift_tab[maxpad+off, j] == 1 iff lane j+off lies in the same batch
    segment as lane j (and in range), so taps never leak across batches.
    """
    cin, n = x.shape
    pad = (k_size - 1) // 2
    zpad = jnp.zeros((cin, maxpad), jnp.float32)
    xp = jnp.concatenate([zpad, x, zpad], axis=1)
    taps = []
    for k in range(k_size):
        off = k - pad
        xs = xp[:, maxpad + off: maxpad + off + n]
        taps.append(xs * shift_tab[maxpad + off: maxpad + off + 1, :])
    xc = jnp.concatenate(taps, axis=0)                 # (K*Cin, N)
    return jnp.dot(w_flat, xc, preferred_element_type=jnp.float32) + bias


def _softmax_bias(scores, bias):
    """Softmax with precomputed additive mask bias (0 / -1e4)."""
    scores = scores + bias
    scores = scores - jnp.max(scores, axis=-1, keepdims=True)
    e = jnp.exp(scores)
    return e * pl.reciprocal(jnp.sum(e, axis=-1, keepdims=True), approx=True)


# ============================ fused Pallas kernels ===========================
def _encoder_kernel(x_ref, xmask_ref, abias_ref, shift_ref,
                    wqkv_ref, bqkv_ref, wo_ref, bo_ref,
                    ln1g_ref, ln1b_ref, fw1_ref, fb1_ref, fw2_ref, fb2_ref,
                    ln2g_ref, ln2b_ref,
                    pms_w_ref, pms_b_ref,
                    dw1_ref, db1_ref, dg1_ref, dbe1_ref,
                    dw2_ref, db2_ref, dg2_ref, dbe2_ref, dwp_ref, dbp_ref,
                    om_ref, ols_ref, odur_ref,
                    *, num_layers, num_heads, hidden, out_ch, k_size, maxpad):
    x = x_ref[...]                 # (H, N)   N = B*T_x, batch folded into lanes
    xmask = xmask_ref[...]         # (1, N)
    abias = abias_ref[...]         # (N, N)   additive attention bias (0/-1e4)
    shift = shift_ref[...]         # (2*maxpad+1, N)
    dk = hidden // num_heads
    scale = 1.0 / math.sqrt(dk)

    for l in range(num_layers):
        x = x * xmask
        # ---------------- multi-head self-attention (fused QKV) -------------
        qkv = jnp.dot(wqkv_ref[l], x, preferred_element_type=jnp.float32) + bqkv_ref[l]
        heads = []
        for h in range(num_heads):
            qh = qkv[h * dk:(h + 1) * dk]
            kh = qkv[hidden + h * dk: hidden + (h + 1) * dk]
            vh = qkv[2 * hidden + h * dk: 2 * hidden + (h + 1) * dk]
            s = jax.lax.dot_general(qh, kh, (((0,), (0,)), ((), ())),
                                    preferred_element_type=jnp.float32) * scale
            p = _softmax_bias(s, abias)
            heads.append(jax.lax.dot_general(vh, p, (((1,), (1,)), ((), ())),
                                             preferred_element_type=jnp.float32))
        att = jnp.concatenate(heads, axis=0)
        y = jnp.dot(wo_ref[l], att, preferred_element_type=jnp.float32) + bo_ref[l]
        x = _ln(x + y, ln1g_ref[l], ln1b_ref[l])
        # ------------------------------- FFN ---------------------------------
        h1 = _conv_same(x * xmask, fw1_ref[l], fb1_ref[l], shift, k_size, maxpad)
        h1 = jnp.maximum(h1, 0.0)
        h2 = _conv_same(h1 * xmask, fw2_ref[l], fb2_ref[l], shift, k_size, maxpad)
        x = _ln(x + h2 * xmask, ln2g_ref[l], ln2b_ref[l])

    x = x * xmask
    # fused mean / log-scale projection (single matmul)
    proj = (jnp.dot(pms_w_ref[...], x, preferred_element_type=jnp.float32)
            + pms_b_ref[...])
    om_ref[...] = proj[:out_ch] * xmask
    ols_ref[...] = proj[out_ch:] * xmask

    # --------------------------- duration predictor --------------------------
    d = _conv_same(x * xmask, dw1_ref[...], db1_ref[...], shift, k_size, maxpad)
    d = _ln(jnp.maximum(d, 0.0), dg1_ref[...], dbe1_ref[...])
    d = _conv_same(d * xmask, dw2_ref[...], db2_ref[...], shift, k_size, maxpad)
    d = _ln(jnp.maximum(d, 0.0), dg2_ref[...], dbe2_ref[...])
    d = jnp.dot(dwp_ref[...], d * xmask, preferred_element_type=jnp.float32) + dbp_ref[...]
    odur_ref[...] = d * xmask


def _flow_kernel(x_ref, mask_ref, seg_ref, shift_ref,
                 fm_ref, fb_ref,
                 sw_ref, sb_ref, ew_ref, eb_ref,
                 inw_ref, inb_ref, rsw_ref, rsb_ref,
                 z_ref, ld_ref,
                 *, num_blocks, num_wn_layers, hidden, half, k_size, maxpad):
    x = x_ref[...]                 # (Cs, N)  N = B*T_sq
    mask = mask_ref[...]           # (1, N)
    seg = seg_ref[...]             # (B, N)   batch-segment indicator
    shift = shift_ref[...]         # (2*maxpad+1, N)
    n = x.shape[1]
    ld = jnp.zeros((1, seg.shape[0]), jnp.float32)

    for blk in range(num_blocks):
        # ActNorm folded into the expanded InvConvNear channel-mixing matrix:
        #   x <- (invm @ diag(exp(an_logs)) @ x + invm @ an_bias) * mask
        x = (jnp.dot(fm_ref[blk], x, preferred_element_type=jnp.float32)
             + fb_ref[blk]) * mask
        # Affine coupling with WaveNet transform
        x0 = x[:half]
        x1 = x[half:]
        h = (jnp.dot(sw_ref[blk], x0, preferred_element_type=jnp.float32)
             + sb_ref[blk]) * mask
        wn_out = jnp.zeros((hidden, n), jnp.float32)
        for i in range(num_wn_layers):
            li = blk * num_wn_layers + i
            x_in = _conv_same(h, inw_ref[li], inb_ref[li], shift, k_size, maxpad)
            acts = jnp.tanh(x_in[:hidden]) * jax.nn.sigmoid(x_in[hidden:])
            rs = jnp.dot(rsw_ref[li], acts,
                         preferred_element_type=jnp.float32) + rsb_ref[li]
            if i < num_wn_layers - 1:
                h = (h + rs[:hidden]) * mask
                wn_out = wn_out + rs[hidden:]
            else:
                wn_out = wn_out + rs[:hidden]
        wn_out = wn_out * mask
        out = jnp.dot(ew_ref[blk], wn_out, preferred_element_type=jnp.float32) + eb_ref[blk]
        t_ = out[:half]
        s_ = out[half:]
        z1 = (t_ + jnp.exp(s_) * x1) * mask
        colsum = jnp.sum(s_ * mask, axis=0, keepdims=True)          # (1, N)
        ld = ld + jax.lax.dot_general(colsum, seg, (((1,), (1,)), ((), ())),
                                      preferred_element_type=jnp.float32)
        x = jnp.concatenate([x0, z1], axis=0)

    z_ref[...] = x
    ld_ref[...] = ld


def _logp_kernel(mt_ref, lst_ref, z_ref, o_ref):
    mt = mt_ref[...]               # (B, Tx, C)
    lst = lst_ref[...]             # (B, Tx, C)
    z = z_ref[...]                 # (B, C, Ty)
    o_scale = jnp.exp(-2.0 * lst)
    logp1 = jnp.sum(-0.5 * math.log(2.0 * math.pi) - lst, axis=-1, keepdims=True)
    logp2 = jnp.einsum('btc,bcy->bty', o_scale, -0.5 * z * z,
                       preferred_element_type=jnp.float32)
    logp3 = jnp.einsum('btc,bcy->bty', mt * o_scale, z,
                       preferred_element_type=jnp.float32)
    logp4 = jnp.sum(-0.5 * mt * mt * o_scale, axis=-1, keepdims=True)
    o_ref[...] = logp1 + logp2 + logp3 + logp4


def _outputs_kernel(attn_ref, mean_ref, ls_ref, xm_ref, ym_ref, yls_ref, dur_ref):
    attn = attn_ref[...]           # (B, Tx, Ty)
    mean = mean_ref[...]           # (B, C, Tx)
    ls = ls_ref[...]               # (B, C, Tx)
    xm = xm_ref[...]               # (B, Tx, 1)
    ym_ref[...] = jnp.einsum('bct,bty->bcy', mean, attn,
                             preferred_element_type=jnp.float32)
    yls_ref[...] = jnp.einsum('bct,bty->bcy', ls, attn,
                              preferred_element_type=jnp.float32)
    dur_ref[...] = jnp.log(1.0 + jnp.sum(attn, axis=2, keepdims=True)) * xm


# ============================ pallas_call wrapper ============================
def _block_spec(shape):
    zeros = (0,) * len(shape)
    return pl.BlockSpec(shape, lambda i, _z=zeros: _z)


def pallas_run(kernel, args, out_shapes):
    """Single-program fused kernel call: whole arrays resident in VMEM."""
    return pl.pallas_call(
        kernel,
        out_shape=tuple(out_shapes),
        grid=(1,),
        in_specs=[_block_spec(a.shape) for a in args],
        out_specs=tuple(_block_spec(o.shape) for o in out_shapes),
        compiler_params=pltpu.CompilerParams(
            dimension_semantics=("arbitrary",)),
    )(*args)


# ================================ JAX glue ===================================
def sequence_mask(lengths, max_len):
    ids = jnp.arange(max_len)
    return (ids[None, :] < lengths[:, None]).astype(jnp.float32)


def flatten_conv_w(w):
    """(Cout, Cin, K) torch conv weight -> (Cout, K*Cin) im2col weight."""
    cout, cin, k = w.shape
    return jnp.transpose(w, (0, 2, 1)).reshape(cout, k * cin)


def shift_valid_table(batch, t, maxpad):
    """valid[maxpad+off, j] = 1 iff lane j+off is in range & same batch segment."""
    n = batch * t
    j = jnp.arange(n)
    rows = []
    for off in range(-maxpad, maxpad + 1):
        tgt = j + off
        ok = (tgt >= 0) & (tgt < n) & ((tgt // t) == (j // t))
        rows.append(ok.astype(jnp.float32))
    return jnp.stack(rows, axis=0)


def segment_matrix(batch, t):
    j = jnp.arange(batch * t)
    b = jnp.arange(batch)
    return (j[None, :] // t == b[:, None]).astype(jnp.float32)


def expand_inv_conv(w, channels, num_splits):
    """Expand InvConvNear's (S,S) grouped weight into a (C,C) channel-mix matrix."""
    half = num_splits // 2
    groups = channels // num_splits
    idx = jnp.arange(channels)
    a = idx // (groups * half)
    g = (idx // half) % groups
    d = idx % half
    s = a * half + d
    same_group = (g[:, None] == g[None, :]).astype(w.dtype)
    return w[s[:, None], s[None, :]] * same_group


def from_flat(xf, batch, t):
    """(C, B*T) -> (B, C, T)."""
    c = xf.shape[0]
    return jnp.transpose(xf.reshape(c, batch, t), (1, 0, 2))


def pad_rows(w, rows):
    if w.shape[0] < rows:
        w = jnp.concatenate(
            [w, jnp.zeros((rows - w.shape[0], w.shape[1]), w.dtype)], axis=0)
    return w


def squeeze(x, x_mask, n):
    Bb, C, T = x.shape
    t = (T // n) * n
    x = x[:, :, :t]
    x_sqz = x.reshape(Bb, C, t // n, n)
    x_sqz = jnp.transpose(x_sqz, (0, 3, 1, 2)).reshape(Bb, C * n, t // n)
    x_mask = x_mask[:, :, n - 1::n]
    return x_sqz * x_mask, x_mask


def unsqueeze(x, x_mask, n):
    Bb, C, T = x.shape
    x_un = x.reshape(Bb, n, C // n, T)
    x_un = jnp.transpose(x_un, (0, 2, 3, 1)).reshape(Bb, C // n, T * n)
    x_mask = jnp.repeat(x_mask[:, :, :, None], n, axis=3).reshape(Bb, 1, T * n)
    return x_un * x_mask, x_mask


def maximum_path_jax(value, mask):
    """Monotonic alignment search (DP + backtracking), value/mask: (B,Tx,Ty)."""
    max_neg = -1e9
    value = value * mask
    Bb, Tx, Ty = value.shape
    x_range = jnp.arange(Tx)[None, :]

    def fwd_step(v, inp):
        col, j = inp
        v0 = jnp.pad(v, ((0, 0), (1, 0)), constant_values=max_neg)[:, :-1]
        v1 = v
        max_mask = v1 >= v0
        v_max = jnp.where(max_mask, v1, v0)
        index_mask = x_range <= j
        v_new = jnp.where(index_mask, v_max + col, max_neg)
        return v_new, max_mask.astype(jnp.int32)

    value_t = jnp.transpose(value, (2, 0, 1))            # (Ty, B, Tx)
    _, dir_t = jax.lax.scan(fwd_step, jnp.zeros((Bb, Tx), jnp.float32),
                            (value_t, jnp.arange(Ty)))
    direction = jnp.transpose(dir_t, (1, 2, 0))           # (B, Tx, Ty)
    direction = jnp.where(mask > 0, direction, 1)

    index_init = jnp.sum(mask[:, :, 0], axis=1).astype(jnp.int32) - 1

    def bwd_step(index, dcol):
        onehot = jax.nn.one_hot(index, Tx, dtype=value.dtype)
        d = jnp.take_along_axis(dcol, index[:, None], axis=1)[:, 0]
        return index + d - 1, onehot

    dir_cols = jnp.transpose(direction, (2, 0, 1))         # (Ty, B, Tx)
    _, path_t = jax.lax.scan(bwd_step, index_init, dir_cols, reverse=True)
    path = jnp.transpose(path_t, (1, 2, 0))                # (B, Tx, Ty)
    return path * mask


# ------------------------------- Encoder -------------------------------------
def encoder_forward(p, x_ids, x_lengths):
    Bb, T = x_ids.shape
    N = Bb * T
    emb = p['emb'][x_ids] * math.sqrt(HIDDEN)              # (B, T, H)
    x_flat = jnp.transpose(emb, (2, 0, 1)).reshape(HIDDEN, N)
    x_mask = sequence_mask(x_lengths, T)                   # (B, T)
    xm_flat = x_mask.reshape(1, N)
    ids = jnp.arange(N)
    same_b = ((ids[:, None] // T) == (ids[None, :] // T)).astype(jnp.float32)
    xm_vec = x_mask.reshape(N)
    amask = xm_vec[:, None] * xm_vec[None, :] * same_b      # (N, N)
    abias = jnp.where(amask == 0.0, -1e4, 0.0).astype(jnp.float32)
    shift_tab = shift_valid_table(Bb, T, MAXPAD_ENC)

    layers = p['layers']
    wqkv = jnp.stack([jnp.concatenate([lp['wq'], lp['wk'], lp['wv']], axis=0)
                      for lp in layers])
    bqkv = jnp.stack([jnp.concatenate([lp['bq'], lp['bk'], lp['bv']])[:, None]
                      for lp in layers])
    wo = jnp.stack([lp['wo'] for lp in layers])
    bo = jnp.stack([lp['bo'][:, None] for lp in layers])
    ln1g = jnp.stack([lp['ln1_g'][:, None] for lp in layers])
    ln1b = jnp.stack([lp['ln1_b'][:, None] for lp in layers])
    fw1 = jnp.stack([flatten_conv_w(lp['ffn_w1']) for lp in layers])
    fb1 = jnp.stack([lp['ffn_b1'][:, None] for lp in layers])
    fw2 = jnp.stack([flatten_conv_w(lp['ffn_w2']) for lp in layers])
    fb2 = jnp.stack([lp['ffn_b2'][:, None] for lp in layers])
    ln2g = jnp.stack([lp['ln2_g'][:, None] for lp in layers])
    ln2b = jnp.stack([lp['ln2_b'][:, None] for lp in layers])
    dp = p['dp']

    # fuse mean/log-scale projections into a single matmul weight
    pms_w = jnp.concatenate([p['proj_m_w'], p['proj_s_w']], axis=0)
    pms_b = jnp.concatenate([p['proj_m_b'], p['proj_s_b']])[:, None]

    kern = functools.partial(_encoder_kernel, num_layers=NUM_LAYERS_ENC,
                             num_heads=NUM_HEADS, hidden=HIDDEN, out_ch=OUT_CH,
                             k_size=KERNEL, maxpad=MAXPAD_ENC)
    args = (x_flat, xm_flat, abias, shift_tab,
            wqkv, bqkv, wo, bo, ln1g, ln1b, fw1, fb1, fw2, fb2, ln2g, ln2b,
            pms_w, pms_b,
            flatten_conv_w(dp['w1']), dp['b1'][:, None],
            dp['g1'][:, None], dp['be1'][:, None],
            flatten_conv_w(dp['w2']), dp['b2'][:, None],
            dp['g2'][:, None], dp['be2'][:, None],
            dp['wp'], dp['bp'][:, None])
    out_shapes = (jax.ShapeDtypeStruct((OUT_CH, N), jnp.float32),
                  jax.ShapeDtypeStruct((OUT_CH, N), jnp.float32),
                  jax.ShapeDtypeStruct((1, N), jnp.float32))
    om_f, ols_f, odur_f = pallas_run(kern, args, out_shapes)

    o_mean = from_flat(om_f, Bb, T)
    o_log_scale = from_flat(ols_f, Bb, T)
    o_dur_log = from_flat(odur_f, Bb, T)
    return o_mean, o_log_scale, o_dur_log, x_mask[:, None, :]


# ------------------------------- Decoder --------------------------------------
def decoder_forward(p, y, y_mask):
    x, x_mask_sq = squeeze(y, y_mask, NUM_SQZ)
    Bb, Cs, T = x.shape
    N = Bb * T
    half = Cs // 2
    x_flat = jnp.transpose(x, (1, 0, 2)).reshape(Cs, N)
    m_flat = x_mask_sq.reshape(1, N)
    seg = segment_matrix(Bb, T)
    shift_tab = shift_valid_table(Bb, T, MAXPAD_DEC)

    blocks = p['blocks']
    # Fold ActNorm (scale/bias) into the expanded InvConvNear matrix:
    #   z = invm @ (bias + exp(logs) * x)  ->  (invm*exp(logs)) @ x + invm @ bias
    fm_list, fb_list = [], []
    for bp in blocks:
        invm = expand_inv_conv(bp['inv_w'], Cs, NUM_SPLITS)
        fm_list.append(invm * jnp.exp(bp['an_logs'])[None, :])
        fb_list.append(jnp.dot(invm, bp['an_bias'][:, None]))
    fm = jnp.stack(fm_list)
    fb = jnp.stack(fb_list)

    sw = jnp.stack([bp['start_w'] for bp in blocks])
    sb = jnp.stack([bp['start_b'][:, None] for bp in blocks])
    ew = jnp.stack([bp['end_w'] for bp in blocks])
    eb = jnp.stack([bp['end_b'][:, None] for bp in blocks])
    # per-(block, wn-layer) weights flattened into one leading axis
    inw = jnp.stack([flatten_conv_w(w) for bp in blocks for w in bp['wn_in_w']])
    inb = jnp.stack([b[:, None] for bp in blocks for b in bp['wn_in_b']])
    rsw = jnp.stack([pad_rows(w, 2 * HIDDEN)
                     for bp in blocks for w in bp['wn_rs_w']])
    rsb = jnp.stack([pad_rows(b[:, None], 2 * HIDDEN)
                     for bp in blocks for b in bp['wn_rs_b']])

    kern = functools.partial(_flow_kernel, num_blocks=NUM_FLOW_BLOCKS,
                             num_wn_layers=NUM_BLOCK_LAYERS, hidden=HIDDEN,
                             half=half, k_size=KERNEL_DEC, maxpad=MAXPAD_DEC)
    args = (x_flat, m_flat, seg, shift_tab, fm, fb,
            sw, sb, ew, eb, inw, inb, rsw, rsb)
    out_shapes = (jax.ShapeDtypeStruct((Cs, N), jnp.float32),
                  jax.ShapeDtypeStruct((1, Bb), jnp.float32))
    z_flat, ld = pallas_run(kern, args, out_shapes)

    # parameter-only logdet terms (ActNorm + InvConvNear); the data-dependent
    # coupling term was accumulated inside the kernel.
    x_len = jnp.sum(x_mask_sq, axis=(1, 2))                # (B,)
    const = jnp.float32(0.0)
    for bp in blocks:
        _, labs = jnp.linalg.slogdet(bp['inv_w'])
        const = const + jnp.sum(bp['an_logs']) + labs * (Cs / NUM_SPLITS)
    logdet = ld[0] + const * x_len

    z = from_flat(z_flat, Bb, T)
    z, _ = unsqueeze(z, x_mask_sq, NUM_SQZ)
    return z, logdet


# ------------------------------ full forward ----------------------------------
def glow_tts_forward(params, x, x_lengths, y, y_lengths):
    o_mean, o_log_scale, o_dur_log, x_mask = encoder_forward(params['enc'], x, x_lengths)

    # preprocess (truncate to multiple of num_sqz)
    y_max_length = (y.shape[2] // NUM_SQZ) * NUM_SQZ
    y = y[:, :, :y_max_length]
    y_lengths = (y_lengths // NUM_SQZ) * NUM_SQZ
    y_mask = sequence_mask(y_lengths, y_max_length)[:, None, :]
    attn_mask = x_mask[:, :, :, None] * y_mask[:, :, None, :]     # (B,1,Tx,Ty)

    z, logdet = decoder_forward(params['dec'], y, y_mask)

    # alignment log-likelihood (one fused kernel over the whole batch)
    Bb, Tx = x.shape
    Ty = z.shape[2]
    om_t = jnp.transpose(o_mean, (0, 2, 1))                       # (B, Tx, C)
    ols_t = jnp.transpose(o_log_scale, (0, 2, 1))
    (logp,) = pallas_run(
        _logp_kernel, (om_t, ols_t, z),
        (jax.ShapeDtypeStruct((Bb, Tx, Ty), jnp.float32),))

    attn = maximum_path_jax(logp, attn_mask[:, 0])                # (B,Tx,Ty)

    xm_col = jnp.transpose(x_mask, (0, 2, 1))                     # (B, Tx, 1)
    y_mean, y_log_scale, dur = pallas_run(
        _outputs_kernel, (attn, o_mean, o_log_scale, xm_col),
        (jax.ShapeDtypeStruct((Bb, OUT_CH, Ty), jnp.float32),
         jax.ShapeDtypeStruct((Bb, OUT_CH, Ty), jnp.float32),
         jax.ShapeDtypeStruct((Bb, Tx, 1), jnp.float32)))
    o_attn_dur = dur.reshape(Bb, 1, Tx)
    attn_out = jnp.transpose(attn, (0, 2, 1))                     # (B,Ty,Tx)
    return z, logdet, y_mean, y_log_scale, attn_out, o_dur_log, o_attn_dur


# ------------------------------ parameter init ---------------------------------
class _KeyGen:
    def __init__(self, key):
        self.key = key

    def __call__(self):
        self.key, k = jax.random.split(self.key)
        return k


def _normal(key, shape, scale):
    return scale * jax.random.normal(key, shape, dtype=jnp.float32)


def init_params(key):
    kg = _KeyGen(key)
    enc = {'emb': _normal(kg(), (NUM_CHARS, HIDDEN), HIDDEN ** -0.5)}
    layers = []
    for _ in range(NUM_LAYERS_ENC):
        lp = {
            'wq': _normal(kg(), (HIDDEN, HIDDEN), 0.1), 'bq': jnp.zeros((HIDDEN,)),
            'wk': _normal(kg(), (HIDDEN, HIDDEN), 0.1), 'bk': jnp.zeros((HIDDEN,)),
            'wv': _normal(kg(), (HIDDEN, HIDDEN), 0.1), 'bv': jnp.zeros((HIDDEN,)),
            'wo': _normal(kg(), (HIDDEN, HIDDEN), 0.1), 'bo': jnp.zeros((HIDDEN,)),
            'ln1_g': jnp.ones((HIDDEN,)), 'ln1_b': jnp.zeros((HIDDEN,)),
            'ffn_w1': _normal(kg(), (FILTER, HIDDEN, KERNEL), 0.1), 'ffn_b1': jnp.zeros((FILTER,)),
            'ffn_w2': _normal(kg(), (HIDDEN, FILTER, KERNEL), 0.1), 'ffn_b2': jnp.zeros((HIDDEN,)),
            'ln2_g': jnp.ones((HIDDEN,)), 'ln2_b': jnp.zeros((HIDDEN,)),
        }
        layers.append(lp)
    enc['layers'] = layers
    enc['proj_m_w'] = _normal(kg(), (OUT_CH, HIDDEN), 0.1)
    enc['proj_m_b'] = jnp.zeros((OUT_CH,))
    enc['proj_s_w'] = _normal(kg(), (OUT_CH, HIDDEN), 0.1)
    enc['proj_s_b'] = jnp.zeros((OUT_CH,))
    enc['dp'] = {
        'w1': _normal(kg(), (FILTER_DP, HIDDEN, KERNEL), 0.1), 'b1': jnp.zeros((FILTER_DP,)),
        'g1': jnp.ones((FILTER_DP,)), 'be1': jnp.zeros((FILTER_DP,)),
        'w2': _normal(kg(), (FILTER_DP, FILTER_DP, KERNEL), 0.1), 'b2': jnp.zeros((FILTER_DP,)),
        'g2': jnp.ones((FILTER_DP,)), 'be2': jnp.zeros((FILTER_DP,)),
        'wp': _normal(kg(), (1, FILTER_DP), 0.1), 'bp': jnp.zeros((1,)),
    }

    CS = OUT_CH * NUM_SQZ        # channels inside the flow (32)
    HALF = CS // 2
    HD = HIDDEN
    blocks = []
    for _ in range(NUM_FLOW_BLOCKS):
        w = jnp.linalg.qr(jax.random.normal(kg(), (NUM_SPLITS, NUM_SPLITS)))[0]
        sign = jnp.where(jnp.linalg.det(w) < 0, -1.0, 1.0)
        w = w.at[:, 0].multiply(sign)
        bp = {
            'an_logs': _normal(kg(), (CS,), 0.01),
            'an_bias': _normal(kg(), (CS,), 0.01),
            'inv_w': w.astype(jnp.float32),
            'start_w': _normal(kg(), (HD, HALF), 0.1), 'start_b': jnp.zeros((HD,)),
            # torch zero-inits the `end` conv; use tiny values to exercise compute
            'end_w': _normal(kg(), (CS, HD), 0.01), 'end_b': jnp.zeros((CS,)),
            'wn_in_w': [_normal(kg(), (2 * HD, HD, KERNEL_DEC), 0.05)
                        for _ in range(NUM_BLOCK_LAYERS)],
            'wn_in_b': [jnp.zeros((2 * HD,)) for _ in range(NUM_BLOCK_LAYERS)],
            'wn_rs_w': [_normal(kg(), (2 * HD if i < NUM_BLOCK_LAYERS - 1 else HD, HD), 0.05)
                        for i in range(NUM_BLOCK_LAYERS)],
            'wn_rs_b': [jnp.zeros((2 * HD if i < NUM_BLOCK_LAYERS - 1 else HD,))
                        for i in range(NUM_BLOCK_LAYERS)],
        }
        blocks.append(bp)
    return {'enc': enc, 'dec': {'blocks': blocks}}


# ==================================== main =====================================
if __name__ == "__main__":
    key = jax.random.PRNGKey(0)
    pkey, xkey, ykey = jax.random.split(key, 3)
    params = init_params(pkey)

    x = jax.random.randint(xkey, (B, T_X), 0, NUM_CHARS, dtype=jnp.int32)
    x_lengths = jnp.array([T_X, T_X - 2], dtype=jnp.int32)
    y = jax.random.normal(ykey, (B, OUT_CH, T_Y), dtype=jnp.float32)
    y_lengths = jnp.array([T_Y, T_Y - 4], dtype=jnp.int32)

    fwd = jax.jit(glow_tts_forward)
    outs = jax.block_until_ready(fwd(params, x, x_lengths, y, y_lengths))
    z, logdet, y_mean, y_log_scale, attn, o_dur_log, o_attn_dur = outs

    assert z.shape == (B, OUT_CH, T_Y)
    assert logdet.shape == (B,)
    assert y_mean.shape == (B, OUT_CH, T_Y)
    assert y_log_scale.shape == (B, OUT_CH, T_Y)
    assert attn.shape == (B, T_Y, T_X)
    assert o_dur_log.shape == (B, 1, T_X)
    assert o_attn_dur.shape == (B, 1, T_X)
    assert all(bool(jnp.all(jnp.isfinite(o))) for o in
               (z, logdet, y_mean, y_log_scale, attn, o_dur_log, o_attn_dur))
    print("KERNEL_OK")
</pallas_src>

<mosaic_0001>
module attributes {stable_mosaic.version = 11 : i64} {
  func.func @_flow_kernel(%arg0: i32, %arg1: memref<32x16xf32, #tpu.memory_space<vmem>>, %arg2: memref<1x16xf32, #tpu.memory_space<vmem>>, %arg3: memref<2x16xf32, #tpu.memory_space<vmem>>, %arg4: memref<5x16xf32, #tpu.memory_space<vmem>>, %arg5: memref<3x32x32xf32, #tpu.memory_space<vmem>>, %arg6: memref<3x32x1xf32, #tpu.memory_space<vmem>>, %arg7: memref<3x32x16xf32, #tpu.memory_space<vmem>>, %arg8: memref<3x32x1xf32, #tpu.memory_space<vmem>>, %arg9: memref<3x32x32xf32, #tpu.memory_space<vmem>>, %arg10: memref<3x32x1xf32, #tpu.memory_space<vmem>>, %arg11: memref<6x64x160xf32, #tpu.memory_space<vmem>>, %arg12: memref<6x64x1xf32, #tpu.memory_space<vmem>>, %arg13: memref<6x64x32xf32, #tpu.memory_space<vmem>>, %arg14: memref<6x64x1xf32, #tpu.memory_space<vmem>>, %arg15: memref<32x16xf32, #tpu.memory_space<vmem>>, %arg16: memref<1x2xf32, #tpu.memory_space<vmem>>) attributes {dimension_semantics = [#tpu.dimension_semantics<arbitrary>], iteration_bounds = array<i64: 1>, scalar_prefetch = 0 : i64, scratch_operands = 0 : i64, tpu.core_type = #tpu.core_type<tc>, window_params = [{pipeline_mode = #tpu.pipeline_mode<synchronous>, transform_indices = @transform_0, window_bounds = array<i64: 32, 16>}, {pipeline_mode = #tpu.pipeline_mode<synchronous>, transform_indices = @transform_1, window_bounds = array<i64: 1, 16>}, {pipeline_mode = #tpu.pipeline_mode<synchronous>, transform_indices = @transform_2, window_bounds = array<i64: 2, 16>}, {pipeline_mode = #tpu.pipeline_mode<synchronous>, transform_indices = @transform_3, window_bounds = array<i64: 5, 16>}, {pipeline_mode = #tpu.pipeline_mode<synchronous>, transform_indices = @transform_4, window_bounds = array<i64: 3, 32, 32>}, {pipeline_mode = #tpu.pipeline_mode<synchronous>, transform_indices = @transform_5, window_bounds = array<i64: 3, 32, 1>}, {pipeline_mode = #tpu.pipeline_mode<synchronous>, transform_indices = @transform_6, window_bounds = array<i64: 3, 32, 16>}, {pipeline_mode = #tpu.pipeline_mode<synchronous>, transform_indices = @transform_7, window_bounds = array<i64: 3, 32, 1>}, {pipeline_mode = #tpu.pipeline_mode<synchronous>, transform_indices = @transform_8, window_bounds = array<i64: 3, 32, 32>}, {pipeline_mode = #tpu.pipeline_mode<synchronous>, transform_indices = @transform_9, window_bounds = array<i64: 3, 32, 1>}, {pipeline_mode = #tpu.pipeline_mode<synchronous>, transform_indices = @transform_10, window_bounds = array<i64: 6, 64, 160>}, {pipeline_mode = #tpu.pipeline_mode<synchronous>, transform_indices = @transform_11, window_bounds = array<i64: 6, 64, 1>}, {pipeline_mode = #tpu.pipeline_mode<synchronous>, transform_indices = @transform_12, window_bounds = array<i64: 6, 64, 32>}, {pipeline_mode = #tpu.pipeline_mode<synchronous>, transform_indices = @transform_13, window_bounds = array<i64: 6, 64, 1>}, {pipeline_mode = #tpu.pipeline_mode<synchronous>, transform_indices = @transform_14, window_bounds = array<i64: 32, 16>}, {pipeline_mode = #tpu.pipeline_mode<synchronous>, transform_indices = @transform_15, window_bounds = array<i64: 1, 2>}]} {
    %c0 = arith.constant 0 : index
    %c0_0 = arith.constant 0 : index
    %0 = vector.load %arg1[%c0, %c0_0] : memref<32x16xf32, #tpu.memory_space<vmem>>, vector<32x16xf32>
    %c0_1 = arith.constant 0 : index
    %c0_2 = arith.constant 0 : index
    %1 = vector.load %arg2[%c0_1, %c0_2] : memref<1x16xf32, #tpu.memory_space<vmem>>, vector<1x16xf32>
    %c0_3 = arith.constant 0 : index
    %c0_4 = arith.constant 0 : index
    %2 = vector.load %arg3[%c0_3, %c0_4] : memref<2x16xf32, #tpu.memory_space<vmem>>, vector<2x16xf32>
    %c0_5 = arith.constant 0 : index
    %c0_6 = arith.constant 0 : index
    %3 = vector.load %arg4[%c0_5, %c0_6] : memref<5x16xf32, #tpu.memory_space<vmem>>, vector<5x16xf32>
    %cst = arith.constant 0.000000e+00 : f32
    %4 = vector.broadcast %cst : f32 to vector<1x2xf32>
    %c0_7 = arith.constant 0 : index
    %c0_8 = arith.constant 0 : index
    %c0_9 = arith.constant 0 : index
    %5 = vector.load %arg5[%c0_7, %c0_8, %c0_9] : memref<3x32x32xf32, #tpu.memory_space<vmem>>, vector<1x32x32xf32>
    %6 = vector.shape_cast %5 : vector<1x32x32xf32> to vector<32x32xf32>
    %cst_10 = arith.constant dense<0.000000e+00> : vector<32x16xf32>
    %7 = tpu.matmul %6, %0, %cst_10 {dimension_numbers = #tpu.dot_dimension_numbers<[1], [0], [0], [1], [0, 0, 1, 1], [], []>} : vector<32x32xf32>, vector<32x16xf32>, vector<32x16xf32> -> vector<32x16xf32>
    %c0_11 = arith.constant 0 : index
    %c0_12 = arith.constant 0 : index
    %c0_13 = arith.constant 0 : index
    %8 = vector.load %arg6[%c0_11, %c0_12, %c0_13] : memref<3x32x1xf32, #tpu.memory_space<vmem>>, vector<1x32x1xf32>
    %9 = vector.shape_cast %8 : vector<1x32x1xf32> to vector<32x1xf32>
    %10 = vector.broadcast %9 : vector<32x1xf32> to vector<32x16xf32>
    %11 = arith.addf %7, %10 : vector<32x16xf32>
    %12 = vector.broadcast %1 : vector<1x16xf32> to vector<32x16xf32>
    %13 = arith.mulf %11, %12 : vector<32x16xf32>
    %14 = vector.extract_strided_slice %13 {offsets = [0, 0], sizes = [16, 16], strides = [1, 1]} : vector<32x16xf32> to vector<16x16xf32>
    %15 = vector.extract_strided_slice %13 {offsets = [16, 0], sizes = [16, 16], strides = [1, 1]} : vector<32x16xf32> to vector<16x16xf32>
    %c0_14 = arith.constant 0 : index
    %c0_15 = arith.constant 0 : index
    %c0_16 = arith.constant 0 : index
    %16 = vector.load %arg7[%c0_14, %c0_15, %c0_16] : memref<3x32x16xf32, #tpu.memory_space<vmem>>, vector<1x32x16xf32>
    %17 = vector.shape_cast %16 : vector<1x32x16xf32> to vector<32x16xf32>
    %cst_17 = arith.constant dense<0.000000e+00> : vector<32x16xf32>
    %18 = tpu.matmul %17, %14, %cst_17 {dimension_numbers = #tpu.dot_dimension_numbers<[1], [0], [0], [1], [0, 0, 1, 1], [], []>} : vector<32x16xf32>, vector<16x16xf32>, vector<32x16xf32> -> vector<32x16xf32>
    %c0_18 = arith.constant 0 : index
    %c0_19 = arith.constant 0 : index
    %c0_20 = arith.constant 0 : index
    %19 = vector.load %arg8[%c0_18, %c0_19, %c0_20] : memref<3x32x1xf32, #tpu.memory_space<vmem>>, vector<1x32x1xf32>
    %20 = vector.shape_cast %19 : vector<1x32x1xf32> to vector<32x1xf32>
    %21 = vector.broadcast %20 : vector<32x1xf32> to vector<32x16xf32>
    %22 = arith.addf %18, %21 : vector<32x16xf32>
    %23 = vector.broadcast %1 : vector<1x16xf32> to vector<32x16xf32>
    %24 = arith.mulf %22, %23 : vector<32x16xf32>
    %cst_21 = arith.constant 0.000000e+00 : f32
    %25 = vector.broadcast %cst_21 : f32 to vector<32x16xf32>
    %c0_22 = arith.constant 0 : index
    %c0_23 = arith.constant 0 : index
    %c0_24 = arith.constant 0 : index
    %26 = vector.load %arg11[%c0_22, %c0_23, %c0_24] : memref<6x64x160xf32, #tpu.memory_space<vmem>>, vector<1x64x160xf32>
    %27 = vector.shape_cast %26 : vector<1x64x160xf32> to vector<64x160xf32>
    %c0_25 = arith.constant 0 : index
    %c0_26 = arith.constant 0 : index
    %c0_27 = arith.constant 0 : index
    %28 = vector.load %arg12[%c0_25, %c0_26, %c0_27] : memref<6x64x1xf32, #tpu.memory_space<vmem>>, vector<1x64x1xf32>
    %29 = vector.shape_cast %28 : vector<1x64x1xf32> to vector<64x1xf32>
    %cst_28 = arith.constant 0.000000e+00 : f32
    %30 = vector.broadcast %cst_28 : f32 to vector<32x2xf32>
    %31 = tpu.concatenate %30, %24, %30 in 1 : vector<32x2xf32>, vector<32x16xf32>, vector<32x2xf32> -> vector<32x20xf32>
    %32 = vector.extract_strided_slice %31 {offsets = [0, 0], sizes = [32, 16], strides = [1, 1]} : vector<32x20xf32> to vector<32x16xf32>
    %33 = vector.extract_strided_slice %3 {offsets = [0, 0], sizes = [1, 16], strides = [1, 1]} : vector<5x16xf32> to vector<1x16xf32>
    %34 = vector.broadcast %33 : vector<1x16xf32> to vector<32x16xf32>
    %35 = arith.mulf %32, %34 : vector<32x16xf32>
    %36 = vector.extract_strided_slice %31 {offsets = [0, 1], sizes = [32, 16], strides = [1, 1]} : vector<32x20xf32> to vector<32x16xf32>
    %37 = vector.extract_strided_slice %3 {offsets = [1, 0], sizes = [1, 16], strides = [1, 1]} : vector<5x16xf32> to vector<1x16xf32>
    %38 = vector.broadcast %37 : vector<1x16xf32> to vector<32x16xf32>
    %39 = arith.mulf %36, %38 : vector<32x16xf32>
    %40 = vector.extract_strided_slice %31 {offsets = [0, 2], sizes = [32, 16], strides = [1, 1]} : vector<32x20xf32> to vector<32x16xf32>
    %41 = vector.extract_strided_slice %3 {offsets = [2, 0], sizes = [1, 16], strides = [1, 1]} : vector<5x16xf32> to vector<1x16xf32>
    %42 = vector.broadcast %41 : vector<1x16xf32> to vector<32x16xf32>
    %43 = arith.mulf %40, %42 : vector<32x16xf32>
    %44 = vector.extract_strided_slice %31 {offsets = [0, 3], sizes = [32, 16], strides = [1, 1]} : vector<32x20xf32> to vector<32x16xf32>
    %45 = vector.extract_strided_slice %3 {offsets = [3, 0], sizes = [1, 16], strides = [1, 1]} : vector<5x16xf32> to vector<1x16xf32>
    %46 = vector.broadcast %45 : vector<1x16xf32> to vector<32x16xf32>
    %47 = arith.mulf %44, %46 : vector<32x16xf32>
    %48 = vector.extract_strided_slice %31 {offsets = [0, 4], sizes = [32, 16], strides = [1, 1]} : vector<32x20xf32> to vector<32x16xf32>
    %49 = vector.extract_strided_slice %3 {offsets = [4, 0], sizes = [1, 16], strides = [1, 1]} : vector<5x16xf32> to vector<1x16xf32>
    %50 = vector.broadcast %49 : vector<1x16xf32> to vector<32x16xf32>
    %51 = arith.mulf %48, %50 : vector<32x16xf32>
    %52 = tpu.concatenate %35, %39, %43, %47, %51 in 0 : vector<32x16xf32>, vector<32x16xf32>, vector<32x16xf32>, vector<32x16xf32>, vector<32x16xf32> -> vector<160x16xf32>
    %cst_29 = arith.constant dense<0.000000e+00> : vector<64x16xf32>
    %53 = tpu.matmul %27, %52, %cst_29 {dimension_numbers = #tpu.dot_dimension_numbers<[1], [0], [0], [1], [0, 0, 1, 1], [], []>} : vector<64x160xf32>, vector<160x16xf32>, vector<64x16xf32> -> vector<64x16xf32>
    %54 = vector.broadcast %29 : vector<64x1xf32> to vector<64x16xf32>
    %55 = arith.addf %53, %54 : vector<64x16xf32>
    %56 = vector.extract_strided_slice %55 {offsets = [0, 0], sizes = [32, 16], strides = [1, 1]} : vector<64x16xf32> to vector<32x16xf32>
    %57 = math.tanh %56 : vector<32x16xf32>
    %58 = vector.extract_strided_slice %55 {offsets = [32, 0], sizes = [32, 16], strides = [1, 1]} : vector<64x16xf32> to vector<32x16xf32>
    %59 = arith.negf %58 : vector<32x16xf32>
    %60 = math.exp %59 : vector<32x16xf32>
    %cst_30 = arith.constant 1.000000e+00 : f32
    %61 = vector.broadcast %cst_30 : f32 to vector<32x16xf32>
    %62 = arith.addf %61, %60 : vector<32x16xf32>
    %63 = arith.divf %61, %62 : vector<32x16xf32>
    %64 = arith.mulf %57, %63 : vector<32x16xf32>
    %c0_31 = arith.constant 0 : index
    %c0_32 = arith.constant 0 : index
    %c0_33 = arith.constant 0 : index
    %65 = vector.load %arg13[%c0_31, %c0_32, %c0_33] : memref<6x64x32xf32, #tpu.memory_space<vmem>>, vector<1x64x32xf32>
    %66 = vector.shape_cast %65 : vector<1x64x32xf32> to vector<64x32xf32>
    %cst_34 = arith.constant dense<0.000000e+00> : vector<64x16xf32>
    %67 = tpu.matmul %66, %64, %cst_34 {dimension_numbers = #tpu.dot_dimension_numbers<[1], [0], [0], [1], [0, 0, 1, 1], [], []>} : vector<64x32xf32>, vector<32x16xf32>, vector<64x16xf32> -> vector<64x16xf32>
    %c0_35 = arith.constant 0 : index
    %c0_36 = arith.constant 0 : index
    %c0_37 = arith.constant 0 : index
    %68 = vector.load %arg14[%c0_35, %c0_36, %c0_37] : memref<6x64x1xf32, #tpu.memory_space<vmem>>, vector<1x64x1xf32>
    %69 = vector.shape_cast %68 : vector<1x64x1xf32> to vector<64x1xf32>
    %70 = vector.broadcast %69 : vector<64x1xf32> to vector<64x16xf32>
    %71 = arith.addf %67, %70 : vector<64x16xf32>
    %72 = vector.extract_strided_slice %71 {offsets = [0, 0], sizes = [32, 16], strides = [1, 1]} : vector<64x16xf32> to vector<32x16xf32>
    %73 = arith.addf %24, %72 : vector<32x16xf32>
    %74 = vector.broadcast %1 : vector<1x16xf32> to vector<32x16xf32>
    %75 = arith.mulf %73, %74 : vector<32x16xf32>
    %76 = vector.extract_strided_slice %71 {offsets = [32, 0], sizes = [32, 16], strides = [1, 1]} : vector<64x16xf32> to vector<32x16xf32>
    %77 = arith.addf %25, %76 : vector<32x16xf32>
    %c1 = arith.constant 1 : index
    %c0_38 = arith.constant 0 : index
    %c0_39 = arith.constant 0 : index
    %78 = vector.load %arg11[%c1, %c0_38, %c0_39] : memref<6x64x160xf32, #tpu.memory_space<vmem>>, vector<1x64x160xf32>
    %79 = vector.shape_cast %78 : vector<1x64x160xf32> to vector<64x160xf32>
    %c1_40 = arith.constant 1 : index
    %c0_41 = arith.constant 0 : index
    %c0_42 = arith.constant 0 : index
    %80 = vector.load %arg12[%c1_40, %c0_41, %c0_42] : memref<6x64x1xf32, #tpu.memory_space<vmem>>, vector<1x64x1xf32>
    %81 = vector.shape_cast %80 : vector<1x64x1xf32> to vector<64x1xf32>
    %cst_43 = arith.constant 0.000000e+00 : f32
    %82 = vector.broadcast %cst_43 : f32 to vector<32x2xf32>
    %83 = tpu.concatenate %82, %75, %82 in 1 : vector<32x2xf32>, vector<32x16xf32>, vector<32x2xf32> -> vector<32x20xf32>
    %84 = vector.extract_strided_slice %83 {offsets = [0, 0], sizes = [32, 16], strides = [1, 1]} : vector<32x20xf32> to vector<32x16xf32>
    %85 = vector.extract_strided_slice %3 {offsets = [0, 0], sizes = [1, 16], strides = [1, 1]} : vector<5x16xf32> to vector<1x16xf32>
    %86 = vector.broadcast %85 : vector<1x16xf32> to vector<32x16xf32>
    %87 = arith.mulf %84, %86 : vector<32x16xf32>
    %88 = vector.extract_strided_slice %83 {offsets = [0, 1], sizes = [32, 16], strides = [1, 1]} : vector<32x20xf32> to vector<32x16xf32>
    %89 = vector.extract_strided_slice %3 {offsets = [1, 0], sizes = [1, 16], strides = [1, 1]} : vector<5x16xf32> to vector<1x16xf32>
    %90 = vector.broadcast %89 : vector<1x16xf32> to vector<32x16xf32>
    %91 = arith.mulf %88, %90 : vector<32x16xf32>
    %92 = vector.extract_strided_slice %83 {offsets = [0, 2], sizes = [32, 16], strides = [1, 1]} : vector<32x20xf32> to vector<32x16xf32>
    %93 = vector.extract_strided_slice %3 {offsets = [2, 0], sizes = [1, 16], strides = [1, 1]} : vector<5x16xf32> to vector<1x16xf32>
    %94 = vector.broadcast %93 : vector<1x16xf32> to vector<32x16xf32>
    %95 = arith.mulf %92, %94 : vector<32x16xf32>
    %96 = vector.extract_strided_slice %83 {offsets = [0, 3], sizes = [32, 16], strides = [1, 1]} : vector<32x20xf32> to vector<32x16xf32>
    %97 = vector.extract_strided_slice %3 {offsets = [3, 0], sizes = [1, 16], strides = [1, 1]} : vector<5x16xf32> to vector<1x16xf32>
    %98 = vector.broadcast %97 : vector<1x16xf32> to vector<32x16xf32>
    %99 = arith.mulf %96, %98 : vector<32x16xf32>
    %100 = vector.extract_strided_slice %83 {offsets = [0, 4], sizes = [32, 16], strides = [1, 1]} : vector<32x20xf32> to vector<32x16xf32>
    %101 = vector.extract_strided_slice %3 {offsets = [4, 0], sizes = [1, 16], strides = [1, 1]} : vector<5x16xf32> to vector<1x16xf32>
    %102 = vector.broadcast %101 : vector<1x16xf32> to vector<32x16xf32>
    %103 = arith.mulf %100, %102 : vector<32x16xf32>
    %104 = tpu.concatenate %87, %91, %95, %99, %103 in 0 : vector<32x16xf32>, vector<32x16xf32>, vector<32x16xf32>, vector<32x16xf32>, vector<32x16xf32> -> vector<160x16xf32>
    %cst_44 = arith.constant dense<0.000000e+00> : vector<64x16xf32>
    %105 = tpu.matmul %79, %104, %cst_44 {dimension_numbers = #tpu.dot_dimension_numbers<[1], [0], [0], [1], [0, 0, 1, 1], [], []>} : vector<64x160xf32>, vector<160x16xf32>, vector<64x16xf32> -> vector<64x16xf32>
    %106 = vector.broadcast %81 : vector<64x1xf32> to vector<64x16xf32>
    %107 = arith.addf %105, %106 : vector<64x16xf32>
    %108 = vector.extract_strided_slice %107 {offsets = [0, 0], sizes = [32, 16], strides = [1, 1]} : vector<64x16xf32> to vector<32x16xf32>
    %109 = math.tanh %108 : vector<32x16xf32>
    %110 = vector.extract_strided_slice %107 {offsets = [32, 0], sizes = [32, 16], strides = [1, 1]} : vector<64x16xf32> to vector<32x16xf32>
    %111 = arith.negf %110 : vector<32x16xf32>
    %112 = math.exp %111 : vector<32x16xf32>
    %cst_45 = arith.constant 1.000000e+00 : f32
    %113 = vector.broadcast %cst_45 : f32 to vector<32x16xf32>
    %114 = arith.addf %113, %112 : vector<32x16xf32>
    %115 = arith.divf %113, %114 : vector<32x16xf32>
    %116 = arith.mulf %109, %115 : vector<32x16xf32>
    %c1_46 = arith.constant 1 : index
    %c0_47 = arith.constant 0 : index
    %c0_48 = arith.constant 0 : index
    %117 = vector.load %arg13[%c1_46, %c0_47, %c0_48] : memref<6x64x32xf32, #tpu.memory_space<vmem>>, vector<1x64x32xf32>
    %118 = vector.shape_cast %117 : vector<1x64x32xf32> to vector<64x32xf32>
    %cst_49 = arith.constant dense<0.000000e+00> : vector<64x16xf32>
    %119 = tpu.matmul %118, %116, %cst_49 {dimension_numbers = #tpu.dot_dimension_numbers<[1], [0], [0], [1], [0, 0, 1, 1], [], []>} : vector<64x32xf32>, vector<32x16xf32>, vector<64x16xf32> -> vector<64x16xf32>
    %c1_50 = arith.constant 1 : index
    %c0_51 = arith.constant 0 : index
    %c0_52 = arith.constant 0 : index
    %120 = vector.load %arg14[%c1_50, %c0_51, %c0_52] : memref<6x64x1xf32, #tpu.memory_space<vmem>>, vector<1x64x1xf32>
    %121 = vector.shape_cast %120 : vector<1x64x1xf32> to vector<64x1xf32>
    %122 = vector.broadcast %121 : vector<64x1xf32> to vector<64x16xf32>
    %123 = arith.addf %119, %122 : vector<64x16xf32>
    %124 = vector.extract_strided_slice %123 {offsets = [0, 0], sizes = [32, 16], strides = [1, 1]} : vector<64x16xf32> to vector<32x16xf32>
    %125 = arith.addf %77, %124 : vector<32x16xf32>
    %126 = vector.broadcast %1 : vector<1x16xf32> to vector<32x16xf32>
    %127 = arith.mulf %125, %126 : vector<32x16xf32>
    %c0_53 = arith.constant 0 : index
    %c0_54 = arith.constant 0 : index
    %c0_55 = arith.constant 0 : index
    %128 = vector.load %arg9[%c0_53, %c0_54, %c0_55] : memref<3x32x32xf32, #tpu.memory_space<vmem>>, vector<1x32x32xf32>
    %129 = vector.shape_cast %128 : vector<1x32x32xf32> to vector<32x32xf32>
    %cst_56 = arith.constant dense<0.000000e+00> : vector<32x16xf32>
    %130 = tpu.matmul %129, %127, %cst_56 {dimension_numbers = #tpu.dot_dimension_numbers<[1], [0], [0], [1], [0, 0, 1, 1], [], []>} : vector<32x32xf32>, vector<32x16xf32>, vector<32x16xf32> -> vector<32x16xf32>
    %c0_57 = arith.constant 0 : index
    %c0_58 = arith.constant 0 : index
    %c0_59 = arith.constant 0 : index
    %131 = vector.load %arg10[%c0_57, %c0_58, %c0_59] : memref<3x32x1xf32, #tpu.memory_space<vmem>>, vector<1x32x1xf32>
    %132 = vector.shape_cast %131 : vector<1x32x1xf32> to vector<32x1xf32>
    %133 = vector.broadcast %132 : vector<32x1xf32> to vector<32x16xf32>
    %134 = arith.addf %130, %133 : vector<32x16xf32>
    %135 = vector.extract_strided_slice %134 {offsets = [0, 0], sizes = [16, 16], strides = [1, 1]} : vector<32x16xf32> to vector<16x16xf32>
    %136 = vector.extract_strided_slice %134 {offsets = [16, 0], sizes = [16, 16], strides = [1, 1]} : vector<32x16xf32> to vector<16x16xf32>
    %137 = math.exp %136 : vector<16x16xf32>
    %138 = arith.mulf %137, %15 : vector<16x16xf32>
    %139 = arith.addf %135, %138 : vector<16x16xf32>
    %140 = vector.broadcast %1 : vector<1x16xf32> to vector<16x16xf32>
    %141 = arith.mulf %139, %140 : vector<16x16xf32>
    %142 = vector.broadcast %1 : vector<1x16xf32> to vector<16x16xf32>
    %143 = arith.mulf %136, %142 : vector<16x16xf32>
    %cst_60 = arith.constant dense<0.000000e+00> : vector<16xf32>
    %144 = vector.multi_reduction <add>, %143, %cst_60 [0] : vector<16x16xf32> to vector<16xf32>
    %145 = vector.shape_cast %144 : vector<16xf32> to vector<1x16xf32>
    %cst_61 = arith.constant dense<0.000000e+00> : vector<1x2xf32>
    %146 = tpu.matmul %145, %2, %cst_61 {dimension_numbers = #tpu.dot_dimension_numbers<[1], [1], [0], [0], [0, 0, 1, 0], [], []>} : vector<1x16xf32>, vector<2x16xf32>, vector<1x2xf32> -> vector<1x2xf32>
    %147 = arith.addf %4, %146 : vector<1x2xf32>
    %148 = tpu.concatenate %14, %141 in 0 : vector<16x16xf32>, vector<16x16xf32> -> vector<32x16xf32>
    %c1_62 = arith.constant 1 : index
    %c0_63 = arith.constant 0 : index
    %c0_64 = arith.constant 0 : index
    %149 = vector.load %arg5[%c1_62, %c0_63, %c0_64] : memref<3x32x32xf32, #tpu.memory_space<vmem>>, vector<1x32x32xf32>
    %150 = vector.shape_cast %149 : vector<1x32x32xf32> to vector<32x32xf32>
    %cst_65 = arith.constant dense<0.000000e+00> : vector<32x16xf32>
    %151 = tpu.matmul %150, %148, %cst_65 {dimension_numbers = #tpu.dot_dimension_numbers<[1], [0], [0], [1], [0, 0, 1, 1], [], []>} : vector<32x32xf32>, vector<32x16xf32>, vector<32x16xf32> -> vector<32x16xf32>
    %c1_66 = arith.constant 1 : index
    %c0_67 = arith.constant 0 : index
    %c0_68 = arith.constant 0 : index
    %152 = vector.load %arg6[%c1_66, %c0_67, %c0_68] : memref<3x32x1xf32, #tpu.memory_space<vmem>>, vector<1x32x1xf32>
    %153 = vector.shape_cast %152 : vector<1x32x1xf32> to vector<32x1xf32>
    %154 = vector.broadcast %153 : vector<32x1xf32> to vector<32x16xf32>
    %155 = arith.addf %151, %154 : vector<32x16xf32>
    %156 = vector.broadcast %1 : vector<1x16xf32> to vector<32x16xf32>
    %157 = arith.mulf %155, %156 : vector<32x16xf32>
    %158 = vector.extract_strided_slice %157 {offsets = [0, 0], sizes = [16, 16], strides = [1, 1]} : vector<32x16xf32> to vector<16x16xf32>
    %159 = vector.extract_strided_slice %157 {offsets = [16, 0], sizes = [16, 16], strides = [1, 1]} : vector<32x16xf32> to vector<16x16xf32>
    %c1_69 = arith.constant 1 : index
    %c0_70 = arith.constant 0 : index
    %c0_71 = arith.constant 0 : index
    %160 = vector.load %arg7[%c1_69, %c0_70, %c0_71] : memref<3x32x16xf32, #tpu.memory_space<vmem>>, vector<1x32x16xf32>
    %161 = vector.shape_cast %160 : vector<1x32x16xf32> to vector<32x16xf32>
    %cst_72 = arith.constant dense<0.000000e+00> : vector<32x16xf32>
    %162 = tpu.matmul %161, %158, %cst_72 {dimension_numbers = #tpu.dot_dimension_numbers<[1], [0], [0], [1], [0, 0, 1, 1], [], []>} : vector<32x16xf32>, vector<16x16xf32>, vector<32x16xf32> -> vector<32x16xf32>
    %c1_73 = arith.constant 1 : index
    %c0_74 = arith.constant 0 : index
    %c0_75 = arith.constant 0 : index
    %163 = vector.load %arg8[%c1_73, %c0_74, %c0_75] : memref<3x32x1xf32, #tpu.memory_space<vmem>>, vector<1x32x1xf32>
    %164 = vector.shape_cast %163 : vector<1x32x1xf32> to vector<32x1xf32>
    %165 = vector.broadcast %164 : vector<32x1xf32> to vector<32x16xf32>
    %166 = arith.addf %162, %165 : vector<32x16xf32>
    %167 = vector.broadcast %1 : vector<1x16xf32> to vector<32x16xf32>
    %168 = arith.mulf %166, %167 : vector<32x16xf32>
    %cst_76 = arith.constant 0.000000e+00 : f32
    %169 = vector.broadcast %cst_76 : f32 to vector<32x16xf32>
    %c2 = arith.constant 2 : index
    %c0_77 = arith.constant 0 : index
    %c0_78 = arith.constant 0 : index
    %170 = vector.load %arg11[%c2, %c0_77, %c0_78] : memref<6x64x160xf32, #tpu.memory_space<vmem>>, vector<1x64x160xf32>
    %171 = vector.shape_cast %170 : vector<1x64x160xf32> to vector<64x160xf32>
    %c2_79 = arith.constant 2 : index
    %c0_80 = arith.constant 0 : index
    %c0_81 = arith.constant 0 : index
    %172 = vector.load %arg12[%c2_79, %c0_80, %c0_81] : memref<6x64x1xf32, #tpu.memory_space<vmem>>, vector<1x64x1xf32>
    %173 = vector.shape_cast %172 : vector<1x64x1xf32> to vector<64x1xf32>
    %cst_82 = arith.constant 0.000000e+00 : f32
    %174 = vector.broadcast %cst_82 : f32 to vector<32x2xf32>
    %175 = tpu.concatenate %174, %168, %174 in 1 : vector<32x2xf32>, vector<32x16xf32>, vector<32x2xf32> -> vector<32x20xf32>
    %176 = vector.extract_strided_slice %175 {offsets = [0, 0], sizes = [32, 16], strides = [1, 1]} : vector<32x20xf32> to vector<32x16xf32>
    %177 = vector.extract_strided_slice %3 {offsets = [0, 0], sizes = [1, 16], strides = [1, 1]} : vector<5x16xf32> to vector<1x16xf32>
    %178 = vector.broadcast %177 : vector<1x16xf32> to vector<32x16xf32>
    %179 = arith.mulf %176, %178 : vector<32x16xf32>
    %180 = vector.extract_strided_slice %175 {offsets = [0, 1], sizes = [32, 16], strides = [1, 1]} : vector<32x20xf32> to vector<32x16xf32>
    %181 = vector.extract_strided_slice %3 {offsets = [1, 0], sizes = [1, 16], strides = [1, 1]} : vector<5x16xf32> to vector<1x16xf32>
    %182 = vector.broadcast %181 : vector<1x16xf32> to vector<32x16xf32>
    %183 = arith.mulf %180, %182 : vector<32x16xf32>
    %184 = vector.extract_strided_slice %175 {offsets = [0, 2], sizes = [32, 16], strides = [1, 1]} : vector<32x20xf32> to vector<32x16xf32>
    %185 = vector.extract_strided_slice %3 {offsets = [2, 0], sizes = [1, 16], strides = [1, 1]} : vector<5x16xf32> to vector<1x16xf32>
    %186 = vector.broadcast %185 : vector<1x16xf32> to vector<32x16xf32>
    %187 = arith.mulf %184, %186 : vector<32x16xf32>
    %188 = vector.extract_strided_slice %175 {offsets = [0, 3], sizes = [32, 16], strides = [1, 1]} : vector<32x20xf32> to vector<32x16xf32>
    %189 = vector.extract_strided_slice %3 {offsets = [3, 0], sizes = [1, 16], strides = [1, 1]} : vector<5x16xf32> to vector<1x16xf32>
    %190 = vector.broadcast %189 : vector<1x16xf32> to vector<32x16xf32>
    %191 = arith.mulf %188, %190 : vector<32x16xf32>
    %192 = vector.extract_strided_slice %175 {offsets = [0, 4], sizes = [32, 16], strides = [1, 1]} : vector<32x20xf32> to vector<32x16xf32>
    %193 = vector.extract_strided_slice %3 {offsets = [4, 0], sizes = [1, 16], strides = [1, 1]} : vector<5x16xf32> to vector<1x16xf32>
    %194 = vector.broadcast %193 : vector<1x16xf32> to vector<32x16xf32>
    %195 = arith.mulf %192, %194 : vector<32x16xf32>
    %196 = tpu.concatenate %179, %183, %187, %191, %195 in 0 : vector<32x16xf32>, vector<32x16xf32>, vector<32x16xf32>, vector<32x16xf32>, vector<32x16xf32> -> vector<160x16xf32>
    %cst_83 = arith.constant dense<0.000000e+00> : vector<64x16xf32>
    %197 = tpu.matmul %171, %196, %cst_83 {dimension_numbers = #tpu.dot_dimension_numbers<[1], [0], [0], [1], [0, 0, 1, 1], [], []>} : vector<64x160xf32>, vector<160x16xf32>, vector<64x16xf32> -> vector<64x16xf32>
    %198 = vector.broadcast %173 : vector<64x1xf32> to vector<64x16xf32>
    %199 = arith.addf %197, %198 : vector<64x16xf32>
    %200 = vector.extract_strided_slice %199 {offsets = [0, 0], sizes = [32, 16], strides = [1, 1]} : vector<64x16xf32> to vector<32x16xf32>
    %201 = math.tanh %200 : vector<32x16xf32>
    %202 = vector.extract_strided_slice %199 {offsets = [32, 0], sizes = [32, 16], strides = [1, 1]} : vector<64x16xf32> to vector<32x16xf32>
    %203 = arith.negf %202 : vector<32x16xf32>
    %204 = math.exp %203 : vector<32x16xf32>
    %cst_84 = arith.constant 1.000000e+00 : f32
    %205 = vector.broadcast %cst_84 : f32 to vector<32x16xf32>
    %206 = arith.addf %205, %204 : vector<32x16xf32>
    %207 = arith.divf %205, %206 : vector<32x16xf32>
    %208 = arith.mulf %201, %207 : vector<32x16xf32>
    %c2_85 = arith.constant 2 : index
    %c0_86 = arith.constant 0 : index
    %c0_87 = arith.constant 0 : index
    %209 = vector.load %arg13[%c2_85, %c0_86, %c0_87] : memref<6x64x32xf32, #tpu.memory_space<vmem>>, vector<1x64x32xf32>
    %210 = vector.shape_cast %209 : vector<1x64x32xf32> to vector<64x32xf32>
    %cst_88 = arith.constant dense<0.000000e+00> : vector<64x16xf32>
    %211 = tpu.matmul %210, %208, %cst_88 {dimension_numbers = #tpu.dot_dimension_numbers<[1], [0], [0], [1], [0, 0, 1, 1], [], []>} : vector<64x32xf32>, vector<32x16xf32>, vector<64x16xf32> -> vector<64x16xf32>
    %c2_89 = arith.constant 2 : index
    %c0_90 = arith.constant 0 : index
    %c0_91 = arith.constant 0 : index
    %212 = vector.load %arg14[%c2_89, %c0_90, %c0_91] : memref<6x64x1xf32, #tpu.memory_space<vmem>>, vector<1x64x1xf32>
    %213 = vector.shape_cast %212 : vector<1x64x1xf32> to vector<64x1xf32>
    %214 = vector.broadcast %213 : vector<64x1xf32> to vector<64x16xf32>
    %215 = arith.addf %211, %214 : vector<64x16xf32>
    %216 = vector.extract_strided_slice %215 {offsets = [0, 0], sizes = [32, 16], strides = [1, 1]} : vector<64x16xf32> to vector<32x16xf32>
    %217 = arith.addf %168, %216 : vector<32x16xf32>
    %218 = vector.broadcast %1 : vector<1x16xf32> to vector<32x16xf32>
    %219 = arith.mulf %217, %218 : vector<32x16xf32>
    %220 = vector.extract_strided_slice %215 {offsets = [32, 0], sizes = [32, 16], strides = [1, 1]} : vector<64x16xf32> to vector<32x16xf32>
    %221 = arith.addf %169, %220 : vector<32x16xf32>
    %c3 = arith.constant 3 : index
    %c0_92 = arith.constant 0 : index
    %c0_93 = arith.constant 0 : index
    %222 = vector.load %arg11[%c3, %c0_92, %c0_93] : memref<6x64x160xf32, #tpu.memory_space<vmem>>, vector<1x64x160xf32>
    %223 = vector.shape_cast %222 : vector<1x64x160xf32> to vector<64x160xf32>
    %c3_94 = arith.constant 3 : index
    %c0_95 = arith.constant 0 : index
    %c0_96 = arith.constant 0 : index
    %224 = vector.load %arg12[%c3_94, %c0_95, %c0_96] : memref<6x64x1xf32, #tpu.memory_space<vmem>>, vector<1x64x1xf32>
    %225 = vector.shape_cast %224 : vector<1x64x1xf32> to vector<64x1xf32>
    %cst_97 = arith.constant 0.000000e+00 : f32
    %226 = vector.broadcast %cst_97 : f32 to vector<32x2xf32>
    %227 = tpu.concatenate %226, %219, %226 in 1 : vector<32x2xf32>, vector<32x16xf32>, vector<32x2xf32> -> vector<32x20xf32>
    %228 = vector.extract_strided_slice %227 {offsets = [0, 0], sizes = [32, 16], strides = [1, 1]} : vector<32x20xf32> to vector<32x16xf32>
    %229 = vector.extract_strided_slice %3 {offsets = [0, 0], sizes = [1, 16], strides = [1, 1]} : vector<5x16xf32> to vector<1x16xf32>
    %230 = vector.broadcast %229 : vector<1x16xf32> to vector<32x16xf32>
    %231 = arith.mulf %228, %230 : vector<32x16xf32>
    %232 = vector.extract_strided_slice %227 {offsets = [0, 1], sizes = [32, 16], strides = [1, 1]} : vector<32x20xf32> to vector<32x16xf32>
    %233 = vector.extract_strided_slice %3 {offsets = [1, 0], sizes = [1, 16], strides = [1, 1]} : vector<5x16xf32> to vector<1x16xf32>
    %234 = vector.broadcast %233 : vector<1x16xf32> to vector<32x16xf32>
    %235 = arith.mulf %232, %234 : vector<32x16xf32>
    %236 = vector.extract_strided_slice %227 {offsets = [0, 2], sizes = [32, 16], strides = [1, 1]} : vector<32x20xf32> to vector<32x16xf32>
    %237 = vector.extract_strided_slice %3 {offsets = [2, 0], sizes = [1, 16], strides = [1, 1]} : vector<5x16xf32> to vector<1x16xf32>
    %238 = vector.broadcast %237 : vector<1x16xf32> to vector<32x16xf32>
    %239 = arith.mulf %236, %238 : vector<32x16xf32>
    %240 = vector.extract_strided_slice %227 {offsets = [0, 3], sizes = [32, 16], strides = [1, 1]} : vector<32x20xf32> to vector<32x16xf32>
    %241 = vector.extract_strided_slice %3 {offsets = [3, 0], sizes = [1, 16], strides = [1, 1]} : vector<5x16xf32> to vector<1x16xf32>
    %242 = vector.broadcast %241 : vector<1x16xf32> to vector<32x16xf32>
    %243 = arith.mulf %240, %242 : vector<32x16xf32>
    %244 = vector.extract_strided_slice %227 {offsets = [0, 4], sizes = [32, 16], strides = [1, 1]} : vector<32x20xf32> to vector<32x16xf32>
    %245 = vector.extract_strided_slice %3 {offsets = [4, 0], sizes = [1, 16], strides = [1, 1]} : vector<5x16xf32> to vector<1x16xf32>
    %246 = vector.broadcast %245 : vector<1x16xf32> to vector<32x16xf32>
    %247 = arith.mulf %244, %246 : vector<32x16xf32>
    %248 = tpu.concatenate %231, %235, %239, %243, %247 in 0 : vector<32x16xf32>, vector<32x16xf32>, vector<32x16xf32>, vector<32x16xf32>, vector<32x16xf32> -> vector<160x16xf32>
    %cst_98 = arith.constant dense<0.000000e+00> : vector<64x16xf32>
    %249 = tpu.matmul %223, %248, %cst_98 {dimension_numbers = #tpu.dot_dimension_numbers<[1], [0], [0], [1], [0, 0, 1, 1], [], []>} : vector<64x160xf32>, vector<160x16xf32>, vector<64x16xf32> -> vector<64x16xf32>
    %250 = vector.broadcast %225 : vector<64x1xf32> to vector<64x16xf32>
    %251 = arith.addf %249, %250 : vector<64x16xf32>
    %252 = vector.extract_strided_slice %251 {offsets = [0, 0], sizes = [32, 16], strides = [1, 1]} : vector<64x16xf32> to vector<32x16xf32>
    %253 = math.tanh %252 : vector<32x16xf32>
    %254 = vector.extract_strided_slice %251 {offsets = [32, 0], sizes = [32, 16], strides = [1, 1]} : vector<64x16xf32> to vector<32x16xf32>
    %255 = arith.negf %254 : vector<32x16xf32>
    %256 = math.exp %255 : vector<32x16xf32>
    %cst_99 = arith.constant 1.000000e+00 : f32
    %257 = vector.broadcast %cst_99 : f32 to vector<32x16xf32>
    %258 = arith.addf %257, %256 : vector<32x16xf32>
    %259 = arith.divf %257, %258 : vector<32x16xf32>
    %260 = arith.mulf %253, %259 : vector<32x16xf32>
    %c3_100 = arith.constant 3 : index
    %c0_101 = arith.constant 0 : index
    %c0_102 = arith.constant 0 : index
    %261 = vector.load %arg13[%c3_100, %c0_101, %c0_102] : memref<6x64x32xf32, #tpu.memory_space<vmem>>, vector<1x64x32xf32>
    %262 = vector.shape_cast %261 : vector<1x64x32xf32> to vector<64x32xf32>
    %cst_103 = arith.constant dense<0.000000e+00> : vector<64x16xf32>
    %263 = tpu.matmul %262, %260, %cst_103 {dimension_numbers = #tpu.dot_dimension_numbers<[1], [0], [0], [1], [0, 0, 1, 1], [], []>} : vector<64x32xf32>, vector<32x16xf32>, vector<64x16xf32> -> vector<64x16xf32>
    %c3_104 = arith.constant 3 : index
    %c0_105 = arith.constant 0 : index
    %c0_106 = arith.constant 0 : index
    %264 = vector.load %arg14[%c3_104, %c0_105, %c0_106] : memref<6x64x1xf32, #tpu.memory_space<vmem>>, vector<1x64x1xf32>
    %265 = vector.shape_cast %264 : vector<1x64x1xf32> to vector<64x1xf32>
    %266 = vector.broadcast %265 : vector<64x1xf32> to vector<64x16xf32>
    %267 = arith.addf %263, %266 : vector<64x16xf32>
    %268 = vector.extract_strided_slice %267 {offsets = [0, 0], sizes = [32, 16], strides = [1, 1]} : vector<64x16xf32> to vector<32x16xf32>
    %269 = arith.addf %221, %268 : vector<32x16xf32>
    %270 = vector.broadcast %1 : vector<1x16xf32> to vector<32x16xf32>
    %271 = arith.mulf %269, %270 : vector<32x16xf32>
    %c1_107 = arith.constant 1 : index
    %c0_108 = arith.constant 0 : index
    %c0_109 = arith.constant 0 : index
    %272 = vector.load %arg9[%c1_107, %c0_108, %c0_109] : memref<3x32x32xf32, #tpu.memory_space<vmem>>, vector<1x32x32xf32>
    %273 = vector.shape_cast %272 : vector<1x32x32xf32> to vector<32x32xf32>
    %cst_110 = arith.constant dense<0.000000e+00> : vector<32x16xf32>
    %274 = tpu.matmul %273, %271, %cst_110 {dimension_numbers = #tpu.dot_dimension_numbers<[1], [0], [0], [1], [0, 0, 1, 1], [], []>} : vector<32x32xf32>, vector<32x16xf32>, vector<32x16xf32> -> vector<32x16xf32>
    %c1_111 = arith.constant 1 : index
    %c0_112 = arith.constant 0 : index
    %c0_113 = arith.constant 0 : index
    %275 = vector.load %arg10[%c1_111, %c0_112, %c0_113] : memref<3x32x1xf32, #tpu.memory_space<vmem>>, vector<1x32x1xf32>
    %276 = vector.shape_cast %275 : vector<1x32x1xf32> to vector<32x1xf32>
    %277 = vector.broadcast %276 : vector<32x1xf32> to vector<32x16xf32>
    %278 = arith.addf %274, %277 : vector<32x16xf32>
    %279 = vector.extract_strided_slice %278 {offsets = [0, 0], sizes = [16, 16], strides = [1, 1]} : vector<32x16xf32> to vector<16x16xf32>
    %280 = vector.extract_strided_slice %278 {offsets = [16, 0], sizes = [16, 16], strides = [1, 1]} : vector<32x16xf32> to vector<16x16xf32>
    %281 = math.exp %280 : vector<16x16xf32>
    %282 = arith.mulf %281, %159 : vector<16x16xf32>
    %283 = arith.addf %279, %282 : vector<16x16xf32>
    %284 = vector.broadcast %1 : vector<1x16xf32> to vector<16x16xf32>
    %285 = arith.mulf %283, %284 : vector<16x16xf32>
    %286 = vector.broadcast %1 : vector<1x16xf32> to vector<16x16xf32>
    %287 = arith.mulf %280, %286 : vector<16x16xf32>
    %cst_114 = arith.constant dense<0.000000e+00> : vector<16xf32>
    %288 = vector.multi_reduction <add>, %287, %cst_114 [0] : vector<16x16xf32> to vector<16xf32>
    %289 = vector.shape_cast %288 : vector<16xf32> to vector<1x16xf32>
    %cst_115 = arith.constant dense<0.000000e+00> : vector<1x2xf32>
    %290 = tpu.matmul %289, %2, %cst_115 {dimension_numbers = #tpu.dot_dimension_numbers<[1], [1], [0], [0], [0, 0, 1, 0], [], []>} : vector<1x16xf32>, vector<2x16xf32>, vector<1x2xf32> -> vector<1x2xf32>
    %291 = arith.addf %147, %290 : vector<1x2xf32>
    %292 = tpu.concatenate %158, %285 in 0 : vector<16x16xf32>, vector<16x16xf32> -> vector<32x16xf32>
    %c2_116 = arith.constant 2 : index
    %c0_117 = arith.constant 0 : index
    %c0_118 = arith.constant 0 : index
    %293 = vector.load %arg5[%c2_116, %c0_117, %c0_118] : memref<3x32x32xf32, #tpu.memory_space<vmem>>, vector<1x32x32xf32>
    %294 = vector.shape_cast %293 : vector<1x32x32xf32> to vector<32x32xf32>
    %cst_119 = arith.constant dense<0.000000e+00> : vector<32x16xf32>
    %295 = tpu.matmul %294, %292, %cst_119 {dimension_numbers = #tpu.dot_dimension_numbers<[1], [0], [0], [1], [0, 0, 1, 1], [], []>} : vector<32x32xf32>, vector<32x16xf32>, vector<32x16xf32> -> vector<32x16xf32>
    %c2_120 = arith.constant 2 : index
    %c0_121 = arith.constant 0 : index
    %c0_122 = arith.constant 0 : index
    %296 = vector.load %arg6[%c2_120, %c0_121, %c0_122] : memref<3x32x1xf32, #tpu.memory_space<vmem>>, vector<1x32x1xf32>
    %297 = vector.shape_cast %296 : vector<1x32x1xf32> to vector<32x1xf32>
    %298 = vector.broadcast %297 : vector<32x1xf32> to vector<32x16xf32>
    %299 = arith.addf %295, %298 : vector<32x16xf32>
    %300 = vector.broadcast %1 : vector<1x16xf32> to vector<32x16xf32>
    %301 = arith.mulf %299, %300 : vector<32x16xf32>
    %302 = vector.extract_strided_slice %301 {offsets = [0, 0], sizes = [16, 16], strides = [1, 1]} : vector<32x16xf32> to vector<16x16xf32>
    %303 = vector.extract_strided_slice %301 {offsets = [16, 0], sizes = [16, 16], strides = [1, 1]} : vector<32x16xf32> to vector<16x16xf32>
    %c2_123 = arith.constant 2 : index
    %c0_124 = arith.constant 0 : index
    %c0_125 = arith.constant 0 : index
    %304 = vector.load %arg7[%c2_123, %c0_124, %c0_125] : memref<3x32x16xf32, #tpu.memory_space<vmem>>, vector<1x32x16xf32>
    %305 = vector.shape_cast %304 : vector<1x32x16xf32> to vector<32x16xf32>
    %cst_126 = arith.constant dense<0.000000e+00> : vector<32x16xf32>
    %306 = tpu.matmul %305, %302, %cst_126 {dimension_numbers = #tpu.dot_dimension_numbers<[1], [0], [0], [1], [0, 0, 1, 1], [], []>} : vector<32x16xf32>, vector<16x16xf32>, vector<32x16xf32> -> vector<32x16xf32>
    %c2_127 = arith.constant 2 : index
    %c0_128 = arith.constant 0 : index
    %c0_129 = arith.constant 0 : index
    %307 = vector.load %arg8[%c2_127, %c0_128, %c0_129] : memref<3x32x1xf32, #tpu.memory_space<vmem>>, vector<1x32x1xf32>
    %308 = vector.shape_cast %307 : vector<1x32x1xf32> to vector<32x1xf32>
    %309 = vector.broadcast %308 : vector<32x1xf32> to vector<32x16xf32>
    %310 = arith.addf %306, %309 : vector<32x16xf32>
    %311 = vector.broadcast %1 : vector<1x16xf32> to vector<32x16xf32>
    %312 = arith.mulf %310, %311 : vector<32x16xf32>
    %cst_130 = arith.constant 0.000000e+00 : f32
    %313 = vector.broadcast %cst_130 : f32 to vector<32x16xf32>
    %c4 = arith.constant 4 : index
    %c0_131 = arith.constant 0 : index
    %c0_132 = arith.constant 0 : index
    %314 = vector.load %arg11[%c4, %c0_131, %c0_132] : memref<6x64x160xf32, #tpu.memory_space<vmem>>, vector<1x64x160xf32>
    %315 = vector.shape_cast %314 : vector<1x64x160xf32> to vector<64x160xf32>
    %c4_133 = arith.constant 4 : index
    %c0_134 = arith.constant 0 : index
    %c0_135 = arith.constant 0 : index
    %316 = vector.load %arg12[%c4_133, %c0_134, %c0_135] : memref<6x64x1xf32, #tpu.memory_space<vmem>>, vector<1x64x1xf32>
    %317 = vector.shape_cast %316 : vector<1x64x1xf32> to vector<64x1xf32>
    %cst_136 = arith.constant 0.000000e+00 : f32
    %318 = vector.broadcast %cst_136 : f32 to vector<32x2xf32>
    %319 = tpu.concatenate %318, %312, %318 in 1 : vector<32x2xf32>, vector<32x16xf32>, vector<32x2xf32> -> vector<32x20xf32>
    %320 = vector.extract_strided_slice %319 {offsets = [0, 0], sizes = [32, 16], strides = [1, 1]} : vector<32x20xf32> to vector<32x16xf32>
    %321 = vector.extract_strided_slice %3 {offsets = [0, 0], sizes = [1, 16], strides = [1, 1]} : vector<5x16xf32> to vector<1x16xf32>
    %322 = vector.broadcast %321 : vector<1x16xf32> to vector<32x16xf32>
    %323 = arith.mulf %320, %322 : vector<32x16xf32>
    %324 = vector.extract_strided_slice %319 {offsets = [0, 1], sizes = [32, 16], strides = [1, 1]} : vector<32x20xf32> to vector<32x16xf32>
    %325 = vector.extract_strided_slice %3 {offsets = [1, 0], sizes = [1, 16], strides = [1, 1]} : vector<5x16xf32> to vector<1x16xf32>
    %326 = vector.broadcast %325 : vector<1x16xf32> to vector<32x16xf32>
    %327 = arith.mulf %324, %326 : vector<32x16xf32>
    %328 = vector.extract_strided_slice %319 {offsets = [0, 2], sizes = [32, 16], strides = [1, 1]} : vector<32x20xf32> to vector<32x16xf32>
    %329 = vector.extract_strided_slice %3 {offsets = [2, 0], sizes = [1, 16], strides = [1, 1]} : vector<5x16xf32> to vector<1x16xf32>
    %330 = vector.broadcast %329 : vector<1x16xf32> to vector<32x16xf32>
    %331 = arith.mulf %328, %330 : vector<32x16xf32>
    %332 = vector.extract_strided_slice %319 {offsets = [0, 3], sizes = [32, 16], strides = [1, 1]} : vector<32x20xf32> to vector<32x16xf32>
    %333 = vector.extract_strided_slice %3 {offsets = [3, 0], sizes = [1, 16], strides = [1, 1]} : vector<5x16xf32> to vector<1x16xf32>
    %334 = vector.broadcast %333 : vector<1x16xf32> to vector<32x16xf32>
    %335 = arith.mulf %332, %334 : vector<32x16xf32>
    %336 = vector.extract_strided_slice %319 {offsets = [0, 4], sizes = [32, 16], strides = [1, 1]} : vector<32x20xf32> to vector<32x16xf32>
    %337 = vector.extract_strided_slice %3 {offsets = [4, 0], sizes = [1, 16], strides = [1, 1]} : vector<5x16xf32> to vector<1x16xf32>
    %338 = vector.broadcast %337 : vector<1x16xf32> to vector<32x16xf32>
    %339 = arith.mulf %336, %338 : vector<32x16xf32>
    %340 = tpu.concatenate %323, %327, %331, %335, %339 in 0 : vector<32x16xf32>, vector<32x16xf32>, vector<32x16xf32>, vector<32x16xf32>, vector<32x16xf32> -> vector<160x16xf32>
    %cst_137 = arith.constant dense<0.000000e+00> : vector<64x16xf32>
    %341 = tpu.matmul %315, %340, %cst_137 {dimension_numbers = #tpu.dot_dimension_numbers<[1], [0], [0], [1], [0, 0, 1, 1], [], []>} : vector<64x160xf32>, vector<160x16xf32>, vector<64x16xf32> -> vector<64x16xf32>
    %342 = vector.broadcast %317 : vector<64x1xf32> to vector<64x16xf32>
    %343 = arith.addf %341, %342 : vector<64x16xf32>
    %344 = vector.extract_strided_slice %343 {offsets = [0, 0], sizes = [32, 16], strides = [1, 1]} : vector<64x16xf32> to vector<32x16xf32>
    %345 = math.tanh %344 : vector<32x16xf32>
    %346 = vector.extract_strided_slice %343 {offsets = [32, 0], sizes = [32, 16], strides = [1, 1]} : vector<64x16xf32> to vector<32x16xf32>
    %347 = arith.negf %346 : vector<32x16xf32>
    %348 = math.exp %347 : vector<32x16xf32>
    %cst_138 = arith.constant 1.000000e+00 : f32
    %349 = vector.broadcast %cst_138 : f32 to vector<32x16xf32>
    %350 = arith.addf %349, %348 : vector<32x16xf32>
    %351 = arith.divf %349, %350 : vector<32x16xf32>
    %352 = arith.mulf %345, %351 : vector<32x16xf32>
    %c4_139 = arith.constant 4 : index
    %c0_140 = arith.constant 0 : index
    %c0_141 = arith.constant 0 : index
    %353 = vector.load %arg13[%c4_139, %c0_140, %c0_141] : memref<6x64x32xf32, #tpu.memory_space<vmem>>, vector<1x64x32xf32>
    %354 = vector.shape_cast %353 : vector<1x64x32xf32> to vector<64x32xf32>
    %cst_142 = arith.constant dense<0.000000e+00> : vector<64x16xf32>
    %355 = tpu.matmul %354, %352, %cst_142 {dimension_numbers = #tpu.dot_dimension_numbers<[1], [0], [0], [1], [0, 0, 1, 1], [], []>} : vector<64x32xf32>, vector<32x16xf32>, vector<64x16xf32> -> vector<64x16xf32>
    %c4_143 = arith.constant 4 : index
    %c0_144 = arith.constant 0 : index
    %c0_145 = arith.constant 0 : index
    %356 = vector.load %arg14[%c4_143, %c0_144, %c0_145] : memref<6x64x1xf32, #tpu.memory_space<vmem>>, vector<1x64x1xf32>
    %357 = vector.shape_cast %356 : vector<1x64x1xf32> to vector<64x1xf32>
    %358 = vector.broadcast %357 : vector<64x1xf32> to vector<64x16xf32>
    %359 = arith.addf %355, %358 : vector<64x16xf32>
    %360 = vector.extract_strided_slice %359 {offsets = [0, 0], sizes = [32, 16], strides = [1, 1]} : vector<64x16xf32> to vector<32x16xf32>
    %361 = arith.addf %312, %360 : vector<32x16xf32>
    %362 = vector.broadcast %1 : vector<1x16xf32> to vector<32x16xf32>
    %363 = arith.mulf %361, %362 : vector<32x16xf32>
    %364 = vector.extract_strided_slice %359 {offsets = [32, 0], sizes = [32, 16], strides = [1, 1]} : vector<64x16xf32> to vector<32x16xf32>
    %365 = arith.addf %313, %364 : vector<32x16xf32>
    %c5 = arith.constant 5 : index
    %c0_146 = arith.constant 0 : index
    %c0_147 = arith.constant 0 : index
    %366 = vector.load %arg11[%c5, %c0_146, %c0_147] : memref<6x64x160xf32, #tpu.memory_space<vmem>>, vector<1x64x160xf32>
    %367 = vector.shape_cast %366 : vector<1x64x160xf32> to vector<64x160xf32>
    %c5_148 = arith.constant 5 : index
    %c0_149 = arith.constant 0 : index
    %c0_150 = arith.constant 0 : index
    %368 = vector.load %arg12[%c5_148, %c0_149, %c0_150] : memref<6x64x1xf32, #tpu.memory_space<vmem>>, vector<1x64x1xf32>
    %369 = vector.shape_cast %368 : vector<1x64x1xf32> to vector<64x1xf32>
    %cst_151 = arith.constant 0.000000e+00 : f32
    %370 = vector.broadcast %cst_151 : f32 to vector<32x2xf32>
    %371 = tpu.concatenate %370, %363, %370 in 1 : vector<32x2xf32>, vector<32x16xf32>, vector<32x2xf32> -> vector<32x20xf32>
    %372 = vector.extract_strided_slice %371 {offsets = [0, 0], sizes = [32, 16], strides = [1, 1]} : vector<32x20xf32> to vector<32x16xf32>
    %373 = vector.extract_strided_slice %3 {offsets = [0, 0], sizes = [1, 16], strides = [1, 1]} : vector<5x16xf32> to vector<1x16xf32>
    %374 = vector.broadcast %373 : vector<1x16xf32> to vector<32x16xf32>
    %375 = arith.mulf %372, %374 : vector<32x16xf32>
    %376 = vector.extract_strided_slice %371 {offsets = [0, 1], sizes = [32, 16], strides = [1, 1]} : vector<32x20xf32> to vector<32x16xf32>
    %377 = vector.extract_strided_slice %3 {offsets = [1, 0], sizes = [1, 16], strides = [1, 1]} : vector<5x16xf32> to vector<1x16xf32>
    %378 = vector.broadcast %377 : vector<1x16xf32> to vector<32x16xf32>
    %379 = arith.mulf %376, %378 : vector<32x16xf32>
    %380 = vector.extract_strided_slice %371 {offsets = [0, 2], sizes = [32, 16], strides = [1, 1]} : vector<32x20xf32> to vector<32x16xf32>
    %381 = vector.extract_strided_slice %3 {offsets = [2, 0], sizes = [1, 16], strides = [1, 1]} : vector<5x16xf32> to vector<1x16xf32>
    %382 = vector.broadcast %381 : vector<1x16xf32> to vector<32x16xf32>
    %383 = arith.mulf %380, %382 : vector<32x16xf32>
    %384 = vector.extract_strided_slice %371 {offsets = [0, 3], sizes = [32, 16], strides = [1, 1]} : vector<32x20xf32> to vector<32x16xf32>
    %385 = vector.extract_strided_slice %3 {offsets = [3, 0], sizes = [1, 16], strides = [1, 1]} : vector<5x16xf32> to vector<1x16xf32>
    %386 = vector.broadcast %385 : vector<1x16xf32> to vector<32x16xf32>
    %387 = arith.mulf %384, %386 : vector<32x16xf32>
    %388 = vector.extract_strided_slice %371 {offsets = [0, 4], sizes = [32, 16], strides = [1, 1]} : vector<32x20xf32> to vector<32x16xf32>
    %389 = vector.extract_strided_slice %3 {offsets = [4, 0], sizes = [1, 16], strides = [1, 1]} : vector<5x16xf32> to vector<1x16xf32>
    %390 = vector.broadcast %389 : vector<1x16xf32> to vector<32x16xf32>
    %391 = arith.mulf %388, %390 : vector<32x16xf32>
    %392 = tpu.concatenate %375, %379, %383, %387, %391 in 0 : vector<32x16xf32>, vector<32x16xf32>, vector<32x16xf32>, vector<32x16xf32>, vector<32x16xf32> -> vector<160x16xf32>
    %cst_152 = arith.constant dense<0.000000e+00> : vector<64x16xf32>
    %393 = tpu.matmul %367, %392, %cst_152 {dimension_numbers = #tpu.dot_dimension_numbers<[1], [0], [0], [1], [0, 0, 1, 1], [], []>} : vector<64x160xf32>, vector<160x16xf32>, vector<64x16xf32> -> vector<64x16xf32>
    %394 = vector.broadcast %369 : vector<64x1xf32> to vector<64x16xf32>
    %395 = arith.addf %393, %394 : vector<64x16xf32>
    %396 = vector.extract_strided_slice %395 {offsets = [0, 0], sizes = [32, 16], strides = [1, 1]} : vector<64x16xf32> to vector<32x16xf32>
    %397 = math.tanh %396 : vector<32x16xf32>
    %398 = vector.extract_strided_slice %395 {offsets = [32, 0], sizes = [32, 16], strides = [1, 1]} : vector<64x16xf32> to vector<32x16xf32>
    %399 = arith.negf %398 : vector<32x16xf32>
    %400 = math.exp %399 : vector<32x16xf32>
    %cst_153 = arith.constant 1.000000e+00 : f32
    %401 = vector.broadcast %cst_153 : f32 to vector<32x16xf32>
    %402 = arith.addf %401, %400 : vector<32x16xf32>
    %403 = arith.divf %401, %402 : vector<32x16xf32>
    %404 = arith.mulf %397, %403 : vector<32x16xf32>
    %c5_154 = arith.constant 5 : index
    %c0_155 = arith.constant 0 : index
    %c0_156 = arith.constant 0 : index
    %405 = vector.load %arg13[%c5_154, %c0_155, %c0_156] : memref<6x64x32xf32, #tpu.memory_space<vmem>>, vector<1x64x32xf32>
    %406 = vector.shape_cast %405 : vector<1x64x32xf32> to vector<64x32xf32>
    %cst_157 = arith.constant dense<0.000000e+00> : vector<64x16xf32>
    %407 = tpu.matmul %406, %404, %cst_157 {dimension_numbers = #tpu.dot_dimension_numbers<[1], [0], [0], [1], [0, 0, 1, 1], [], []>} : vector<64x32xf32>, vector<32x16xf32>, vector<64x16xf32> -> vector<64x16xf32>
    %c5_158 = arith.constant 5 : index
    %c0_159 = arith.constant 0 : index
    %c0_160 = arith.constant 0 : index
    %408 = vector.load %arg14[%c5_158, %c0_159, %c0_160] : memref<6x64x1xf32, #tpu.memory_space<vmem>>, vector<1x64x1xf32>
    %409 = vector.shape_cast %408 : vector<1x64x1xf32> to vector<64x1xf32>
    %410 = vector.broadcast %409 : vector<64x1xf32> to vector<64x16xf32>
    %411 = arith.addf %407, %410 : vector<64x16xf32>
    %412 = vector.extract_strided_slice %411 {offsets = [0, 0], sizes = [32, 16], strides = [1, 1]} : vector<64x16xf32> to vector<32x16xf32>
    %413 = arith.addf %365, %412 : vector<32x16xf32>
    %414 = vector.broadcast %1 : vector<1x16xf32> to vector<32x16xf32>
    %415 = arith.mulf %413, %414 : vector<32x16xf32>
    %c2_161 = arith.constant 2 : index
    %c0_162 = arith.constant 0 : index
    %c0_163 = arith.constant 0 : index
    %416 = vector.load %arg9[%c2_161, %c0_162, %c0_163] : memref<3x32x32xf32, #tpu.memory_space<vmem>>, vector<1x32x32xf32>
    %417 = vector.shape_cast %416 : vector<1x32x32xf32> to vector<32x32xf32>
    %cst_164 = arith.constant dense<0.000000e+00> : vector<32x16xf32>
    %418 = tpu.matmul %417, %415, %cst_164 {dimension_numbers = #tpu.dot_dimension_numbers<[1], [0], [0], [1], [0, 0, 1, 1], [], []>} : vector<32x32xf32>, vector<32x16xf32>, vector<32x16xf32> -> vector<32x16xf32>
    %c2_165 = arith.constant 2 : index
    %c0_166 = arith.constant 0 : index
    %c0_167 = arith.constant 0 : index
    %419 = vector.load %arg10[%c2_165, %c0_166, %c0_167] : memref<3x32x1xf32, #tpu.memory_space<vmem>>, vector<1x32x1xf32>
    %420 = vector.shape_cast %419 : vector<1x32x1xf32> to vector<32x1xf32>
    %421 = vector.broadcast %420 : vector<32x1xf32> to vector<32x16xf32>
    %422 = arith.addf %418, %421 : vector<32x16xf32>
    %423 = vector.extract_strided_slice %422 {offsets = [0, 0], sizes = [16, 16], strides = [1, 1]} : vector<32x16xf32> to vector<16x16xf32>
    %424 = vector.extract_strided_slice %422 {offsets = [16, 0], sizes = [16, 16], strides = [1, 1]} : vector<32x16xf32> to vector<16x16xf32>
    %425 = math.exp %424 : vector<16x16xf32>
    %426 = arith.mulf %425, %303 : vector<16x16xf32>
    %427 = arith.addf %423, %426 : vector<16x16xf32>
    %428 = vector.broadcast %1 : vector<1x16xf32> to vector<16x16xf32>
    %429 = arith.mulf %427, %428 : vector<16x16xf32>
    %430 = vector.broadcast %1 : vector<1x16xf32> to vector<16x16xf32>
    %431 = arith.mulf %424, %430 : vector<16x16xf32>
    %cst_168 = arith.constant dense<0.000000e+00> : vector<16xf32>
    %432 = vector.multi_reduction <add>, %431, %cst_168 [0] : vector<16x16xf32> to vector<16xf32>
    %433 = vector.shape_cast %432 : vector<16xf32> to vector<1x16xf32>
    %cst_169 = arith.constant dense<0.000000e+00> : vector<1x2xf32>
    %434 = tpu.matmul %433, %2, %cst_169 {dimension_numbers = #tpu.dot_dimension_numbers<[1], [1], [0], [0], [0, 0, 1, 0], [], []>} : vector<1x16xf32>, vector<2x16xf32>, vector<1x2xf32> -> vector<1x2xf32>
    %435 = arith.addf %291, %434 : vector<1x2xf32>
    %436 = tpu.concatenate %302, %429 in 0 : vector<16x16xf32>, vector<16x16xf32> -> vector<32x16xf32>
    %c0_170 = arith.constant 0 : index
    %c0_171 = arith.constant 0 : index
    %437 = vector.load %arg15[%c0_170, %c0_171] : memref<32x16xf32, #tpu.memory_space<vmem>>, vector<32x16xf32>
    tpu.vector_store %arg15[%c0_170, %c0_171], %436 {strides = array<i32>} : memref<32x16xf32, #tpu.memory_space<vmem>>, vector<32x16xf32>,
    %c0_172 = arith.constant 0 : index
    %c0_173 = arith.constant 0 : index
    %438 = vector.load %arg16[%c0_172, %c0_173] : memref<1x2xf32, #tpu.memory_space<vmem>>, vector<1x2xf32>
    tpu.vector_store %arg16[%c0_172, %c0_173], %435 {strides = array<i32>} : memref<1x2xf32, #tpu.memory_space<vmem>>, vector<1x2xf32>,
    return
  }
  func.func @transform_0(%arg0: i32) -> (i32, i32) {
    %c0_i32 = arith.constant 0 : i32
    %c0_i32_0 = arith.constant 0 : i32
    %c0_i32_1 = arith.constant 0 : i32
    return %c0_i32, %c0_i32_0 : i32, i32
  }
  func.func @transform_1(%arg0: i32) -> (i32, i32) {
    %c0_i32 = arith.constant 0 : i32
    %c0_i32_0 = arith.constant 0 : i32
    %c0_i32_1 = arith.constant 0 : i32
    return %c0_i32, %c0_i32_0 : i32, i32
  }
  func.func @transform_2(%arg0: i32) -> (i32, i32) {
    %c0_i32 = arith.constant 0 : i32
    %c0_i32_0 = arith.constant 0 : i32
    %c0_i32_1 = arith.constant 0 : i32
    return %c0_i32, %c0_i32_0 : i32, i32
  }
  func.func @transform_3(%arg0: i32) -> (i32, i32) {
    %c0_i32 = arith.constant 0 : i32
    %c0_i32_0 = arith.constant 0 : i32
    %c0_i32_1 = arith.constant 0 : i32
    return %c0_i32, %c0_i32_0 : i32, i32
  }
  func.func @transform_4(%arg0: i32) -> (i32, i32, i32) {
    %c0_i32 = arith.constant 0 : i32
    %c0_i32_0 = arith.constant 0 : i32
    %c0_i32_1 = arith.constant 0 : i32
    %c0_i32_2 = arith.constant 0 : i32
    return %c0_i32, %c0_i32_0, %c0_i32_1 : i32, i32, i32
  }
  func.func @transform_5(%arg0: i32) -> (i32, i32, i32) {
    %c0_i32 = arith.constant 0 : i32
    %c0_i32_0 = arith.constant 0 : i32
    %c0_i32_1 = arith.constant 0 : i32
    %c0_i32_2 = arith.constant 0 : i32
    return %c0_i32, %c0_i32_0, %c0_i32_1 : i32, i32, i32
  }
  func.func @transform_6(%arg0: i32) -> (i32, i32, i32) {
    %c0_i32 = arith.constant 0 : i32
    %c0_i32_0 = arith.constant 0 : i32
    %c0_i32_1 = arith.constant 0 : i32
    %c0_i32_2 = arith.constant 0 : i32
    return %c0_i32, %c0_i32_0, %c0_i32_1 : i32, i32, i32
  }
  func.func @transform_7(%arg0: i32) -> (i32, i32, i32) {
    %c0_i32 = arith.constant 0 : i32
    %c0_i32_0 = arith.constant 0 : i32
    %c0_i32_1 = arith.constant 0 : i32
    %c0_i32_2 = arith.constant 0 : i32
    return %c0_i32, %c0_i32_0, %c0_i32_1 : i32, i32, i32
  }
  func.func @transform_8(%arg0: i32) -> (i32, i32, i32) {
    %c0_i32 = arith.constant 0 : i32
    %c0_i32_0 = arith.constant 0 : i32
    %c0_i32_1 = arith.constant 0 : i32
    %c0_i32_2 = arith.constant 0 : i32
    return %c0_i32, %c0_i32_0, %c0_i32_1 : i32, i32, i32
  }
  func.func @transform_9(%arg0: i32) -> (i32, i32, i32) {
    %c0_i32 = arith.constant 0 : i32
    %c0_i32_0 = arith.constant 0 : i32
    %c0_i32_1 = arith.constant 0 : i32
    %c0_i32_2 = arith.constant 0 : i32
    return %c0_i32, %c0_i32_0, %c0_i32_1 : i32, i32, i32
  }
  func.func @transform_10(%arg0: i32) -> (i32, i32, i32) {
    %c0_i32 = arith.constant 0 : i32
    %c0_i32_0 = arith.constant 0 : i32
    %c0_i32_1 = arith.constant 0 : i32
    %c0_i32_2 = arith.constant 0 : i32
    return %c0_i32, %c0_i32_0, %c0_i32_1 : i32, i32, i32
  }
  func.func @transform_11(%arg0: i32) -> (i32, i32, i32) {
    %c0_i32 = arith.constant 0 : i32
    %c0_i32_0 = arith.constant 0 : i32
    %c0_i32_1 = arith.constant 0 : i32
    %c0_i32_2 = arith.constant 0 : i32
    return %c0_i32, %c0_i32_0, %c0_i32_1 : i32, i32, i32
  }
  func.func @transform_12(%arg0: i32) -> (i32, i32, i32) {
    %c0_i32 = arith.constant 0 : i32
    %c0_i32_0 = arith.constant 0 : i32
    %c0_i32_1 = arith.constant 0 : i32
    %c0_i32_2 = arith.constant 0 : i32
    return %c0_i32, %c0_i32_0, %c0_i32_1 : i32, i32, i32
  }
  func.func @transform_13(%arg0: i32) -> (i32, i32, i32) {
    %c0_i32 = arith.constant 0 : i32
    %c0_i32_0 = arith.constant 0 : i32
    %c0_i32_1 = arith.constant 0 : i32
    %c0_i32_2 = arith.constant 0 : i32
    return %c0_i32, %c0_i32_0, %c0_i32_1 : i32, i32, i32
  }
  func.func @transform_14(%arg0: i32) -> (i32, i32) {
    %c0_i32 = arith.constant 0 : i32
    %c0_i32_0 = arith.constant 0 : i32
    %c0_i32_1 = arith.constant 0 : i32
    return %c0_i32, %c0_i32_0 : i32, i32
  }
  func.func @transform_15(%arg0: i32) -> (i32, i32) {
    %c0_i32 = arith.constant 0 : i32
    %c0_i32_0 = arith.constant 0 : i32
    %c0_i32_1 = arith.constant 0 : i32
    return %c0_i32, %c0_i32_0 : i32, i32
  }
}

module attributes {stable_mosaic.version = 11 : i64} {
  func.func @_logp_kernel(%arg0: i32, %arg1: memref<2x8x16xf32, #tpu.memory_space<vmem>>, %arg2: memref<2x8x16xf32, #tpu.memory_space<vmem>>, %arg3: memref<2x16x16xf32, #tpu.memory_space<vmem>>, %arg4: memref<2x8x16xf32, #tpu.memory_space<vmem>>) attributes {dimension_semantics = [#tpu.dimension_semantics<arbitrary>], iteration_bounds = array<i64: 1>, scalar_prefetch = 0 : i64, scratch_operands = 0 : i64, tpu.core_type = #tpu.core_type<tc>, window_params = [{pipeline_mode = #tpu.pipeline_mode<synchronous>, transform_indices = @transform_0, window_bounds = array<i64: 2, 8, 16>}, {pipeline_mode = #tpu.pipeline_mode<synchronous>, transform_indices = @transform_1, window_bounds = array<i64: 2, 8, 16>}, {pipeline_mode = #tpu.pipeline_mode<synchronous>, transform_indices = @transform_2, window_bounds = array<i64: 2, 16, 16>}, {pipeline_mode = #tpu.pipeline_mode<synchronous>, transform_indices = @transform_3, window_bounds = array<i64: 2, 8, 16>}]} {
    %c0 = arith.constant 0 : index
    %c0_0 = arith.constant 0 : index
    %c0_1 = arith.constant 0 : index
    %0 = vector.load %arg1[%c0, %c0_0, %c0_1] : memref<2x8x16xf32, #tpu.memory_space<vmem>>, vector<2x8x16xf32>
    %c0_2 = arith.constant 0 : index
    %c0_3 = arith.constant 0 : index
    %c0_4 = arith.constant 0 : index
    %1 = vector.load %arg2[%c0_2, %c0_3, %c0_4] : memref<2x8x16xf32, #tpu.memory_space<vmem>>, vector<2x8x16xf32>
    %c0_5 = arith.constant 0 : index
    %c0_6 = arith.constant 0 : index
    %c0_7 = arith.constant 0 : index
    %2 = vector.load %arg3[%c0_5, %c0_6, %c0_7] : memref<2x16x16xf32, #tpu.memory_space<vmem>>, vector<2x16x16xf32>
    %cst = arith.constant -2.000000e+00 : f32
    %3 = vector.broadcast %cst : f32 to vector<2x8x16xf32>
    %4 = arith.mulf %3, %1 : vector<2x8x16xf32>
    %5 = math.exp %4 : vector<2x8x16xf32>
    %cst_8 = arith.constant -0.918938517 : f32
    %6 = vector.broadcast %cst_8 : f32 to vector<2x8x16xf32>
    %7 = arith.subf %6, %1 : vector<2x8x16xf32>
    %cst_9 = arith.constant dense<0.000000e+00> : vector<2x8xf32>
    %8 = vector.multi_reduction <add>, %7, %cst_9 [2] : vector<2x8x16xf32> to vector<2x8xf32>
    %9 = vector.shape_cast %8 : vector<2x8xf32> to vector<2x8x1xf32>
    %cst_10 = arith.constant -5.000000e-01 : f32
    %10 = vector.broadcast %cst_10 : f32 to vector<2x16x16xf32>
    %11 = arith.mulf %10, %2 : vector<2x16x16xf32>
    %12 = arith.mulf %11, %2 : vector<2x16x16xf32>
    "tpu.trace_start"() <{level = 10 : i32, message = "btc,bcy->bty"}> : () -> ()
    %cst_11 = arith.constant dense<0.000000e+00> : vector<2x8x16xf32>
    %13 = tpu.matmul %5, %12, %cst_11 {dimension_numbers = #tpu.dot_dimension_numbers<[2], [1], [1], [2], [0, 0, 0, 1, 1, 2], [0], [0]>} : vector<2x8x16xf32>, vector<2x16x16xf32>, vector<2x8x16xf32> -> vector<2x8x16xf32>
    "tpu.trace_stop"() : () -> ()
    %14 = arith.mulf %0, %5 : vector<2x8x16xf32>
    "tpu.trace_start"() <{level = 10 : i32, message = "btc,bcy->bty"}> : () -> ()
    %cst_12 = arith.constant dense<0.000000e+00> : vector<2x8x16xf32>
    %15 = tpu.matmul %14, %2, %cst_12 {dimension_numbers = #tpu.dot_dimension_numbers<[2], [1], [1], [2], [0, 0, 0, 1, 1, 2], [0], [0]>} : vector<2x8x16xf32>, vector<2x16x16xf32>, vector<2x8x16xf32> -> vector<2x8x16xf32>
    "tpu.trace_stop"() : () -> ()
    %cst_13 = arith.constant -5.000000e-01 : f32
    %16 = vector.broadcast %cst_13 : f32 to vector<2x8x16xf32>
    %17 = arith.mulf %16, %0 : vector<2x8x16xf32>
    %18 = arith.mulf %17, %0 : vector<2x8x16xf32>
    %19 = arith.mulf %18, %5 : vector<2x8x16xf32>
    %cst_14 = arith.constant dense<0.000000e+00> : vector<2x8xf32>
    %20 = vector.multi_reduction <add>, %19, %cst_14 [2] : vector<2x8x16xf32> to vector<2x8xf32>
    %21 = vector.shape_cast %20 : vector<2x8xf32> to vector<2x8x1xf32>
    %22 = vector.broadcast %9 : vector<2x8x1xf32> to vector<2x8x16xf32>
    %23 = arith.addf %22, %13 : vector<2x8x16xf32>
    %24 = arith.addf %23, %15 : vector<2x8x16xf32>
    %25 = vector.broadcast %21 : vector<2x8x1xf32> to vector<2x8x16xf32>
    %26 = arith.addf %24, %25 : vector<2x8x16xf32>
    %c0_15 = arith.constant 0 : index
    %c0_16 = arith.constant 0 : index
    %c0_17 = arith.constant 0 : index
    %27 = vector.load %arg4[%c0_15, %c0_16, %c0_17] : memref<2x8x16xf32, #tpu.memory_space<vmem>>, vector<2x8x16xf32>
    tpu.vector_store %arg4[%c0_15, %c0_16, %c0_17], %26 {strides = array<i32>} : memref<2x8x16xf32, #tpu.memory_space<vmem>>, vector<2x8x16xf32>,
    return
  }
  func.func @transform_0(%arg0: i32) -> (i32, i32, i32) {
    %c0_i32 = arith.constant 0 : i32
    %c0_i32_0 = arith.constant 0 : i32
    %c0_i32_1 = arith.constant 0 : i32
    %c0_i32_2 = arith.constant 0 : i32
    return %c0_i32, %c0_i32_0, %c0_i32_1 : i32, i32, i32
  }
  func.func @transform_1(%arg0: i32) -> (i32, i32, i32) {
    %c0_i32 = arith.constant 0 : i32
    %c0_i32_0 = arith.constant 0 : i32
    %c0_i32_1 = arith.constant 0 : i32
    %c0_i32_2 = arith.constant 0 : i32
    return %c0_i32, %c0_i32_0, %c0_i32_1 : i32, i32, i32
  }
  func.func @transform_2(%arg0: i32) -> (i32, i32, i32) {
    %c0_i32 = arith.constant 0 : i32
    %c0_i32_0 = arith.constant 0 : i32
    %c0_i32_1 = arith.constant 0 : i32
    %c0_i32_2 = arith.constant 0 : i32
    return %c0_i32, %c0_i32_0, %c0_i32_1 : i32, i32, i32
  }
  func.func @transform_3(%arg0: i32) -> (i32, i32, i32) {
    %c0_i32 = arith.constant 0 : i32
    %c0_i32_0 = arith.constant 0 : i32
    %c0_i32_1 = arith.constant 0 : i32
    %c0_i32_2 = arith.constant 0 : i32
    return %c0_i32, %c0_i32_0, %c0_i32_1 : i32, i32, i32
  }
}

module attributes {stable_mosaic.version = 11 : i64} {
  func.func @_encoder_kernel(%arg0: i32, %arg1: memref<32x16xf32, #tpu.memory_space<vmem>>, %arg2: memref<1x16xf32, #tpu.memory_space<vmem>>, %arg3: memref<16x16xf32, #tpu.memory_space<vmem>>, %arg4: memref<3x16xf32, #tpu.memory_space<vmem>>, %arg5: memref<2x96x32xf32, #tpu.memory_space<vmem>>, %arg6: memref<2x96x1xf32, #tpu.memory_space<vmem>>, %arg7: memref<2x32x32xf32, #tpu.memory_space<vmem>>, %arg8: memref<2x32x1xf32, #tpu.memory_space<vmem>>, %arg9: memref<2x32x1xf32, #tpu.memory_space<vmem>>, %arg10: memref<2x32x1xf32, #tpu.memory_space<vmem>>, %arg11: memref<2x64x96xf32, #tpu.memory_space<vmem>>, %arg12: memref<2x64x1xf32, #tpu.memory_space<vmem>>, %arg13: memref<2x32x192xf32, #tpu.memory_space<vmem>>, %arg14: memref<2x32x1xf32, #tpu.memory_space<vmem>>, %arg15: memref<2x32x1xf32, #tpu.memory_space<vmem>>, %arg16: memref<2x32x1xf32, #tpu.memory_space<vmem>>, %arg17: memref<32x32xf32, #tpu.memory_space<vmem>>, %arg18: memref<32x1xf32, #tpu.memory_space<vmem>>, %arg19: memref<64x96xf32, #tpu.memory_space<vmem>>, %arg20: memref<64x1xf32, #tpu.memory_space<vmem>>, %arg21: memref<64x1xf32, #tpu.memory_space<vmem>>, %arg22: memref<64x1xf32, #tpu.memory_space<vmem>>, %arg23: memref<64x192xf32, #tpu.memory_space<vmem>>, %arg24: memref<64x1xf32, #tpu.memory_space<vmem>>, %arg25: memref<64x1xf32, #tpu.memory_space<vmem>>, %arg26: memref<64x1xf32, #tpu.memory_space<vmem>>, %arg27: memref<1x64xf32, #tpu.memory_space<vmem>>, %arg28: memref<1x1xf32, #tpu.memory_space<vmem>>, %arg29: memref<16x16xf32, #tpu.memory_space<vmem>>, %arg30: memref<16x16xf32, #tpu.memory_space<vmem>>, %arg31: memref<1x16xf32, #tpu.memory_space<vmem>>) attributes {dimension_semantics = [#tpu.dimension_semantics<arbitrary>], iteration_bounds = array<i64: 1>, scalar_prefetch = 0 : i64, scratch_operands = 0 : i64, tpu.core_type = #tpu.core_type<tc>, window_params = [{pipeline_mode = #tpu.pipeline_mode<synchronous>, transform_indices = @transform_0, window_bounds = array<i64: 32, 16>}, {pipeline_mode = #tpu.pipeline_mode<synchronous>, transform_indices = @transform_1, window_bounds = array<i64: 1, 16>}, {pipeline_mode = #tpu.pipeline_mode<synchronous>, transform_indices = @transform_2, window_bounds = array<i64: 16, 16>}, {pipeline_mode = #tpu.pipeline_mode<synchronous>, transform_indices = @transform_3, window_bounds = array<i64: 3, 16>}, {pipeline_mode = #tpu.pipeline_mode<synchronous>, transform_indices = @transform_4, window_bounds = array<i64: 2, 96, 32>}, {pipeline_mode = #tpu.pipeline_mode<synchronous>, transform_indices = @transform_5, window_bounds = array<i64: 2, 96, 1>}, {pipeline_mode = #tpu.pipeline_mode<synchronous>, transform_indices = @transform_6, window_bounds = array<i64: 2, 32, 32>}, {pipeline_mode = #tpu.pipeline_mode<synchronous>, transform_indices = @transform_7, window_bounds = array<i64: 2, 32, 1>}, {pipeline_mode = #tpu.pipeline_mode<synchronous>, transform_indices = @transform_8, window_bounds = array<i64: 2, 32, 1>}, {pipeline_mode = #tpu.pipeline_mode<synchronous>, transform_indices = @transform_9, window_bounds = array<i64: 2, 32, 1>}, {pipeline_mode = #tpu.pipeline_mode<synchronous>, transform_indices = @transform_10, window_bounds = array<i64: 2, 64, 96>}, {pipeline_mode = #tpu.pipeline_mode<synchronous>, transform_indices = @transform_11, window_bounds = array<i64: 2, 64, 1>}, {pipeline_mode = #tpu.pipeline_mode<synchronous>, transform_indices = @transform_12, window_bounds = array<i64: 2, 32, 192>}, {pipeline_mode = #tpu.pipeline_mode<synchronous>, transform_indices = @transform_13, window_bounds = array<i64: 2, 32, 1>}, {pipeline_mode = #tpu.pipeline_mode<synchronous>, transform_indices = @transform_14, window_bounds = array<i64: 2, 32, 1>}, {pipeline_mode = #tpu.pipeline_mode<synchronous>, transform_indices = @transform_15, window_bounds = array<i64: 2, 32, 1>}, {pipeline_mode = #tpu.pipeline_mode<synchronous>, transform_indices = @transform_16, window_bounds = array<i64: 32, 32>}, {pipeline_mode = #tpu.pipeline_mode<synchronous>, transform_indices = @transform_17, window_bounds = array<i64: 32, 1>}, {pipeline_mode = #tpu.pipeline_mode<synchronous>, transform_indices = @transform_18, window_bounds = array<i64: 64, 96>}, {pipeline_mode = #tpu.pipeline_mode<synchronous>, transform_indices = @transform_19, window_bounds = array<i64: 64, 1>}, {pipeline_mode = #tpu.pipeline_mode<synchronous>, transform_indices = @transform_20, window_bounds = array<i64: 64, 1>}, {pipeline_mode = #tpu.pipeline_mode<synchronous>, transform_indices = @transform_21, window_bounds = array<i64: 64, 1>}, {pipeline_mode = #tpu.pipeline_mode<synchronous>, transform_indices = @transform_22, window_bounds = array<i64: 64, 192>}, {pipeline_mode = #tpu.pipeline_mode<synchronous>, transform_indices = @transform_23, window_bounds = array<i64: 64, 1>}, {pipeline_mode = #tpu.pipeline_mode<synchronous>, transform_indices = @transform_24, window_bounds = array<i64: 64, 1>}, {pipeline_mode = #tpu.pipeline_mode<synchronous>, transform_indices = @transform_25, window_bounds = array<i64: 64, 1>}, {pipeline_mode = #tpu.pipeline_mode<synchronous>, transform_indices = @transform_26, window_bounds = array<i64: 1, 64>}, {pipeline_mode = #tpu.pipeline_mode<synchronous>, transform_indices = @transform_27, window_bounds = array<i64: 1, 1>}, {pipeline_mode = #tpu.pipeline_mode<synchronous>, transform_indices = @transform_28, window_bounds = array<i64: 16, 16>}, {pipeline_mode = #tpu.pipeline_mode<synchronous>, transform_indices = @transform_29, window_bounds = array<i64: 16, 16>}, {pipeline_mode = #tpu.pipeline_mode<synchronous>, transform_indices = @transform_30, window_bounds = array<i64: 1, 16>}]} {
    %c0 = arith.constant 0 : index
    %c0_0 = arith.constant 0 : index
    %0 = vector.load %arg1[%c0, %c0_0] : memref<32x16xf32, #tpu.memory_space<vmem>>, vector<32x16xf32>
    %c0_1 = arith.constant 0 : index
    %c0_2 = arith.constant 0 : index
    %1 = vector.load %arg2[%c0_1, %c0_2] : memref<1x16xf32, #tpu.memory_space<vmem>>, vector<1x16xf32>
    %c0_3 = arith.constant 0 : index
    %c0_4 = arith.constant 0 : index
    %2 = vector.load %arg3[%c0_3, %c0_4] : memref<16x16xf32, #tpu.memory_space<vmem>>, vector<16x16xf32>
    %c0_5 = arith.constant 0 : index
    %c0_6 = arith.constant 0 : index
    %3 = vector.load %arg4[%c0_5, %c0_6] : memref<3x16xf32, #tpu.memory_space<vmem>>, vector<3x16xf32>
    %4 = vector.broadcast %1 : vector<1x16xf32> to vector<32x16xf32>
    %5 = arith.mulf %0, %4 : vector<32x16xf32>
    %c0_7 = arith.constant 0 : index
    %c0_8 = arith.constant 0 : index
    %c0_9 = arith.constant 0 : index
    %6 = vector.load %arg5[%c0_7, %c0_8, %c0_9] : memref<2x96x32xf32, #tpu.memory_space<vmem>>, vector<1x96x32xf32>
    %7 = vector.shape_cast %6 : vector<1x96x32xf32> to vector<96x32xf32>
    %cst = arith.constant dense<0.000000e+00> : vector<96x16xf32>
    %8 = tpu.matmul %7, %5, %cst {dimension_numbers = #tpu.dot_dimension_numbers<[1], [0], [0], [1], [0, 0, 1, 1], [], []>} : vector<96x32xf32>, vector<32x16xf32>, vector<96x16xf32> -> vector<96x16xf32>
    %c0_10 = arith.constant 0 : index
    %c0_11 = arith.constant 0 : index
    %c0_12 = arith.constant 0 : index
    %9 = vector.load %arg6[%c0_10, %c0_11, %c0_12] : memref<2x96x1xf32, #tpu.memory_space<vmem>>, vector<1x96x1xf32>
    %10 = vector.shape_cast %9 : vector<1x96x1xf32> to vector<96x1xf32>
    %11 = vector.broadcast %10 : vector<96x1xf32> to vector<96x16xf32>
    %12 = arith.addf %8, %11 : vector<96x16xf32>
    %13 = vector.extract_strided_slice %12 {offsets = [0, 0], sizes = [16, 16], strides = [1, 1]} : vector<96x16xf32> to vector<16x16xf32>
    %14 = vector.extract_strided_slice %12 {offsets = [32, 0], sizes = [16, 16], strides = [1, 1]} : vector<96x16xf32> to vector<16x16xf32>
    %15 = vector.extract_strided_slice %12 {offsets = [64, 0], sizes = [16, 16], strides = [1, 1]} : vector<96x16xf32> to vector<16x16xf32>
    %cst_13 = arith.constant dense<0.000000e+00> : vector<16x16xf32>
    %16 = tpu.matmul %13, %14, %cst_13 {dimension_numbers = #tpu.dot_dimension_numbers<[0], [0], [1], [1], [0, 1, 1, 1], [], []>} : vector<16x16xf32>, vector<16x16xf32>, vector<16x16xf32> -> vector<16x16xf32>
    %cst_14 = arith.constant 2.500000e-01 : f32
    %17 = vector.broadcast %cst_14 : f32 to vector<16x16xf32>
    %18 = arith.mulf %16, %17 : vector<16x16xf32>
    %19 = arith.addf %18, %2 : vector<16x16xf32>
    %cst_15 = arith.constant dense<0xFF800000> : vector<16xf32>
    %20 = vector.multi_reduction <maximumf>, %19, %cst_15 [1] : vector<16x16xf32> to vector<16xf32>
    %21 = vector.shape_cast %20 : vector<16xf32> to vector<16x1xf32>
    %22 = vector.broadcast %21 : vector<16x1xf32> to vector<16x16xf32>
    %23 = arith.subf %19, %22 : vector<16x16xf32>
    %24 = math.exp %23 : vector<16x16xf32>
    %cst_16 = arith.constant dense<0.000000e+00> : vector<16xf32>
    %25 = vector.multi_reduction <add>, %24, %cst_16 [1] : vector<16x16xf32> to vector<16xf32>
    %26 = vector.shape_cast %25 : vector<16xf32> to vector<16x1xf32>
    %27 = tpu.reciprocal %26 {approx = true} : vector<16x1xf32> -> vector<16x1xf32>
    %28 = vector.broadcast %27 : vector<16x1xf32> to vector<16x16xf32>
    %29 = arith.mulf %24, %28 : vector<16x16xf32>
    %cst_17 = arith.constant dense<0.000000e+00> : vector<16x16xf32>
    %30 = tpu.matmul %15, %29, %cst_17 {dimension_numbers = #tpu.dot_dimension_numbers<[1], [1], [0], [0], [0, 0, 1, 0], [], []>} : vector<16x16xf32>, vector<16x16xf32>, vector<16x16xf32> -> vector<16x16xf32>
    %31 = vector.extract_strided_slice %12 {offsets = [16, 0], sizes = [16, 16], strides = [1, 1]} : vector<96x16xf32> to vector<16x16xf32>
    %32 = vector.extract_strided_slice %12 {offsets = [48, 0], sizes = [16, 16], strides = [1, 1]} : vector<96x16xf32> to vector<16x16xf32>
    %33 = vector.extract_strided_slice %12 {offsets = [80, 0], sizes = [16, 16], strides = [1, 1]} : vector<96x16xf32> to vector<16x16xf32>
    %cst_18 = arith.constant dense<0.000000e+00> : vector<16x16xf32>
    %34 = tpu.matmul %31, %32, %cst_18 {dimension_numbers = #tpu.dot_dimension_numbers<[0], [0], [1], [1], [0, 1, 1, 1], [], []>} : vector<16x16xf32>, vector<16x16xf32>, vector<16x16xf32> -> vector<16x16xf32>
    %cst_19 = arith.constant 2.500000e-01 : f32
    %35 = vector.broadcast %cst_19 : f32 to vector<16x16xf32>
    %36 = arith.mulf %34, %35 : vector<16x16xf32>
    %37 = arith.addf %36, %2 : vector<16x16xf32>
    %cst_20 = arith.constant dense<0xFF800000> : vector<16xf32>
    %38 = vector.multi_reduction <maximumf>, %37, %cst_20 [1] : vector<16x16xf32> to vector<16xf32>
    %39 = vector.shape_cast %38 : vector<16xf32> to vector<16x1xf32>
    %40 = vector.broadcast %39 : vector<16x1xf32> to vector<16x16xf32>
    %41 = arith.subf %37, %40 : vector<16x16xf32>
    %42 = math.exp %41 : vector<16x16xf32>
    %cst_21 = arith.constant dense<0.000000e+00> : vector<16xf32>
    %43 = vector.multi_reduction <add>, %42, %cst_21 [1] : vector<16x16xf32> to vector<16xf32>
    %44 = vector.shape_cast %43 : vector<16xf32> to vector<16x1xf32>
    %45 = tpu.reciprocal %44 {approx = true} : vector<16x1xf32> -> vector<16x1xf32>
    %46 = vector.broadcast %45 : vector<16x1xf32> to vector<16x16xf32>
    %47 = arith.mulf %42, %46 : vector<16x16xf32>
    %cst_22 = arith.constant dense<0.000000e+00> : vector<16x16xf32>
    %48 = tpu.matmul %33, %47, %cst_22 {dimension_numbers = #tpu.dot_dimension_numbers<[1], [1], [0], [0], [0, 0, 1, 0], [], []>} : vector<16x16xf32>, vector<16x16xf32>, vector<16x16xf32> -> vector<16x16xf32>
    %49 = tpu.concatenate %30, %48 in 0 : vector<16x16xf32>, vector<16x16xf32> -> vector<32x16xf32>
    %c0_23 = arith.constant 0 : index
    %c0_24 = arith.constant 0 : index
    %c0_25 = arith.constant 0 : index
    %50 = vector.load %arg7[%c0_23, %c0_24, %c0_25] : memref<2x32x32xf32, #tpu.memory_space<vmem>>, vector<1x32x32xf32>
    %51 = vector.shape_cast %50 : vector<1x32x32xf32> to vector<32x32xf32>
    %cst_26 = arith.constant dense<0.000000e+00> : vector<32x16xf32>
    %52 = tpu.matmul %51, %49, %cst_26 {dimension_numbers = #tpu.dot_dimension_numbers<[1], [0], [0], [1], [0, 0, 1, 1], [], []>} : vector<32x32xf32>, vector<32x16xf32>, vector<32x16xf32> -> vector<32x16xf32>
    %c0_27 = arith.constant 0 : index
    %c0_28 = arith.constant 0 : index
    %c0_29 = arith.constant 0 : index
    %53 = vector.load %arg8[%c0_27, %c0_28, %c0_29] : memref<2x32x1xf32, #tpu.memory_space<vmem>>, vector<1x32x1xf32>
    %54 = vector.shape_cast %53 : vector<1x32x1xf32> to vector<32x1xf32>
    %55 = vector.broadcast %54 : vector<32x1xf32> to vector<32x16xf32>
    %56 = arith.addf %52, %55 : vector<32x16xf32>
    %57 = arith.addf %5, %56 : vector<32x16xf32>
    %c0_30 = arith.constant 0 : index
    %c0_31 = arith.constant 0 : index
    %c0_32 = arith.constant 0 : index
    %58 = vector.load %arg9[%c0_30, %c0_31, %c0_32] : memref<2x32x1xf32, #tpu.memory_space<vmem>>, vector<1x32x1xf32>
    %59 = vector.shape_cast %58 : vector<1x32x1xf32> to vector<32x1xf32>
    %c0_33 = arith.constant 0 : index
    %c0_34 = arith.constant 0 : index
    %c0_35 = arith.constant 0 : index
    %60 = vector.load %arg10[%c0_33, %c0_34, %c0_35] : memref<2x32x1xf32, #tpu.memory_space<vmem>>, vector<1x32x1xf32>
    %61 = vector.shape_cast %60 : vector<1x32x1xf32> to vector<32x1xf32>
    %cst_36 = arith.constant dense<0.000000e+00> : vector<16xf32>
    %62 = vector.multi_reduction <add>, %57, %cst_36 [0] : vector<32x16xf32> to vector<16xf32>
    %63 = vector.shape_cast %62 : vector<16xf32> to vector<1x16xf32>
    %cst_37 = arith.constant 3.200000e+01 : f32
    %64 = vector.broadcast %cst_37 : f32 to vector<1x16xf32>
    %65 = arith.divf %63, %64 : vector<1x16xf32>
    %66 = vector.broadcast %65 : vector<1x16xf32> to vector<32x16xf32>
    %67 = arith.subf %57, %66 : vector<32x16xf32>
    %68 = arith.mulf %67, %67 : vector<32x16xf32>
    %cst_38 = arith.constant dense<0.000000e+00> : vector<16xf32>
    %69 = vector.multi_reduction <add>, %68, %cst_38 [0] : vector<32x16xf32> to vector<16xf32>
    %70 = vector.shape_cast %69 : vector<16xf32> to vector<1x16xf32>
    %cst_39 = arith.constant 3.200000e+01 : f32
    %71 = vector.broadcast %cst_39 : f32 to vector<1x16xf32>
    %72 = arith.divf %70, %71 : vector<1x16xf32>
    %73 = vector.broadcast %65 : vector<1x16xf32> to vector<32x16xf32>
    %74 = arith.subf %57, %73 : vector<32x16xf32>
    %cst_40 = arith.constant 9.99999974E-5 : f32
    %75 = vector.broadcast %cst_40 : f32 to vector<1x16xf32>
    %76 = arith.addf %72, %75 : vector<1x16xf32>
    %77 = math.rsqrt %76 : vector<1x16xf32>
    %78 = vector.broadcast %77 : vector<1x16xf32> to vector<32x16xf32>
    %79 = arith.mulf %74, %78 : vector<32x16xf32>
    %80 = vector.broadcast %59 : vector<32x1xf32> to vector<32x16xf32>
    %81 = arith.mulf %79, %80 : vector<32x16xf32>
    %82 = vector.broadcast %61 : vector<32x1xf32> to vector<32x16xf32>
    %83 = arith.addf %81, %82 : vector<32x16xf32>
    %84 = vector.broadcast %1 : vector<1x16xf32> to vector<32x16xf32>
    %85 = arith.mulf %83, %84 : vector<32x16xf32>
    %c0_41 = arith.constant 0 : index
    %c0_42 = arith.constant 0 : index
    %c0_43 = arith.constant 0 : index
    %86 = vector.load %arg11[%c0_41, %c0_42, %c0_43] : memref<2x64x96xf32, #tpu.memory_space<vmem>>, vector<1x64x96xf32>
    %87 = vector.shape_cast %86 : vector<1x64x96xf32> to vector<64x96xf32>
    %c0_44 = arith.constant 0 : index
    %c0_45 = arith.constant 0 : index
    %c0_46 = arith.constant 0 : index
    %88 = vector.load %arg12[%c0_44, %c0_45, %c0_46] : memref<2x64x1xf32, #tpu.memory_space<vmem>>, vector<1x64x1xf32>
    %89 = vector.shape_cast %88 : vector<1x64x1xf32> to vector<64x1xf32>
    %cst_47 = arith.constant 0.000000e+00 : f32
    %90 = vector.broadcast %cst_47 : f32 to vector<32x1xf32>
    %91 = tpu.concatenate %90, %85, %90 in 1 : vector<32x1xf32>, vector<32x16xf32>, vector<32x1xf32> -> vector<32x18xf32>
    %92 = vector.extract_strided_slice %91 {offsets = [0, 0], sizes = [32, 16], strides = [1, 1]} : vector<32x18xf32> to vector<32x16xf32>
    %93 = vector.extract_strided_slice %3 {offsets = [0, 0], sizes = [1, 16], strides = [1, 1]} : vector<3x16xf32> to vector<1x16xf32>
    %94 = vector.broadcast %93 : vector<1x16xf32> to vector<32x16xf32>
    %95 = arith.mulf %92, %94 : vector<32x16xf32>
    %96 = vector.extract_strided_slice %91 {offsets = [0, 1], sizes = [32, 16], strides = [1, 1]} : vector<32x18xf32> to vector<32x16xf32>
    %97 = vector.extract_strided_slice %3 {offsets = [1, 0], sizes = [1, 16], strides = [1, 1]} : vector<3x16xf32> to vector<1x16xf32>
    %98 = vector.broadcast %97 : vector<1x16xf32> to vector<32x16xf32>
    %99 = arith.mulf %96, %98 : vector<32x16xf32>
    %100 = vector.extract_strided_slice %91 {offsets = [0, 2], sizes = [32, 16], strides = [1, 1]} : vector<32x18xf32> to vector<32x16xf32>
    %101 = vector.extract_strided_slice %3 {offsets = [2, 0], sizes = [1, 16], strides = [1, 1]} : vector<3x16xf32> to vector<1x16xf32>
    %102 = vector.broadcast %101 : vector<1x16xf32> to vector<32x16xf32>
    %103 = arith.mulf %100, %102 : vector<32x16xf32>
    %104 = tpu.concatenate %95, %99, %103 in 0 : vector<32x16xf32>, vector<32x16xf32>, vector<32x16xf32> -> vector<96x16xf32>
    %cst_48 = arith.constant dense<0.000000e+00> : vector<64x16xf32>
    %105 = tpu.matmul %87, %104, %cst_48 {dimension_numbers = #tpu.dot_dimension_numbers<[1], [0], [0], [1], [0, 0, 1, 1], [], []>} : vector<64x96xf32>, vector<96x16xf32>, vector<64x16xf32> -> vector<64x16xf32>
    %106 = vector.broadcast %89 : vector<64x1xf32> to vector<64x16xf32>
    %107 = arith.addf %105, %106 : vector<64x16xf32>
    %cst_49 = arith.constant 0.000000e+00 : f32
    %108 = vector.broadcast %cst_49 : f32 to vector<64x16xf32>
    %109 = arith.maximumf %107, %108 : vector<64x16xf32>
    %110 = vector.broadcast %1 : vector<1x16xf32> to vector<64x16xf32>
    %111 = arith.mulf %109, %110 : vector<64x16xf32>
    %c0_50 = arith.constant 0 : index
    %c0_51 = arith.constant 0 : index
    %c0_52 = arith.constant 0 : index
    %112 = vector.load %arg13[%c0_50, %c0_51, %c0_52] : memref<2x32x192xf32, #tpu.memory_space<vmem>>, vector<1x32x192xf32>
    %113 = vector.shape_cast %112 : vector<1x32x192xf32> to vector<32x192xf32>
    %c0_53 = arith.constant 0 : index
    %c0_54 = arith.constant 0 : index
    %c0_55 = arith.constant 0 : index
    %114 = vector.load %arg14[%c0_53, %c0_54, %c0_55] : memref<2x32x1xf32, #tpu.memory_space<vmem>>, vector<1x32x1xf32>
    %115 = vector.shape_cast %114 : vector<1x32x1xf32> to vector<32x1xf32>
    %cst_56 = arith.constant 0.000000e+00 : f32
    %116 = vector.broadcast %cst_56 : f32 to vector<64x1xf32>
    %117 = tpu.concatenate %116, %111, %116 in 1 : vector<64x1xf32>, vector<64x16xf32>, vector<64x1xf32> -> vector<64x18xf32>
    %118 = vector.extract_strided_slice %117 {offsets = [0, 0], sizes = [64, 16], strides = [1, 1]} : vector<64x18xf32> to vector<64x16xf32>
    %119 = vector.extract_strided_slice %3 {offsets = [0, 0], sizes = [1, 16], strides = [1, 1]} : vector<3x16xf32> to vector<1x16xf32>
    %120 = vector.broadcast %119 : vector<1x16xf32> to vector<64x16xf32>
    %121 = arith.mulf %118, %120 : vector<64x16xf32>
    %122 = vector.extract_strided_slice %117 {offsets = [0, 1], sizes = [64, 16], strides = [1, 1]} : vector<64x18xf32> to vector<64x16xf32>
    %123 = vector.extract_strided_slice %3 {offsets = [1, 0], sizes = [1, 16], strides = [1, 1]} : vector<3x16xf32> to vector<1x16xf32>
    %124 = vector.broadcast %123 : vector<1x16xf32> to vector<64x16xf32>
    %125 = arith.mulf %122, %124 : vector<64x16xf32>
    %126 = vector.extract_strided_slice %117 {offsets = [0, 2], sizes = [64, 16], strides = [1, 1]} : vector<64x18xf32> to vector<64x16xf32>
    %127 = vector.extract_strided_slice %3 {offsets = [2, 0], sizes = [1, 16], strides = [1, 1]} : vector<3x16xf32> to vector<1x16xf32>
    %128 = vector.broadcast %127 : vector<1x16xf32> to vector<64x16xf32>
    %129 = arith.mulf %126, %128 : vector<64x16xf32>
    %130 = tpu.concatenate %121, %125, %129 in 0 : vector<64x16xf32>, vector<64x16xf32>, vector<64x16xf32> -> vector<192x16xf32>
    %cst_57 = arith.constant dense<0.000000e+00> : vector<32x16xf32>
    %131 = tpu.matmul %113, %130, %cst_57 {dimension_numbers = #tpu.dot_dimension_numbers<[1], [0], [0], [1], [0, 0, 1, 1], [], []>} : vector<32x192xf32>, vector<192x16xf32>, vector<32x16xf32> -> vector<32x16xf32>
    %132 = vector.broadcast %115 : vector<32x1xf32> to vector<32x16xf32>
    %133 = arith.addf %131, %132 : vector<32x16xf32>
    %134 = vector.broadcast %1 : vector<1x16xf32> to vector<32x16xf32>
    %135 = arith.mulf %133, %134 : vector<32x16xf32>
    %136 = arith.addf %83, %135 : vector<32x16xf32>
    %c0_58 = arith.constant 0 : index
    %c0_59 = arith.constant 0 : index
    %c0_60 = arith.constant 0 : index
    %137 = vector.load %arg15[%c0_58, %c0_59, %c0_60] : memref<2x32x1xf32, #tpu.memory_space<vmem>>, vector<1x32x1xf32>
    %138 = vector.shape_cast %137 : vector<1x32x1xf32> to vector<32x1xf32>
    %c0_61 = arith.constant 0 : index
    %c0_62 = arith.constant 0 : index
    %c0_63 = arith.constant 0 : index
    %139 = vector.load %arg16[%c0_61, %c0_62, %c0_63] : memref<2x32x1xf32, #tpu.memory_space<vmem>>, vector<1x32x1xf32>
    %140 = vector.shape_cast %139 : vector<1x32x1xf32> to vector<32x1xf32>
    %cst_64 = arith.constant dense<0.000000e+00> : vector<16xf32>
    %141 = vector.multi_reduction <add>, %136, %cst_64 [0] : vector<32x16xf32> to vector<16xf32>
    %142 = vector.shape_cast %141 : vector<16xf32> to vector<1x16xf32>
    %cst_65 = arith.constant 3.200000e+01 : f32
    %143 = vector.broadcast %cst_65 : f32 to vector<1x16xf32>
    %144 = arith.divf %142, %143 : vector<1x16xf32>
    %145 = vector.broadcast %144 : vector<1x16xf32> to vector<32x16xf32>
    %146 = arith.subf %136, %145 : vector<32x16xf32>
    %147 = arith.mulf %146, %146 : vector<32x16xf32>
    %cst_66 = arith.constant dense<0.000000e+00> : vector<16xf32>
    %148 = vector.multi_reduction <add>, %147, %cst_66 [0] : vector<32x16xf32> to vector<16xf32>
    %149 = vector.shape_cast %148 : vector<16xf32> to vector<1x16xf32>
    %cst_67 = arith.constant 3.200000e+01 : f32
    %150 = vector.broadcast %cst_67 : f32 to vector<1x16xf32>
    %151 = arith.divf %149, %150 : vector<1x16xf32>
    %152 = vector.broadcast %144 : vector<1x16xf32> to vector<32x16xf32>
    %153 = arith.subf %136, %152 : vector<32x16xf32>
    %cst_68 = arith.constant 9.99999974E-5 : f32
    %154 = vector.broadcast %cst_68 : f32 to vector<1x16xf32>
    %155 = arith.addf %151, %154 : vector<1x16xf32>
    %156 = math.rsqrt %155 : vector<1x16xf32>
    %157 = vector.broadcast %156 : vector<1x16xf32> to vector<32x16xf32>
    %158 = arith.mulf %153, %157 : vector<32x16xf32>
    %159 = vector.broadcast %138 : vector<32x1xf32> to vector<32x16xf32>
    %160 = arith.mulf %158, %159 : vector<32x16xf32>
    %161 = vector.broadcast %140 : vector<32x1xf32> to vector<32x16xf32>
    %162 = arith.addf %160, %161 : vector<32x16xf32>
    %163 = vector.broadcast %1 : vector<1x16xf32> to vector<32x16xf32>
    %164 = arith.mulf %162, %163 : vector<32x16xf32>
    %c1 = arith.constant 1 : index
    %c0_69 = arith.constant 0 : index
    %c0_70 = arith.constant 0 : index
    %165 = vector.load %arg5[%c1, %c0_69, %c0_70] : memref<2x96x32xf32, #tpu.memory_space<vmem>>, vector<1x96x32xf32>
    %166 = vector.shape_cast %165 : vector<1x96x32xf32> to vector<96x32xf32>
    %cst_71 = arith.constant dense<0.000000e+00> : vector<96x16xf32>
    %167 = tpu.matmul %166, %164, %cst_71 {dimension_numbers = #tpu.dot_dimension_numbers<[1], [0], [0], [1], [0, 0, 1, 1], [], []>} : vector<96x32xf32>, vector<32x16xf32>, vector<96x16xf32> -> vector<96x16xf32>
    %c1_72 = arith.constant 1 : index
    %c0_73 = arith.constant 0 : index
    %c0_74 = arith.constant 0 : index
    %168 = vector.load %arg6[%c1_72, %c0_73, %c0_74] : memref<2x96x1xf32, #tpu.memory_space<vmem>>, vector<1x96x1xf32>
    %169 = vector.shape_cast %168 : vector<1x96x1xf32> to vector<96x1xf32>
    %170 = vector.broadcast %169 : vector<96x1xf32> to vector<96x16xf32>
    %171 = arith.addf %167, %170 : vector<96x16xf32>
    %172 = vector.extract_strided_slice %171 {offsets = [0, 0], sizes = [16, 16], strides = [1, 1]} : vector<96x16xf32> to vector<16x16xf32>
    %173 = vector.extract_strided_slice %171 {offsets = [32, 0], sizes = [16, 16], strides = [1, 1]} : vector<96x16xf32> to vector<16x16xf32>
    %174 = vector.extract_strided_slice %171 {offsets = [64, 0], sizes = [16, 16], strides = [1, 1]} : vector<96x16xf32> to vector<16x16xf32>
    %cst_75 = arith.constant dense<0.000000e+00> : vector<16x16xf32>
    %175 = tpu.matmul %172, %173, %cst_75 {dimension_numbers = #tpu.dot_dimension_numbers<[0], [0], [1], [1], [0, 1, 1, 1], [], []>} : vector<16x16xf32>, vector<16x16xf32>, vector<16x16xf32> -> vector<16x16xf32>
    %cst_76 = arith.constant 2.500000e-01 : f32
    %176 = vector.broadcast %cst_76 : f32 to vector<16x16xf32>
    %177 = arith.mulf %175, %176 : vector<16x16xf32>
    %178 = arith.addf %177, %2 : vector<16x16xf32>
    %cst_77 = arith.constant dense<0xFF800000> : vector<16xf32>
    %179 = vector.multi_reduction <maximumf>, %178, %cst_77 [1] : vector<16x16xf32> to vector<16xf32>
    %180 = vector.shape_cast %179 : vector<16xf32> to vector<16x1xf32>
    %181 = vector.broadcast %180 : vector<16x1xf32> to vector<16x16xf32>
    %182 = arith.subf %178, %181 : vector<16x16xf32>
    %183 = math.exp %182 : vector<16x16xf32>
    %cst_78 = arith.constant dense<0.000000e+00> : vector<16xf32>
    %184 = vector.multi_reduction <add>, %183, %cst_78 [1] : vector<16x16xf32> to vector<16xf32>
    %185 = vector.shape_cast %184 : vector<16xf32> to vector<16x1xf32>
    %186 = tpu.reciprocal %185 {approx = true} : vector<16x1xf32> -> vector<16x1xf32>
    %187 = vector.broadcast %186 : vector<16x1xf32> to vector<16x16xf32>
    %188 = arith.mulf %183, %187 : vector<16x16xf32>
    %cst_79 = arith.constant dense<0.000000e+00> : vector<16x16xf32>
    %189 = tpu.matmul %174, %188, %cst_79 {dimension_numbers = #tpu.dot_dimension_numbers<[1], [1], [0], [0], [0, 0, 1, 0], [], []>} : vector<16x16xf32>, vector<16x16xf32>, vector<16x16xf32> -> vector<16x16xf32>
    %190 = vector.extract_strided_slice %171 {offsets = [16, 0], sizes = [16, 16], strides = [1, 1]} : vector<96x16xf32> to vector<16x16xf32>
    %191 = vector.extract_strided_slice %171 {offsets = [48, 0], sizes = [16, 16], strides = [1, 1]} : vector<96x16xf32> to vector<16x16xf32>
    %192 = vector.extract_strided_slice %171 {offsets = [80, 0], sizes = [16, 16], strides = [1, 1]} : vector<96x16xf32> to vector<16x16xf32>
    %cst_80 = arith.constant dense<0.000000e+00> : vector<16x16xf32>
    %193 = tpu.matmul %190, %191, %cst_80 {dimension_numbers = #tpu.dot_dimension_numbers<[0], [0], [1], [1], [0, 1, 1, 1], [], []>} : vector<16x16xf32>, vector<16x16xf32>, vector<16x16xf32> -> vector<16x16xf32>
    %cst_81 = arith.constant 2.500000e-01 : f32
    %194 = vector.broadcast %cst_81 : f32 to vector<16x16xf32>
    %195 = arith.mulf %193, %194 : vector<16x16xf32>
    %196 = arith.addf %195, %2 : vector<16x16xf32>
    %cst_82 = arith.constant dense<0xFF800000> : vector<16xf32>
    %197 = vector.multi_reduction <maximumf>, %196, %cst_82 [1] : vector<16x16xf32> to vector<16xf32>
    %198 = vector.shape_cast %197 : vector<16xf32> to vector<16x1xf32>
    %199 = vector.broadcast %198 : vector<16x1xf32> to vector<16x16xf32>
    %200 = arith.subf %196, %199 : vector<16x16xf32>
    %201 = math.exp %200 : vector<16x16xf32>
    %cst_83 = arith.constant dense<0.000000e+00> : vector<16xf32>
    %202 = vector.multi_reduction <add>, %201, %cst_83 [1] : vector<16x16xf32> to vector<16xf32>
    %203 = vector.shape_cast %202 : vector<16xf32> to vector<16x1xf32>
    %204 = tpu.reciprocal %203 {approx = true} : vector<16x1xf32> -> vector<16x1xf32>
    %205 = vector.broadcast %204 : vector<16x1xf32> to vector<16x16xf32>
    %206 = arith.mulf %201, %205 : vector<16x16xf32>
    %cst_84 = arith.constant dense<0.000000e+00> : vector<16x16xf32>
    %207 = tpu.matmul %192, %206, %cst_84 {dimension_numbers = #tpu.dot_dimension_numbers<[1], [1], [0], [0], [0, 0, 1, 0], [], []>} : vector<16x16xf32>, vector<16x16xf32>, vector<16x16xf32> -> vector<16x16xf32>
    %208 = tpu.concatenate %189, %207 in 0 : vector<16x16xf32>, vector<16x16xf32> -> vector<32x16xf32>
    %c1_85 = arith.constant 1 : index
    %c0_86 = arith.constant 0 : index
    %c0_87 = arith.constant 0 : index
    %209 = vector.load %arg7[%c1_85, %c0_86, %c0_87] : memref<2x32x32xf32, #tpu.memory_space<vmem>>, vector<1x32x32xf32>
    %210 = vector.shape_cast %209 : vector<1x32x32xf32> to vector<32x32xf32>
    %cst_88 = arith.constant dense<0.000000e+00> : vector<32x16xf32>
    %211 = tpu.matmul %210, %208, %cst_88 {dimension_numbers = #tpu.dot_dimension_numbers<[1], [0], [0], [1], [0, 0, 1, 1], [], []>} : vector<32x32xf32>, vector<32x16xf32>, vector<32x16xf32> -> vector<32x16xf32>
    %c1_89 = arith.constant 1 : index
    %c0_90 = arith.constant 0 : index
    %c0_91 = arith.constant 0 : index
    %212 = vector.load %arg8[%c1_89, %c0_90, %c0_91] : memref<2x32x1xf32, #tpu.memory_space<vmem>>, vector<1x32x1xf32>
    %213 = vector.shape_cast %212 : vector<1x32x1xf32> to vector<32x1xf32>
    %214 = vector.broadcast %213 : vector<32x1xf32> to vector<32x16xf32>
    %215 = arith.addf %211, %214 : vector<32x16xf32>
    %216 = arith.addf %164, %215 : vector<32x16xf32>
    %c1_92 = arith.constant 1 : index
    %c0_93 = arith.constant 0 : index
    %c0_94 = arith.constant 0 : index
    %217 = vector.load %arg9[%c1_92, %c0_93, %c0_94] : memref<2x32x1xf32, #tpu.memory_space<vmem>>, vector<1x32x1xf32>
    %218 = vector.shape_cast %217 : vector<1x32x1xf32> to vector<32x1xf32>
    %c1_95 = arith.constant 1 : index
    %c0_96 = arith.constant 0 : index
    %c0_97 = arith.constant 0 : index
    %219 = vector.load %arg10[%c1_95, %c0_96, %c0_97] : memref<2x32x1xf32, #tpu.memory_space<vmem>>, vector<1x32x1xf32>
    %220 = vector.shape_cast %219 : vector<1x32x1xf32> to vector<32x1xf32>
    %cst_98 = arith.constant dense<0.000000e+00> : vector<16xf32>
    %221 = vector.multi_reduction <add>, %216, %cst_98 [0] : vector<32x16xf32> to vector<16xf32>
    %222 = vector.shape_cast %221 : vector<16xf32> to vector<1x16xf32>
    %cst_99 = arith.constant 3.200000e+01 : f32
    %223 = vector.broadcast %cst_99 : f32 to vector<1x16xf32>
    %224 = arith.divf %222, %223 : vector<1x16xf32>
    %225 = vector.broadcast %224 : vector<1x16xf32> to vector<32x16xf32>
    %226 = arith.subf %216, %225 : vector<32x16xf32>
    %227 = arith.mulf %226, %226 : vector<32x16xf32>
    %cst_100 = arith.constant dense<0.000000e+00> : vector<16xf32>
    %228 = vector.multi_reduction <add>, %227, %cst_100 [0] : vector<32x16xf32> to vector<16xf32>
    %229 = vector.shape_cast %228 : vector<16xf32> to vector<1x16xf32>
    %cst_101 = arith.constant 3.200000e+01 : f32
    %230 = vector.broadcast %cst_101 : f32 to vector<1x16xf32>
    %231 = arith.divf %229, %230 : vector<1x16xf32>
    %232 = vector.broadcast %224 : vector<1x16xf32> to vector<32x16xf32>
    %233 = arith.subf %216, %232 : vector<32x16xf32>
    %cst_102 = arith.constant 9.99999974E-5 : f32
    %234 = vector.broadcast %cst_102 : f32 to vector<1x16xf32>
    %235 = arith.addf %231, %234 : vector<1x16xf32>
    %236 = math.rsqrt %235 : vector<1x16xf32>
    %237 = vector.broadcast %236 : vector<1x16xf32> to vector<32x16xf32>
    %238 = arith.mulf %233, %237 : vector<32x16xf32>
    %239 = vector.broadcast %218 : vector<32x1xf32> to vector<32x16xf32>
    %240 = arith.mulf %238, %239 : vector<32x16xf32>
    %241 = vector.broadcast %220 : vector<32x1xf32> to vector<32x16xf32>
    %242 = arith.addf %240, %241 : vector<32x16xf32>
    %243 = vector.broadcast %1 : vector<1x16xf32> to vector<32x16xf32>
    %244 = arith.mulf %242, %243 : vector<32x16xf32>
    %c1_103 = arith.constant 1 : index
    %c0_104 = arith.constant 0 : index
    %c0_105 = arith.constant 0 : index
    %245 = vector.load %arg11[%c1_103, %c0_104, %c0_105] : memref<2x64x96xf32, #tpu.memory_space<vmem>>, vector<1x64x96xf32>
    %246 = vector.shape_cast %245 : vector<1x64x96xf32> to vector<64x96xf32>
    %c1_106 = arith.constant 1 : index
    %c0_107 = arith.constant 0 : index
    %c0_108 = arith.constant 0 : index
    %247 = vector.load %arg12[%c1_106, %c0_107, %c0_108] : memref<2x64x1xf32, #tpu.memory_space<vmem>>, vector<1x64x1xf32>
    %248 = vector.shape_cast %247 : vector<1x64x1xf32> to vector<64x1xf32>
    %cst_109 = arith.constant 0.000000e+00 : f32
    %249 = vector.broadcast %cst_109 : f32 to vector<32x1xf32>
    %250 = tpu.concatenate %249, %244, %249 in 1 : vector<32x1xf32>, vector<32x16xf32>, vector<32x1xf32> -> vector<32x18xf32>
    %251 = vector.extract_strided_slice %250 {offsets = [0, 0], sizes = [32, 16], strides = [1, 1]} : vector<32x18xf32> to vector<32x16xf32>
    %252 = vector.extract_strided_slice %3 {offsets = [0, 0], sizes = [1, 16], strides = [1, 1]} : vector<3x16xf32> to vector<1x16xf32>
    %253 = vector.broadcast %252 : vector<1x16xf32> to vector<32x16xf32>
    %254 = arith.mulf %251, %253 : vector<32x16xf32>
    %255 = vector.extract_strided_slice %250 {offsets = [0, 1], sizes = [32, 16], strides = [1, 1]} : vector<32x18xf32> to vector<32x16xf32>
    %256 = vector.extract_strided_slice %3 {offsets = [1, 0], sizes = [1, 16], strides = [1, 1]} : vector<3x16xf32> to vector<1x16xf32>
    %257 = vector.broadcast %256 : vector<1x16xf32> to vector<32x16xf32>
    %258 = arith.mulf %255, %257 : vector<32x16xf32>
    %259 = vector.extract_strided_slice %250 {offsets = [0, 2], sizes = [32, 16], strides = [1, 1]} : vector<32x18xf32> to vector<32x16xf32>
    %260 = vector.extract_strided_slice %3 {offsets = [2, 0], sizes = [1, 16], strides = [1, 1]} : vector<3x16xf32> to vector<1x16xf32>
    %261 = vector.broadcast %260 : vector<1x16xf32> to vector<32x16xf32>
    %262 = arith.mulf %259, %261 : vector<32x16xf32>
    %263 = tpu.concatenate %254, %258, %262 in 0 : vector<32x16xf32>, vector<32x16xf32>, vector<32x16xf32> -> vector<96x16xf32>
    %cst_110 = arith.constant dense<0.000000e+00> : vector<64x16xf32>
    %264 = tpu.matmul %246, %263, %cst_110 {dimension_numbers = #tpu.dot_dimension_numbers<[1], [0], [0], [1], [0, 0, 1, 1], [], []>} : vector<64x96xf32>, vector<96x16xf32>, vector<64x16xf32> -> vector<64x16xf32>
    %265 = vector.broadcast %248 : vector<64x1xf32> to vector<64x16xf32>
    %266 = arith.addf %264, %265 : vector<64x16xf32>
    %cst_111 = arith.constant 0.000000e+00 : f32
    %267 = vector.broadcast %cst_111 : f32 to vector<64x16xf32>
    %268 = arith.maximumf %266, %267 : vector<64x16xf32>
    %269 = vector.broadcast %1 : vector<1x16xf32> to vector<64x16xf32>
    %270 = arith.mulf %268, %269 : vector<64x16xf32>
    %c1_112 = arith.constant 1 : index
    %c0_113 = arith.constant 0 : index
    %c0_114 = arith.constant 0 : index
    %271 = vector.load %arg13[%c1_112, %c0_113, %c0_114] : memref<2x32x192xf32, #tpu.memory_space<vmem>>, vector<1x32x192xf32>
    %272 = vector.shape_cast %271 : vector<1x32x192xf32> to vector<32x192xf32>
    %c1_115 = arith.constant 1 : index
    %c0_116 = arith.constant 0 : index
    %c0_117 = arith.constant 0 : index
    %273 = vector.load %arg14[%c1_115, %c0_116, %c0_117] : memref<2x32x1xf32, #tpu.memory_space<vmem>>, vector<1x32x1xf32>
    %274 = vector.shape_cast %273 : vector<1x32x1xf32> to vector<32x1xf32>
    %cst_118 = arith.constant 0.000000e+00 : f32
    %275 = vector.broadcast %cst_118 : f32 to vector<64x1xf32>
    %276 = tpu.concatenate %275, %270, %275 in 1 : vector<64x1xf32>, vector<64x16xf32>, vector<64x1xf32> -> vector<64x18xf32>
    %277 = vector.extract_strided_slice %276 {offsets = [0, 0], sizes = [64, 16], strides = [1, 1]} : vector<64x18xf32> to vector<64x16xf32>
    %278 = vector.extract_strided_slice %3 {offsets = [0, 0], sizes = [1, 16], strides = [1, 1]} : vector<3x16xf32> to vector<1x16xf32>
    %279 = vector.broadcast %278 : vector<1x16xf32> to vector<64x16xf32>
    %280 = arith.mulf %277, %279 : vector<64x16xf32>
    %281 = vector.extract_strided_slice %276 {offsets = [0, 1], sizes = [64, 16], strides = [1, 1]} : vector<64x18xf32> to vector<64x16xf32>
    %282 = vector.extract_strided_slice %3 {offsets = [1, 0], sizes = [1, 16], strides = [1, 1]} : vector<3x16xf32> to vector<1x16xf32>
    %283 = vector.broadcast %282 : vector<1x16xf32> to vector<64x16xf32>
    %284 = arith.mulf %281, %283 : vector<64x16xf32>
    %285 = vector.extract_strided_slice %276 {offsets = [0, 2], sizes = [64, 16], strides = [1, 1]} : vector<64x18xf32> to vector<64x16xf32>
    %286 = vector.extract_strided_slice %3 {offsets = [2, 0], sizes = [1, 16], strides = [1, 1]} : vector<3x16xf32> to vector<1x16xf32>
    %287 = vector.broadcast %286 : vector<1x16xf32> to vector<64x16xf32>
    %288 = arith.mulf %285, %287 : vector<64x16xf32>
    %289 = tpu.concatenate %280, %284, %288 in 0 : vector<64x16xf32>, vector<64x16xf32>, vector<64x16xf32> -> vector<192x16xf32>
    %cst_119 = arith.constant dense<0.000000e+00> : vector<32x16xf32>
    %290 = tpu.matmul %272, %289, %cst_119 {dimension_numbers = #tpu.dot_dimension_numbers<[1], [0], [0], [1], [0, 0, 1, 1], [], []>} : vector<32x192xf32>, vector<192x16xf32>, vector<32x16xf32> -> vector<32x16xf32>
    %291 = vector.broadcast %274 : vector<32x1xf32> to vector<32x16xf32>
    %292 = arith.addf %290, %291 : vector<32x16xf32>
    %293 = vector.broadcast %1 : vector<1x16xf32> to vector<32x16xf32>
    %294 = arith.mulf %292, %293 : vector<32x16xf32>
    %295 = arith.addf %242, %294 : vector<32x16xf32>
    %c1_120 = arith.constant 1 : index
    %c0_121 = arith.constant 0 : index
    %c0_122 = arith.constant 0 : index
    %296 = vector.load %arg15[%c1_120, %c0_121, %c0_122] : memref<2x32x1xf32, #tpu.memory_space<vmem>>, vector<1x32x1xf32>
    %297 = vector.shape_cast %296 : vector<1x32x1xf32> to vector<32x1xf32>
    %c1_123 = arith.constant 1 : index
    %c0_124 = arith.constant 0 : index
    %c0_125 = arith.constant 0 : index
    %298 = vector.load %arg16[%c1_123, %c0_124, %c0_125] : memref<2x32x1xf32, #tpu.memory_space<vmem>>, vector<1x32x1xf32>
    %299 = vector.shape_cast %298 : vector<1x32x1xf32> to vector<32x1xf32>
    %cst_126 = arith.constant dense<0.000000e+00> : vector<16xf32>
    %300 = vector.multi_reduction <add>, %295, %cst_126 [0] : vector<32x16xf32> to vector<16xf32>
    %301 = vector.shape_cast %300 : vector<16xf32> to vector<1x16xf32>
    %cst_127 = arith.constant 3.200000e+01 : f32
    %302 = vector.broadcast %cst_127 : f32 to vector<1x16xf32>
    %303 = arith.divf %301, %302 : vector<1x16xf32>
    %304 = vector.broadcast %303 : vector<1x16xf32> to vector<32x16xf32>
    %305 = arith.subf %295, %304 : vector<32x16xf32>
    %306 = arith.mulf %305, %305 : vector<32x16xf32>
    %cst_128 = arith.constant dense<0.000000e+00> : vector<16xf32>
    %307 = vector.multi_reduction <add>, %306, %cst_128 [0] : vector<32x16xf32> to vector<16xf32>
    %308 = vector.shape_cast %307 : vector<16xf32> to vector<1x16xf32>
    %cst_129 = arith.constant 3.200000e+01 : f32
    %309 = vector.broadcast %cst_129 : f32 to vector<1x16xf32>
    %310 = arith.divf %308, %309 : vector<1x16xf32>
    %311 = vector.broadcast %303 : vector<1x16xf32> to vector<32x16xf32>
    %312 = arith.subf %295, %311 : vector<32x16xf32>
    %cst_130 = arith.constant 9.99999974E-5 : f32
    %313 = vector.broadcast %cst_130 : f32 to vector<1x16xf32>
    %314 = arith.addf %310, %313 : vector<1x16xf32>
    %315 = math.rsqrt %314 : vector<1x16xf32>
    %316 = vector.broadcast %315 : vector<1x16xf32> to vector<32x16xf32>
    %317 = arith.mulf %312, %316 : vector<32x16xf32>
    %318 = vector.broadcast %297 : vector<32x1xf32> to vector<32x16xf32>
    %319 = arith.mulf %317, %318 : vector<32x16xf32>
    %320 = vector.broadcast %299 : vector<32x1xf32> to vector<32x16xf32>
    %321 = arith.addf %319, %320 : vector<32x16xf32>
    %322 = vector.broadcast %1 : vector<1x16xf32> to vector<32x16xf32>
    %323 = arith.mulf %321, %322 : vector<32x16xf32>
    %c0_131 = arith.constant 0 : index
    %c0_132 = arith.constant 0 : index
    %324 = vector.load %arg17[%c0_131, %c0_132] : memref<32x32xf32, #tpu.memory_space<vmem>>, vector<32x32xf32>
    %cst_133 = arith.constant dense<0.000000e+00> : vector<32x16xf32>
    %325 = tpu.matmul %324, %323, %cst_133 {dimension_numbers = #tpu.dot_dimension_numbers<[1], [0], [0], [1], [0, 0, 1, 1], [], []>} : vector<32x32xf32>, vector<32x16xf32>, vector<32x16xf32> -> vector<32x16xf32>
    %c0_134 = arith.constant 0 : index
    %c0_135 = arith.constant 0 : index
    %326 = vector.load %arg18[%c0_134, %c0_135] : memref<32x1xf32, #tpu.memory_space<vmem>>, vector<32x1xf32>
    %327 = vector.broadcast %326 : vector<32x1xf32> to vector<32x16xf32>
    %328 = arith.addf %325, %327 : vector<32x16xf32>
    %329 = vector.extract_strided_slice %328 {offsets = [0, 0], sizes = [16, 16], strides = [1, 1]} : vector<32x16xf32> to vector<16x16xf32>
    %330 = vector.broadcast %1 : vector<1x16xf32> to vector<16x16xf32>
    %331 = arith.mulf %329, %330 : vector<16x16xf32>
    %c0_136 = arith.constant 0 : index
    %c0_137 = arith.constant 0 : index
    %332 = vector.load %arg29[%c0_136, %c0_137] : memref<16x16xf32, #tpu.memory_space<vmem>>, vector<16x16xf32>
    tpu.vector_store %arg29[%c0_136, %c0_137], %331 {strides = array<i32>} : memref<16x16xf32, #tpu.memory_space<vmem>>, vector<16x16xf32>,
    %333 = vector.extract_strided_slice %328 {offsets = [16, 0], sizes = [16, 16], strides = [1, 1]} : vector<32x16xf32> to vector<16x16xf32>
    %334 = vector.broadcast %1 : vector<1x16xf32> to vector<16x16xf32>
    %335 = arith.mulf %333, %334 : vector<16x16xf32>
    %c0_138 = arith.constant 0 : index
    %c0_139 = arith.constant 0 : index
    %336 = vector.load %arg30[%c0_138, %c0_139] : memref<16x16xf32, #tpu.memory_space<vmem>>, vector<16x16xf32>
    tpu.vector_store %arg30[%c0_138, %c0_139], %335 {strides = array<i32>} : memref<16x16xf32, #tpu.memory_space<vmem>>, vector<16x16xf32>,
    %337 = vector.broadcast %1 : vector<1x16xf32> to vector<32x16xf32>
    %338 = arith.mulf %323, %337 : vector<32x16xf32>
    %c0_140 = arith.constant 0 : index
    %c0_141 = arith.constant 0 : index
    %339 = vector.load %arg19[%c0_140, %c0_141] : memref<64x96xf32, #tpu.memory_space<vmem>>, vector<64x96xf32>
    %c0_142 = arith.constant 0 : index
    %c0_143 = arith.constant 0 : index
    %340 = vector.load %arg20[%c0_142, %c0_143] : memref<64x1xf32, #tpu.memory_space<vmem>>, vector<64x1xf32>
    %cst_144 = arith.constant 0.000000e+00 : f32
    %341 = vector.broadcast %cst_144 : f32 to vector<32x1xf32>
    %342 = tpu.concatenate %341, %338, %341 in 1 : vector<32x1xf32>, vector<32x16xf32>, vector<32x1xf32> -> vector<32x18xf32>
    %343 = vector.extract_strided_slice %342 {offsets = [0, 0], sizes = [32, 16], strides = [1, 1]} : vector<32x18xf32> to vector<32x16xf32>
    %344 = vector.extract_strided_slice %3 {offsets = [0, 0], sizes = [1, 16], strides = [1, 1]} : vector<3x16xf32> to vector<1x16xf32>
    %345 = vector.broadcast %344 : vector<1x16xf32> to vector<32x16xf32>
    %346 = arith.mulf %343, %345 : vector<32x16xf32>
    %347 = vector.extract_strided_slice %342 {offsets = [0, 1], sizes = [32, 16], strides = [1, 1]} : vector<32x18xf32> to vector<32x16xf32>
    %348 = vector.extract_strided_slice %3 {offsets = [1, 0], sizes = [1, 16], strides = [1, 1]} : vector<3x16xf32> to vector<1x16xf32>
    %349 = vector.broadcast %348 : vector<1x16xf32> to vector<32x16xf32>
    %350 = arith.mulf %347, %349 : vector<32x16xf32>
    %351 = vector.extract_strided_slice %342 {offsets = [0, 2], sizes = [32, 16], strides = [1, 1]} : vector<32x18xf32> to vector<32x16xf32>
    %352 = vector.extract_strided_slice %3 {offsets = [2, 0], sizes = [1, 16], strides = [1, 1]} : vector<3x16xf32> to vector<1x16xf32>
    %353 = vector.broadcast %352 : vector<1x16xf32> to vector<32x16xf32>
    %354 = arith.mulf %351, %353 : vector<32x16xf32>
    %355 = tpu.concatenate %346, %350, %354 in 0 : vector<32x16xf32>, vector<32x16xf32>, vector<32x16xf32> -> vector<96x16xf32>
    %cst_145 = arith.constant dense<0.000000e+00> : vector<64x16xf32>
    %356 = tpu.matmul %339, %355, %cst_145 {dimension_numbers = #tpu.dot_dimension_numbers<[1], [0], [0], [1], [0, 0, 1, 1], [], []>} : vector<64x96xf32>, vector<96x16xf32>, vector<64x16xf32> -> vector<64x16xf32>
    %357 = vector.broadcast %340 : vector<64x1xf32> to vector<64x16xf32>
    %358 = arith.addf %356, %357 : vector<64x16xf32>
    %cst_146 = arith.constant 0.000000e+00 : f32
    %359 = vector.broadcast %cst_146 : f32 to vector<64x16xf32>
    %360 = arith.maximumf %358, %359 : vector<64x16xf32>
    %c0_147 = arith.constant 0 : index
    %c0_148 = arith.constant 0 : index
    %361 = vector.load %arg21[%c0_147, %c0_148] : memref<64x1xf32, #tpu.memory_space<vmem>>, vector<64x1xf32>
    %c0_149 = arith.constant 0 : index
    %c0_150 = arith.constant 0 : index
    %362 = vector.load %arg22[%c0_149, %c0_150] : memref<64x1xf32, #tpu.memory_space<vmem>>, vector<64x1xf32>
    %cst_151 = arith.constant dense<0.000000e+00> : vector<16xf32>
    %363 = vector.multi_reduction <add>, %360, %cst_151 [0] : vector<64x16xf32> to vector<16xf32>
    %364 = vector.shape_cast %363 : vector<16xf32> to vector<1x16xf32>
    %cst_152 = arith.constant 6.400000e+01 : f32
    %365 = vector.broadcast %cst_152 : f32 to vector<1x16xf32>
    %366 = arith.divf %364, %365 : vector<1x16xf32>
    %367 = vector.broadcast %366 : vector<1x16xf32> to vector<64x16xf32>
    %368 = arith.subf %360, %367 : vector<64x16xf32>
    %369 = arith.mulf %368, %368 : vector<64x16xf32>
    %cst_153 = arith.constant dense<0.000000e+00> : vector<16xf32>
    %370 = vector.multi_reduction <add>, %369, %cst_153 [0] : vector<64x16xf32> to vector<16xf32>
    %371 = vector.shape_cast %370 : vector<16xf32> to vector<1x16xf32>
    %cst_154 = arith.constant 6.400000e+01 : f32
    %372 = vector.broadcast %cst_154 : f32 to vector<1x16xf32>
    %373 = arith.divf %371, %372 : vector<1x16xf32>
    %374 = vector.broadcast %366 : vector<1x16xf32> to vector<64x16xf32>
    %375 = arith.subf %360, %374 : vector<64x16xf32>
    %cst_155 = arith.constant 9.99999974E-5 : f32
    %376 = vector.broadcast %cst_155 : f32 to vector<1x16xf32>
    %377 = arith.addf %373, %376 : vector<1x16xf32>
    %378 = math.rsqrt %377 : vector<1x16xf32>
    %379 = vector.broadcast %378 : vector<1x16xf32> to vector<64x16xf32>
    %380 = arith.mulf %375, %379 : vector<64x16xf32>
    %381 = vector.broadcast %361 : vector<64x1xf32> to vector<64x16xf32>
    %382 = arith.mulf %380, %381 : vector<64x16xf32>
    %383 = vector.broadcast %362 : vector<64x1xf32> to vector<64x16xf32>
    %384 = arith.addf %382, %383 : vector<64x16xf32>
    %385 = vector.broadcast %1 : vector<1x16xf32> to vector<64x16xf32>
    %386 = arith.mulf %384, %385 : vector<64x16xf32>
    %c0_156 = arith.constant 0 : index
    %c0_157 = arith.constant 0 : index
    %387 = vector.load %arg23[%c0_156, %c0_157] : memref<64x192xf32, #tpu.memory_space<vmem>>, vector<64x192xf32>
    %c0_158 = arith.constant 0 : index
    %c0_159 = arith.constant 0 : index
    %388 = vector.load %arg24[%c0_158, %c0_159] : memref<64x1xf32, #tpu.memory_space<vmem>>, vector<64x1xf32>
    %cst_160 = arith.constant 0.000000e+00 : f32
    %389 = vector.broadcast %cst_160 : f32 to vector<64x1xf32>
    %390 = tpu.concatenate %389, %386, %389 in 1 : vector<64x1xf32>, vector<64x16xf32>, vector<64x1xf32> -> vector<64x18xf32>
    %391 = vector.extract_strided_slice %390 {offsets = [0, 0], sizes = [64, 16], strides = [1, 1]} : vector<64x18xf32> to vector<64x16xf32>
    %392 = vector.extract_strided_slice %3 {offsets = [0, 0], sizes = [1, 16], strides = [1, 1]} : vector<3x16xf32> to vector<1x16xf32>
    %393 = vector.broadcast %392 : vector<1x16xf32> to vector<64x16xf32>
    %394 = arith.mulf %391, %393 : vector<64x16xf32>
    %395 = vector.extract_strided_slice %390 {offsets = [0, 1], sizes = [64, 16], strides = [1, 1]} : vector<64x18xf32> to vector<64x16xf32>
    %396 = vector.extract_strided_slice %3 {offsets = [1, 0], sizes = [1, 16], strides = [1, 1]} : vector<3x16xf32> to vector<1x16xf32>
    %397 = vector.broadcast %396 : vector<1x16xf32> to vector<64x16xf32>
    %398 = arith.mulf %395, %397 : vector<64x16xf32>
    %399 = vector.extract_strided_slice %390 {offsets = [0, 2], sizes = [64, 16], strides = [1, 1]} : vector<64x18xf32> to vector<64x16xf32>
    %400 = vector.extract_strided_slice %3 {offsets = [2, 0], sizes = [1, 16], strides = [1, 1]} : vector<3x16xf32> to vector<1x16xf32>
    %401 = vector.broadcast %400 : vector<1x16xf32> to vector<64x16xf32>
    %402 = arith.mulf %399, %401 : vector<64x16xf32>
    %403 = tpu.concatenate %394, %398, %402 in 0 : vector<64x16xf32>, vector<64x16xf32>, vector<64x16xf32> -> vector<192x16xf32>
    %cst_161 = arith.constant dense<0.000000e+00> : vector<64x16xf32>
    %404 = tpu.matmul %387, %403, %cst_161 {dimension_numbers = #tpu.dot_dimension_numbers<[1], [0], [0], [1], [0, 0, 1, 1], [], []>} : vector<64x192xf32>, vector<192x16xf32>, vector<64x16xf32> -> vector<64x16xf32>
    %405 = vector.broadcast %388 : vector<64x1xf32> to vector<64x16xf32>
    %406 = arith.addf %404, %405 : vector<64x16xf32>
    %cst_162 = arith.constant 0.000000e+00 : f32
    %407 = vector.broadcast %cst_162 : f32 to vector<64x16xf32>
    %408 = arith.maximumf %406, %407 : vector<64x16xf32>
    %c0_163 = arith.constant 0 : index
    %c0_164 = arith.constant 0 : index
    %409 = vector.load %arg25[%c0_163, %c0_164] : memref<64x1xf32, #tpu.memory_space<vmem>>, vector<64x1xf32>
    %c0_165 = arith.constant 0 : index
    %c0_166 = arith.constant 0 : index
    %410 = vector.load %arg26[%c0_165, %c0_166] : memref<64x1xf32, #tpu.memory_space<vmem>>, vector<64x1xf32>
    %cst_167 = arith.constant dense<0.000000e+00> : vector<16xf32>
    %411 = vector.multi_reduction <add>, %408, %cst_167 [0] : vector<64x16xf32> to vector<16xf32>
    %412 = vector.shape_cast %411 : vector<16xf32> to vector<1x16xf32>
    %cst_168 = arith.constant 6.400000e+01 : f32
    %413 = vector.broadcast %cst_168 : f32 to vector<1x16xf32>
    %414 = arith.divf %412, %413 : vector<1x16xf32>
    %415 = vector.broadcast %414 : vector<1x16xf32> to vector<64x16xf32>
    %416 = arith.subf %408, %415 : vector<64x16xf32>
    %417 = arith.mulf %416, %416 : vector<64x16xf32>
    %cst_169 = arith.constant dense<0.000000e+00> : vector<16xf32>
    %418 = vector.multi_reduction <add>, %417, %cst_169 [0] : vector<64x16xf32> to vector<16xf32>
    %419 = vector.shape_cast %418 : vector<16xf32> to vector<1x16xf32>
    %cst_170 = arith.constant 6.400000e+01 : f32
    %420 = vector.broadcast %cst_170 : f32 to vector<1x16xf32>
    %421 = arith.divf %419, %420 : vector<1x16xf32>
    %422 = vector.broadcast %414 : vector<1x16xf32> to vector<64x16xf32>
    %423 = arith.subf %408, %422 : vector<64x16xf32>
    %cst_171 = arith.constant 9.99999974E-5 : f32
    %424 = vector.broadcast %cst_171 : f32 to vector<1x16xf32>
    %425 = arith.addf %421, %424 : vector<1x16xf32>
    %426 = math.rsqrt %425 : vector<1x16xf32>
    %427 = vector.broadcast %426 : vector<1x16xf32> to vector<64x16xf32>
    %428 = arith.mulf %423, %427 : vector<64x16xf32>
    %429 = vector.broadcast %409 : vector<64x1xf32> to vector<64x16xf32>
    %430 = arith.mulf %428, %429 : vector<64x16xf32>
    %431 = vector.broadcast %410 : vector<64x1xf32> to vector<64x16xf32>
    %432 = arith.addf %430, %431 : vector<64x16xf32>
    %c0_172 = arith.constant 0 : index
    %c0_173 = arith.constant 0 : index
    %433 = vector.load %arg27[%c0_172, %c0_173] : memref<1x64xf32, #tpu.memory_space<vmem>>, vector<1x64xf32>
    %434 = vector.broadcast %1 : vector<1x16xf32> to vector<64x16xf32>
    %435 = arith.mulf %432, %434 : vector<64x16xf32>
    %cst_174 = arith.constant dense<0.000000e+00> : vector<1x16xf32>
    %436 = tpu.matmul %433, %435, %cst_174 {dimension_numbers = #tpu.dot_dimension_numbers<[1], [0], [0], [1], [0, 0, 1, 1], [], []>} : vector<1x64xf32>, vector<64x16xf32>, vector<1x16xf32> -> vector<1x16xf32>
    %c0_175 = arith.constant 0 : index
    %c0_176 = arith.constant 0 : index
    %437 = vector.load %arg28[%c0_175, %c0_176] : memref<1x1xf32, #tpu.memory_space<vmem>>, vector<1x1xf32>
    %438 = vector.broadcast %437 : vector<1x1xf32> to vector<1x16xf32>
    %439 = arith.addf %436, %438 : vector<1x16xf32>
    %440 = arith.mulf %439, %1 : vector<1x16xf32>
    %c0_177 = arith.constant 0 : index
    %c0_178 = arith.constant 0 : index
    %441 = vector.load %arg31[%c0_177, %c0_178] : memref<1x16xf32, #tpu.memory_space<vmem>>, vector<1x16xf32>
    tpu.vector_store %arg31[%c0_177, %c0_178], %440 {strides = array<i32>} : memref<1x16xf32, #tpu.memory_space<vmem>>, vector<1x16xf32>,
    return
  }
  func.func @transform_0(%arg0: i32) -> (i32, i32) {
    %c0_i32 = arith.constant 0 : i32
    %c0_i32_0 = arith.constant 0 : i32
    %c0_i32_1 = arith.constant 0 : i32
    return %c0_i32, %c0_i32_0 : i32, i32
  }
  func.func @transform_1(%arg0: i32) -> (i32, i32) {
    %c0_i32 = arith.constant 0 : i32
    %c0_i32_0 = arith.constant 0 : i32
    %c0_i32_1 = arith.constant 0 : i32
    return %c0_i32, %c0_i32_0 : i32, i32
  }
  func.func @transform_2(%arg0: i32) -> (i32, i32) {
    %c0_i32 = arith.constant 0 : i32
    %c0_i32_0 = arith.constant 0 : i32
    %c0_i32_1 = arith.constant 0 : i32
    return %c0_i32, %c0_i32_0 : i32, i32
  }
  func.func @transform_3(%arg0: i32) -> (i32, i32) {
    %c0_i32 = arith.constant 0 : i32
    %c0_i32_0 = arith.constant 0 : i32
    %c0_i32_1 = arith.constant 0 : i32
    return %c0_i32, %c0_i32_0 : i32, i32
  }
  func.func @transform_4(%arg0: i32) -> (i32, i32, i32) {
    %c0_i32 = arith.constant 0 : i32
    %c0_i32_0 = arith.constant 0 : i32
    %c0_i32_1 = arith.constant 0 : i32
    %c0_i32_2 = arith.constant 0 : i32
    return %c0_i32, %c0_i32_0, %c0_i32_1 : i32, i32, i32
  }
  func.func @transform_5(%arg0: i32) -> (i32, i32, i32) {
    %c0_i32 = arith.constant 0 : i32
    %c0_i32_0 = arith.constant 0 : i32
    %c0_i32_1 = arith.constant 0 : i32
    %c0_i32_2 = arith.constant 0 : i32
    return %c0_i32, %c0_i32_0, %c0_i32_1 : i32, i32, i32
  }
  func.func @transform_6(%arg0: i32) -> (i32, i32, i32) {
    %c0_i32 = arith.constant 0 : i32
    %c0_i32_0 = arith.constant 0 : i32
    %c0_i32_1 = arith.constant 0 : i32
    %c0_i32_2 = arith.constant 0 : i32
    return %c0_i32, %c0_i32_0, %c0_i32_1 : i32, i32, i32
  }
  func.func @transform_7(%arg0: i32) -> (i32, i32, i32) {
    %c0_i32 = arith.constant 0 : i32
    %c0_i32_0 = arith.constant 0 : i32
    %c0_i32_1 = arith.constant 0 : i32
    %c0_i32_2 = arith.constant 0 : i32
    return %c0_i32, %c0_i32_0, %c0_i32_1 : i32, i32, i32
  }
  func.func @transform_8(%arg0: i32) -> (i32, i32, i32) {
    %c0_i32 = arith.constant 0 : i32
    %c0_i32_0 = arith.constant 0 : i32
    %c0_i32_1 = arith.constant 0 : i32
    %c0_i32_2 = arith.constant 0 : i32
    return %c0_i32, %c0_i32_0, %c0_i32_1 : i32, i32, i32
  }
  func.func @transform_9(%arg0: i32) -> (i32, i32, i32) {
    %c0_i32 = arith.constant 0 : i32
    %c0_i32_0 = arith.constant 0 : i32
    %c0_i32_1 = arith.constant 0 : i32
    %c0_i32_2 = arith.constant 0 : i32
    return %c0_i32, %c0_i32_0, %c0_i32_1 : i32, i32, i32
  }
  func.func @transform_10(%arg0: i32) -> (i32, i32, i32) {
    %c0_i32 = arith.constant 0 : i32
    %c0_i32_0 = arith.constant 0 : i32
    %c0_i32_1 = arith.constant 0 : i32
    %c0_i32_2 = arith.constant 0 : i32
    return %c0_i32, %c0_i32_0, %c0_i32_1 : i32, i32, i32
  }
  func.func @transform_11(%arg0: i32) -> (i32, i32, i32) {
    %c0_i32 = arith.constant 0 : i32
    %c0_i32_0 = arith.constant 0 : i32
    %c0_i32_1 = arith.constant 0 : i32
    %c0_i32_2 = arith.constant 0 : i32
    return %c0_i32, %c0_i32_0, %c0_i32_1 : i32, i32, i32
  }
  func.func @transform_12(%arg0: i32) -> (i32, i32, i32) {
    %c0_i32 = arith.constant 0 : i32
    %c0_i32_0 = arith.constant 0 : i32
    %c0_i32_1 = arith.constant 0 : i32
    %c0_i32_2 = arith.constant 0 : i32
    return %c0_i32, %c0_i32_0, %c0_i32_1 : i32, i32, i32
  }
  func.func @transform_13(%arg0: i32) -> (i32, i32, i32) {
    %c0_i32 = arith.constant 0 : i32
    %c0_i32_0 = arith.constant 0 : i32
    %c0_i32_1 = arith.constant 0 : i32
    %c0_i32_2 = arith.constant 0 : i32
    return %c0_i32, %c0_i32_0, %c0_i32_1 : i32, i32, i32
  }
  func.func @transform_14(%arg0: i32) -> (i32, i32, i32) {
    %c0_i32 = arith.constant 0 : i32
    %c0_i32_0 = arith.constant 0 : i32
    %c0_i32_1 = arith.constant 0 : i32
    %c0_i32_2 = arith.constant 0 : i32
    return %c0_i32, %c0_i32_0, %c0_i32_1 : i32, i32, i32
  }
  func.func @transform_15(%arg0: i32) -> (i32, i32, i32) {
    %c0_i32 = arith.constant 0 : i32
    %c0_i32_0 = arith.constant 0 : i32
    %c0_i32_1 = arith.constant 0 : i32
    %c0_i32_2 = arith.constant 0 : i32
    return %c0_i32, %c0_i32_0, %c0_i32_1 : i32, i32, i32
  }
  func.func @transform_16(%arg0: i32) -> (i32, i32) {
    %c0_i32 = arith.constant 0 : i32
    %c0_i32_0 = arith.constant 0 : i32
    %c0_i32_1 = arith.constant 0 : i32
    return %c0_i32, %c0_i32_0 : i32, i32
  }
  func.func @transform_17(%arg0: i32) -> (i32, i32) {
    %c0_i32 = arith.constant 0 : i32
    %c0_i32_0 = arith.constant 0 : i32
    %c0_i32_1 = arith.constant 0 : i32
    return %c0_i32, %c0_i32_0 : i32, i32
  }
  func.func @transform_18(%arg0: i32) -> (i32, i32) {
    %c0_i32 = arith.constant 0 : i32
    %c0_i32_0 = arith.constant 0 : i32
    %c0_i32_1 = arith.constant 0 : i32
    return %c0_i32, %c0_i32_0 : i32, i32
  }
  func.func @transform_19(%arg0: i32) -> (i32, i32) {
    %c0_i32 = arith.constant 0 : i32
    %c0_i32_0 = arith.constant 0 : i32
    %c0_i32_1 = arith.constant 0 : i32
    return %c0_i32, %c0_i32_0 : i32, i32
  }
  func.func @transform_20(%arg0: i32) -> (i32, i32) {
    %c0_i32 = arith.constant 0 : i32
    %c0_i32_0 = arith.constant 0 : i32
    %c0_i32_1 = arith.constant 0 : i32
    return %c0_i32, %c0_i32_0 : i32, i32
  }
  func.func @transform_21(%arg0: i32) -> (i32, i32) {
    %c0_i32 = arith.constant 0 : i32
    %c0_i32_0 = arith.constant 0 : i32
    %c0_i32_1 = arith.constant 0 : i32
    return %c0_i32, %c0_i32_0 : i32, i32
  }
  func.func @transform_22(%arg0: i32) -> (i32, i32) {
    %c0_i32 = arith.constant 0 : i32
    %c0_i32_0 = arith.constant 0 : i32
    %c0_i32_1 = arith.constant 0 : i32
    return %c0_i32, %c0_i32_0 : i32, i32
  }
  func.func @transform_23(%arg0: i32) -> (i32, i32) {
    %c0_i32 = arith.constant 0 : i32
    %c0_i32_0 = arith.constant 0 : i32
    %c0_i32_1 = arith.constant 0 : i32
    return %c0_i32, %c0_i32_0 : i32, i32
  }
  func.func @transform_24(%arg0: i32) -> (i32, i32) {
    %c0_i32 = arith.constant 0 : i32
    %c0_i32_0 = arith.constant 0 : i32
    %c0_i32_1 = arith.constant 0 : i32
    return %c0_i32, %c0_i32_0 : i32, i32
  }
  func.func @transform_25(%arg0: i32) -> (i32, i32) {
    %c0_i32 = arith.constant 0 : i32
    %c0_i32_0 = arith.constant 0 : i32
    %c0_i32_1 = arith.constant 0 : i32
    return %c0_i32, %c0_i32_0 : i32, i32
  }
  func.func @transform_26(%arg0: i32) -> (i32, i32) {
    %c0_i32 = arith.constant 0 : i32
    %c0_i32_0 = arith.constant 0 : i32
    %c0_i32_1 = arith.constant 0 : i32
    return %c0_i32, %c0_i32_0 : i32, i32
  }
  func.func @transform_27(%arg0: i32) -> (i32, i32) {
    %c0_i32 = arith.constant 0 : i32
    %c0_i32_0 = arith.constant 0 : i32
    %c0_i32_1 = arith.constant 0 : i32
    return %c0_i32, %c0_i32_0 : i32, i32
  }
  func.func @transform_28(%arg0: i32) -> (i32, i32) {
    %c0_i32 = arith.constant 0 : i32
    %c0_i32_0 = arith.constant 0 : i32
    %c0_i32_1 = arith.constant 0 : i32
    return %c0_i32, %c0_i32_0 : i32, i32
  }
  func.func @transform_29(%arg0: i32) -> (i32, i32) {
    %c0_i32 = arith.constant 0 : i32
    %c0_i32_0 = arith.constant 0 : i32
    %c0_i32_1 = arith.constant 0 : i32
    return %c0_i32, %c0_i32_0 : i32, i32
  }
  func.func @transform_30(%arg0: i32) -> (i32, i32) {
    %c0_i32 = arith.constant 0 : i32
    %c0_i32_0 = arith.constant 0 : i32
    %c0_i32_1 = arith.constant 0 : i32
    return %c0_i32, %c0_i32_0 : i32, i32
  }
}

module attributes {stable_mosaic.version = 11 : i64} {
  func.func @_outputs_kernel(%arg0: i32, %arg1: memref<2x8x16xf32, #tpu.memory_space<vmem>>, %arg2: memref<2x16x8xf32, #tpu.memory_space<vmem>>, %arg3: memref<2x16x8xf32, #tpu.memory_space<vmem>>, %arg4: memref<2x8x1xf32, #tpu.memory_space<vmem>>, %arg5: memref<2x16x16xf32, #tpu.memory_space<vmem>>, %arg6: memref<2x16x16xf32, #tpu.memory_space<vmem>>, %arg7: memref<2x8x1xf32, #tpu.memory_space<vmem>>) attributes {dimension_semantics = [#tpu.dimension_semantics<arbitrary>], iteration_bounds = array<i64: 1>, scalar_prefetch = 0 : i64, scratch_operands = 0 : i64, tpu.core_type = #tpu.core_type<tc>, window_params = [{pipeline_mode = #tpu.pipeline_mode<synchronous>, transform_indices = @transform_0, window_bounds = array<i64: 2, 8, 16>}, {pipeline_mode = #tpu.pipeline_mode<synchronous>, transform_indices = @transform_1, window_bounds = array<i64: 2, 16, 8>}, {pipeline_mode = #tpu.pipeline_mode<synchronous>, transform_indices = @transform_2, window_bounds = array<i64: 2, 16, 8>}, {pipeline_mode = #tpu.pipeline_mode<synchronous>, transform_indices = @transform_3, window_bounds = array<i64: 2, 8, 1>}, {pipeline_mode = #tpu.pipeline_mode<synchronous>, transform_indices = @transform_4, window_bounds = array<i64: 2, 16, 16>}, {pipeline_mode = #tpu.pipeline_mode<synchronous>, transform_indices = @transform_5, window_bounds = array<i64: 2, 16, 16>}, {pipeline_mode = #tpu.pipeline_mode<synchronous>, transform_indices = @transform_6, window_bounds = array<i64: 2, 8, 1>}]} {
    %c0 = arith.constant 0 : index
    %c0_0 = arith.constant 0 : index
    %c0_1 = arith.constant 0 : index
    %0 = vector.load %arg1[%c0, %c0_0, %c0_1] : memref<2x8x16xf32, #tpu.memory_space<vmem>>, vector<2x8x16xf32>
    %c0_2 = arith.constant 0 : index
    %c0_3 = arith.constant 0 : index
    %c0_4 = arith.constant 0 : index
    %1 = vector.load %arg2[%c0_2, %c0_3, %c0_4] : memref<2x16x8xf32, #tpu.memory_space<vmem>>, vector<2x16x8xf32>
    %c0_5 = arith.constant 0 : index
    %c0_6 = arith.constant 0 : index
    %c0_7 = arith.constant 0 : index
    %2 = vector.load %arg3[%c0_5, %c0_6, %c0_7] : memref<2x16x8xf32, #tpu.memory_space<vmem>>, vector<2x16x8xf32>
    %c0_8 = arith.constant 0 : index
    %c0_9 = arith.constant 0 : index
    %c0_10 = arith.constant 0 : index
    %3 = vector.load %arg4[%c0_8, %c0_9, %c0_10] : memref<2x8x1xf32, #tpu.memory_space<vmem>>, vector<2x8x1xf32>
    "tpu.trace_start"() <{level = 10 : i32, message = "bct,bty->bcy"}> : () -> ()
    %cst = arith.constant dense<0.000000e+00> : vector<2x16x16xf32>
    %4 = tpu.matmul %1, %0, %cst {dimension_numbers = #tpu.dot_dimension_numbers<[2], [1], [1], [2], [0, 0, 0, 1, 1, 2], [0], [0]>} : vector<2x16x8xf32>, vector<2x8x16xf32>, vector<2x16x16xf32> -> vector<2x16x16xf32>
    "tpu.trace_stop"() : () -> ()
    %c0_11 = arith.constant 0 : index
    %c0_12 = arith.constant 0 : index
    %c0_13 = arith.constant 0 : index
    %5 = vector.load %arg5[%c0_11, %c0_12, %c0_13] : memref<2x16x16xf32, #tpu.memory_space<vmem>>, vector<2x16x16xf32>
    tpu.vector_store %arg5[%c0_11, %c0_12, %c0_13], %4 {strides = array<i32>} : memref<2x16x16xf32, #tpu.memory_space<vmem>>, vector<2x16x16xf32>,
    "tpu.trace_start"() <{level = 10 : i32, message = "bct,bty->bcy"}> : () -> ()
    %cst_14 = arith.constant dense<0.000000e+00> : vector<2x16x16xf32>
    %6 = tpu.matmul %2, %0, %cst_14 {dimension_numbers = #tpu.dot_dimension_numbers<[2], [1], [1], [2], [0, 0, 0, 1, 1, 2], [0], [0]>} : vector<2x16x8xf32>, vector<2x8x16xf32>, vector<2x16x16xf32> -> vector<2x16x16xf32>
    "tpu.trace_stop"() : () -> ()
    %c0_15 = arith.constant 0 : index
    %c0_16 = arith.constant 0 : index
    %c0_17 = arith.constant 0 : index
    %7 = vector.load %arg6[%c0_15, %c0_16, %c0_17] : memref<2x16x16xf32, #tpu.memory_space<vmem>>, vector<2x16x16xf32>
    tpu.vector_store %arg6[%c0_15, %c0_16, %c0_17], %6 {strides = array<i32>} : memref<2x16x16xf32, #tpu.memory_space<vmem>>, vector<2x16x16xf32>,
    %cst_18 = arith.constant dense<0.000000e+00> : vector<2x8xf32>
    %8 = vector.multi_reduction <add>, %0, %cst_18 [2] : vector<2x8x16xf32> to vector<2x8xf32>
    %9 = vector.shape_cast %8 : vector<2x8xf32> to vector<2x8x1xf32>
    %cst_19 = arith.constant 1.000000e+00 : f32
    %10 = vector.broadcast %cst_19 : f32 to vector<2x8x1xf32>
    %11 = arith.addf %10, %9 : vector<2x8x1xf32>
    %12 = math.log %11 : vector<2x8x1xf32>
    %13 = arith.mulf %12, %3 : vector<2x8x1xf32>
    %c0_20 = arith.constant 0 : index
    %c0_21 = arith.constant 0 : index
    %c0_22 = arith.constant 0 : index
    %14 = vector.load %arg7[%c0_20, %c0_21, %c0_22] : memref<2x8x1xf32, #tpu.memory_space<vmem>>, vector<2x8x1xf32>
    tpu.vector_store %arg7[%c0_20, %c0_21, %c0_22], %13 {strides = array<i32>} : memref<2x8x1xf32, #tpu.memory_space<vmem>>, vector<2x8x1xf32>,
    return
  }
  func.func @transform_0(%arg0: i32) -> (i32, i32, i32) {
    %c0_i32 = arith.constant 0 : i32
    %c0_i32_0 = arith.constant 0 : i32
    %c0_i32_1 = arith.constant 0 : i32
    %c0_i32_2 = arith.constant 0 : i32
    return %c0_i32, %c0_i32_0, %c0_i32_1 : i32, i32, i32
  }
  func.func @transform_1(%arg0: i32) -> (i32, i32, i32) {
    %c0_i32 = arith.constant 0 : i32
    %c0_i32_0 = arith.constant 0 : i32
    %c0_i32_1 = arith.constant 0 : i32
    %c0_i32_2 = arith.constant 0 : i32
    return %c0_i32, %c0_i32_0, %c0_i32_1 : i32, i32, i32
  }
  func.func @transform_2(%arg0: i32) -> (i32, i32, i32) {
    %c0_i32 = arith.constant 0 : i32
    %c0_i32_0 = arith.constant 0 : i32
    %c0_i32_1 = arith.constant 0 : i32
    %c0_i32_2 = arith.constant 0 : i32
    return %c0_i32, %c0_i32_0, %c0_i32_1 : i32, i32, i32
  }
  func.func @transform_3(%arg0: i32) -> (i32, i32, i32) {
    %c0_i32 = arith.constant 0 : i32
    %c0_i32_0 = arith.constant 0 : i32
    %c0_i32_1 = arith.constant 0 : i32
    %c0_i32_2 = arith.constant 0 : i32
    return %c0_i32, %c0_i32_0, %c0_i32_1 : i32, i32, i32
  }
  func.func @transform_4(%arg0: i32) -> (i32, i32, i32) {
    %c0_i32 = arith.constant 0 : i32
    %c0_i32_0 = arith.constant 0 : i32
    %c0_i32_1 = arith.constant 0 : i32
    %c0_i32_2 = arith.constant 0 : i32
    return %c0_i32, %c0_i32_0, %c0_i32_1 : i32, i32, i32
  }
  func.func @transform_5(%arg0: i32) -> (i32, i32, i32) {
    %c0_i32 = arith.constant 0 : i32
    %c0_i32_0 = arith.constant 0 : i32
    %c0_i32_1 = arith.constant 0 : i32
    %c0_i32_2 = arith.constant 0 : i32
    return %c0_i32, %c0_i32_0, %c0_i32_1 : i32, i32, i32
  }
  func.func @transform_6(%arg0: i32) -> (i32, i32, i32) {
    %c0_i32 = arith.constant 0 : i32
    %c0_i32_0 = arith.constant 0 : i32
    %c0_i32_1 = arith.constant 0 : i32
    %c0_i32_2 = arith.constant 0 : i32
    return %c0_i32, %c0_i32_0, %c0_i32_1 : i32, i32, i32
  }
}

</mosaic_0001>

<bundles_post_ra>
// kernel: mul.97
= control target key start
LH: loop header
LB: loop body
LE: loop exit
PB: predicated region body
PF: predicated region fallthrough
CT: control target
= control target key end

     0   :  { %s7_s6 = smov 3  ;;  %s21_s9 = smov 3  ;;  %vm4_vm0 = vcmask 15360   ;;  %vm11_vm1 = vcmask 130160   ;;  %vm18_vm2 = vcmask 113760   ;;  %vm25_vm3 = vcmask 97360   ;;  %s121_s0 = inlined_call_operand.vmem [shape: f32[2,8,1,2], index: 0, kind: input, shape index: {}]   ;;  %s122_s1 = inlined_call_operand.vmem [shape: f32[2,16], index: 1, kind: output, shape index: {}]  }
   0x1   :  { %v63_v0 = vld [vmem:[%s121_s0 + $0x7] ss:$8 sm:%s7_s6]   ;;  %s77_s10 = smov 14   ;;  %v65_v1 = vld [vmem:[%s121_s0 + $0x5] ss:$8 sm:%s21_s9]   ;;  %s14_s13 = smov 3 }
   0x2   :  { %9 = vrot.lane.b32.xlu0 %v63_v0, %s77_s10  ;;  %s78_s14 = smov 10   ;;  %v64_v2 = vld [vmem:[%s121_s0 + $0x6] ss:$8 sm:%s14_s13]   ;;  %s28_s17 = smov 3  ;;  %vm32_vm4 = vcmask 80960   ;;  %vm39_vm5 = vcmask 64560  }
   0x3   :  { %23 = vrot.lane.b32.xlu1 %v65_v1, %s78_s14  ;;  %v66_v3 = vld [vmem:[%s121_s0 + $0x4] ss:$8 sm:%s28_s17]   ;;  %s35_s20 = smov 3  ;;  %s42_s21 = smov 3  ;;  %vm46_vm6 = vcmask 48160   ;;  %vm53_vm7 = vcmask 31760  }
   0x4   :  { %s79_s22 = smov 12   ;;  %s80_s23 = smov 8   ;;  %v67_v4 = vld [vmem:[%s121_s0 + $0x3] ss:$8 sm:%s35_s20]   ;;  %v68_v5 = vld [vmem:[%s121_s0 + $0x2] ss:$8 sm:%s42_s21]  }
   0x5   :  { %s2_s26 = smov 3  ;;  %s49_s29 = smov 3 }
   0x6   :  { %16 = vrot.lane.b32.xlu0 %v64_v2, %s79_s22  ;;  %v3_v6 = vld [vmem:[%s121_s0] ss:$8 sm:%s2_s26]   ;;  %s81_s3 = smov 6   ;;  %s82_s4 = smov 4  }
   0x7   :  { %30 = vrot.lane.b32.xlu1 %v66_v3, %s80_s23  ;;  %5 = vst.msk [vmem:[#allocation0] sm:$0x3] %vm4_vm0, %v3_v6   ;;  %v69_v7 = vld [vmem:[%s121_s0 + $0x1] ss:$8 sm:%s49_s29]   ;;  %s83_s0 = smov 2  }
   0xa   :  { %37 = vrot.lane.b32.xlu0 %v67_v4, %s81_s3 }
   0xb   :  { %44 = vrot.lane.b32.xlu1 %v68_v5, %s82_s4 }
   0xe   :  { %51 = vrot.lane.b32.xlu0 %v69_v7, %s83_s0 }
  0x74   :  { %v10_v8 = vpop.permute.xlu0 %9  }
  0x75   :  { %12 = vst.msk [vmem:[#allocation0] sm:$0x3] %vm11_vm1, %v10_v8   ;;  %v24_v9 = vpop.permute.xlu1 %23  }
  0x78   :  { %v17_v10 = vpop.permute.xlu0 %16  }
  0x79   :  { %19 = vst.msk [vmem:[#allocation0] sm:$0x3] %vm18_vm2, %v17_v10   ;;  %v31_v11 = vpop.permute.xlu1 %30  }
  0x7a   :  { %26 = vst.msk [vmem:[#allocation0] sm:$0x3] %vm25_vm3, %v24_v9  }
  0x7b   :  { %33 = vst.msk [vmem:[#allocation0] sm:$0x3] %vm32_vm4, %v31_v11  }
  0x7c   :  { %v38_v12 = vpop.permute.xlu0 %37  }
  0x7d   :  { %40 = vst.msk [vmem:[#allocation0] sm:$0x3] %vm39_vm5, %v38_v12   ;;  %v45_v13 = vpop.permute.xlu1 %44  }
  0x7e   :  { %47 = vst.msk [vmem:[#allocation0] sm:$0x3] %vm46_vm6, %v45_v13  }
  0x80   :  { %v52_v14 = vpop.permute.xlu0 %51  }
  0x81   :  { %54 = vst.msk [vmem:[#allocation0] sm:$0x3] %vm53_vm7, %v52_v14  }
  0x88   :  { %v59_v15 = vld [vmem:[#allocation0] sm:$0x3] }
  0x89   :  { %62 = vst [vmem:[%s122_s1] sm:$0x3] %v59_v15 }

// kernel: custom-call.31
= control target key start
LH: loop header
LB: loop body
LE: loop exit
PB: predicated region body
PF: predicated region fallthrough
CT: control target
= control target key end

     0   :  { %s6_s0 = inlined_call_operand.vmem [shape: s32[16,2,8], index: 0, kind: output, shape index: {}]  }

// kernel: custom-call.18
= control target key start
LH: loop header
LB: loop body
LE: loop exit
PB: predicated region body
PF: predicated region fallthrough
CT: control target
= control target key end

     0   :  { %s6_s0 = inlined_call_operand.vmem [shape: f32[2,8], index: 0, kind: output, shape index: {}]  }

// kernel: glow_tts_forward.6
= control target key start
LH: loop header
LB: loop body
LE: loop exit
PB: predicated region body
PF: predicated region fallthrough
CT: control target
= control target key end

     0   :  { %v413_v0 = vmov 0.0   ;;  %vm414_vm0 = vmmov 0   ;;  %vm30_vm1 = vcmask 130048   ;;  %s491_s2 = inlined_call_operand.vmem [shape: f32[2,16,16], index: 2, kind: input, shape index: {}]   ;;  %s492_s1 = inlined_call_operand.vmem [shape: f32[2,8,16], index: 1, kind: input, shape index: {}]   ;;  %s493_s0 = inlined_call_operand.vmem [shape: f32[2,8,16], index: 0, kind: input, shape index: {}]   ;;  %s494_s3 = inlined_call_operand.vmem [shape: f32[2,8,16], index: 3, kind: output, shape index: {}]  }
   0x1   :  { %379 = vmatprep.subr.mxu0 %v413_v0  ;;  %386 = vmatprep.subr.mxu1 %v413_v0  ;;  %v19_v1 = vld [vmem:[%s491_s2 + $0x8] sm:$0xff]  ;;  %v21_v2 = vld [vmem:[%s491_s2 + $0x18] sm:$0xff]  ;;  %v18_v3 = vld [vmem:[%s491_s2] sm:$0xff] }
   0x2   :  { %v38_v4 = vmul.f32 -0.5, %v19_v1  ;;  %v40_v5 = vmul.f32 -0.5, %v21_v2  ;;  %v37_v6 = vmul.f32 -0.5, %v18_v3  ;;  %v20_v7 = vld [vmem:[%s491_s2 + $0x10] sm:$0xff]  ;;  %383 = vmatprep.mubr.msk.f32.mxu0 %vm414_vm0, %v413_v0  ;;  %390 = vmatprep.mubr.msk.f32.mxu1 %vm414_vm0, %v413_v0  ;;  %v16_v8 = vld [vmem:[%s492_s1] sm:$0xff]  ;;  %v17_v9 = vld [vmem:[%s492_s1 + $0x8] sm:$0xff] }
   0x3   :  { %v39_v10 = vmul.f32 -0.5, %v20_v7  ;;  %v22_v11 = vmul.f32 -2.0, %v16_v8  ;;  %v23_v12 = vmul.f32 -2.0, %v17_v9  ;;  %v28_v16 = vsub.f32 -0.9189385, %v16_v8  ;;  %v14_v23 = vld [vmem:[%s493_s0] sm:$0xff] }
   0x4   :  { %v42_v13 = vmul.f32 %v38_v4, %v19_v1  ;;  %v44_v14 = vmul.f32 %v40_v5, %v21_v2  ;;  %v41_v15 = vmul.f32 %v37_v6, %v18_v3  ;;  %v29_v21 = vsub.f32 -0.9189385, %v17_v9  ;;  %v15_v25 = vld [vmem:[%s493_s0 + $0x8] sm:$0xff] }
   0x5   :  { %v43_v17 = vmul.f32 %v39_v10, %v20_v7  ;;  %v24_v18 = vmul.f32 1.442695, %v22_v11  ;;  %v26_v19 = vmul.f32 1.442695, %v23_v12  ;;  %v31_v20 = vsel %vm30_vm1, %v28_v16, 0.0 }
   0x6   :  { %380 = vmatpush3.msra.mxu0 %v42_v13  ;;  %387 = vmatpush3.msra.mxu1 %v44_v14  ;;  %v34_v22 = vsel %vm30_vm1, %v29_v21, 0.0  ;;  %v339_v24 = vmul.f32 -0.5, %v14_v23  ;;  %v340_v26 = vmul.f32 -0.5, %v15_v25 }
   0x7   :  { %381 = vmatprep.subr.mxu0 %v413_v0  ;;  %388 = vmatprep.subr.mxu1 %v413_v0  ;;  %409 = vpow2.f32 %v24_v18 }
   0x8   :  { %382 = vmatpush3.msra.mxu0 %v41_v15  ;;  %389 = vmatpush3.msra.mxu1 %v43_v17  ;;  %411 = vpow2.f32 %v26_v19  ;;  %v341_v27 = vmul.f32 %v339_v24, %v14_v23  ;;  %v342_v29 = vmul.f32 %v340_v26, %v15_v25 }
   0x9   :  { %393 = vmatprep.subr.mxu0 %v413_v0  ;;  %400 = vmatprep.subr.mxu1 %v413_v0 }
   0xa   :  { %32 = vadd.xlane.f32.xlu0 %v31_v20 }
   0xe   :  { %35 = vadd.xlane.f32.xlu0 %v34_v22 }
  0x14   :  { %v410_v28 = vpop.eup %409 }
  0x15   :  { %v412_v30 = vpop.eup %411  ;;  %384 = vmatmul.mubr.msk.f32.vlgmr.msra.gmra.mxu0 %vm30_vm1, %v410_v28  ;;  %v343_v31 = vmul.f32 %v410_v28, %v341_v27  ;;  %v191_v32 = vmul.f32 %v410_v28, %v14_v23 }
  0x16   :  { %391 = vmatmul.mubr.msk.f32.vlgmr.msra.gmra.mxu1 %vm30_vm1, %v412_v30  ;;  %394 = vmatpush3.msra.mxu0 %v19_v1  ;;  %v192_v33 = vmul.f32 %v412_v30, %v15_v25  ;;  %v344_v35 = vmul.f32 %v412_v30, %v342_v29 }
  0x17   :  { %401 = vmatpush3.msra.mxu1 %v21_v2  ;;  %395 = vmatprep.subr.mxu0 %v413_v0  ;;  %v345_v34 = vsel %vm30_vm1, %v343_v31, 0.0 }
  0x18   :  { %402 = vmatprep.subr.mxu1 %v413_v0  ;;  %396 = vmatpush3.msra.mxu0 %v18_v3  ;;  %v348_v36 = vsel %vm30_vm1, %v344_v35, 0.0 }
  0x19   :  { %403 = vmatpush3.msra.mxu1 %v20_v7  ;;  %397 = vmatprep.mubr.msk.f32.mxu0 %vm414_vm0, %v413_v0 }
  0x1a   :  { %404 = vmatprep.mubr.msk.f32.mxu1 %vm414_vm0, %v413_v0  ;;  %398 = vmatmul.mubr.msk.f32.vlgmr.msra.gmra.mxu0 %vm30_vm1, %v191_v32 }
  0x1b   :  { %405 = vmatmul.mubr.msk.f32.vlgmr.msra.gmra.mxu1 %vm30_vm1, %v192_v33  ;;  %346 = vadd.xlane.f32.xlu1 %v345_v34 }
  0x1f   :  { %349 = vadd.xlane.f32.xlu1 %v348_v36 }
  0x93   :  { %v33_v37 = vpop.xlane.xlu0 %32 }
  0x97   :  { %v36_v41 = vpop.xlane.xlu0 %35 }
  0xa4   :  { %v347_v39 = vpop.xlane.xlu1 %346 }
  0xa8   :  { %v350_v49 = vpop.xlane.xlu1 %349 }
  0xd5   :  { %v114_v38 = vpop.f32.mrf.mxu0 }
  0xd6   :  { %v187_v40 = vpop.f32.mrf.mxu1  ;;  %v351_v44 = vadd.f32 %v114_v38, %v33_v37 }
  0xd7   :  { %v385_v42 = vpop.f32.mrf.mxu0  ;;  %v352_v45 = vadd.f32 %v187_v40, %v36_v41 }
  0xd8   :  { %v392_v43 = vpop.f32.mrf.mxu1 }
  0xda   :  { %v262_v46 = vpop.f32.mrf.mxu0 }
  0xdb   :  { %v353_v47 = vadd.f32 %v351_v44, %v262_v46  ;;  %v335_v48 = vpop.f32.mrf.mxu1 }
  0xdc   :  { %v354_v50 = vadd.f32 %v352_v45, %v335_v48  ;;  %v399_v51 = vpop.f32.mrf.mxu0 }
  0xdd   :  { %v355_v52 = vadd.f32 %v353_v47, %v347_v39  ;;  %v406_v53 = vpop.f32.mrf.mxu1 }
  0xde   :  { %v356_v54 = vadd.f32 %v354_v50, %v350_v49 }
  0xdf   :  { %357 = vst.msk [vmem:[%s494_s3] sm:$0xff] %vm30_vm1, %v355_v52 }
  0xe0   :  { %358 = vst.msk [vmem:[%s494_s3 + $0x8] sm:$0xff] %vm30_vm1, %v356_v54 }

// kernel: custom-call.19
= control target key start
LH: loop header
LB: loop body
LE: loop exit
PB: predicated region body
PF: predicated region fallthrough
CT: control target
= control target key end

     0   :  { %5 = vsyncpa [#allocation6], 0  ;;  %s549_s0 = inlined_call_operand.vmem [shape: f32[4,4], index: 0, kind: input, shape index: {}]   ;;  %s550_s1 = inlined_call_operand.vmem [shape: f32[4,4], index: 1, kind: output, shape index: {0}]   ;;  %s551_s2 = inlined_call_operand.hbm [shape: s32[4], index: 2, kind: output, shape index: {1}]   ;;  %s552_s3 = inlined_call_operand.hbm [shape: s32[4], index: 3, kind: output, shape index: {2}]  }
   0x1   :  { %6 = vsyncpa [#allocation9], 0  ;;  %v68_v0 = vld [vmem:[%s549_s0] sm:$0xf]  ;;  %v78_v1 = vlaneseq  ;;  %v478_v2 = vmov 0   ;;  %s508_s14 = smov 0  }
   0x2   :  { %69 = vst [vmem:[#allocation1] sm:$0xf] %v68_v0  ;;  %77 = vst [vmem:[#allocation4] sm:$0x1] %v478_v2 }
   0x3   :  { %v505_v3 = vshrl.u32 %v78_v1, 7 }
   0x5   :  { %82 = vst [vmem:[#allocation10] sm:$0xff] %v505_v3 }
   0x9   :  { %v73_v4 = vld [vmem:[#allocation1] sm:$0xf] }
   0xa   :  { %74 = vst [vmem:[#allocation0] sm:$0xf] %v73_v4 }
  0x11   :  { %v75_v5 = vld [vmem:[#allocation0] sm:$0xff] }
  0x12   :  { %76 = vst [vmem:[#allocation2] sm:$0xff] %v75_v5 }
  0x13 LB: > { %vm98_vm0 = vcmp.lt.s32.totalorder %v505_v3, 4  ;;  %v515_v8 = vstv %s476_s14  ;;  %s139_s0 = ssub.s32 128, %s476_s14  ;;  %v145_v38 = vand.u32 127, %v78_v1  ;;  %v148_v40 = vld [vmem:[#allocation4] ss:$0 sm:$0xff]  ;;  %s151_s15 = scalar_lea.vmem [#allocation2], %s476_s14  ;;  %s476_s14 = sphi %s508_s14, %s88_s14  }
  0x14   : > { %vm97_vm1 = vcmp.ge.s32.totalorder %v505_v3, %v515_v8  ;;  %s157_s17 = scalar_lea.vmem [#allocation10], %s476_s14  ;;  %vm177_vm15 = vcmp.gt.s32.totalorder %v505_v3, %v515_v8  ;;  %s88_s14 = sadd.s32 1, %s476_s14  }
  0x15   : > { %vm99_vm3 = vmand %vm97_vm1, %vm98_vm0  ;;  %vm169_vm12 = vcmp.gt.s32.totalorder %v145_v38, %v515_v8  ;;  %vm146_vm13 = vcmp.eq.s32.totalorder %v145_v38, %v515_v8  ;;  %v159_v42 = vld [vmem:[%s157_s17] ss:$0 sm:$0xff]  ;;  %p85_p0 = scmp.ge.s32.totalorder %s88_s14, 4  }
  0x16   : > { %vm181_vm1 = vmand %vm177_vm15, %vm146_vm13  ;;  %s479_s20 = smov (%p85_p0), [#allocation5]  }
  0x17   :  { %s329_s21 = sshll.u32 (%p85_p0), %s479_s20, 4  ;;  %s330_s21 = int_to_ptr.vmem [resolvable:$true] %s329_s21 }
  0x18   :  { %s426_s22 = scalar_lea.vmem (%p85_p0), %s330_s21, 16  ;;  %s430_s23 = scalar_lea.vmem (%p85_p0), %s330_s21, 32 }
  0x19   : > { %v93_v6 = vld [vmem:[#allocation2] sm:$0xff]  ;;  %v153_v41 = vld [vmem:[%s151_s15] ss:$0 sm:$0xff]  ;;  %p427_p1 = scmp.ne.s32.totalorder (%p85_p0), %s330_s21, %s426_s22  ;;  %p431_p2 = scmp.lt.s32.totalorder (%p85_p0), %s330_s21, %s330_s21 }
  0x1a   : > { %v94_v7 = vand.u32 2147483647, %v93_v6  ;;  %p432_p3 = scmp.lt.s32.totalorder (%p85_p0), %s430_s23, %s426_s22 }
  0x1c   : > { %vm407_vm2 = vcmp.gt.f32.partialorder %v94_v7, -inf  ;;  %p433_p4 = por (%p85_p0), %p432_p3, %p431_p2 }
  0x1d   : > { %vm101_vm4 = vmand %vm99_vm3, %vm407_vm2 }
  0x1e   : > { %v102_v9 = vsel %vm101_vm4, %v505_v3, %v515_v8  ;;  %v103_v10 = vsel %vm101_vm4, %v94_v7, -inf  ;;  %p434_p5 = pnand (%p85_p0), %p433_p4, %p427_p1 }
  0x1f   : > { %v104_v11 = vrot.slane %v103_v10, 1  ;;  %v105_v12 = vrot.slane %v102_v9, 1 }
  0x21   : > { %vm106_vm5 = vcmp.ge.f32.partialorder %v104_v11, %v103_v10  ;;  %v109_v13 = vrot.slane %v104_v11, 1  ;;  %v110_v14 = vrot.slane %v105_v12, 1 }
  0x22   : > { %v107_v15 = vsel %vm106_vm5, %v104_v11, %v103_v10  ;;  %v108_v16 = vsel %vm106_vm5, %v105_v12, %v102_v9 }
  0x23   : > { %vm111_vm6 = vcmp.ge.f32.partialorder %v109_v13, %v107_v15  ;;  %v114_v17 = vrot.slane %v109_v13, 1  ;;  %v115_v18 = vrot.slane %v110_v14, 1 }
  0x24   : > { %v112_v19 = vsel %vm111_vm6, %v109_v13, %v107_v15  ;;  %v113_v20 = vsel %vm111_vm6, %v110_v14, %v108_v16 }
  0x25   : > { %vm116_vm7 = vcmp.ge.f32.partialorder %v114_v17, %v112_v19  ;;  %v119_v21 = vrot.slane %v114_v17, 1  ;;  %v120_v22 = vrot.slane %v115_v18, 1 }
  0x26   : > { %v117_v23 = vsel %vm116_vm7, %v114_v17, %v112_v19  ;;  %v118_v24 = vsel %vm116_vm7, %v115_v18, %v113_v20 }
  0x27   : > { %vm121_vm8 = vcmp.ge.f32.partialorder %v119_v21, %v117_v23  ;;  %v124_v25 = vrot.slane %v119_v21, 1  ;;  %v125_v26 = vrot.slane %v120_v22, 1 }
  0x28   : > { %v122_v27 = vsel %vm121_vm8, %v119_v21, %v117_v23  ;;  %v123_v28 = vsel %vm121_vm8, %v120_v22, %v118_v24 }
  0x29   : > { %vm126_vm9 = vcmp.ge.f32.partialorder %v124_v25, %v122_v27  ;;  %v129_v29 = vrot.slane %v124_v25, 1  ;;  %v130_v30 = vrot.slane %v125_v26, 1 }
  0x2a   : > { %v127_v31 = vsel %vm126_vm9, %v124_v25, %v122_v27  ;;  %v128_v32 = vsel %vm126_vm9, %v125_v26, %v123_v28 }
  0x2b   : > { %vm131_vm10 = vcmp.ge.f32.partialorder %v129_v29, %v127_v31  ;;  %v134_v33 = vrot.slane %v129_v29, 1  ;;  %v135_v34 = vrot.slane %v130_v30, 1 }
  0x2c   : > { %v132_v35 = vsel %vm131_vm10, %v129_v29, %v127_v31  ;;  %v133_v36 = vsel %vm131_vm10, %v130_v30, %v128_v32 }
  0x2d   : > { %vm136_vm11 = vcmp.ge.f32.partialorder %v134_v33, %v132_v35 }
  0x2e   : > { %v138_v37 = vsel %vm136_vm11, %v135_v34, %v133_v36 }
  0x2f   : > { %140 = vrot.lane.b32.xlu0 %v138_v37, %s139_s0 }
  0xa1   : > { %v141_v39 = vpop.permute.xlu0 %140 }
  0xa2   : > { %411 = vpush %v141_v39 }
  0xd3   : > { %s412_s16 = spop %411 }
  0xd4   : > { %v147_v43 = vstv %s412_s16  ;;  %s152_s18 = scalar_lea.vmem [#allocation2], %s412_s16  ;;  %s158_s19 = scalar_lea.vmem [#allocation10], %s412_s16 }
  0xd5   : > { %v154_v44 = vld [vmem:[%s152_s18] ss:$0 sm:$0xff]  ;;  %v149_v46 = vsel %vm146_vm13, %v147_v43, %v148_v40 }
  0xd6   : > { %v160_v45 = vld [vmem:[%s158_s19] ss:$0 sm:$0xff]  ;;  %155 = vst [vmem:[%s152_s18] sm:$0x1] %v153_v41  ;;  %vm163_vm14 = vcmp.ne.f32.partialorder %v154_v44, 0.0  ;;  %150 = vst [vmem:[#allocation4] sm:$0x1] %v149_v46 }
  0xd7   : > { %161 = vst [vmem:[%s158_s19] sm:$0x1] %v159_v42  ;;  %156 = vst [vmem:[%s151_s15] sm:$0x1] %v154_v44  ;;  %v170_v53 = vsel %vm169_vm12, %v154_v44, 0.0 }
  0xd8   : > { %162 = vst [vmem:[%s157_s17] sm:$0x1] %v160_v45  ;;  %vm164_vm0 = vmand %vm146_vm13, %vm163_vm14 }
  0xd9   : > { %v165_v47 = vsel %vm164_vm0, %v154_v44, 1.0 }
  0xda   : > { %v178_v48 = vsel %vm177_vm15, %v165_v47, 1.0 }
  0xdb   : > { %424 = vrcp.f32 %v178_v48 }
  0xdd   :  { %v249_v59 = vld [vmem:[#allocation4] sm:$0x1] (%p85_p0) }
  0xde   : > { %v174_v50 = vld [vmem:[#allocation2] sm:$0xff]  ;;  %252 = vst [vmem:[#allocation5] sm:$0x1] (%p85_p0), %v249_v59 }
  0xdf   :  { %v188_v57 = vld [vmem:[#allocation10] sm:$0xff] (%p85_p0) }
  0xe8   : > { %v425_v49 = vpop.eup %424 }
  0xe9   : > { %v180_v51 = vmul.f32 %v425_v49, %v174_v50 }
  0xeb   : > { %v182_v52 = vsel %vm181_vm1, %v180_v51, 0.0 }
  0xec   : > { %183 = vadd.xlane.f32.xlu0 %v182_v52 }
 0x119   :  { %204 = vxpose.xlu0.b32.start.end [1/1] (short) (narrow) (%p85_p0), %v188_v57, 8 }
 0x175   : > { %v184_v54 = vpop.xlane.xlu0 %183 }
 0x176   : > { %v185_v55 = vmul.f32 %v184_v54, %v170_v53  ;;  %87 = sbr.rel (!%p85_p0) target bundleno = 19 (0x13), region = 134 }
 0x178   : > { %v186_v56 = vsub.f32 %v180_v51, %v185_v55 }
 0x17a   : > { %187 = vst [vmem:[#allocation2] sm:$0xff] %v186_v56 }
 0x181   :  { %v241_v58 = vld [vmem:[#allocation2] sm:$0xf] }
 0x182   :  { %244 = vst [vmem:[#allocation3] sm:$0xf] %v241_v58 }
 0x183   :  { %437 = shalt.err (!%p434_p5)
}
 0x184   :  { %332 = dma.vmem_to_hbm [thread:$0]  %s330_s21, 16, %s551_s2, [#allocation6]  }
 0x185   :  { %s480_s28 = smov [#allocation8]  }
 0x186   :  { %s338_s29 = sshll.u32 %s480_s28, 4  ;;  %s339_s29 = int_to_ptr.vmem [resolvable:$true] %s338_s29 }
 0x187   :  { %s446_s30 = scalar_lea.vmem %s339_s29, 16  ;;  %s450_s4 = scalar_lea.vmem %s339_s29, 32 }
 0x188   :  { %p447_p6 = scmp.ne.s32.totalorder %s339_s29, %s446_s30  ;;  %p451_p7 = scmp.lt.s32.totalorder %s339_s29, %s339_s29 }
 0x189   :  { %v322_v60 = vld [vmem:[#allocation3] sm:$0xf]  ;;  %p452_p8 = scmp.lt.s32.totalorder %s450_s4, %s446_s30 }
 0x18a   :  { %323 = vst [vmem:[%s550_s1] sm:$0xf] %v322_v60 }
 0x18b   :  { %p453_p9 = por %p452_p8, %p451_p7 }
 0x18d   :  { %p454_p10 = pnand %p453_p9, %p447_p6 }
 0x195   :  { %v220_v61 = vpop.trf.xlu0 }
 0x196   :  { %236 = vst [vmem:[#allocation7] sm:$0x1] %v220_v61 }
 0x19d   :  { %v257_v62 = vld [vmem:[#allocation7] sm:$0x1] }
 0x19e   :  { %260 = vst [vmem:[#allocation8] sm:$0x1] %v257_v62 }
 0x19f   :  { %457 = shalt.err (!%p454_p10)
}
 0x1a0   :  { %341 = dma.vmem_to_hbm [thread:$0]  %s339_s29, 16, %s552_s3, [#allocation9]  }
 0x1a1   :  { %470 = dma.done.wait [#allocation6], 16  }
 0x1a2   :  { %471 = vsyncadd [#allocation6], 4294967280 }
 0x1a3   :  { %472 = dma.done.wait [#allocation9], 16  }
 0x1a4   :  { %473 = vsyncadd [#allocation9], 4294967280 }
 0x1a5   :  { %348 = vsyncpa [#allocation6], 1 }
 0x1a6   :  { %349 = vsyncpa [#allocation9], 1 }

// kernel: glow_tts_forward.5
= control target key start
LH: loop header
LB: loop body
LE: loop exit
PB: predicated region body
PF: predicated region fallthrough
CT: control target
= control target key end

     0   :  { %vm84_vm0 = vcmask 261120   ;;  %v5704_v2 = vmov 0   ;;  %vm220_vm1 = vcmask 130048   ;;  %v372_v26 = vlaneseq  ;;  %s5706_s22 = smov 3   ;;  %s5707_s23 = smov 1   ;;  %s7691_s0 = inlined_call_operand.vmem [shape: f32[32,16], index: 0, kind: input, shape index: {}]   ;;  %s7692_s4 = inlined_call_operand.vmem [shape: f32[3,32,32], index: 4, kind: input, shape index: {}]   ;;  %s7693_s5 = inlined_call_operand.vmem [shape: f32[3,32,1], index: 5, kind: input, shape index: {}]   ;;  %s7694_s7 = inlined_call_operand.vmem [shape: f32[3,32,1], index: 7, kind: input, shape index: {}]   ;;  %s7695_s6 = inlined_call_operand.vmem [shape: f32[3,32,16], index: 6, kind: input, shape index: {}]   ;;  %s7696_s1 = inlined_call_operand.vmem [shape: f32[1,16], index: 1, kind: input, shape index: {}]   ;;  %s7697_s3 = inlined_call_operand.vmem [shape: f32[5,16], index: 3, kind: input, shape index: {}]   ;;  %s7698_s10 = inlined_call_operand.vmem [shape: f32[6,64,160], index: 10, kind: input, shape index: {}]   ;;  %s7699_s11 = inlined_call_operand.vmem [shape: f32[6,64,1], index: 11, kind: input, shape index: {}]   ;;  %s7700_s13 = inlined_call_operand.vmem [shape: f32[6,64,1], index: 13, kind: input, shape index: {}]   ;;  %s7701_s12 = inlined_call_operand.vmem [shape: f32[6,64,32], index: 12, kind: input, shape index: {}]   ;;  %s7702_s9 = inlined_call_operand.vmem [shape: f32[3,32,1], index: 9, kind: input, shape index: {}]   ;;  %s7703_s8 = inlined_call_operand.vmem [shape: f32[3,32,32], index: 8, kind: input, shape index: {}]   ;;  %s7704_s2 = inlined_call_operand.vmem [shape: f32[2,16], index: 2, kind: input, shape index: {}]   ;;  %s7705_s14 = inlined_call_operand.vmem [shape: f32[32,16], index: 14, kind: output, shape index: {0}]   ;;  %s7706_s15 = inlined_call_operand.vmem [shape: f32[1,2], index: 15, kind: output, shape index: {1}]  }
   0x1   :  { %v52_v0 = vld [vmem:[%s7691_s0 + $0x18] sm:$0xff]  ;;  %v51_v1 = vld [vmem:[%s7691_s0 + $0x10] sm:$0xff]  ;;  %5542 = vset.pattern.permute.xlu0 %v5704_v2  ;;  %5543 = vset.pattern.permute.xlu1 %v5704_v2  ;;  %v56_v3 = vld [vmem:[%s7692_s4] sm:$0xff]  ;;  %s5708_s24 = smov 4   ;;  %v5709_v55 = vmov 0.0   ;;  %vm362_vm2 = vcmask 15360  }
   0x2   :  { %5282 = vmatprep.subr.mxu0 %v52_v0  ;;  %v50_v4 = vld [vmem:[%s7691_s0 + $0x8] sm:$0xff]  ;;  %5290 = vmatprep.mubr.msk.f32.mxu0 %vm84_vm0, %v56_v3  ;;  %v49_v6 = vld [vmem:[%s7691_s0] sm:$0xff]  ;;  %v199_v11 = vld [vmem:[%s7694_s7 + $0x18] sm:$0xff]  ;;  %v373_v27 = vshrl.u32 %v372_v26, 7  ;;  %vm367_vm3 = vcmask 146432   ;;  %s5710_s25 = smov 125  }
   0x3   :  { %5283 = vmatpush3.msra.mxu0 %v52_v0  ;;  %v61_v5 = vld [vmem:[%s7693_s5 + $0x8] sm:$0xff]  ;;  %v60_v7 = vld [vmem:[%s7693_s5] sm:$0xff]  ;;  %217 = vperm.xlu1 %5543, %v199_v11   ;;  %v198_v12 = vld [vmem:[%s7694_s7 + $0x10] sm:$0xff]  ;;  %s5711_s26 = smov 126   ;;  %s5712_s27 = smov 127   ;;  %vm5714_vm4 = vmmov 0  }
   0x4   :  { %5284 = vmatprep.subr.mxu0 %v51_v1  ;;  %71 = vperm.xlu0 %5542, %v61_v5   ;;  %v57_v8 = vld [vmem:[%s7692_s4 + $0x8] sm:$0xff]  ;;  %v192_v10 = vld [vmem:[%s7695_s6] sm:$0xff]  ;;  %v194_v24 = vld [vmem:[%s7695_s6 + $0x10] sm:$0xff]  ;;  %v374_v28 = vsub.s32 0, %v373_v27  ;;  %v406_v37 = vsub.s32 3, %v373_v27  ;;  %v394_v47 = vsub.s32 2, %v373_v27 }
   0x5   :  { %5285 = vmatpush3.msra.mxu0 %v51_v1  ;;  %v197_v9 = vld [vmem:[%s7694_s7 + $0x8] sm:$0xff]  ;;  %5300 = vmatprep.mubr.msk.f32.mxu1 %vm220_vm1, %v192_v10  ;;  %v196_v13 = vld [vmem:[%s7694_s7] sm:$0xff]  ;;  %v195_v25 = vld [vmem:[%s7695_s6 + $0x18] sm:$0xff]  ;;  %v382_v49 = vsub.s32 1, %v373_v27  ;;  %v418_v52 = vsub.s32 4, %v373_v27  ;;  %s5713_s28 = smov 124  }
   0x6   :  { %5286 = vmatprep.subr.mxu0 %v50_v4  ;;  %v5840_v15 = vld [vmem:[%s7696_s1] ss:$0 sm:$0xff]  ;;  %v193_v23 = vld [vmem:[%s7695_s6 + $0x8] sm:$0xff]  ;;  %vm4717_vm5 = vcmask 8192  }
   0x7   :  { %5287 = vmatpush3.msra.mxu0 %v50_v4  ;;  %212 = vperm.xlu1 %5543, %v198_v12   ;;  %v55_v29 = vld [vmem:[%s7697_s3] sm:$0x1f]  ;;  %s5705_s3 = smov 2  }
   0x8   :  { %5288 = vmatprep.subr.mxu0 %v49_v6  ;;  %66 = vperm.xlu0 %5542, %v60_v7   ;;  %v5867_v30 = vrot.slane %v55_v29, %v374_v28  ;;  %v407_v45 = vrot.slane %v55_v29, %v406_v37  ;;  %v395_v51 = vrot.slane %v55_v29, %v394_v47  ;;  %v345_v28 = vld [vmem:[%s7699_s11 + $0x38] sm:$0xff] }
   0x9   :  { %5289 = vmatpush3.msra.mxu0 %v49_v6  ;;  %v383_v53 = vrot.slane %v55_v29, %v382_v49  ;;  %v419_v54 = vrot.slane %v55_v29, %v418_v52  ;;  %v344_v29 = vld [vmem:[%s7699_s11 + $0x30] sm:$0xff]  ;;  %v704_v37 = vld [vmem:[%s7700_s13 + $0x18] sm:$0xff] }
   0xa   :  { %5291 = vmatmul.mubr.msk.f32.vlgmr.msra.gmra.mxu0 %vm84_vm0, %v57_v8 }
   0xb   :  { %202 = vperm.xlu1 %5543, %v196_v13  }
   0xc   :  { %207 = vperm.xlu0 %5542, %v197_v9  }
  0x7e   :  { %v218_v31 = vpop.permute.xlu1 %217 }
  0x7f   :  { %v72_v14 = vpop.permute.xlu0 %71 }
  0x82   :  { %v213_v33 = vpop.permute.xlu1 %212 }
  0x83   :  { %v67_v18 = vpop.permute.xlu0 %66 }
  0x86   :  { %v203_v42 = vpop.permute.xlu1 %202 }
  0x87   :  { %v208_v41 = vpop.permute.xlu0 %207 }
  0xca   :  { %v5292_v16 = vpop.f32.mrf.mxu0 }
  0xcb   :  { %v169_v17 = vadd.f32 %v5292_v16, %v72_v14 }
  0xcc   :  { %v163_v19 = vpop.f32.mrf.mxu0 }
  0xcd   :  { %v5843_v20 = vmul.f32 %v5840_v15, %v169_v17  ;;  %v164_v21 = vadd.f32 %v163_v19, %v67_v18 }
  0xcf   :  { %v5846_v22 = vmul.f32 %v5840_v15, %v164_v21  ;;  %5296 = vmatprep.subr.mxu1 %v5843_v20 }
  0xd0   :  { %5297 = vmatpush3.msra.mxu1 %v5843_v20 }
  0xd1   :  { %5298 = vmatprep.subr.mxu1 %v5846_v22 }
  0xd2   :  { %5299 = vmatpush3.msra.mxu1 %v5846_v22 }
  0xd3   :  { %5301 = vmatmul.mubr.msk.f32.vlgmr.msra.gmra.mxu1 %vm220_vm1, %v193_v23  ;;  %556 = vmatprep.subr.mxu1 %v5709_v55 }
  0xd4   :  { %5303 = vmatprep.mubr.msk.f32.mxu1 %vm220_vm1, %v194_v24 }
  0xd7   :  { %5304 = vmatmul.mubr.msk.f32.gmra.mxu1 %vm220_vm1, %v195_v25  ;;  %v323_v25 = vld [vmem:[%s7698_s10 + $0x8] sm:$0xff] }
  0xd8   :  { %4736 = vmatprep.mubr.msk.f32.mxu1 %vm84_vm0, %v323_v25  ;;  %v59_v25 = vld [vmem:[%s7692_s4 + $0x18] sm:$0xff] }
 0x193   :  { %v5302_v32 = vpop.f32.mrf.mxu1 }
 0x194   :  { %v305_v43 = vadd.f32 %v5302_v32, %v208_v41  ;;  %v342_v32 = vld [vmem:[%s7699_s11 + $0x20] sm:$0xff] }
 0x195   :  { %v299_v34 = vpop.f32.mrf.mxu1  ;;  %v701_v41 = vld [vmem:[%s7700_s13] sm:$0xff] }
 0x196   :  { %v300_v46 = vadd.f32 %v299_v34, %v203_v42  ;;  %v5880_v48 = vmul.f32 %v5840_v15, %v305_v43  ;;  %v340_v34 = vld [vmem:[%s7699_s11 + $0x10] sm:$0xff] }
 0x197   :  { %v5305_v35 = vpop.f32.mrf.mxu1 }
 0x198   :  { %v315_v36 = vadd.f32 %v5305_v35, %v218_v31  ;;  %v5883_v50 = vmul.f32 %v5840_v15, %v300_v46  ;;  %v343_v31 = vld [vmem:[%s7699_s11 + $0x28] sm:$0xff] }
 0x199   :  { %v309_v38 = vpop.f32.mrf.mxu1  ;;  %v339_v35 = vld [vmem:[%s7699_s11 + $0x8] sm:$0xff] }
 0x19a   :  { %v5870_v39 = vmul.f32 %v5840_v15, %v315_v36  ;;  %v310_v40 = vadd.f32 %v309_v38, %v213_v33  ;;  %v341_v33 = vld [vmem:[%s7699_s11 + $0x18] sm:$0xff]  ;;  %v338_v36 = vld [vmem:[%s7699_s11] sm:$0xff]  ;;  %v703_v38 = vld [vmem:[%s7700_s13 + $0x10] sm:$0xff] }
 0x19c   :  { %v5873_v44 = vmul.f32 %v5840_v15, %v310_v40  ;;  %356 = vrot.lane.b32.xlu0 %v5870_v39, %s5705_s3  ;;  %v702_v40 = vld [vmem:[%s7700_s13 + $0x8] sm:$0xff] }
 0x19e   :  { %354 = vrot.lane.b32.xlu1 %v5873_v44, %s5705_s3 }
 0x1a0   :  { %409 = vrot.lane.b32.xlu0 %v407_v45, %s5706_s22 }
 0x1a2   :  { %352 = vrot.lane.b32.xlu1 %v5880_v48, %s5705_s3 }
 0x1a4   :  { %350 = vrot.lane.b32.xlu0 %v5883_v50, %s5705_s3 }
 0x1a6   :  { %397 = vrot.lane.b32.xlu1 %v395_v51, %s5705_s3 }
 0x1a8   :  { %385 = vrot.lane.b32.xlu0 %v383_v53, %s5707_s23 }
 0x1aa   :  { %421 = vrot.lane.b32.xlu1 %v419_v54, %s5708_s24 }
 0x20e   :  { %v357_v56 = vpop.permute.xlu0 %356 }
 0x20f   :  { %v366_v57 = vsel %vm362_vm2, 0.0, %v357_v56 }
 0x210   :  { %v355_v58 = vpop.permute.xlu1 %354  ;;  %v5894_v60 = vsel %vm367_vm3, %v366_v57, 0.0 }
 0x211   :  { %v365_v59 = vsel %vm362_vm2, 0.0, %v355_v58  ;;  %v379_v58 = vmul.f32 %v5867_v30, %v5894_v60 }
 0x212   :  { %v5897_v61 = vsel %vm367_vm3, %v365_v59, 0.0  ;;  %v5899_v62 = vpop.permute.xlu0 %409 }
 0x213   :  { %v414_v63 = vmul.f32 %v5899_v62, %v5897_v61  ;;  %v415_v0 = vmul.f32 %v5899_v62, %v5894_v60  ;;  %v378_v59 = vmul.f32 %v5867_v30, %v5897_v61 }
 0x214   :  { %v353_v1 = vpop.permute.xlu1 %352 }
 0x215   :  { %v364_v2 = vsel %vm362_vm2, 0.0, %v353_v1  ;;  %468 = vrot.lane.b32.xlu1 %v414_v63, %s5710_s25  ;;  %470 = vrot.lane.b32.xlu0 %v415_v0, %s5710_s25 }
 0x216   :  { %v5909_v3 = vsel %vm367_vm3, %v364_v2, 0.0  ;;  %v351_v4 = vpop.permute.xlu0 %350  ;;  %v322_v2 = vld [vmem:[%s7698_s10] sm:$0xff] }
 0x217   :  { %v363_v5 = vsel %vm362_vm2, 0.0, %v351_v4  ;;  %v413_v6 = vmul.f32 %v5899_v62, %v5909_v3  ;;  %v377_v63 = vmul.f32 %v5867_v30, %v5909_v3  ;;  %v325_v4 = vld [vmem:[%s7698_s10 + $0x18] sm:$0xff] }
 0x218   :  { %v5915_v7 = vsel %vm367_vm3, %v363_v5, 0.0  ;;  %v5917_v8 = vpop.permute.xlu1 %397  ;;  %v324_v5 = vld [vmem:[%s7698_s10 + $0x10] sm:$0xff] }
 0x219   :  { %466 = vrot.lane.b32.xlu0 %v413_v6, %s5710_s25  ;;  %v412_v9 = vmul.f32 %v5899_v62, %v5915_v7  ;;  %v403_v10 = vmul.f32 %v5917_v8, %v5894_v60  ;;  %v402_v11 = vmul.f32 %v5917_v8, %v5897_v61  ;;  %v401_v12 = vmul.f32 %v5917_v8, %v5909_v3  ;;  %v327_v6 = vld [vmem:[%s7698_s10 + $0x28] sm:$0xff] }
 0x21a   :  { %v5931_v13 = vpop.permute.xlu0 %385  ;;  %v400_v14 = vmul.f32 %v5917_v8, %v5915_v7  ;;  %v376_v0 = vmul.f32 %v5867_v30, %v5915_v7 }
 0x21b   :  { %464 = vrot.lane.b32.xlu1 %v412_v9, %s5710_s25  ;;  %v391_v16 = vmul.f32 %v5931_v13, %v5894_v60  ;;  %v390_v17 = vmul.f32 %v5931_v13, %v5897_v61  ;;  %v389_v18 = vmul.f32 %v5931_v13, %v5909_v3  ;;  %v388_v21 = vmul.f32 %v5931_v13, %v5915_v7  ;;  %v329_v9 = vld [vmem:[%s7698_s10 + $0x38] sm:$0xff] }
 0x21c   :  { %v5945_v19 = vpop.permute.xlu1 %421 }
 0x21d   :  { %454 = vrot.lane.b32.xlu0 %v403_v10, %s5711_s26  ;;  %v427_v23 = vmul.f32 %v5945_v19, %v5894_v60  ;;  %v426_v24 = vmul.f32 %v5945_v19, %v5897_v61  ;;  %v425_v26 = vmul.f32 %v5945_v19, %v5909_v3  ;;  %v424_v27 = vmul.f32 %v5945_v19, %v5915_v7  ;;  %v326_v7 = vld [vmem:[%s7698_s10 + $0x20] sm:$0xff]  ;;  %v328_v10 = vld [vmem:[%s7698_s10 + $0x30] sm:$0xff] }
 0x21f   :  { %452 = vrot.lane.b32.xlu1 %v402_v11, %s5711_s26  ;;  %v331_v11 = vld [vmem:[%s7698_s10 + $0x48] sm:$0xff] }
 0x221   :  { %450 = vrot.lane.b32.xlu0 %v401_v12, %s5711_s26  ;;  %v330_v12 = vld [vmem:[%s7698_s10 + $0x40] sm:$0xff] }
 0x223   :  { %448 = vrot.lane.b32.xlu1 %v400_v14, %s5711_s26  ;;  %v333_v14 = vld [vmem:[%s7698_s10 + $0x58] sm:$0xff] }
 0x225   :  { %438 = vrot.lane.b32.xlu0 %v391_v16, %s5712_s27  ;;  %v332_v16 = vld [vmem:[%s7698_s10 + $0x50] sm:$0xff] }
 0x227   :  { %436 = vrot.lane.b32.xlu1 %v390_v17, %s5712_s27  ;;  %v335_v17 = vld [vmem:[%s7698_s10 + $0x68] sm:$0xff] }
 0x229   :  { %434 = vrot.lane.b32.xlu0 %v389_v18, %s5712_s27  ;;  %v334_v18 = vld [vmem:[%s7698_s10 + $0x60] sm:$0xff] }
 0x22b   :  { %432 = vrot.lane.b32.xlu1 %v388_v21, %s5712_s27  ;;  %v337_v21 = vld [vmem:[%s7698_s10 + $0x78] sm:$0xff] }
 0x22d   :  { %486 = vrot.lane.b32.xlu0 %v427_v23, %s5713_s28  ;;  %v336_v23 = vld [vmem:[%s7698_s10 + $0x70] sm:$0xff] }
 0x22f   :  { %484 = vrot.lane.b32.xlu1 %v426_v24, %s5713_s28  ;;  %v58_v24 = vld [vmem:[%s7692_s4 + $0x10] sm:$0xff] }
 0x230   :  { %5293 = vmatprep.mubr.msk.f32.mxu0 %vm84_vm0, %v58_v24 }
 0x231   :  { %482 = vrot.lane.b32.xlu0 %v425_v26, %s5713_s28  ;;  %5294 = vmatmul.mubr.msk.f32.gmra.mxu0 %vm84_vm0, %v59_v25  ;;  %v693_v26 = vld [vmem:[%s7701_s12] sm:$0xff] }
 0x232   :  { %5314 = vmatprep.mubr.msk.f32.mxu0 %vm84_vm0, %v693_v26 }
 0x233   :  { %480 = vrot.lane.b32.xlu1 %v424_v27, %s5713_s28 }
 0x235   :  { %529 = vperm.xlu0 %5542, %v345_v28  }
 0x237   :  { %524 = vperm.xlu1 %5543, %v344_v29  }
 0x239   :  { %519 = vperm.xlu0 %5542, %v343_v31  }
 0x23b   :  { %514 = vperm.xlu1 %5543, %v342_v32  }
 0x23d   :  { %509 = vperm.xlu0 %5542, %v341_v33  }
 0x23f   :  { %504 = vperm.xlu1 %5543, %v340_v34  }
 0x241   :  { %499 = vperm.xlu0 %5542, %v339_v35  }
 0x243   :  { %494 = vperm.xlu1 %5543, %v338_v36  }
 0x245   :  { %726 = vperm.xlu0 %5542, %v704_v37  }
 0x247   :  { %721 = vperm.xlu1 %5543, %v703_v38  }
 0x249   :  { %716 = vperm.xlu0 %5542, %v702_v40  }
 0x24b   :  { %711 = vperm.xlu1 %5543, %v701_v41  }
 0x287   :  { %v471_v42 = vpop.permute.xlu0 %470  ;;  %v469_v43 = vpop.permute.xlu1 %468 }
 0x288   :  { %557 = vmatpush1.msra.mxu1 %v471_v42 }
 0x289   :  { %558 = vmatprep.subr.mxu1 %v5709_v55 }
 0x28a   :  { %559 = vmatpush1.msra.mxu1 %v469_v43 }
 0x28b   :  { %560 = vmatprep.subr.mxu1 %v5709_v55  ;;  %v467_v45 = vpop.permute.xlu0 %466 }
 0x28c   :  { %561 = vmatpush1.msra.mxu1 %v467_v45 }
 0x28d   :  { %v465_v46 = vpop.permute.xlu1 %464  ;;  %562 = vmatprep.subr.mxu1 %v5709_v55 }
 0x28e   :  { %563 = vmatpush1.msra.mxu1 %v465_v46 }
 0x28f   :  { %564 = vmatprep.subr.mxu1 %v5709_v55  ;;  %v455_v47 = vpop.permute.xlu0 %454 }
 0x290   :  { %565 = vmatpush1.msra.mxu1 %v455_v47 }
 0x291   :  { %v453_v49 = vpop.permute.xlu1 %452  ;;  %566 = vmatprep.subr.mxu1 %v5709_v55 }
 0x292   :  { %567 = vmatpush1.msra.mxu1 %v453_v49 }
 0x293   :  { %568 = vmatprep.subr.mxu1 %v5709_v55  ;;  %v451_v51 = vpop.permute.xlu0 %450 }
 0x294   :  { %569 = vmatpush1.msra.mxu1 %v451_v51 }
 0x295   :  { %v449_v52 = vpop.permute.xlu1 %448  ;;  %570 = vmatprep.subr.mxu1 %v5709_v55 }
 0x296   :  { %571 = vmatpush1.msra.mxu1 %v449_v52 }
 0x297   :  { %572 = vmatprep.subr.mxu1 %v5709_v55  ;;  %v439_v53 = vpop.permute.xlu0 %438 }
 0x298   :  { %573 = vmatpush1.msra.mxu1 %v439_v53 }
 0x299   :  { %v437_v54 = vpop.permute.xlu1 %436  ;;  %574 = vmatprep.subr.mxu1 %v5709_v55 }
 0x29a   :  { %575 = vmatpush1.msra.mxu1 %v437_v54 }
 0x29b   :  { %576 = vmatprep.subr.mxu1 %v5709_v55  ;;  %v435_v56 = vpop.permute.xlu0 %434 }
 0x29c   :  { %577 = vmatpush1.msra.mxu1 %v435_v56 }
 0x29d   :  { %v433_v57 = vpop.permute.xlu1 %432  ;;  %578 = vmatprep.subr.mxu1 %v5709_v55 }
 0x29e   :  { %579 = vmatpush1.msra.mxu1 %v433_v57 }
 0x29f   :  { %580 = vmatprep.subr.mxu1 %v5709_v55  ;;  %v487_v1 = vpop.permute.xlu0 %486 }
 0x2a0   :  { %581 = vmatpush1.msra.mxu1 %v379_v58 }
 0x2a1   :  { %582 = vmatprep.subr.mxu1 %v5709_v55  ;;  %v485_v60 = vpop.permute.xlu1 %484 }
 0x2a2   :  { %583 = vmatpush1.msra.mxu1 %v378_v59 }
 0x2a3   :  { %584 = vmatprep.subr.mxu1 %v5709_v55  ;;  %v483_v61 = vpop.permute.xlu0 %482 }
 0x2a4   :  { %585 = vmatpush1.msra.mxu1 %v377_v63 }
 0x2a5   :  { %586 = vmatprep.subr.mxu1 %v5709_v55  ;;  %v481_v3 = vpop.permute.xlu1 %480 }
 0x2a6   :  { %587 = vmatpush1.msra.mxu1 %v376_v0 }
 0x2a7   :  { %612 = vmatprep.subr.mxu1 %v5709_v55 }
 0x2a8   :  { %613 = vmatpush2.msra.mxu1 %v487_v1 }
 0x2a9   :  { %614 = vmatprep.subr.mxu1 %v5709_v55 }
 0x2aa   :  { %615 = vmatpush2.msra.mxu1 %v485_v60 }
 0x2ab   :  { %616 = vmatprep.subr.mxu1 %v5709_v55 }
 0x2ac   :  { %617 = vmatpush2.msra.mxu1 %v483_v61 }
 0x2ad   :  { %618 = vmatprep.subr.mxu1 %v5709_v55 }
 0x2ae   :  { %619 = vmatpush2.msra.mxu1 %v481_v3 }
 0x2af   :  { %621 = vmatmul.mubr.f32.vlgmr.msra.gmra.mxu1 %v322_v2 }
 0x2b0   :  { %4737 = vmatprep.mubr.msk.f32.mxu1 %vm84_vm0, %v325_v4  ;;  %v530_v36 = vpop.permute.xlu0 %529 }
 0x2b2   :  { %v525_v38 = vpop.permute.xlu1 %524 }
 0x2b3   :  { %626 = vmatmul.mubr.f32.gmra.mxu1 %v324_v5 }
 0x2b4   :  { %4738 = vmatprep.mubr.msk.f32.mxu1 %vm84_vm0, %v327_v6  ;;  %v520_v42 = vpop.permute.xlu0 %519 }
 0x2b6   :  { %v515_v45 = vpop.permute.xlu1 %514 }
 0x2b7   :  { %631 = vmatmul.mubr.f32.gmra.mxu1 %v326_v7 }
 0x2b8   :  { %4739 = vmatprep.mubr.msk.f32.mxu1 %vm84_vm0, %v329_v9  ;;  %v510_v0 = vpop.permute.xlu0 %509 }
 0x2ba   :  { %v505_v2 = vpop.permute.xlu1 %504 }
 0x2bb   :  { %636 = vmatmul.mubr.f32.gmra.mxu1 %v328_v10 }
 0x2bc   :  { %4740 = vmatprep.mubr.msk.f32.mxu1 %vm84_vm0, %v331_v11  ;;  %v500_v7 = vpop.permute.xlu0 %499 }
 0x2bf   :  { %641 = vmatmul.mubr.f32.gmra.mxu1 %v330_v12 }
 0x2c0   :  { %4741 = vmatprep.mubr.msk.f32.mxu1 %vm84_vm0, %v333_v14  ;;  %v495_v14 = vpop.permute.xlu1 %494 }
 0x2c3   :  { %646 = vmatmul.mubr.f32.gmra.mxu1 %v332_v16 }
 0x2c4   :  { %4742 = vmatprep.mubr.msk.f32.mxu1 %vm84_vm0, %v335_v17 }
 0x2c7   :  { %651 = vmatmul.mubr.f32.gmra.mxu1 %v334_v18 }
 0x2c8   :  { %4743 = vmatprep.mubr.msk.f32.mxu1 %vm84_vm0, %v337_v21 }
 0x2cb   :  { %656 = vmatmul.mubr.f32.gmra.mxu1 %v336_v23 }
 0x36f   :  { %v622_v27 = vpop.f32.mrf.mxu1 }
 0x370   :  { %v623_v16 = vadd.f32 %v622_v27, %v495_v14 }
 0x371   :  { %v624_v28 = vpop.f32.mrf.mxu1 }
 0x373   :  { %v627_v29 = vpop.f32.mrf.mxu1 }
 0x374   :  { %v628_v11 = vadd.f32 %v627_v29, %v500_v7 }
 0x375   :  { %v629_v31 = vpop.f32.mrf.mxu1 }
 0x377   :  { %v632_v32 = vpop.f32.mrf.mxu1 }
 0x378   :  { %v633_v6 = vadd.f32 %v632_v32, %v505_v2 }
 0x379   :  { %v634_v33 = vpop.f32.mrf.mxu1 }
 0x37a   :  { %v694_v33 = vld [vmem:[%s7701_s12 + $0x8] sm:$0xff] }
 0x37b   :  { %v637_v34 = vpop.f32.mrf.mxu1 }
 0x37c   :  { %v638_v60 = vadd.f32 %v637_v34, %v510_v0  ;;  %v695_v34 = vld [vmem:[%s7701_s12 + $0x10] sm:$0xff] }
 0x37d   :  { %v639_v35 = vpop.f32.mrf.mxu1 }
 0x37e   :  { %v696_v35 = vld [vmem:[%s7701_s12 + $0x18] sm:$0xff] }
 0x37f   :  { %v642_v37 = vpop.f32.mrf.mxu1 }
 0x380   :  { %v643_v47 = vadd.f32 %v642_v37, %v515_v45  ;;  %v698_v37 = vld [vmem:[%s7701_s12 + $0x28] sm:$0xff]  ;;  %v722_v45 = vpop.permute.xlu1 %721 }
 0x381   :  { %v644_v40 = vpop.f32.mrf.mxu1 }
 0x382   :  { %v4744_v56 = vmul.f32 -1.442695, %v643_v47  ;;  %v700_v40 = vld [vmem:[%s7701_s12 + $0x38] sm:$0xff] }
 0x383   :  { %v647_v41 = vpop.f32.mrf.mxu1 }
 0x384   :  { %v648_v46 = vadd.f32 %v647_v41, %v520_v42  ;;  %v6123_v41 = vpop.f32.mrf.mxu0  ;;  %v727_v42 = vpop.permute.xlu0 %726 }
 0x385   :  { %v649_v43 = vpop.f32.mrf.mxu1 }
 0x386   :  { %v4745_v53 = vmul.f32 -1.442695, %v648_v46  ;;  %v6125_v43 = vpop.f32.mrf.mxu0 }
 0x387   :  { %v652_v49 = vpop.f32.mrf.mxu1 }
 0x388   :  { %v653_v51 = vadd.f32 %v652_v49, %v525_v38  ;;  %v699_v38 = vld [vmem:[%s7701_s12 + $0x30] sm:$0xff]  ;;  %v717_v49 = vpop.permute.xlu0 %716 }
 0x389   :  { %v654_v52 = vpop.f32.mrf.mxu1 }
 0x38a   :  { %v4746_v54 = vmul.f32 -1.442695, %v653_v51 }
 0x38b   :  { %v657_v57 = vpop.f32.mrf.mxu1 }
 0x38c   :  { %5544 = vpow2.f32 %v4746_v54  ;;  %v658_v58 = vadd.f32 %v657_v57, %v530_v36  ;;  %v697_v36 = vld [vmem:[%s7701_s12 + $0x20] sm:$0xff]  ;;  %v712_v54 = vpop.permute.xlu1 %711 }
 0x38d   :  { %v659_v59 = vpop.f32.mrf.mxu1  ;;  %5546 = vpow2.f32 %v4745_v53 }
 0x38e   :  { %v4747_v63 = vmul.f32 -1.442695, %v658_v58  ;;  %5548 = vpow2.f32 %v4744_v56 }
 0x390   :  { %5550 = vpow2.f32 %v4747_v63 }
 0x391   :  { %5552 = vtanh.f32 %v638_v60 }
 0x399   :  { %v5545_v1 = vpop.eup %5544 }
 0x39a   :  { %v5547_v61 = vpop.eup %5546  ;;  %v679_v3 = vadd.f32 1.0, %v5545_v1 }
 0x39b   :  { %v5549_v4 = vpop.eup %5548  ;;  %v678_v9 = vadd.f32 1.0, %v5547_v61 }
 0x39c   :  { %5554 = vrcp.f32 %v679_v3  ;;  %v677_v12 = vadd.f32 1.0, %v5549_v4 }
 0x39d   :  { %v5551_v5 = vpop.eup %5550 }
 0x39e   :  { %v680_v10 = vadd.f32 1.0, %v5551_v5  ;;  %v5553_v17 = vpop.eup %5552 }
 0x3a0   :  { %5556 = vrcp.f32 %v680_v10 }
 0x3a1   :  { %5558 = vtanh.f32 %v633_v6 }
 0x3a2   :  { %5560 = vrcp.f32 %v678_v9 }
 0x3a3   :  { %5562 = vtanh.f32 %v628_v11 }
 0x3a4   :  { %5564 = vrcp.f32 %v677_v12 }
 0x3a5   :  { %5566 = vtanh.f32 %v623_v16 }
 0x3a9   :  { %v5555_v18 = vpop.eup %5554 }
 0x3ad   :  { %v5557_v21 = vpop.eup %5556 }
 0x3ae   :  { %v5559_v23 = vpop.eup %5558  ;;  %v692_v24 = vmul.f32 %v5557_v21, %v5553_v17 }
 0x3af   :  { %v5561_v25 = vpop.eup %5560  ;;  %v691_v28 = vmul.f32 %v5559_v23, %v5555_v18 }
 0x3b0   :  { %v5563_v26 = vpop.eup %5562  ;;  %5306 = vmatprep.subr.mxu0 %v692_v24 }
 0x3b1   :  { %v5565_v29 = vpop.eup %5564  ;;  %5307 = vmatpush3.msra.mxu0 %v692_v24  ;;  %v690_v31 = vmul.f32 %v5563_v26, %v5561_v25 }
 0x3b2   :  { %5308 = vmatprep.subr.mxu0 %v691_v28  ;;  %v5567_v32 = vpop.eup %5566 }
 0x3b3   :  { %5309 = vmatpush3.msra.mxu0 %v691_v28  ;;  %v689_v27 = vmul.f32 %v5567_v32, %v5565_v29 }
 0x3b4   :  { %5310 = vmatprep.subr.mxu0 %v690_v31 }
 0x3b5   :  { %5311 = vmatpush3.msra.mxu0 %v690_v31 }
 0x3b6   :  { %5312 = vmatprep.subr.mxu0 %v689_v27 }
 0x3b7   :  { %5313 = vmatpush3.msra.mxu0 %v689_v27  ;;  %v4757_v27 = vld [vmem:[%s7698_s10 + $0x88] sm:$0xff] }
 0x3b8   :  { %5315 = vmatmul.mubr.msk.f32.vlgmr.msra.gmra.mxu0 %vm84_vm0, %v694_v33  ;;  %1088 = vmatprep.subr.mxu0 %v5709_v55 }
 0x3b9   :  { %5317 = vmatprep.mubr.msk.f32.mxu0 %vm84_vm0, %v695_v34 }
 0x3bc   :  { %5318 = vmatmul.mubr.msk.f32.gmra.mxu0 %vm84_vm0, %v696_v35  ;;  %v4779_v35 = vld [vmem:[%s7699_s11 + $0x78] sm:$0xff] }
 0x3bd   :  { %5320 = vmatprep.mubr.msk.f32.mxu0 %vm84_vm0, %v697_v36  ;;  %v4778_v36 = vld [vmem:[%s7699_s11 + $0x70] sm:$0xff] }
 0x3c0   :  { %5321 = vmatmul.mubr.msk.f32.gmra.mxu0 %vm84_vm0, %v698_v37  ;;  %v4777_v37 = vld [vmem:[%s7699_s11 + $0x68] sm:$0xff] }
 0x3c1   :  { %5323 = vmatprep.mubr.msk.f32.mxu0 %vm84_vm0, %v699_v38  ;;  %v4776_v38 = vld [vmem:[%s7699_s11 + $0x60] sm:$0xff] }
 0x3c4   :  { %5324 = vmatmul.mubr.msk.f32.gmra.mxu0 %vm84_vm0, %v700_v40  ;;  %v4775_v40 = vld [vmem:[%s7699_s11 + $0x58] sm:$0xff] }
 0x3c5   :  { %4780 = vmatprep.mubr.msk.f32.mxu0 %vm84_vm0, %v4757_v27  ;;  %v4761_v27 = vld [vmem:[%s7698_s10 + $0xa8] sm:$0xff] }
 0x478   :  { %v5316_v46 = vpop.f32.mrf.mxu0 }
 0x479   :  { %v845_v52 = vadd.f32 %v5316_v46, %v717_v49  ;;  %v4772_v46 = vld [vmem:[%s7699_s11 + $0x40] sm:$0xff]  ;;  %v4803_v49 = vld [vmem:[%s7700_s13 + $0x58] sm:$0xff] }
 0x47a   :  { %v839_v47 = vpop.f32.mrf.mxu0 }
 0x47b   :  { %v840_v57 = vadd.f32 %v839_v47, %v712_v54  ;;  %v879_v63 = vadd.f32 %v845_v52, %v5880_v48  ;;  %v708_v47 = vld [vmem:[%s7700_s13 + $0x38] sm:$0xff]  ;;  %v4802_v52 = vld [vmem:[%s7700_s13 + $0x50] sm:$0xff]  ;;  %v4801_v54 = vld [vmem:[%s7700_s13 + $0x48] sm:$0xff] }
 0x47c   :  { %v5319_v51 = vpop.f32.mrf.mxu0 }
 0x47d   :  { %v855_v53 = vadd.f32 %v5319_v51, %v727_v42  ;;  %v878_v60 = vadd.f32 %v840_v57, %v5883_v50  ;;  %v883_v2 = vmul.f32 %v5840_v15, %v879_v63  ;;  %v4774_v42 = vld [vmem:[%s7699_s11 + $0x50] sm:$0xff]  ;;  %v4800_v57 = vld [vmem:[%s7700_s13 + $0x40] sm:$0xff]  ;;  %v63_v63 = vld [vmem:[%s7693_s5 + $0x18] sm:$0xff] }
 0x47e   :  { %v849_v56 = vpop.f32.mrf.mxu0  ;;  %v707_v51 = vld [vmem:[%s7700_s13 + $0x30] sm:$0xff] }
 0x47f   :  { %v881_v58 = vadd.f32 %v855_v53, %v5870_v39  ;;  %v850_v59 = vadd.f32 %v849_v56, %v722_v45  ;;  %v882_v39 = vmul.f32 %v5840_v15, %v878_v60  ;;  %v4773_v45 = vld [vmem:[%s7699_s11 + $0x48] sm:$0xff]  ;;  %v705_v56 = vld [vmem:[%s7700_s13 + $0x20] sm:$0xff] }
 0x480   :  { %v706_v53 = vld [vmem:[%s7700_s13 + $0x28] sm:$0xff]  ;;  %v1416_v60 = vld [vmem:[%s7702_s9] sm:$0xff] }
 0x481   :  { %v880_v0 = vadd.f32 %v850_v59, %v5873_v44  ;;  %v885_v1 = vmul.f32 %v5840_v15, %v881_v58  ;;  %v1419_v58 = vld [vmem:[%s7702_s9 + $0x18] sm:$0xff]  ;;  %v1418_v59 = vld [vmem:[%s7702_s9 + $0x10] sm:$0xff] }
 0x483   :  { %926 = vrot.lane.b32.xlu0 %v885_v1, %s5705_s3  ;;  %v884_v61 = vmul.f32 %v5840_v15, %v880_v0  ;;  %v62_v0 = vld [vmem:[%s7693_s5 + $0x10] sm:$0xff]  ;;  %v1417_v1 = vld [vmem:[%s7702_s9 + $0x8] sm:$0xff] }
 0x485   :  { %924 = vrot.lane.b32.xlu1 %v884_v61, %s5705_s3  ;;  %v4825_v61 = vld [vmem:[%s7693_s5 + $0x28] sm:$0xff] }
 0x487   :  { %922 = vrot.lane.b32.xlu0 %v883_v2, %s5705_s3  ;;  %v4824_v2 = vld [vmem:[%s7693_s5 + $0x20] sm:$0xff] }
 0x489   :  { %920 = vrot.lane.b32.xlu1 %v882_v39, %s5705_s3  ;;  %v4839_v39 = vld [vmem:[%s7694_s7 + $0x38] sm:$0xff] }
 0x4f5   :  { %v927_v48 = vpop.permute.xlu0 %926 }
 0x4f6   :  { %v935_v44 = vsel %vm362_vm2, 0.0, %v927_v48  ;;  %v4838_v48 = vld [vmem:[%s7694_s7 + $0x30] sm:$0xff] }
 0x4f7   :  { %v6141_v3 = vsel %vm367_vm3, %v935_v44, 0.0  ;;  %v925_v50 = vpop.permute.xlu1 %924  ;;  %v4837_v44 = vld [vmem:[%s7694_s7 + $0x28] sm:$0xff] }
 0x4f8   :  { %v934_v4 = vsel %vm362_vm2, 0.0, %v925_v50  ;;  %v955_v5 = vmul.f32 %v6141_v3, %v5899_v62  ;;  %v951_v18 = vmul.f32 %v6141_v3, %v5917_v8  ;;  %v947_v25 = vmul.f32 %v6141_v3, %v5931_v13  ;;  %v4836_v50 = vld [vmem:[%s7694_s7 + $0x20] sm:$0xff] }
 0x4f9   :  { %v6147_v6 = vsel %vm367_vm3, %v934_v4, 0.0  ;;  %v923_v7 = vpop.permute.xlu0 %922  ;;  %v959_v31 = vmul.f32 %v6141_v3, %v5945_v19 }
 0x4fa   :  { %v933_v15 = vsel %vm362_vm2, 0.0, %v923_v7  ;;  %1002 = vrot.lane.b32.xlu0 %v955_v5, %s5710_s25  ;;  %v954_v9 = vmul.f32 %v6147_v6, %v5899_v62  ;;  %v950_v21 = vmul.f32 %v6147_v6, %v5917_v8  ;;  %v946_v26 = vmul.f32 %v6147_v6, %v5931_v13 }
 0x4fb   :  { %v6154_v10 = vsel %vm367_vm3, %v933_v15, 0.0  ;;  %v921_v11 = vpop.permute.xlu1 %920  ;;  %v958_v32 = vmul.f32 %v6147_v6, %v5945_v19 }
 0x4fc   :  { %v932_v12 = vsel %vm362_vm2, 0.0, %v921_v11  ;;  %1000 = vrot.lane.b32.xlu1 %v954_v9, %s5710_s25  ;;  %v953_v14 = vmul.f32 %v6154_v10, %v5899_v62  ;;  %v949_v23 = vmul.f32 %v6154_v10, %v5917_v8  ;;  %v945_v28 = vmul.f32 %v6154_v10, %v5931_v13 }
 0x4fd   :  { %v6161_v16 = vsel %vm367_vm3, %v932_v12, 0.0  ;;  %v957_v33 = vmul.f32 %v6154_v10, %v5945_v19 }
 0x4fe   :  { %998 = vrot.lane.b32.xlu0 %v953_v14, %s5710_s25  ;;  %v952_v17 = vmul.f32 %v6161_v16, %v5899_v62  ;;  %v948_v24 = vmul.f32 %v6161_v16, %v5917_v8  ;;  %v944_v29 = vmul.f32 %v6161_v16, %v5931_v13  ;;  %v956_v34 = vmul.f32 %v6161_v16, %v5945_v19 }
 0x500   :  { %996 = vrot.lane.b32.xlu1 %v952_v17, %s5710_s25 }
 0x502   :  { %986 = vrot.lane.b32.xlu0 %v951_v18, %s5711_s26 }
 0x504   :  { %984 = vrot.lane.b32.xlu1 %v950_v21, %s5711_s26 }
 0x506   :  { %982 = vrot.lane.b32.xlu0 %v949_v23, %s5711_s26 }
 0x508   :  { %980 = vrot.lane.b32.xlu1 %v948_v24, %s5711_s26  ;;  %v943_v24 = vmul.f32 %v6141_v3, %v5867_v30 }
 0x50a   :  { %970 = vrot.lane.b32.xlu0 %v947_v25, %s5712_s27  ;;  %v942_v25 = vmul.f32 %v6147_v6, %v5867_v30 }
 0x50c   :  { %968 = vrot.lane.b32.xlu1 %v946_v26, %s5712_s27  ;;  %v941_v26 = vmul.f32 %v6154_v10, %v5867_v30  ;;  %v4756_v10 = vld [vmem:[%s7698_s10 + $0x80] sm:$0xff] }
 0x50e   :  { %966 = vrot.lane.b32.xlu0 %v945_v28, %s5712_s27  ;;  %v940_v28 = vmul.f32 %v6161_v16, %v5867_v30 }
 0x510   :  { %964 = vrot.lane.b32.xlu1 %v944_v29, %s5712_s27 }
 0x512   :  { %1018 = vrot.lane.b32.xlu0 %v959_v31, %s5713_s28  ;;  %v4759_v31 = vld [vmem:[%s7698_s10 + $0x98] sm:$0xff] }
 0x514   :  { %1016 = vrot.lane.b32.xlu1 %v958_v32, %s5713_s28  ;;  %v4758_v32 = vld [vmem:[%s7698_s10 + $0x90] sm:$0xff] }
 0x516   :  { %1014 = vrot.lane.b32.xlu0 %v957_v33, %s5713_s28  ;;  %v4760_v33 = vld [vmem:[%s7698_s10 + $0xa0] sm:$0xff] }
 0x518   :  { %1012 = vrot.lane.b32.xlu1 %v956_v34, %s5713_s28  ;;  %v4763_v34 = vld [vmem:[%s7698_s10 + $0xb8] sm:$0xff] }
 0x51a   :  { %1061 = vperm.xlu0 %5542, %v4779_v35   ;;  %v4762_v35 = vld [vmem:[%s7698_s10 + $0xb0] sm:$0xff] }
 0x51c   :  { %1056 = vperm.xlu1 %5543, %v4778_v36   ;;  %v4765_v36 = vld [vmem:[%s7698_s10 + $0xc8] sm:$0xff] }
 0x51e   :  { %1051 = vperm.xlu0 %5542, %v4777_v37   ;;  %v4764_v37 = vld [vmem:[%s7698_s10 + $0xc0] sm:$0xff] }
 0x520   :  { %1046 = vperm.xlu1 %5543, %v4776_v38   ;;  %v4767_v38 = vld [vmem:[%s7698_s10 + $0xd8] sm:$0xff] }
 0x522   :  { %1041 = vperm.xlu0 %5542, %v4775_v40   ;;  %v4766_v40 = vld [vmem:[%s7698_s10 + $0xd0] sm:$0xff] }
 0x524   :  { %1036 = vperm.xlu1 %5543, %v4774_v42   ;;  %v4769_v42 = vld [vmem:[%s7698_s10 + $0xe8] sm:$0xff] }
 0x526   :  { %1031 = vperm.xlu0 %5542, %v4773_v45   ;;  %v4768_v45 = vld [vmem:[%s7698_s10 + $0xe0] sm:$0xff] }
 0x528   :  { %1026 = vperm.xlu1 %5543, %v4772_v46   ;;  %v4771_v46 = vld [vmem:[%s7698_s10 + $0xf8] sm:$0xff] }
 0x52a   :  { %746 = vperm.xlu0 %5542, %v708_v47   ;;  %v4770_v47 = vld [vmem:[%s7698_s10 + $0xf0] sm:$0xff] }
 0x52c   :  { %1260 = vperm.xlu1 %5543, %v4803_v49   ;;  %v4792_v49 = vld [vmem:[%s7701_s12 + $0x40] sm:$0xff] }
 0x52d   :  { %5334 = vmatprep.mubr.msk.f32.mxu1 %vm84_vm0, %v4792_v49 }
 0x52e   :  { %741 = vperm.xlu0 %5542, %v707_v51   ;;  %v6374_v51 = vpop.f32.mrf.mxu0 }
 0x530   :  { %1255 = vperm.xlu1 %5543, %v4802_v52   ;;  %v6376_v52 = vpop.f32.mrf.mxu0 }
 0x532   :  { %736 = vperm.xlu0 %5542, %v706_v53   ;;  %v6378_v53 = vpop.f32.mrf.mxu0 }
 0x534   :  { %1250 = vperm.xlu1 %5543, %v4801_v54   ;;  %v6380_v54 = vpop.f32.mrf.mxu0 }
 0x536   :  { %731 = vperm.xlu0 %5542, %v705_v56  }
 0x538   :  { %1245 = vperm.xlu1 %5543, %v4800_v57  }
 0x53a   :  { %1437 = vperm.xlu0 %5542, %v1419_v58  }
 0x53c   :  { %1432 = vperm.xlu1 %5543, %v1418_v59  }
 0x53e   :  { %81 = vperm.xlu0 %5542, %v63_v63  }
 0x540   :  { %76 = vperm.xlu1 %5543, %v62_v0  }
 0x542   :  { %1427 = vperm.xlu0 %5542, %v1417_v1  }
 0x544   :  { %1422 = vperm.xlu1 %5543, %v1416_v60  }
 0x546   :  { %1575 = vperm.xlu0 %5542, %v4825_v61  }
 0x548   :  { %1570 = vperm.xlu1 %5543, %v4824_v2  }
 0x54a   :  { %1716 = vperm.xlu0 %5542, %v4839_v39  }
 0x54c   :  { %1711 = vperm.xlu1 %5543, %v4838_v48  }
 0x54e   :  { %1706 = vperm.xlu0 %5542, %v4837_v44  }
 0x550   :  { %1701 = vperm.xlu1 %5543, %v4836_v50  }
 0x56c   :  { %v1003_v4 = vpop.permute.xlu0 %1002 }
 0x56d   :  { %1089 = vmatpush1.msra.mxu0 %v1003_v4 }
 0x56e   :  { %v1001_v5 = vpop.permute.xlu1 %1000  ;;  %1090 = vmatprep.subr.mxu0 %v5709_v55 }
 0x56f   :  { %1091 = vmatpush1.msra.mxu0 %v1001_v5 }
 0x570   :  { %1092 = vmatprep.subr.mxu0 %v5709_v55  ;;  %v999_v7 = vpop.permute.xlu0 %998 }
 0x571   :  { %1093 = vmatpush1.msra.mxu0 %v999_v7 }
 0x572   :  { %v997_v15 = vpop.permute.xlu1 %996  ;;  %1094 = vmatprep.subr.mxu0 %v5709_v55 }
 0x573   :  { %1095 = vmatpush1.msra.mxu0 %v997_v15 }
 0x574   :  { %1096 = vmatprep.subr.mxu0 %v5709_v55  ;;  %v987_v9 = vpop.permute.xlu0 %986 }
 0x575   :  { %1097 = vmatpush1.msra.mxu0 %v987_v9 }
 0x576   :  { %v985_v11 = vpop.permute.xlu1 %984  ;;  %1098 = vmatprep.subr.mxu0 %v5709_v55 }
 0x577   :  { %1099 = vmatpush1.msra.mxu0 %v985_v11 }
 0x578   :  { %1100 = vmatprep.subr.mxu0 %v5709_v55  ;;  %v983_v12 = vpop.permute.xlu0 %982 }
 0x579   :  { %1101 = vmatpush1.msra.mxu0 %v983_v12 }
 0x57a   :  { %v981_v14 = vpop.permute.xlu1 %980  ;;  %1102 = vmatprep.subr.mxu0 %v5709_v55 }
 0x57b   :  { %1103 = vmatpush1.msra.mxu0 %v981_v14 }
 0x57c   :  { %1104 = vmatprep.subr.mxu0 %v5709_v55  ;;  %v971_v17 = vpop.permute.xlu0 %970 }
 0x57d   :  { %1105 = vmatpush1.msra.mxu0 %v971_v17 }
 0x57e   :  { %v969_v18 = vpop.permute.xlu1 %968  ;;  %1106 = vmatprep.subr.mxu0 %v5709_v55 }
 0x57f   :  { %1107 = vmatpush1.msra.mxu0 %v969_v18 }
 0x580   :  { %1108 = vmatprep.subr.mxu0 %v5709_v55  ;;  %v967_v21 = vpop.permute.xlu0 %966 }
 0x581   :  { %1109 = vmatpush1.msra.mxu0 %v967_v21 }
 0x582   :  { %v965_v23 = vpop.permute.xlu1 %964  ;;  %1110 = vmatprep.subr.mxu0 %v5709_v55 }
 0x583   :  { %1111 = vmatpush1.msra.mxu0 %v965_v23 }
 0x584   :  { %1112 = vmatprep.subr.mxu0 %v5709_v55  ;;  %v1019_v29 = vpop.permute.xlu0 %1018 }
 0x585   :  { %1113 = vmatpush1.msra.mxu0 %v943_v24 }
 0x586   :  { %1114 = vmatprep.subr.mxu0 %v5709_v55  ;;  %v1017_v3 = vpop.permute.xlu1 %1016 }
 0x587   :  { %1115 = vmatpush1.msra.mxu0 %v942_v25 }
 0x588   :  { %1116 = vmatprep.subr.mxu0 %v5709_v55  ;;  %v1015_v6 = vpop.permute.xlu0 %1014 }
 0x589   :  { %1117 = vmatpush1.msra.mxu0 %v941_v26 }
 0x58a   :  { %1118 = vmatprep.subr.mxu0 %v5709_v55  ;;  %v1013_v16 = vpop.permute.xlu1 %1012 }
 0x58b   :  { %1119 = vmatpush1.msra.mxu0 %v940_v28 }
 0x58c   :  { %1144 = vmatprep.subr.mxu0 %v5709_v55 }
 0x58d   :  { %1145 = vmatpush2.msra.mxu0 %v1019_v29 }
 0x58e   :  { %1146 = vmatprep.subr.mxu0 %v5709_v55 }
 0x58f   :  { %1147 = vmatpush2.msra.mxu0 %v1017_v3 }
 0x590   :  { %1148 = vmatprep.subr.mxu0 %v5709_v55 }
 0x591   :  { %1149 = vmatpush2.msra.mxu0 %v1015_v6 }
 0x592   :  { %1150 = vmatprep.subr.mxu0 %v5709_v55 }
 0x593   :  { %1151 = vmatpush2.msra.mxu0 %v1013_v16 }
 0x594   :  { %1153 = vmatmul.mubr.f32.vlgmr.msra.gmra.mxu0 %v4756_v10 }
 0x595   :  { %4781 = vmatprep.mubr.msk.f32.mxu0 %vm84_vm0, %v4759_v31  ;;  %v1062_v61 = vpop.permute.xlu0 %1061 }
 0x597   :  { %v1057_v39 = vpop.permute.xlu1 %1056 }
 0x598   :  { %1158 = vmatmul.mubr.f32.gmra.mxu0 %v4758_v32 }
 0x599   :  { %4782 = vmatprep.mubr.msk.f32.mxu0 %vm84_vm0, %v4761_v27  ;;  %v1052_v50 = vpop.permute.xlu0 %1051 }
 0x59b   :  { %v1047_v5 = vpop.permute.xlu1 %1046 }
 0x59c   :  { %1163 = vmatmul.mubr.f32.gmra.mxu0 %v4760_v33 }
 0x59d   :  { %4783 = vmatprep.mubr.msk.f32.mxu0 %vm84_vm0, %v4763_v34  ;;  %v1042_v26 = vpop.permute.xlu0 %1041 }
 0x59f   :  { %v1037_v6 = vpop.permute.xlu1 %1036 }
 0x5a0   :  { %1168 = vmatmul.mubr.f32.gmra.mxu0 %v4762_v35 }
 0x5a1   :  { %4784 = vmatprep.mubr.msk.f32.mxu0 %vm84_vm0, %v4765_v36  ;;  %v1032_v27 = vpop.permute.xlu0 %1031 }
 0x5a4   :  { %1173 = vmatmul.mubr.f32.gmra.mxu0 %v4764_v37  ;;  %v1027_v37 = vpop.permute.xlu1 %1026 }
 0x5a5   :  { %4785 = vmatprep.mubr.msk.f32.mxu0 %vm84_vm0, %v4767_v38 }
 0x5a8   :  { %1178 = vmatmul.mubr.f32.gmra.mxu0 %v4766_v40 }
 0x5a9   :  { %4786 = vmatprep.mubr.msk.f32.mxu0 %vm84_vm0, %v4769_v42 }
 0x5ac   :  { %1183 = vmatmul.mubr.f32.gmra.mxu0 %v4768_v45 }
 0x5ad   :  { %4787 = vmatprep.mubr.msk.f32.mxu0 %vm84_vm0, %v4771_v46 }
 0x5b0   :  { %1188 = vmatmul.mubr.f32.gmra.mxu0 %v4770_v47 }
 0x654   :  { %v1154_v56 = vpop.f32.mrf.mxu0 }
 0x655   :  { %v1155_v38 = vadd.f32 %v1154_v56, %v1027_v37  ;;  %v4820_v37 = vld [vmem:[%s7692_s4 + $0x20] sm:$0xff] }
 0x656   :  { %v1156_v57 = vpop.f32.mrf.mxu0 }
 0x658   :  { %v1159_v58 = vpop.f32.mrf.mxu0 }
 0x659   :  { %v1160_v35 = vadd.f32 %v1159_v58, %v1032_v27  ;;  %v1415_v27 = vld [vmem:[%s7703_s8 + $0x18] sm:$0xff] }
 0x65a   :  { %v1161_v59 = vpop.f32.mrf.mxu0 }
 0x65c   :  { %v1164_v63 = vpop.f32.mrf.mxu0 }
 0x65d   :  { %v1165_v32 = vadd.f32 %v1164_v63, %v1037_v6 }
 0x65e   :  { %v1166_v0 = vpop.f32.mrf.mxu0 }
 0x660   :  { %v1169_v1 = vpop.f32.mrf.mxu0 }
 0x661   :  { %v1170_v29 = vadd.f32 %v1169_v1, %v1042_v26  ;;  %v4793_v1 = vld [vmem:[%s7701_s12 + $0x48] sm:$0xff] }
 0x662   :  { %v1171_v60 = vpop.f32.mrf.mxu0 }
 0x663   :  { %v4794_v60 = vld [vmem:[%s7701_s12 + $0x50] sm:$0xff] }
 0x664   :  { %v1174_v2 = vpop.f32.mrf.mxu0 }
 0x665   :  { %v1175_v15 = vadd.f32 %v1174_v2, %v1047_v5  ;;  %v1412_v2 = vld [vmem:[%s7703_s8] sm:$0xff] }
 0x666   :  { %v1176_v48 = vpop.f32.mrf.mxu0  ;;  %5354 = vmatprep.mubr.msk.f32.mxu0 %vm84_vm0, %v1412_v2 }
 0x667   :  { %v4788_v18 = vmul.f32 -1.442695, %v1175_v15  ;;  %v1261_v48 = vpop.permute.xlu1 %1260 }
 0x668   :  { %v1179_v44 = vpop.f32.mrf.mxu0 }
 0x669   :  { %v1180_v7 = vadd.f32 %v1179_v44, %v1052_v50 }
 0x66a   :  { %v1181_v4 = vpop.f32.mrf.mxu0 }
 0x66b   :  { %v4789_v14 = vmul.f32 -1.442695, %v1180_v7  ;;  %v1256_v50 = vpop.permute.xlu1 %1255 }
 0x66c   :  { %v1184_v9 = vpop.f32.mrf.mxu0 }
 0x66d   :  { %v1185_v11 = vadd.f32 %v1184_v9, %v1057_v39  ;;  %v747_v39 = vpop.permute.xlu0 %746 }
 0x66e   :  { %v1186_v12 = vpop.f32.mrf.mxu0 }
 0x66f   :  { %v4790_v17 = vmul.f32 -1.442695, %v1185_v11  ;;  %v1251_v5 = vpop.permute.xlu1 %1250  ;;  %v875_v11 = vadd.f32 %v6378_v53, %v747_v39  ;;  %v6405_v53 = vld [vmem:[%s7696_s1] ss:$0 sm:$0xff] }
 0x670   :  { %v1189_v21 = vpop.f32.mrf.mxu0 }
 0x671   :  { %5568 = vpow2.f32 %v4790_v17  ;;  %v1190_v23 = vadd.f32 %v1189_v21, %v1062_v61  ;;  %v4795_v61 = vld [vmem:[%s7701_s12 + $0x58] sm:$0xff]  ;;  %v742_v44 = vpop.permute.xlu0 %741 }
 0x672   :  { %v1191_v24 = vpop.f32.mrf.mxu0  ;;  %5570 = vpow2.f32 %v4789_v14 }
 0x673   :  { %v4791_v25 = vmul.f32 -1.442695, %v1190_v23  ;;  %5572 = vpow2.f32 %v4788_v18  ;;  %v870_v18 = vadd.f32 %v6380_v54, %v742_v44  ;;  %v1246_v21 = vpop.permute.xlu1 %1245 }
 0x675   :  { %5574 = vpow2.f32 %v4791_v25  ;;  %v737_v4 = vpop.permute.xlu0 %736 }
 0x676   :  { %5576 = vtanh.f32 %v1170_v29  ;;  %v865_v24 = vadd.f32 %v6374_v51, %v737_v4 }
 0x679   :  { %v732_v12 = vpop.permute.xlu0 %731 }
 0x67a   :  { %v860_v29 = vadd.f32 %v6376_v52, %v732_v12 }
 0x67e   :  { %v5569_v28 = vpop.eup %5568 }
 0x67f   :  { %v5571_v3 = vpop.eup %5570  ;;  %v1211_v10 = vadd.f32 1.0, %v5569_v28 }
 0x680   :  { %v5573_v16 = vpop.eup %5572  ;;  %v1210_v33 = vadd.f32 1.0, %v5571_v3 }
 0x681   :  { %5578 = vrcp.f32 %v1211_v10  ;;  %v1209_v36 = vadd.f32 1.0, %v5573_v16 }
 0x682   :  { %v5575_v31 = vpop.eup %5574 }
 0x683   :  { %v1212_v34 = vadd.f32 1.0, %v5575_v31  ;;  %v5577_v40 = vpop.eup %5576  ;;  %v1413_v31 = vld [vmem:[%s7703_s8 + $0x8] sm:$0xff] }
 0x685   :  { %5580 = vrcp.f32 %v1212_v34  ;;  %v4797_v34 = vld [vmem:[%s7701_s12 + $0x68] sm:$0xff] }
 0x686   :  { %5582 = vtanh.f32 %v1165_v32  ;;  %v1414_v32 = vld [vmem:[%s7703_s8 + $0x10] sm:$0xff] }
 0x687   :  { %5584 = vrcp.f32 %v1210_v33  ;;  %v4796_v33 = vld [vmem:[%s7701_s12 + $0x60] sm:$0xff] }
 0x688   :  { %5586 = vtanh.f32 %v1160_v35  ;;  %v4798_v35 = vld [vmem:[%s7701_s12 + $0x70] sm:$0xff] }
 0x689   :  { %5588 = vrcp.f32 %v1209_v36  ;;  %v4799_v36 = vld [vmem:[%s7701_s12 + $0x78] sm:$0xff] }
 0x68a   :  { %5590 = vtanh.f32 %v1155_v38 }
 0x68e   :  { %v5579_v42 = vpop.eup %5578 }
 0x692   :  { %v5581_v45 = vpop.eup %5580 }
 0x693   :  { %v5583_v46 = vpop.eup %5582  ;;  %v1224_v47 = vmul.f32 %v5581_v45, %v5577_v40 }
 0x694   :  { %v5585_v49 = vpop.eup %5584  ;;  %v1223_v59 = vmul.f32 %v5583_v46, %v5579_v42  ;;  %v1438_v42 = vpop.permute.xlu0 %1437 }
 0x695   :  { %v5587_v57 = vpop.eup %5586  ;;  %5326 = vmatprep.subr.mxu1 %v1224_v47 }
 0x696   :  { %v5589_v58 = vpop.eup %5588  ;;  %5327 = vmatpush3.msra.mxu1 %v1224_v47  ;;  %v1222_v63 = vmul.f32 %v5587_v57, %v5585_v49  ;;  %v1433_v47 = vpop.permute.xlu1 %1432 }
 0x697   :  { %5328 = vmatprep.subr.mxu1 %v1223_v59  ;;  %v5591_v0 = vpop.eup %5590 }
 0x698   :  { %5329 = vmatpush3.msra.mxu1 %v1223_v59  ;;  %v1221_v56 = vmul.f32 %v5591_v0, %v5589_v58 }
 0x699   :  { %5330 = vmatprep.subr.mxu1 %v1222_v63 }
 0x69a   :  { %5331 = vmatpush3.msra.mxu1 %v1222_v63  ;;  %v77_v2 = vpop.permute.xlu1 %76 }
 0x69b   :  { %5332 = vmatprep.subr.mxu1 %v1221_v56 }
 0x69c   :  { %5333 = vmatpush3.msra.mxu1 %v1221_v56 }
 0x69d   :  { %5335 = vmatmul.mubr.msk.f32.vlgmr.msra.gmra.mxu1 %vm84_vm0, %v4793_v1 }
 0x69e   :  { %5337 = vmatprep.mubr.msk.f32.mxu1 %vm84_vm0, %v4794_v60 }
 0x6a1   :  { %5338 = vmatmul.mubr.msk.f32.gmra.mxu1 %vm84_vm0, %v4795_v61  ;;  %v82_v61 = vpop.permute.xlu0 %81 }
 0x6a2   :  { %5340 = vmatprep.mubr.msk.f32.mxu1 %vm84_vm0, %v4796_v33  ;;  %v179_v39 = vadd.f32 %v6123_v41, %v82_v61 }
 0x6a4   :  { %v191_v44 = vmul.f32 %v6405_v53, %v179_v39 }
 0x6a5   :  { %5341 = vmatmul.mubr.msk.f32.gmra.mxu1 %vm84_vm0, %v4797_v34  ;;  %v1428_v4 = vpop.permute.xlu0 %1427 }
 0x6a6   :  { %5343 = vmatprep.mubr.msk.f32.mxu1 %vm84_vm0, %v4798_v35 }
 0x6a9   :  { %5344 = vmatmul.mubr.msk.f32.gmra.mxu1 %vm84_vm0, %v4799_v36 }
 0x6aa   :  { %5368 = vmatprep.mubr.msk.f32.mxu1 %vm84_vm0, %v4820_v37 }
 0x75d   :  { %v5336_v7 = vpop.f32.mrf.mxu1 }
 0x75e   :  { %v1375_v14 = vadd.f32 %v5336_v7, %v1251_v5 }
 0x75f   :  { %v1369_v15 = vpop.f32.mrf.mxu1 }
 0x760   :  { %v1370_v25 = vadd.f32 %v1369_v15, %v1246_v21  ;;  %v1405_v3 = vadd.f32 %v1375_v14, %v865_v24 }
 0x761   :  { %v5339_v9 = vpop.f32.mrf.mxu1 }
 0x762   :  { %v1385_v17 = vadd.f32 %v5339_v9, %v1261_v48  ;;  %v1404_v16 = vadd.f32 %v1370_v25, %v860_v29  ;;  %v1409_v51 = vmul.f32 %v6405_v53, %v1405_v3  ;;  %v174_v48 = vadd.f32 %v6125_v43, %v77_v2  ;;  %v4821_v43 = vld [vmem:[%s7692_s4 + $0x28] sm:$0xff] }
 0x763   :  { %v1379_v23 = vpop.f32.mrf.mxu1 }
 0x764   :  { %v1407_v26 = vadd.f32 %v1385_v17, %v875_v11  ;;  %v1380_v28 = vadd.f32 %v1379_v23, %v1256_v50  ;;  %v1408_v52 = vmul.f32 %v6405_v53, %v1404_v16  ;;  %v190_v5 = vmul.f32 %v6405_v53, %v174_v48  ;;  %v1423_v11 = vpop.permute.xlu1 %1422 }
 0x765   :  { %v5342_v23 = vpop.f32.mrf.mxu1 }
 0x766   :  { %v1406_v6 = vadd.f32 %v1380_v28, %v870_v18  ;;  %v1411_v10 = vmul.f32 %v6405_v53, %v1407_v26  ;;  %v1576_v28 = vpop.permute.xlu0 %1575  ;;  %v4823_v23 = vld [vmem:[%s7692_s4 + $0x38] sm:$0xff] }
 0x767   :  { %v1389_v24 = vpop.f32.mrf.mxu1 }
 0x768   :  { %5346 = vmatprep.subr.mxu0 %v1411_v10  ;;  %v1410_v54 = vmul.f32 %v6405_v53, %v1406_v6  ;;  %v1571_v6 = vpop.permute.xlu1 %1570 }
 0x769   :  { %5347 = vmatpush3.msra.mxu0 %v1411_v10  ;;  %v5345_v25 = vpop.f32.mrf.mxu1 }
 0x76a   :  { %5348 = vmatprep.subr.mxu0 %v1410_v54 }
 0x76b   :  { %5349 = vmatpush3.msra.mxu0 %v1410_v54  ;;  %v1397_v26 = vpop.f32.mrf.mxu1 }
 0x76c   :  { %5350 = vmatprep.subr.mxu0 %v1409_v51  ;;  %v1712_v33 = vpop.permute.xlu1 %1711 }
 0x76d   :  { %5351 = vmatpush3.msra.mxu0 %v1409_v51  ;;  %v4833_v51 = vld [vmem:[%s7695_s6 + $0x28] sm:$0xff] }
 0x76e   :  { %5352 = vmatprep.subr.mxu0 %v1408_v52 }
 0x76f   :  { %5353 = vmatpush3.msra.mxu0 %v1408_v52  ;;  %v4834_v52 = vld [vmem:[%s7695_s6 + $0x30] sm:$0xff] }
 0x770   :  { %5355 = vmatmul.mubr.msk.f32.vlgmr.msra.gmra.mxu0 %vm84_vm0, %v1413_v31  ;;  %v4835_v31 = vld [vmem:[%s7695_s6 + $0x38] sm:$0xff] }
 0x771   :  { %5357 = vmatprep.mubr.msk.f32.mxu0 %vm84_vm0, %v1414_v32  ;;  %v1717_v32 = vpop.permute.xlu0 %1716 }
 0x774   :  { %5358 = vmatmul.mubr.msk.f32.gmra.mxu0 %vm84_vm0, %v1415_v27 }
 0x775   :  { %v1707_v37 = vpop.permute.xlu0 %1706 }
 0x830   :  { %v5356_v38 = vpop.f32.mrf.mxu0 }
 0x831   :  { %v1524_v7 = vadd.f32 %v5356_v38, %v1428_v4 }
 0x832   :  { %v1518_v40 = vpop.f32.mrf.mxu0 }
 0x833   :  { %v1519_v12 = vadd.f32 %v1518_v40, %v1423_v11 }
 0x834   :  { %v5359_v45 = vpop.f32.mrf.mxu0 }
 0x835   :  { %v1534_v46 = vadd.f32 %v5359_v45, %v1438_v42 }
 0x836   :  { %v1528_v49 = vpop.f32.mrf.mxu0 }
 0x837   :  { %v1539_v57 = vmul.f32 1.442695, %v1534_v46  ;;  %v1548_v59 = vmul.f32 %v6405_v53, %v1534_v46  ;;  %v1529_v58 = vadd.f32 %v1528_v49, %v1433_v47  ;;  %v1702_v46 = vpop.permute.xlu1 %1701 }
 0x839   :  { %5592 = vpow2.f32 %v1539_v57  ;;  %v1537_v63 = vmul.f32 1.442695, %v1529_v58  ;;  %v1547_v0 = vmul.f32 %v6405_v53, %v1529_v58  ;;  %v1550_v56 = vsel %vm220_vm1, %v1548_v59, 0.0 }
 0x83b   :  { %5594 = vpow2.f32 %v1537_v63  ;;  %v1549_v1 = vsel %vm220_vm1, %v1547_v0, 0.0 }
 0x83c   :  { %v6447_v60 = vadd.f32 %v1550_v56, %v1549_v1 }
 0x846   :  { %v5593_v50 = vpop.eup %5592 }
 0x847   :  { %v1542_v15 = vmul.f32 %v5593_v50, %v191_v44 }
 0x848   :  { %v5595_v9 = vpop.eup %5594 }
 0x849   :  { %v1544_v14 = vadd.f32 %v1542_v15, %v1524_v7  ;;  %v1541_v17 = vmul.f32 %v5595_v9, %v190_v5 }
 0x84b   :  { %v1546_v18 = vmul.f32 %v6405_v53, %v1544_v14  ;;  %v1543_v21 = vadd.f32 %v1541_v17, %v1519_v12 }
 0x84d   :  { %5360 = vmatprep.subr.mxu1 %v1546_v18  ;;  %v1545_v41 = vmul.f32 %v6405_v53, %v1543_v21 }
 0x84e   :  { %5361 = vmatpush3.msra.mxu1 %v1546_v18 }
 0x84f   :  { %5362 = vmatprep.subr.mxu1 %v1545_v41 }
 0x850   :  { %5363 = vmatpush3.msra.mxu1 %v1545_v41 }
 0x851   :  { %5364 = vmatprep.subr.mxu1 %v5843_v20 }
 0x852   :  { %5365 = vmatpush3.msra.mxu1 %v5843_v20  ;;  %v4832_v20 = vld [vmem:[%s7695_s6 + $0x20] sm:$0xff] }
 0x853   :  { %5366 = vmatprep.subr.mxu1 %v5846_v22  ;;  %5378 = vmatprep.mubr.msk.f32.mxu0 %vm220_vm1, %v4832_v20  ;;  %v4845_v20 = vld [vmem:[%s7698_s10 + $0x108] sm:$0xff] }
 0x854   :  { %5367 = vmatpush3.msra.mxu1 %v5846_v22 }
 0x855   :  { %5369 = vmatmul.mubr.msk.f32.vlgmr.msra.gmra.mxu1 %vm84_vm0, %v4821_v43  ;;  %2018 = vmatprep.subr.mxu1 %v5709_v55  ;;  %v4822_v43 = vld [vmem:[%s7692_s4 + $0x30] sm:$0xff] }
 0x856   :  { %5371 = vmatprep.mubr.msk.f32.mxu1 %vm84_vm0, %v4822_v43  ;;  %v4854_v43 = vld [vmem:[%s7698_s10 + $0x150] sm:$0xff] }
 0x859   :  { %5372 = vmatmul.mubr.msk.f32.gmra.mxu1 %vm84_vm0, %v4823_v23  ;;  %v4857_v23 = vld [vmem:[%s7698_s10 + $0x168] sm:$0xff] }
 0x85a   :  { %4868 = vmatprep.mubr.msk.f32.mxu1 %vm84_vm0, %v4845_v20  ;;  %v4880_v20 = vld [vmem:[%s7701_s12 + $0x80] sm:$0xff] }
 0x915   :  { %v5370_v29 = vpop.f32.mrf.mxu1 }
 0x916   :  { %v1672_v3 = vadd.f32 %v5370_v29, %v1576_v28 }
 0x917   :  { %v1666_v10 = vpop.f32.mrf.mxu1 }
 0x918   :  { %v6469_v22 = vmul.f32 %v6405_v53, %v1672_v3  ;;  %v1667_v16 = vadd.f32 %v1666_v10, %v1571_v6  ;;  %v4867_v3 = vld [vmem:[%s7699_s11 + $0xb8] sm:$0xff]  ;;  %v4866_v6 = vld [vmem:[%s7699_s11 + $0xb0] sm:$0xff]  ;;  %v4865_v10 = vld [vmem:[%s7699_s11 + $0xa8] sm:$0xff] }
 0x91a   :  { %v6472_v54 = vmul.f32 %v6405_v53, %v1667_v16  ;;  %5374 = vmatprep.subr.mxu0 %v6469_v22  ;;  %v4864_v16 = vld [vmem:[%s7699_s11 + $0xa0] sm:$0xff] }
 0x91b   :  { %5375 = vmatpush3.msra.mxu0 %v6469_v22 }
 0x91c   :  { %5376 = vmatprep.subr.mxu0 %v6472_v54 }
 0x91d   :  { %5377 = vmatpush3.msra.mxu0 %v6472_v54 }
 0x91e   :  { %5379 = vmatmul.mubr.msk.f32.vlgmr.msra.gmra.mxu0 %vm220_vm1, %v4833_v51  ;;  %v4863_v51 = vld [vmem:[%s7699_s11 + $0x98] sm:$0xff] }
 0x91f   :  { %5381 = vmatprep.mubr.msk.f32.mxu0 %vm220_vm1, %v4834_v52  ;;  %v4862_v52 = vld [vmem:[%s7699_s11 + $0x90] sm:$0xff] }
 0x922   :  { %5382 = vmatmul.mubr.msk.f32.gmra.mxu0 %vm220_vm1, %v4835_v31  ;;  %v4861_v31 = vld [vmem:[%s7699_s11 + $0x88] sm:$0xff] }
 0x923   :  { %5392 = vmatprep.mubr.msk.f32.mxu0 %vm84_vm0, %v4880_v20 }
 0x9de   :  { %v5380_v27 = vpop.f32.mrf.mxu0 }
 0x9df   :  { %v1803_v40 = vadd.f32 %v5380_v27, %v1707_v37  ;;  %v4891_v27 = vld [vmem:[%s7700_s13 + $0x98] sm:$0xff] }
 0x9e0   :  { %v1797_v34 = vpop.f32.mrf.mxu0 }
 0x9e1   :  { %v1798_v47 = vadd.f32 %v1797_v34, %v1702_v46  ;;  %v6499_v57 = vmul.f32 %v6405_v53, %v1803_v40  ;;  %v4889_v34 = vld [vmem:[%s7700_s13 + $0x88] sm:$0xff] }
 0x9e2   :  { %v5383_v35 = vpop.f32.mrf.mxu0 }
 0x9e3   :  { %v1813_v36 = vadd.f32 %v5383_v35, %v1717_v32  ;;  %v6504_v59 = vmul.f32 %v6405_v53, %v1798_v47  ;;  %v4860_v32 = vld [vmem:[%s7699_s11 + $0x80] sm:$0xff] }
 0x9e4   :  { %v1807_v38 = vpop.f32.mrf.mxu0  ;;  %v4888_v35 = vld [vmem:[%s7700_s13 + $0x80] sm:$0xff] }
 0x9e5   :  { %v6491_v42 = vmul.f32 %v6405_v53, %v1813_v36  ;;  %v1808_v45 = vadd.f32 %v1807_v38, %v1712_v33  ;;  %v4890_v33 = vld [vmem:[%s7700_s13 + $0x90] sm:$0xff] }
 0x9e7   :  { %v6494_v49 = vmul.f32 %v6405_v53, %v1808_v45  ;;  %1856 = vrot.lane.b32.xlu0 %v6491_v42, %s5705_s3 }
 0x9e9   :  { %1854 = vrot.lane.b32.xlu1 %v6494_v49, %s5705_s3 }
 0x9eb   :  { %1852 = vrot.lane.b32.xlu0 %v6499_v57, %s5705_s3 }
 0x9ed   :  { %1850 = vrot.lane.b32.xlu1 %v6504_v59, %s5705_s3 }
 0xa59   :  { %v1857_v58 = vpop.permute.xlu0 %1856 }
 0xa5a   :  { %v1865_v63 = vsel %vm362_vm2, 0.0, %v1857_v58 }
 0xa5b   :  { %v6512_v0 = vsel %vm367_vm3, %v1865_v63, 0.0  ;;  %v1855_v56 = vpop.permute.xlu1 %1854 }
 0xa5c   :  { %v1864_v1 = vsel %vm362_vm2, 0.0, %v1855_v56  ;;  %v1885_v61 = vmul.f32 %v6512_v0, %v5899_v62  ;;  %v1881_v11 = vmul.f32 %v6512_v0, %v5917_v8  ;;  %v1877_v18 = vmul.f32 %v6512_v0, %v5931_v13 }
 0xa5d   :  { %v6518_v2 = vsel %vm367_vm3, %v1864_v1, 0.0  ;;  %v1853_v39 = vpop.permute.xlu0 %1852  ;;  %v1889_v25 = vmul.f32 %v6512_v0, %v5945_v19 }
 0xa5e   :  { %v1863_v48 = vsel %vm362_vm2, 0.0, %v1853_v39  ;;  %1932 = vrot.lane.b32.xlu0 %v1885_v61, %s5710_s25  ;;  %v1884_v44 = vmul.f32 %v6518_v2, %v5899_v62  ;;  %v1880_v12 = vmul.f32 %v6518_v2, %v5917_v8  ;;  %v1876_v21 = vmul.f32 %v6518_v2, %v5931_v13 }
 0xa5f   :  { %v6525_v50 = vsel %vm367_vm3, %v1863_v48, 0.0  ;;  %v1851_v4 = vpop.permute.xlu1 %1850  ;;  %v1888_v26 = vmul.f32 %v6518_v2, %v5945_v19  ;;  %v1873_v39 = vmul.f32 %v6512_v0, %v5867_v30  ;;  %v1872_v48 = vmul.f32 %v6518_v2, %v5867_v30 }
 0xa60   :  { %v1862_v5 = vsel %vm362_vm2, 0.0, %v1851_v4  ;;  %1930 = vrot.lane.b32.xlu1 %v1884_v44, %s5710_s25  ;;  %v1883_v7 = vmul.f32 %v6525_v50, %v5899_v62  ;;  %v1879_v14 = vmul.f32 %v6525_v50, %v5917_v8  ;;  %v1875_v41 = vmul.f32 %v6525_v50, %v5931_v13 }
 0xa61   :  { %v6532_v15 = vsel %vm367_vm3, %v1862_v5, 0.0  ;;  %v1887_v28 = vmul.f32 %v6525_v50, %v5945_v19  ;;  %v1871_v44 = vmul.f32 %v6525_v50, %v5867_v30  ;;  %v4844_v50 = vld [vmem:[%s7698_s10 + $0x100] sm:$0xff] }
 0xa62   :  { %1928 = vrot.lane.b32.xlu0 %v1883_v7, %s5710_s25  ;;  %v1882_v9 = vmul.f32 %v6532_v15, %v5899_v62  ;;  %v1878_v17 = vmul.f32 %v6532_v15, %v5917_v8  ;;  %v1874_v24 = vmul.f32 %v6532_v15, %v5931_v13  ;;  %v1886_v29 = vmul.f32 %v6532_v15, %v5945_v19 }
 0xa63   :  { %v1870_v4 = vmul.f32 %v6532_v15, %v5867_v30  ;;  %v4847_v15 = vld [vmem:[%s7698_s10 + $0x118] sm:$0xff] }
 0xa64   :  { %1926 = vrot.lane.b32.xlu1 %v1882_v9, %s5710_s25  ;;  %v4846_v9 = vld [vmem:[%s7698_s10 + $0x110] sm:$0xff] }
 0xa66   :  { %1916 = vrot.lane.b32.xlu0 %v1881_v11, %s5711_s26  ;;  %v4849_v11 = vld [vmem:[%s7698_s10 + $0x128] sm:$0xff] }
 0xa68   :  { %1914 = vrot.lane.b32.xlu1 %v1880_v12, %s5711_s26  ;;  %v4848_v12 = vld [vmem:[%s7698_s10 + $0x120] sm:$0xff] }
 0xa6a   :  { %1912 = vrot.lane.b32.xlu0 %v1879_v14, %s5711_s26  ;;  %v4851_v14 = vld [vmem:[%s7698_s10 + $0x138] sm:$0xff] }
 0xa6c   :  { %1910 = vrot.lane.b32.xlu1 %v1878_v17, %s5711_s26  ;;  %v4850_v17 = vld [vmem:[%s7698_s10 + $0x130] sm:$0xff] }
 0xa6e   :  { %1900 = vrot.lane.b32.xlu0 %v1877_v18, %s5712_s27  ;;  %v4853_v18 = vld [vmem:[%s7698_s10 + $0x148] sm:$0xff] }
 0xa70   :  { %1898 = vrot.lane.b32.xlu1 %v1876_v21, %s5712_s27  ;;  %v4852_v21 = vld [vmem:[%s7698_s10 + $0x140] sm:$0xff] }
 0xa72   :  { %1896 = vrot.lane.b32.xlu0 %v1875_v41, %s5712_s27  ;;  %v4855_v41 = vld [vmem:[%s7698_s10 + $0x158] sm:$0xff] }
 0xa74   :  { %1894 = vrot.lane.b32.xlu1 %v1874_v24, %s5712_s27  ;;  %v4856_v24 = vld [vmem:[%s7698_s10 + $0x160] sm:$0xff] }
 0xa76   :  { %1948 = vrot.lane.b32.xlu0 %v1889_v25, %s5713_s28  ;;  %v4859_v25 = vld [vmem:[%s7698_s10 + $0x178] sm:$0xff] }
 0xa78   :  { %1946 = vrot.lane.b32.xlu1 %v1888_v26, %s5713_s28  ;;  %v4858_v26 = vld [vmem:[%s7698_s10 + $0x170] sm:$0xff] }
 0xa7a   :  { %1944 = vrot.lane.b32.xlu0 %v1887_v28, %s5713_s28  ;;  %v6705_v28 = vpop.f32.mrf.mxu1 }
 0xa7c   :  { %1942 = vrot.lane.b32.xlu1 %v1886_v29, %s5713_s28  ;;  %v6707_v29 = vpop.f32.mrf.mxu1 }
 0xa7e   :  { %1991 = vperm.xlu0 %5542, %v4867_v3  }
 0xa80   :  { %1986 = vperm.xlu1 %5543, %v4866_v6  }
 0xa82   :  { %1981 = vperm.xlu0 %5542, %v4865_v10  }
 0xa84   :  { %1976 = vperm.xlu1 %5543, %v4864_v16  }
 0xa86   :  { %1971 = vperm.xlu0 %5542, %v4863_v51  }
 0xa88   :  { %1966 = vperm.xlu1 %5543, %v4862_v52  }
 0xa8a   :  { %1961 = vperm.xlu0 %5542, %v4861_v31  }
 0xa8c   :  { %1956 = vperm.xlu1 %5543, %v4860_v32  }
 0xa8e   :  { %2190 = vperm.xlu0 %5542, %v4891_v27  }
 0xa90   :  { %2185 = vperm.xlu1 %5543, %v4890_v33  }
 0xa92   :  { %2180 = vperm.xlu0 %5542, %v4889_v34  }
 0xa94   :  { %2175 = vperm.xlu1 %5543, %v4888_v35  }
 0xad0   :  { %v1933_v36 = vpop.permute.xlu0 %1932 }
 0xad1   :  { %2019 = vmatpush1.msra.mxu1 %v1933_v36 }
 0xad2   :  { %v1931_v37 = vpop.permute.xlu1 %1930  ;;  %2020 = vmatprep.subr.mxu1 %v5709_v55 }
 0xad3   :  { %2021 = vmatpush1.msra.mxu1 %v1931_v37 }
 0xad4   :  { %2022 = vmatprep.subr.mxu1 %v5709_v55  ;;  %v1929_v38 = vpop.permute.xlu0 %1928 }
 0xad5   :  { %2023 = vmatpush1.msra.mxu1 %v1929_v38 }
 0xad6   :  { %v1927_v40 = vpop.permute.xlu1 %1926  ;;  %2024 = vmatprep.subr.mxu1 %v5709_v55 }
 0xad7   :  { %2025 = vmatpush1.msra.mxu1 %v1927_v40 }
 0xad8   :  { %2026 = vmatprep.subr.mxu1 %v5709_v55  ;;  %v1917_v45 = vpop.permute.xlu0 %1916 }
 0xad9   :  { %2027 = vmatpush1.msra.mxu1 %v1917_v45 }
 0xada   :  { %v1915_v46 = vpop.permute.xlu1 %1914  ;;  %2028 = vmatprep.subr.mxu1 %v5709_v55 }
 0xadb   :  { %2029 = vmatpush1.msra.mxu1 %v1915_v46 }
 0xadc   :  { %2030 = vmatprep.subr.mxu1 %v5709_v55  ;;  %v1913_v47 = vpop.permute.xlu0 %1912 }
 0xadd   :  { %2031 = vmatpush1.msra.mxu1 %v1913_v47 }
 0xade   :  { %v1911_v58 = vpop.permute.xlu1 %1910  ;;  %2032 = vmatprep.subr.mxu1 %v5709_v55 }
 0xadf   :  { %2033 = vmatpush1.msra.mxu1 %v1911_v58 }
 0xae0   :  { %2034 = vmatprep.subr.mxu1 %v5709_v55  ;;  %v1901_v63 = vpop.permute.xlu0 %1900 }
 0xae1   :  { %2035 = vmatpush1.msra.mxu1 %v1901_v63 }
 0xae2   :  { %v1899_v56 = vpop.permute.xlu1 %1898  ;;  %2036 = vmatprep.subr.mxu1 %v5709_v55 }
 0xae3   :  { %2037 = vmatpush1.msra.mxu1 %v1899_v56 }
 0xae4   :  { %2038 = vmatprep.subr.mxu1 %v5709_v55  ;;  %v1897_v1 = vpop.permute.xlu0 %1896 }
 0xae5   :  { %2039 = vmatpush1.msra.mxu1 %v1897_v1 }
 0xae6   :  { %v1895_v61 = vpop.permute.xlu1 %1894  ;;  %2040 = vmatprep.subr.mxu1 %v5709_v55 }
 0xae7   :  { %2041 = vmatpush1.msra.mxu1 %v1895_v61 }
 0xae8   :  { %2042 = vmatprep.subr.mxu1 %v5709_v55  ;;  %v1949_v5 = vpop.permute.xlu0 %1948 }
 0xae9   :  { %2043 = vmatpush1.msra.mxu1 %v1873_v39 }
 0xaea   :  { %2044 = vmatprep.subr.mxu1 %v5709_v55  ;;  %v1947_v0 = vpop.permute.xlu1 %1946 }
 0xaeb   :  { %2045 = vmatpush1.msra.mxu1 %v1872_v48 }
 0xaec   :  { %2046 = vmatprep.subr.mxu1 %v5709_v55  ;;  %v1945_v2 = vpop.permute.xlu0 %1944 }
 0xaed   :  { %2047 = vmatpush1.msra.mxu1 %v1871_v44 }
 0xaee   :  { %2048 = vmatprep.subr.mxu1 %v5709_v55  ;;  %v1943_v7 = vpop.permute.xlu1 %1942 }
 0xaef   :  { %2049 = vmatpush1.msra.mxu1 %v1870_v4 }
 0xaf0   :  { %2074 = vmatprep.subr.mxu1 %v5709_v55 }
 0xaf1   :  { %2075 = vmatpush2.msra.mxu1 %v1949_v5 }
 0xaf2   :  { %2076 = vmatprep.subr.mxu1 %v5709_v55 }
 0xaf3   :  { %2077 = vmatpush2.msra.mxu1 %v1947_v0 }
 0xaf4   :  { %2078 = vmatprep.subr.mxu1 %v5709_v55 }
 0xaf5   :  { %2079 = vmatpush2.msra.mxu1 %v1945_v2 }
 0xaf6   :  { %2080 = vmatprep.subr.mxu1 %v5709_v55 }
 0xaf7   :  { %2081 = vmatpush2.msra.mxu1 %v1943_v7 }
 0xaf8   :  { %2083 = vmatmul.mubr.f32.vlgmr.msra.gmra.mxu1 %v4844_v50 }
 0xaf9   :  { %4869 = vmatprep.mubr.msk.f32.mxu1 %vm84_vm0, %v4847_v15  ;;  %v1992_v27 = vpop.permute.xlu0 %1991 }
 0xafb   :  { %v1987_v34 = vpop.permute.xlu1 %1986 }
 0xafc   :  { %2088 = vmatmul.mubr.f32.gmra.mxu1 %v4846_v9 }
 0xafd   :  { %4870 = vmatprep.mubr.msk.f32.mxu1 %vm84_vm0, %v4849_v11  ;;  %v1982_v37 = vpop.permute.xlu0 %1981 }
 0xaff   :  { %v1977_v40 = vpop.permute.xlu1 %1976 }
 0xb00   :  { %2093 = vmatmul.mubr.f32.gmra.mxu1 %v4848_v12 }
 0xb01   :  { %4871 = vmatprep.mubr.msk.f32.mxu1 %vm84_vm0, %v4851_v14  ;;  %v1972_v5 = vpop.permute.xlu0 %1971 }
 0xb03   :  { %v1967_v7 = vpop.permute.xlu1 %1966 }
 0xb04   :  { %2098 = vmatmul.mubr.f32.gmra.mxu1 %v4850_v17 }
 0xb05   :  { %4872 = vmatprep.mubr.msk.f32.mxu1 %vm84_vm0, %v4853_v18  ;;  %v1962_v14 = vpop.permute.xlu0 %1961 }
 0xb08   :  { %2103 = vmatmul.mubr.f32.gmra.mxu1 %v4852_v21 }
 0xb09   :  { %4873 = vmatprep.mubr.msk.f32.mxu1 %vm84_vm0, %v4855_v41 }
 0xb0c   :  { %2108 = vmatmul.mubr.f32.gmra.mxu1 %v4854_v43  ;;  %v1957_v43 = vpop.permute.xlu1 %1956 }
 0xb0d   :  { %4874 = vmatprep.mubr.msk.f32.mxu1 %vm84_vm0, %v4857_v23 }
 0xb10   :  { %2113 = vmatmul.mubr.f32.gmra.mxu1 %v4856_v24 }
 0xb11   :  { %4875 = vmatprep.mubr.msk.f32.mxu1 %vm84_vm0, %v4859_v25 }
 0xb14   :  { %2118 = vmatmul.mubr.f32.gmra.mxu1 %v4858_v26 }
 0xbb8   :  { %v2084_v3 = vpop.f32.mrf.mxu1 }
 0xbb9   :  { %v2085_v23 = vadd.f32 %v2084_v3, %v1957_v43 }
 0xbba   :  { %v2086_v6 = vpop.f32.mrf.mxu1 }
 0xbbc   :  { %v2089_v10 = vpop.f32.mrf.mxu1 }
 0xbbd   :  { %v2090_v21 = vadd.f32 %v2089_v10, %v1962_v14 }
 0xbbe   :  { %v2091_v16 = vpop.f32.mrf.mxu1 }
 0xbc0   :  { %v2094_v51 = vpop.f32.mrf.mxu1 }
 0xbc1   :  { %v2095_v12 = vadd.f32 %v2094_v51, %v1967_v7 }
 0xbc2   :  { %v2096_v52 = vpop.f32.mrf.mxu1 }
 0xbc4   :  { %v2099_v31 = vpop.f32.mrf.mxu1 }
 0xbc5   :  { %v2100_v2 = vadd.f32 %v2099_v31, %v1972_v5 }
 0xbc6   :  { %v2101_v32 = vpop.f32.mrf.mxu1 }
 0xbc8   :  { %v2104_v33 = vpop.f32.mrf.mxu1 }
 0xbc9   :  { %v2105_v46 = vadd.f32 %v2104_v33, %v1977_v40  ;;  %v4882_v33 = vld [vmem:[%s7701_s12 + $0x90] sm:$0xff]  ;;  %v2191_v40 = vpop.permute.xlu0 %2190 }
 0xbca   :  { %v2106_v35 = vpop.f32.mrf.mxu1 }
 0xbcb   :  { %v4876_v61 = vmul.f32 -1.442695, %v2105_v46  ;;  %v4884_v35 = vld [vmem:[%s7701_s12 + $0xa0] sm:$0xff] }
 0xbcc   :  { %v2109_v36 = vpop.f32.mrf.mxu1 }
 0xbcd   :  { %v2110_v45 = vadd.f32 %v2109_v36, %v1982_v37  ;;  %v4885_v36 = vld [vmem:[%s7701_s12 + $0xa8] sm:$0xff]  ;;  %v4886_v37 = vld [vmem:[%s7701_s12 + $0xb0] sm:$0xff] }
 0xbce   :  { %v2111_v38 = vpop.f32.mrf.mxu1 }
 0xbcf   :  { %v4877_v56 = vmul.f32 -1.442695, %v2110_v45  ;;  %v4887_v38 = vld [vmem:[%s7701_s12 + $0xb8] sm:$0xff]  ;;  %v2186_v45 = vpop.permute.xlu1 %2185 }
 0xbd0   :  { %v2114_v47 = vpop.f32.mrf.mxu1 }
 0xbd1   :  { %v2115_v58 = vadd.f32 %v2114_v47, %v1987_v34  ;;  %v4883_v34 = vld [vmem:[%s7701_s12 + $0x98] sm:$0xff] }
 0xbd2   :  { %v2116_v63 = vpop.f32.mrf.mxu1 }
 0xbd3   :  { %v4878_v1 = vmul.f32 -1.442695, %v2115_v58  ;;  %v2181_v58 = vpop.permute.xlu0 %2180 }
 0xbd4   :  { %v2119_v39 = vpop.f32.mrf.mxu1 }
 0xbd5   :  { %5596 = vpow2.f32 %v4878_v1  ;;  %v2120_v48 = vadd.f32 %v2119_v39, %v1992_v27  ;;  %v4881_v27 = vld [vmem:[%s7701_s12 + $0x88] sm:$0xff] }
 0xbd6   :  { %v2121_v44 = vpop.f32.mrf.mxu1  ;;  %5598 = vpow2.f32 %v4877_v56 }
 0xbd7   :  { %v4879_v4 = vmul.f32 -1.442695, %v2120_v48  ;;  %5600 = vpow2.f32 %v4876_v61  ;;  %v2176_v61 = vpop.permute.xlu1 %2175 }
 0xbd9   :  { %5602 = vpow2.f32 %v4879_v4 }
 0xbda   :  { %5604 = vtanh.f32 %v2100_v2 }
 0xbe2   :  { %v5597_v0 = vpop.eup %5596 }
 0xbe3   :  { %v5599_v50 = vpop.eup %5598  ;;  %v2141_v15 = vadd.f32 1.0, %v5597_v0 }
 0xbe4   :  { %v5601_v9 = vpop.eup %5600  ;;  %v2140_v17 = vadd.f32 1.0, %v5599_v50 }
 0xbe5   :  { %5606 = vrcp.f32 %v2141_v15  ;;  %v2139_v41 = vadd.f32 1.0, %v5601_v9 }
 0xbe6   :  { %v5603_v11 = vpop.eup %5602 }
 0xbe7   :  { %v2142_v18 = vadd.f32 1.0, %v5603_v11  ;;  %v5605_v24 = vpop.eup %5604 }
 0xbe9   :  { %5608 = vrcp.f32 %v2142_v18 }
 0xbea   :  { %5610 = vtanh.f32 %v2095_v12 }
 0xbeb   :  { %5612 = vrcp.f32 %v2140_v17 }
 0xbec   :  { %5614 = vtanh.f32 %v2090_v21 }
 0xbed   :  { %5616 = vrcp.f32 %v2139_v41 }
 0xbee   :  { %5618 = vtanh.f32 %v2085_v23 }
 0xbf2   :  { %v5607_v25 = vpop.eup %5606 }
 0xbf6   :  { %v5609_v26 = vpop.eup %5608 }
 0xbf7   :  { %v5611_v20 = vpop.eup %5610  ;;  %v2154_v6 = vmul.f32 %v5609_v26, %v5605_v24 }
 0xbf8   :  { %v5613_v16 = vpop.eup %5612  ;;  %v2153_v52 = vmul.f32 %v5611_v20, %v5607_v25 }
 0xbf9   :  { %v5615_v51 = vpop.eup %5614  ;;  %5384 = vmatprep.subr.mxu0 %v2154_v6 }
 0xbfa   :  { %v5617_v10 = vpop.eup %5616  ;;  %5385 = vmatpush3.msra.mxu0 %v2154_v6  ;;  %v2152_v31 = vmul.f32 %v5615_v51, %v5613_v16 }
 0xbfb   :  { %5386 = vmatprep.subr.mxu0 %v2153_v52  ;;  %v5619_v32 = vpop.eup %5618 }
 0xbfc   :  { %5387 = vmatpush3.msra.mxu0 %v2153_v52  ;;  %v2151_v3 = vmul.f32 %v5619_v32, %v5617_v10 }
 0xbfd   :  { %5388 = vmatprep.subr.mxu0 %v2152_v31 }
 0xbfe   :  { %5389 = vmatpush3.msra.mxu0 %v2152_v31 }
 0xbff   :  { %5390 = vmatprep.subr.mxu0 %v2151_v3 }
 0xc00   :  { %5391 = vmatpush3.msra.mxu0 %v2151_v3 }
 0xc01   :  { %5393 = vmatmul.mubr.msk.f32.vlgmr.msra.gmra.mxu0 %vm84_vm0, %v4881_v27  ;;  %2552 = vmatprep.subr.mxu0 %v5709_v55  ;;  %v4905_v27 = vld [vmem:[%s7698_s10 + $0x188] sm:$0xff] }
 0xc02   :  { %5395 = vmatprep.mubr.msk.f32.mxu0 %vm84_vm0, %v4882_v33 }
 0xc05   :  { %5396 = vmatmul.mubr.msk.f32.gmra.mxu0 %vm84_vm0, %v4883_v34 }
 0xc06   :  { %5398 = vmatprep.mubr.msk.f32.mxu0 %vm84_vm0, %v4884_v35  ;;  %v4927_v35 = vld [vmem:[%s7699_s11 + $0xf8] sm:$0xff] }
 0xc09   :  { %5399 = vmatmul.mubr.msk.f32.gmra.mxu0 %vm84_vm0, %v4885_v36  ;;  %v4926_v36 = vld [vmem:[%s7699_s11 + $0xf0] sm:$0xff] }
 0xc0a   :  { %5401 = vmatprep.mubr.msk.f32.mxu0 %vm84_vm0, %v4886_v37  ;;  %v4925_v37 = vld [vmem:[%s7699_s11 + $0xe8] sm:$0xff] }
 0xc0d   :  { %5402 = vmatmul.mubr.msk.f32.gmra.mxu0 %vm84_vm0, %v4887_v38  ;;  %v4924_v38 = vld [vmem:[%s7699_s11 + $0xe0] sm:$0xff] }
 0xc0e   :  { %4928 = vmatprep.mubr.msk.f32.mxu0 %vm84_vm0, %v4905_v27  ;;  %v4906_v27 = vld [vmem:[%s7698_s10 + $0x190] sm:$0xff] }
 0xcc1   :  { %v5394_v46 = vpop.f32.mrf.mxu0 }
 0xcc2   :  { %v2309_v56 = vadd.f32 %v5394_v46, %v2181_v58  ;;  %v4921_v46 = vld [vmem:[%s7699_s11 + $0xc8] sm:$0xff]  ;;  %v4895_v58 = vld [vmem:[%s7700_s13 + $0xb8] sm:$0xff] }
 0xcc3   :  { %v2303_v47 = vpop.f32.mrf.mxu0 }
 0xcc4   :  { %v2304_v48 = vadd.f32 %v2303_v47, %v2176_v61  ;;  %v2343_v5 = vadd.f32 %v2309_v56, %v6499_v57  ;;  %v4920_v47 = vld [vmem:[%s7699_s11 + $0xc0] sm:$0xff]  ;;  %v4894_v56 = vld [vmem:[%s7700_s13 + $0xb0] sm:$0xff]  ;;  %v4893_v61 = vld [vmem:[%s7700_s13 + $0xa8] sm:$0xff] }
 0xcc5   :  { %v5397_v63 = vpop.f32.mrf.mxu0 }
 0xcc6   :  { %v2319_v1 = vadd.f32 %v5397_v63, %v2191_v40  ;;  %v2342_v50 = vadd.f32 %v2304_v48, %v6504_v59  ;;  %v2347_v15 = vmul.f32 %v6405_v53, %v2343_v5  ;;  %v4923_v40 = vld [vmem:[%s7699_s11 + $0xd8] sm:$0xff]  ;;  %v4892_v48 = vld [vmem:[%s7700_s13 + $0xa0] sm:$0xff]  ;;  %v4970_v5 = vld [vmem:[%s7702_s9 + $0x30] sm:$0xff] }
 0xcc7   :  { %v2313_v39 = vpop.f32.mrf.mxu0  ;;  %v4951_v63 = vld [vmem:[%s7700_s13 + $0xd8] sm:$0xff] }
 0xcc8   :  { %v2345_v44 = vadd.f32 %v2319_v1, %v6491_v42  ;;  %v2314_v4 = vadd.f32 %v2313_v39, %v2186_v45  ;;  %v2346_v9 = vmul.f32 %v6405_v53, %v2342_v50  ;;  %v4922_v45 = vld [vmem:[%s7699_s11 + $0xd0] sm:$0xff]  ;;  %v4949_v39 = vld [vmem:[%s7700_s13 + $0xc8] sm:$0xff] }
 0xcc9   :  { %v4950_v1 = vld [vmem:[%s7700_s13 + $0xd0] sm:$0xff]  ;;  %v4969_v50 = vld [vmem:[%s7702_s9 + $0x28] sm:$0xff] }
 0xcca   :  { %v2349_v0 = vmul.f32 %v6405_v53, %v2345_v44  ;;  %v2344_v2 = vadd.f32 %v2314_v4, %v6494_v49  ;;  %v4948_v44 = vld [vmem:[%s7700_s13 + $0xc0] sm:$0xff]  ;;  %v4971_v4 = vld [vmem:[%s7702_s9 + $0x38] sm:$0xff] }
 0xccc   :  { %v2348_v7 = vmul.f32 %v6405_v53, %v2344_v2  ;;  %2390 = vrot.lane.b32.xlu0 %v2349_v0, %s5705_s3  ;;  %v4827_v0 = vld [vmem:[%s7693_s5 + $0x38] sm:$0xff]  ;;  %v4826_v2 = vld [vmem:[%s7693_s5 + $0x30] sm:$0xff] }
 0xcce   :  { %2388 = vrot.lane.b32.xlu1 %v2348_v7, %s5705_s3  ;;  %v4968_v7 = vld [vmem:[%s7702_s9 + $0x20] sm:$0xff] }
 0xcd0   :  { %2386 = vrot.lane.b32.xlu0 %v2347_v15, %s5705_s3  ;;  %v4985_v15 = vld [vmem:[%s7693_s5 + $0x48] sm:$0xff] }
 0xcd2   :  { %2384 = vrot.lane.b32.xlu1 %v2346_v9, %s5705_s3  ;;  %v4984_v9 = vld [vmem:[%s7693_s5 + $0x40] sm:$0xff] }
 0xd3e   :  { %v2391_v42 = vpop.permute.xlu0 %2390 }
 0xd3f   :  { %v2399_v57 = vsel %vm362_vm2, 0.0, %v2391_v42  ;;  %v4999_v42 = vld [vmem:[%s7694_s7 + $0x58] sm:$0xff] }
 0xd40   :  { %v6752_v49 = vsel %vm367_vm3, %v2399_v57, 0.0  ;;  %v2389_v59 = vpop.permute.xlu1 %2388  ;;  %v4998_v57 = vld [vmem:[%s7694_s7 + $0x50] sm:$0xff] }
 0xd41   :  { %v2398_v11 = vsel %vm362_vm2, 0.0, %v2389_v59  ;;  %v2419_v12 = vmul.f32 %v6752_v49, %v5899_v62  ;;  %v2415_v26 = vmul.f32 %v6752_v49, %v5917_v8  ;;  %v2411_v51 = vmul.f32 %v6752_v49, %v5931_v13  ;;  %v4997_v59 = vld [vmem:[%s7694_s7 + $0x48] sm:$0xff] }
 0xd42   :  { %v6758_v14 = vsel %vm367_vm3, %v2398_v11, 0.0  ;;  %v2387_v53 = vpop.permute.xlu0 %2386  ;;  %v2423_v32 = vmul.f32 %v6752_v49, %v5945_v19  ;;  %v4996_v11 = vld [vmem:[%s7694_s7 + $0x40] sm:$0xff] }
 0xd43   :  { %v2397_v17 = vsel %vm362_vm2, 0.0, %v2387_v53  ;;  %2466 = vrot.lane.b32.xlu0 %v2419_v12, %s5710_s25  ;;  %v2418_v18 = vmul.f32 %v6758_v14, %v5899_v62  ;;  %v2414_v20 = vmul.f32 %v6758_v14, %v5917_v8  ;;  %v2410_v52 = vmul.f32 %v6758_v14, %v5931_v13 }
 0xd44   :  { %v6765_v21 = vsel %vm367_vm3, %v2397_v17, 0.0  ;;  %v2385_v41 = vpop.permute.xlu1 %2384  ;;  %v2422_v3 = vmul.f32 %v6758_v14, %v5945_v19 }
 0xd45   :  { %v2396_v43 = vsel %vm362_vm2, 0.0, %v2385_v41  ;;  %2464 = vrot.lane.b32.xlu1 %v2418_v18, %s5710_s25  ;;  %v2417_v23 = vmul.f32 %v6765_v21, %v5899_v62  ;;  %v2413_v6 = vmul.f32 %v6765_v21, %v5917_v8  ;;  %v2409_v10 = vmul.f32 %v6765_v21, %v5931_v13 }
 0xd46   :  { %v6772_v24 = vsel %vm367_vm3, %v2396_v43, 0.0  ;;  %v2421_v33 = vmul.f32 %v6765_v21, %v5945_v19 }
 0xd47   :  { %2462 = vrot.lane.b32.xlu0 %v2417_v23, %s5710_s25  ;;  %v2416_v25 = vmul.f32 %v6772_v24, %v5899_v62  ;;  %v2412_v16 = vmul.f32 %v6772_v24, %v5917_v8  ;;  %v2408_v31 = vmul.f32 %v6772_v24, %v5931_v13  ;;  %v2420_v34 = vmul.f32 %v6772_v24, %v5945_v19 }
 0xd49   :  { %2460 = vrot.lane.b32.xlu1 %v2416_v25, %s5710_s25 }
 0xd4b   :  { %2450 = vrot.lane.b32.xlu0 %v2415_v26, %s5711_s26 }
 0xd4d   :  { %2448 = vrot.lane.b32.xlu1 %v2414_v20, %s5711_s26 }
 0xd4f   :  { %2446 = vrot.lane.b32.xlu0 %v2413_v6, %s5711_s26 }
 0xd51   :  { %2444 = vrot.lane.b32.xlu1 %v2412_v16, %s5711_s26 }
 0xd53   :  { %2434 = vrot.lane.b32.xlu0 %v2411_v51, %s5712_s27  ;;  %v2407_v51 = vmul.f32 %v6752_v49, %v5867_v30 }
 0xd55   :  { %2432 = vrot.lane.b32.xlu1 %v2410_v52, %s5712_s27  ;;  %v2406_v52 = vmul.f32 %v6758_v14, %v5867_v30 }
 0xd57   :  { %2430 = vrot.lane.b32.xlu0 %v2409_v10, %s5712_s27  ;;  %v2405_v10 = vmul.f32 %v6765_v21, %v5867_v30  ;;  %v4904_v21 = vld [vmem:[%s7698_s10 + $0x180] sm:$0xff] }
 0xd59   :  { %2428 = vrot.lane.b32.xlu1 %v2408_v31, %s5712_s27  ;;  %v2404_v31 = vmul.f32 %v6772_v24, %v5867_v30 }
 0xd5b   :  { %2482 = vrot.lane.b32.xlu0 %v2423_v32, %s5713_s28 }
 0xd5d   :  { %2480 = vrot.lane.b32.xlu1 %v2422_v3, %s5713_s28  ;;  %v4907_v3 = vld [vmem:[%s7698_s10 + $0x198] sm:$0xff] }
 0xd5f   :  { %2478 = vrot.lane.b32.xlu0 %v2421_v33, %s5713_s28  ;;  %v4909_v33 = vld [vmem:[%s7698_s10 + $0x1a8] sm:$0xff] }
 0xd61   :  { %2476 = vrot.lane.b32.xlu1 %v2420_v34, %s5713_s28  ;;  %v4908_v34 = vld [vmem:[%s7698_s10 + $0x1a0] sm:$0xff] }
 0xd63   :  { %2525 = vperm.xlu0 %5542, %v4927_v35   ;;  %v4911_v35 = vld [vmem:[%s7698_s10 + $0x1b8] sm:$0xff] }
 0xd65   :  { %2520 = vperm.xlu1 %5543, %v4926_v36   ;;  %v4910_v36 = vld [vmem:[%s7698_s10 + $0x1b0] sm:$0xff] }
 0xd67   :  { %2515 = vperm.xlu0 %5542, %v4925_v37   ;;  %v4913_v37 = vld [vmem:[%s7698_s10 + $0x1c8] sm:$0xff] }
 0xd69   :  { %2510 = vperm.xlu1 %5543, %v4924_v38   ;;  %v4912_v38 = vld [vmem:[%s7698_s10 + $0x1c0] sm:$0xff] }
 0xd6b   :  { %2505 = vperm.xlu0 %5542, %v4923_v40   ;;  %v4915_v40 = vld [vmem:[%s7698_s10 + $0x1d8] sm:$0xff] }
 0xd6d   :  { %2500 = vperm.xlu1 %5543, %v4922_v45   ;;  %v4914_v45 = vld [vmem:[%s7698_s10 + $0x1d0] sm:$0xff] }
 0xd6f   :  { %2495 = vperm.xlu0 %5542, %v4921_v46   ;;  %v4917_v46 = vld [vmem:[%s7698_s10 + $0x1e8] sm:$0xff] }
 0xd71   :  { %2490 = vperm.xlu1 %5543, %v4920_v47   ;;  %v4916_v47 = vld [vmem:[%s7698_s10 + $0x1e0] sm:$0xff] }
 0xd73   :  { %2210 = vperm.xlu0 %5542, %v4895_v58   ;;  %v4919_v58 = vld [vmem:[%s7698_s10 + $0x1f8] sm:$0xff] }
 0xd75   :  { %2724 = vperm.xlu1 %5543, %v4951_v63   ;;  %v4918_v63 = vld [vmem:[%s7698_s10 + $0x1f0] sm:$0xff] }
 0xd77   :  { %2205 = vperm.xlu0 %5542, %v4894_v56   ;;  %v4940_v56 = vld [vmem:[%s7701_s12 + $0xc0] sm:$0xff] }
 0xd78   :  { %5412 = vmatprep.mubr.msk.f32.mxu1 %vm84_vm0, %v4940_v56 }
 0xd79   :  { %2719 = vperm.xlu1 %5543, %v4950_v1   ;;  %v6985_v1 = vpop.f32.mrf.mxu0 }
 0xd7b   :  { %2200 = vperm.xlu0 %5542, %v4893_v61   ;;  %v6987_v61 = vpop.f32.mrf.mxu0 }
 0xd7d   :  { %2714 = vperm.xlu1 %5543, %v4949_v39   ;;  %v6989_v39 = vpop.f32.mrf.mxu0 }
 0xd7f   :  { %2195 = vperm.xlu0 %5542, %v4892_v48   ;;  %v6991_v48 = vpop.f32.mrf.mxu0 }
 0xd81   :  { %2709 = vperm.xlu1 %5543, %v4948_v44  }
 0xd83   :  { %2903 = vperm.xlu0 %5542, %v4971_v4  }
 0xd85   :  { %2898 = vperm.xlu1 %5543, %v4970_v5  }
 0xd87   :  { %1585 = vperm.xlu0 %5542, %v4827_v0  }
 0xd89   :  { %1580 = vperm.xlu1 %5543, %v4826_v2  }
 0xd8b   :  { %2893 = vperm.xlu0 %5542, %v4969_v50  }
 0xd8d   :  { %2888 = vperm.xlu1 %5543, %v4968_v7  }
 0xd8f   :  { %3190 = vperm.xlu0 %5542, %v4985_v15  }
 0xd91   :  { %3185 = vperm.xlu1 %5543, %v4984_v9  }
 0xd93   :  { %3331 = vperm.xlu0 %5542, %v4999_v42  }
 0xd95   :  { %3326 = vperm.xlu1 %5543, %v4998_v57  }
 0xd97   :  { %3321 = vperm.xlu0 %5542, %v4997_v59  }
 0xd99   :  { %3316 = vperm.xlu1 %5543, %v4996_v11  }
 0xdb5   :  { %v2467_v12 = vpop.permute.xlu0 %2466 }
 0xdb6   :  { %2553 = vmatpush1.msra.mxu0 %v2467_v12 }
 0xdb7   :  { %v2465_v53 = vpop.permute.xlu1 %2464  ;;  %2554 = vmatprep.subr.mxu0 %v5709_v55 }
 0xdb8   :  { %2555 = vmatpush1.msra.mxu0 %v2465_v53 }
 0xdb9   :  { %2556 = vmatprep.subr.mxu0 %v5709_v55  ;;  %v2463_v17 = vpop.permute.xlu0 %2462 }
 0xdba   :  { %2557 = vmatpush1.msra.mxu0 %v2463_v17 }
 0xdbb   :  { %v2461_v18 = vpop.permute.xlu1 %2460  ;;  %2558 = vmatprep.subr.mxu0 %v5709_v55 }
 0xdbc   :  { %2559 = vmatpush1.msra.mxu0 %v2461_v18 }
 0xdbd   :  { %2560 = vmatprep.subr.mxu0 %v5709_v55  ;;  %v2451_v41 = vpop.permute.xlu0 %2450 }
 0xdbe   :  { %2561 = vmatpush1.msra.mxu0 %v2451_v41 }
 0xdbf   :  { %v2449_v43 = vpop.permute.xlu1 %2448  ;;  %2562 = vmatprep.subr.mxu0 %v5709_v55 }
 0xdc0   :  { %2563 = vmatpush1.msra.mxu0 %v2449_v43 }
 0xdc1   :  { %2564 = vmatprep.subr.mxu0 %v5709_v55  ;;  %v2447_v23 = vpop.permute.xlu0 %2446 }
 0xdc2   :  { %2565 = vmatpush1.msra.mxu0 %v2447_v23 }
 0xdc3   :  { %v2445_v25 = vpop.permute.xlu1 %2444  ;;  %2566 = vmatprep.subr.mxu0 %v5709_v55 }
 0xdc4   :  { %2567 = vmatpush1.msra.mxu0 %v2445_v25 }
 0xdc5   :  { %2568 = vmatprep.subr.mxu0 %v5709_v55  ;;  %v2435_v26 = vpop.permute.xlu0 %2434 }
 0xdc6   :  { %2569 = vmatpush1.msra.mxu0 %v2435_v26 }
 0xdc7   :  { %v2433_v20 = vpop.permute.xlu1 %2432  ;;  %2570 = vmatprep.subr.mxu0 %v5709_v55 }
 0xdc8   :  { %2571 = vmatpush1.msra.mxu0 %v2433_v20 }
 0xdc9   :  { %2572 = vmatprep.subr.mxu0 %v5709_v55  ;;  %v2431_v6 = vpop.permute.xlu0 %2430 }
 0xdca   :  { %2573 = vmatpush1.msra.mxu0 %v2431_v6 }
 0xdcb   :  { %v2429_v16 = vpop.permute.xlu1 %2428  ;;  %2574 = vmatprep.subr.mxu0 %v5709_v55 }
 0xdcc   :  { %2575 = vmatpush1.msra.mxu0 %v2429_v16 }
 0xdcd   :  { %2576 = vmatprep.subr.mxu0 %v5709_v55  ;;  %v2483_v32 = vpop.permute.xlu0 %2482 }
 0xdce   :  { %2577 = vmatpush1.msra.mxu0 %v2407_v51 }
 0xdcf   :  { %2578 = vmatprep.subr.mxu0 %v5709_v55  ;;  %v2481_v49 = vpop.permute.xlu1 %2480 }
 0xdd0   :  { %2579 = vmatpush1.msra.mxu0 %v2406_v52 }
 0xdd1   :  { %2580 = vmatprep.subr.mxu0 %v5709_v55  ;;  %v2479_v14 = vpop.permute.xlu0 %2478 }
 0xdd2   :  { %2581 = vmatpush1.msra.mxu0 %v2405_v10 }
 0xdd3   :  { %2582 = vmatprep.subr.mxu0 %v5709_v55  ;;  %v2477_v24 = vpop.permute.xlu1 %2476 }
 0xdd4   :  { %2583 = vmatpush1.msra.mxu0 %v2404_v31 }
 0xdd5   :  { %2608 = vmatprep.subr.mxu0 %v5709_v55 }
 0xdd6   :  { %2609 = vmatpush2.msra.mxu0 %v2483_v32 }
 0xdd7   :  { %2610 = vmatprep.subr.mxu0 %v5709_v55 }
 0xdd8   :  { %2611 = vmatpush2.msra.mxu0 %v2481_v49 }
 0xdd9   :  { %2612 = vmatprep.subr.mxu0 %v5709_v55 }
 0xdda   :  { %2613 = vmatpush2.msra.mxu0 %v2479_v14 }
 0xddb   :  { %2614 = vmatprep.subr.mxu0 %v5709_v55 }
 0xddc   :  { %2615 = vmatpush2.msra.mxu0 %v2477_v24 }
 0xddd   :  { %2617 = vmatmul.mubr.f32.vlgmr.msra.gmra.mxu0 %v4904_v21 }
 0xdde   :  { %4929 = vmatprep.mubr.msk.f32.mxu0 %vm84_vm0, %v4907_v3  ;;  %v2526_v9 = vpop.permute.xlu0 %2525 }
 0xde0   :  { %v2521_v57 = vpop.permute.xlu1 %2520 }
 0xde1   :  { %2622 = vmatmul.mubr.f32.gmra.mxu0 %v4906_v27 }
 0xde2   :  { %4930 = vmatprep.mubr.msk.f32.mxu0 %vm84_vm0, %v4909_v33  ;;  %v2516_v12 = vpop.permute.xlu0 %2515 }
 0xde4   :  { %v2511_v17 = vpop.permute.xlu1 %2510 }
 0xde5   :  { %2627 = vmatmul.mubr.f32.gmra.mxu0 %v4908_v34 }
 0xde6   :  { %4931 = vmatprep.mubr.msk.f32.mxu0 %vm84_vm0, %v4911_v35  ;;  %v2506_v31 = vpop.permute.xlu0 %2505 }
 0xde8   :  { %v2501_v21 = vpop.permute.xlu1 %2500 }
 0xde9   :  { %2632 = vmatmul.mubr.f32.gmra.mxu0 %v4910_v36 }
 0xdea   :  { %4932 = vmatprep.mubr.msk.f32.mxu0 %vm84_vm0, %v4913_v37  ;;  %v2496_v34 = vpop.permute.xlu0 %2495 }
 0xded   :  { %2637 = vmatmul.mubr.f32.gmra.mxu0 %v4912_v38 }
 0xdee   :  { %4933 = vmatprep.mubr.msk.f32.mxu0 %vm84_vm0, %v4915_v40  ;;  %v2491_v40 = vpop.permute.xlu1 %2490 }
 0xdf1   :  { %2642 = vmatmul.mubr.f32.gmra.mxu0 %v4914_v45 }
 0xdf2   :  { %4934 = vmatprep.mubr.msk.f32.mxu0 %vm84_vm0, %v4917_v46 }
 0xdf5   :  { %2647 = vmatmul.mubr.f32.gmra.mxu0 %v4916_v47 }
 0xdf6   :  { %4935 = vmatprep.mubr.msk.f32.mxu0 %vm84_vm0, %v4919_v58 }
 0xdf9   :  { %2652 = vmatmul.mubr.f32.gmra.mxu0 %v4918_v63 }
 0xe9d   :  { %v2618_v44 = vpop.f32.mrf.mxu0 }
 0xe9e   :  { %v2619_v45 = vadd.f32 %v2618_v44, %v2491_v40  ;;  %v4967_v40 = vld [vmem:[%s7703_s8 + $0x38] sm:$0xff] }
 0xe9f   :  { %v2620_v4 = vpop.f32.mrf.mxu0 }
 0xea1   :  { %v2623_v5 = vpop.f32.mrf.mxu0 }
 0xea2   :  { %v2624_v37 = vadd.f32 %v2623_v5, %v2496_v34 }
 0xea3   :  { %v2625_v0 = vpop.f32.mrf.mxu0 }
 0xea5   :  { %v2628_v2 = vpop.f32.mrf.mxu0 }
 0xea6   :  { %v2629_v33 = vadd.f32 %v2628_v2, %v2501_v21 }
 0xea7   :  { %v2630_v50 = vpop.f32.mrf.mxu0 }
 0xea9   :  { %v2633_v7 = vpop.f32.mrf.mxu0 }
 0xeaa   :  { %v2634_v49 = vadd.f32 %v2633_v7, %v2506_v31 }
 0xeab   :  { %v2635_v15 = vpop.f32.mrf.mxu0 }
 0xeac   :  { %v4941_v15 = vld [vmem:[%s7701_s12 + $0xc8] sm:$0xff] }
 0xead   :  { %v2638_v42 = vpop.f32.mrf.mxu0 }
 0xeae   :  { %v2639_v41 = vadd.f32 %v2638_v42, %v2511_v17  ;;  %v4943_v42 = vld [vmem:[%s7701_s12 + $0xd8] sm:$0xff] }
 0xeaf   :  { %v2640_v59 = vpop.f32.mrf.mxu0 }
 0xeb0   :  { %v4936_v6 = vmul.f32 -1.442695, %v2639_v41  ;;  %v54_v59 = vld [vmem:[%s7704_s2] sm:$0x3] }
 0xeb1   :  { %v2643_v11 = vpop.f32.mrf.mxu0 }
 0xeb2   :  { %v2644_v18 = vadd.f32 %v2643_v11, %v2516_v12  ;;  %v2211_v11 = vpop.permute.xlu0 %2210  ;;  %v2725_v12 = vpop.permute.xlu1 %2724 }
 0xeb3   :  { %v2645_v53 = vpop.f32.mrf.mxu0 }
 0xeb4   :  { %v4937_v26 = vmul.f32 -1.442695, %v2644_v18 }
 0xeb5   :  { %v2648_v43 = vpop.f32.mrf.mxu0 }
 0xeb6   :  { %v2649_v23 = vadd.f32 %v2648_v43, %v2521_v57  ;;  %v4964_v57 = vld [vmem:[%s7703_s8 + $0x20] sm:$0xff]  ;;  %v2206_v53 = vpop.permute.xlu0 %2205  ;;  %v2720_v17 = vpop.permute.xlu1 %2719 }
 0xeb7   :  { %v2650_v25 = vpop.f32.mrf.mxu0  ;;  %5432 = vmatprep.mubr.msk.f32.mxu0 %vm84_vm0, %v4964_v57 }
 0xeb8   :  { %v4938_v20 = vmul.f32 -1.442695, %v2649_v23  ;;  %v1552_v25 = vrot.slane %v6447_v60, 4 }
 0xeb9   :  { %v2653_v16 = vpop.f32.mrf.mxu0 }
 0xeba   :  { %5620 = vpow2.f32 %v4938_v20  ;;  %v2654_v51 = vadd.f32 %v2653_v16, %v2526_v9  ;;  %v4942_v9 = vld [vmem:[%s7701_s12 + $0xd0] sm:$0xff]  ;;  %v2201_v18 = vpop.permute.xlu0 %2200  ;;  %v2715_v41 = vpop.permute.xlu1 %2714  ;;  %v2339_v20 = vadd.f32 %v6989_v39, %v2211_v11  ;;  %v7023_v39 = vld [vmem:[%s7696_s1] ss:$0 sm:$0xff] }
 0xebb   :  { %v2655_v52 = vpop.f32.mrf.mxu0  ;;  %5622 = vpow2.f32 %v4937_v26 }
 0xebc   :  { %v4939_v10 = vmul.f32 -1.442695, %v2654_v51  ;;  %5624 = vpow2.f32 %v4936_v6  ;;  %v2334_v52 = vadd.f32 %v6991_v48, %v2206_v53 }
 0xebe   :  { %5626 = vpow2.f32 %v4939_v10  ;;  %v2196_v6 = vpop.permute.xlu0 %2195  ;;  %v2710_v10 = vpop.permute.xlu1 %2709 }
 0xebf   :  { %5628 = vtanh.f32 %v2634_v49 }
 0xec7   :  { %v5621_v32 = vpop.eup %5620 }
 0xec8   :  { %v5623_v14 = vpop.eup %5622  ;;  %v2675_v24 = vadd.f32 1.0, %v5621_v32  ;;  %v2329_v32 = vadd.f32 %v6985_v1, %v2201_v18 }
 0xec9   :  { %v5625_v3 = vpop.eup %5624  ;;  %v2674_v35 = vadd.f32 1.0, %v5623_v14 }
 0xeca   :  { %5630 = vrcp.f32 %v2675_v24  ;;  %v2673_v38 = vadd.f32 1.0, %v5625_v3  ;;  %v1553_v24 = vadd.f32 %v1552_v25, %v6447_v60  ;;  %v2324_v3 = vadd.f32 %v6987_v61, %v2196_v6 }
 0xecb   :  { %v5627_v27 = vpop.eup %5626 }
 0xecc   :  { %v2676_v36 = vadd.f32 1.0, %v5627_v27  ;;  %v5629_v46 = vpop.eup %5628 }
 0xece   :  { %5632 = vrcp.f32 %v2676_v36  ;;  %v4965_v36 = vld [vmem:[%s7703_s8 + $0x28] sm:$0xff] }
 0xecf   :  { %5634 = vtanh.f32 %v2629_v33 }
 0xed0   :  { %5636 = vrcp.f32 %v2674_v35  ;;  %v1554_v35 = vrot.slane %v1553_v24, 2 }
 0xed1   :  { %5638 = vtanh.f32 %v2624_v37 }
 0xed2   :  { %5640 = vrcp.f32 %v2673_v38  ;;  %v1555_v37 = vadd.f32 %v1554_v35, %v1553_v24  ;;  %v4966_v38 = vld [vmem:[%s7703_s8 + $0x30] sm:$0xff]  ;;  %v4981_v35 = vld [vmem:[%s7692_s4 + $0x48] sm:$0xff] }
 0xed3   :  { %5642 = vtanh.f32 %v2619_v45 }
 0xed4   :  { %v1556_v45 = vrot.slane %v1555_v37, 1 }
 0xed7   :  { %v5631_v47 = vpop.eup %5630 }
 0xedb   :  { %v5633_v58 = vpop.eup %5632 }
 0xedc   :  { %v5635_v63 = vpop.eup %5634  ;;  %v2688_v56 = vmul.f32 %v5633_v58, %v5629_v46  ;;  %v1557_v46 = vadd.f32 %v1556_v45, %v1555_v37  ;;  %v4945_v58 = vld [vmem:[%s7701_s12 + $0xe8] sm:$0xff] }
 0xedd   :  { %v5637_v4 = vpop.eup %5636  ;;  %v2687_v2 = vmul.f32 %v5635_v63, %v5631_v47  ;;  %v4944_v47 = vld [vmem:[%s7701_s12 + $0xe0] sm:$0xff]  ;;  %v4946_v63 = vld [vmem:[%s7701_s12 + $0xf0] sm:$0xff] }
 0xede   :  { %v5639_v0 = vpop.eup %5638  ;;  %5404 = vmatprep.subr.mxu1 %v2688_v56 }
 0xedf   :  { %v5641_v5 = vpop.eup %5640  ;;  %5405 = vmatpush3.msra.mxu1 %v2688_v56  ;;  %v2686_v50 = vmul.f32 %v5639_v0, %v5637_v4  ;;  %v4947_v56 = vld [vmem:[%s7701_s12 + $0xf8] sm:$0xff] }
 0xee0   :  { %5406 = vmatprep.subr.mxu1 %v2687_v2  ;;  %v5643_v7 = vpop.eup %5642 }
 0xee1   :  { %5407 = vmatpush3.msra.mxu1 %v2687_v2  ;;  %v2685_v44 = vmul.f32 %v5643_v7, %v5641_v5  ;;  %v2904_v2 = vpop.permute.xlu0 %2903  ;;  %v2899_v7 = vpop.permute.xlu1 %2898 }
 0xee2   :  { %5408 = vmatprep.subr.mxu1 %v2686_v50 }
 0xee3   :  { %5409 = vmatpush3.msra.mxu1 %v2686_v50 }
 0xee4   :  { %5410 = vmatprep.subr.mxu1 %v2685_v44 }
 0xee5   :  { %5411 = vmatpush3.msra.mxu1 %v2685_v44 }
 0xee6   :  { %5413 = vmatmul.mubr.msk.f32.vlgmr.msra.gmra.mxu1 %vm84_vm0, %v4941_v15  ;;  %5438 = vmatprep.subr.mxu1 %v5709_v55 }
 0xee7   :  { %5415 = vmatprep.mubr.msk.f32.mxu1 %vm84_vm0, %v4942_v9  ;;  %5439 = vmatpush3.xpose.msk.msra.mxu1 %vm220_vm1, %v54_v59 }
 0xeea   :  { %5416 = vmatmul.mubr.msk.f32.gmra.mxu1 %vm84_vm0, %v4943_v42 }
 0xeeb   :  { %5418 = vmatprep.mubr.msk.f32.mxu1 %vm84_vm0, %v4944_v47 }
 0xeee   :  { %5419 = vmatmul.mubr.msk.f32.gmra.mxu1 %vm84_vm0, %v4945_v58 }
 0xeef   :  { %5421 = vmatprep.mubr.msk.f32.mxu1 %vm84_vm0, %v4946_v63 }
 0xef2   :  { %5422 = vmatmul.mubr.msk.f32.gmra.mxu1 %vm84_vm0, %v4947_v56 }
 0xef3   :  { %5440 = vmatprep.mubr.msk.f32.mxu1 %vm5714_vm4, %v5709_v55 }
 0xfa6   :  { %v5414_v43 = vpop.f32.mrf.mxu1 }
 0xfa7   :  { %v2839_v16 = vadd.f32 %v5414_v43, %v2715_v41  ;;  %v1586_v41 = vpop.permute.xlu0 %1585 }
 0xfa8   :  { %v2833_v23 = vpop.f32.mrf.mxu1 }
 0xfa9   :  { %v2834_v49 = vadd.f32 %v2833_v23, %v2710_v10  ;;  %v2869_v27 = vadd.f32 %v2839_v16, %v2329_v32  ;;  %v1581_v23 = vpop.permute.xlu1 %1580 }
 0xfaa   :  { %v5417_v26 = vpop.f32.mrf.mxu1  ;;  %v1677_v6 = vadd.f32 %v6707_v29, %v1581_v23 }
 0xfab   :  { %v2849_v51 = vadd.f32 %v5417_v26, %v2725_v12  ;;  %v2868_v34 = vadd.f32 %v2834_v49, %v2324_v3  ;;  %v2873_v60 = vmul.f32 %v7023_v39, %v2869_v27  ;;  %v1682_v26 = vadd.f32 %v6705_v28, %v1586_v41  ;;  %v2894_v10 = vpop.permute.xlu0 %2893  ;;  %v4980_v28 = vld [vmem:[%s7692_s4 + $0x40] sm:$0xff] }
 0xfac   :  { %v2843_v31 = vpop.f32.mrf.mxu1  ;;  %v1687_v32 = vmul.f32 %v7023_v39, %v1677_v6 }
 0xfad   :  { %v2871_v14 = vadd.f32 %v2849_v51, %v2339_v20  ;;  %v2844_v21 = vadd.f32 %v2843_v31, %v2720_v17  ;;  %v2872_v61 = vmul.f32 %v7023_v39, %v2868_v34  ;;  %v1688_v51 = vmul.f32 %v7023_v39, %v1682_v26  ;;  %v2889_v24 = vpop.permute.xlu1 %2888 }
 0xfaf   :  { %v2870_v33 = vadd.f32 %v2844_v21, %v2334_v52  ;;  %v2875_v48 = vmul.f32 %v7023_v39, %v2871_v14  ;;  %v3191_v45 = vpop.permute.xlu0 %3190 }
 0xfb1   :  { %5424 = vmatprep.subr.mxu0 %v2875_v48  ;;  %v2874_v1 = vmul.f32 %v7023_v39, %v2870_v33  ;;  %v3186_v58 = vpop.permute.xlu1 %3185 }
 0xfb2   :  { %5425 = vmatpush3.msra.mxu0 %v2875_v48 }
 0xfb3   :  { %5426 = vmatprep.subr.mxu0 %v2874_v1 }
 0xfb4   :  { %5427 = vmatpush3.msra.mxu0 %v2874_v1 }
 0xfb5   :  { %5428 = vmatprep.subr.mxu0 %v2873_v60 }
 0xfb6   :  { %5429 = vmatpush3.msra.mxu0 %v2873_v60  ;;  %v5420_v60 = vpop.f32.mrf.mxu1 }
 0xfb7   :  { %5430 = vmatprep.subr.mxu0 %v2872_v61 }
 0xfb8   :  { %5431 = vmatpush3.msra.mxu0 %v2872_v61  ;;  %v2853_v61 = vpop.f32.mrf.mxu1 }
 0xfb9   :  { %5433 = vmatmul.mubr.msk.f32.vlgmr.msra.gmra.mxu0 %vm84_vm0, %v4965_v36  ;;  %5443 = vmatprep.subr.mxu0 %v5709_v55 }
 0xfba   :  { %5435 = vmatprep.mubr.msk.f32.mxu0 %vm84_vm0, %v4966_v38  ;;  %5444 = vmatpush3.xpose.msk.msra.mxu0 %vm220_vm1, %v54_v59  ;;  %v5423_v36 = vpop.f32.mrf.mxu1  ;;  %v4992_v38 = vld [vmem:[%s7695_s6 + $0x40] sm:$0xff] }
 0xfbc   :  { %v2861_v37 = vpop.f32.mrf.mxu1 }
 0xfbd   :  { %5436 = vmatmul.mubr.msk.f32.gmra.mxu0 %vm84_vm0, %v4967_v40 }
 0xfbe   :  { %5445 = vmatprep.mubr.msk.f32.mxu0 %vm5714_vm4, %v5709_v55 }
 0xfc1   :  { %5446 = vmatmul.mubr.msk.f32.vlgmr.msra.gmra.mxu0 %vm220_vm1, %v1557_v46 }
 0xfc2   :  { %5466 = vmatprep.mubr.msk.f32.mxu0 %vm220_vm1, %v4992_v38  ;;  %v5005_v38 = vld [vmem:[%s7698_s10 + $0x208] sm:$0xff] }
0x1079   :  { %v5434_v4 = vpop.f32.mrf.mxu0 }
0x107a   :  { %v2990_v49 = vadd.f32 %v5434_v4, %v2894_v10 }
0x107b   :  { %v2984_v0 = vpop.f32.mrf.mxu0 }
0x107c   :  { %v2985_v27 = vadd.f32 %v2984_v0, %v2889_v24  ;;  %v4993_v0 = vld [vmem:[%s7695_s6 + $0x48] sm:$0xff] }
0x107d   :  { %v5437_v5 = vpop.f32.mrf.mxu0 }
0x107e   :  { %v3000_v50 = vadd.f32 %v5437_v5, %v2904_v2  ;;  %v4994_v2 = vld [vmem:[%s7695_s6 + $0x50] sm:$0xff]  ;;  %v4995_v5 = vld [vmem:[%s7695_s6 + $0x58] sm:$0xff] }
0x107f   :  { %v2994_v44 = vpop.f32.mrf.mxu0 }
0x1080   :  { %v3005_v15 = vmul.f32 1.442695, %v3000_v50  ;;  %v3014_v9 = vmul.f32 %v7023_v39, %v3000_v50  ;;  %v2995_v42 = vadd.f32 %v2994_v44, %v2899_v7  ;;  %v3332_v50 = vpop.permute.xlu0 %3331  ;;  %v3327_v44 = vpop.permute.xlu1 %3326 }
0x1081   :  { %v7065_v57 = vpop.f32.mrf.mxu0 }
0x1082   :  { %5644 = vpow2.f32 %v3005_v15  ;;  %v3003_v59 = vmul.f32 1.442695, %v2995_v42  ;;  %v3013_v11 = vmul.f32 %v7023_v39, %v2995_v42  ;;  %v3016_v53 = vsel %vm220_vm1, %v3014_v9, 0.0 }
0x1083   :  { %v5447_v12 = vpop.f32.mrf.mxu0 }
0x1084   :  { %5646 = vpow2.f32 %v3003_v59  ;;  %v3015_v17 = vsel %vm220_vm1, %v3013_v11, 0.0  ;;  %v3322_v59 = vpop.permute.xlu0 %3321 }
0x1085   :  { %v3017_v18 = vadd.f32 %v3016_v53, %v3015_v17 }
0x1087   :  { %v3018_v43 = vrot.slane %v3017_v18, 4 }
0x1089   :  { %v3019_v25 = vadd.f32 %v3018_v43, %v3017_v18  ;;  %v3317_v18 = vpop.permute.xlu1 %3316 }
0x108b   :  { %v3020_v20 = vrot.slane %v3019_v25, 2 }
0x108d   :  { %v3021_v16 = vadd.f32 %v3020_v20, %v3019_v25 }
0x108f   :  { %v5645_v52 = vpop.eup %5644  ;;  %v3022_v31 = vrot.slane %v3021_v16, 1 }
0x1090   :  { %v3008_v14 = vmul.f32 %v5645_v52, %v1688_v51 }
0x1091   :  { %v5647_v21 = vpop.eup %5646  ;;  %v3023_v3 = vadd.f32 %v3022_v31, %v3021_v16 }
0x1092   :  { %v3010_v33 = vadd.f32 %v3008_v14, %v2990_v49  ;;  %v3007_v29 = vmul.f32 %v5647_v21, %v1687_v32 }
0x1093   :  { %5441 = vmatmul.mubr.msk.f32.vlgmr.msra.gmra.mxu1 %vm220_vm1, %v3023_v3 }
0x1094   :  { %v3012_v48 = vmul.f32 %v7023_v39, %v3010_v33  ;;  %v3009_v34 = vadd.f32 %v3007_v29, %v2985_v27  ;;  %5456 = vmatprep.mubr.msk.f32.mxu1 %vm84_vm0, %v4980_v28 }
0x1096   :  { %5448 = vmatprep.subr.mxu1 %v3012_v48  ;;  %v3011_v1 = vmul.f32 %v7023_v39, %v3009_v34 }
0x1097   :  { %5449 = vmatpush3.msra.mxu1 %v3012_v48 }
0x1098   :  { %5450 = vmatprep.subr.mxu1 %v3011_v1 }
0x1099   :  { %5451 = vmatpush3.msra.mxu1 %v3011_v1 }
0x109a   :  { %5452 = vmatprep.subr.mxu1 %v6469_v22 }
0x109b   :  { %5453 = vmatpush3.msra.mxu1 %v6469_v22 }
0x109c   :  { %5454 = vmatprep.subr.mxu1 %v6472_v54 }
0x109d   :  { %5455 = vmatpush3.msra.mxu1 %v6472_v54 }
0x109e   :  { %5457 = vmatmul.mubr.msk.f32.vlgmr.msra.gmra.mxu1 %vm84_vm0, %v4981_v35 }
0x1153   :  { %v7093_v22 = vpop.f32.mrf.mxu1 }
0x1155   :  { %v5442_v40 = vpop.f32.mrf.mxu1 }
0x115e   :  { %v5458_v46 = vpop.f32.mrf.mxu1 }
0x115f   :  { %v3287_v47 = vadd.f32 %v5458_v46, %v3191_v45  ;;  %v5027_v46 = vld [vmem:[%s7699_s11 + $0x138] sm:$0xff] }
0x1160   :  { %v3281_v54 = vpop.f32.mrf.mxu1 }
0x1161   :  { %v3301_v63 = vmul.f32 %v7023_v39, %v3287_v47  ;;  %v3282_v56 = vadd.f32 %v3281_v54, %v3186_v58  ;;  %v5026_v47 = vld [vmem:[%s7699_s11 + $0x130] sm:$0xff]  ;;  %v5025_v58 = vld [vmem:[%s7699_s11 + $0x128] sm:$0xff]  ;;  %v5024_v54 = vld [vmem:[%s7699_s11 + $0x120] sm:$0xff] }
0x1163   :  { %4714 = vst.msk [vmem:[%s7705_s14 + $0x8] sm:$0xff] %vm220_vm1, %v3301_v63  ;;  %v3300_v4 = vmul.f32 %v7023_v39, %v3282_v56  ;;  %5462 = vmatprep.subr.mxu0 %v3301_v63  ;;  %v5022_v56 = vld [vmem:[%s7699_s11 + $0x110] sm:$0xff] }
0x1164   :  { %5463 = vmatpush3.msra.mxu0 %v3301_v63  ;;  %v5023_v63 = vld [vmem:[%s7699_s11 + $0x118] sm:$0xff] }
0x1165   :  { %4713 = vst.msk [vmem:[%s7705_s14] sm:$0xff] %vm220_vm1, %v3300_v4  ;;  %5464 = vmatprep.subr.mxu0 %v3300_v4 }
0x1166   :  { %5465 = vmatpush3.msra.mxu0 %v3300_v4  ;;  %v5021_v4 = vld [vmem:[%s7699_s11 + $0x108] sm:$0xff] }
0x1167   :  { %5467 = vmatmul.mubr.msk.f32.vlgmr.msra.gmra.mxu0 %vm220_vm1, %v4993_v0  ;;  %3633 = vmatprep.subr.mxu0 %v5709_v55  ;;  %v5020_v0 = vld [vmem:[%s7699_s11 + $0x100] sm:$0xff] }
0x1168   :  { %5469 = vmatprep.mubr.msk.f32.mxu0 %vm220_vm1, %v4994_v2  ;;  %v5051_v2 = vld [vmem:[%s7700_s13 + $0x118] sm:$0xff] }
0x116b   :  { %5470 = vmatmul.mubr.msk.f32.gmra.mxu0 %vm220_vm1, %v4995_v5  ;;  %v5050_v5 = vld [vmem:[%s7700_s13 + $0x110] sm:$0xff] }
0x116c   :  { %5028 = vmatprep.mubr.msk.f32.mxu0 %vm84_vm0, %v5005_v38  ;;  %v4983_v38 = vld [vmem:[%s7692_s4 + $0x58] sm:$0xff] }
0x1227   :  { %v5468_v7 = vpop.f32.mrf.mxu0 }
0x1228   :  { %v3418_v12 = vadd.f32 %v5468_v7, %v3322_v59  ;;  %v5048_v7 = vld [vmem:[%s7700_s13 + $0x100] sm:$0xff] }
0x1229   :  { %v3412_v15 = vpop.f32.mrf.mxu0 }
0x122a   :  { %v3413_v41 = vadd.f32 %v3412_v15, %v3317_v18  ;;  %v7127_v23 = vmul.f32 %v7023_v39, %v3418_v12 }
0x122b   :  { %v5471_v9 = vpop.f32.mrf.mxu0 }
0x122c   :  { %v3428_v42 = vadd.f32 %v5471_v9, %v3332_v50  ;;  %v7132_v25 = vmul.f32 %v7023_v39, %v3413_v41  ;;  %v5049_v50 = vld [vmem:[%s7700_s13 + $0x108] sm:$0xff] }
0x122d   :  { %v3422_v11 = vpop.f32.mrf.mxu0 }
0x122e   :  { %v7119_v53 = vmul.f32 %v7023_v39, %v3428_v42  ;;  %v3423_v17 = vadd.f32 %v3422_v11, %v3327_v44 }
0x1230   :  { %v7122_v43 = vmul.f32 %v7023_v39, %v3423_v17  ;;  %3471 = vrot.lane.b32.xlu0 %v7119_v53, %s5705_s3 }
0x1232   :  { %3469 = vrot.lane.b32.xlu1 %v7122_v43, %s5705_s3 }
0x1234   :  { %3467 = vrot.lane.b32.xlu0 %v7127_v23, %s5705_s3 }
0x1236   :  { %3465 = vrot.lane.b32.xlu1 %v7132_v25, %s5705_s3 }
0x12a2   :  { %v3472_v26 = vpop.permute.xlu0 %3471 }
0x12a3   :  { %v3480_v20 = vsel %vm362_vm2, 0.0, %v3472_v26 }
0x12a4   :  { %v7140_v6 = vsel %vm367_vm3, %v3480_v20, 0.0  ;;  %v3470_v16 = vpop.permute.xlu1 %3469 }
0x12a5   :  { %v3479_v51 = vsel %vm362_vm2, 0.0, %v3470_v16  ;;  %v3500_v52 = vmul.f32 %v7140_v6, %v5899_v62  ;;  %v3496_v33 = vmul.f32 %v7140_v6, %v5917_v8  ;;  %v3492_v1 = vmul.f32 %v7140_v6, %v5931_v13 }
0x12a6   :  { %v7146_v10 = vsel %vm367_vm3, %v3479_v51, 0.0  ;;  %v3468_v31 = vpop.permute.xlu0 %3467  ;;  %v3504_v36 = vmul.f32 %v7140_v6, %v5945_v19  ;;  %v3488_v16 = vmul.f32 %v7140_v6, %v5867_v30 }
0x12a7   :  { %v3478_v32 = vsel %vm362_vm2, 0.0, %v3468_v31  ;;  %3547 = vrot.lane.b32.xlu0 %v3500_v52, %s5710_s25  ;;  %v3499_v49 = vmul.f32 %v7146_v10, %v5899_v62  ;;  %v3495_v29 = vmul.f32 %v7146_v10, %v5917_v8  ;;  %v3491_v35 = vmul.f32 %v7146_v10, %v5931_v13 }
0x12a8   :  { %v7153_v14 = vsel %vm367_vm3, %v3478_v32, 0.0  ;;  %v3466_v21 = vpop.permute.xlu1 %3465  ;;  %v3503_v37 = vmul.f32 %v7146_v10, %v5945_v19  ;;  %v3487_v51 = vmul.f32 %v7146_v10, %v5867_v30 }
0x12a9   :  { %v3477_v24 = vsel %vm362_vm2, 0.0, %v3466_v21  ;;  %3545 = vrot.lane.b32.xlu1 %v3499_v49, %s5710_s25  ;;  %v3498_v3 = vmul.f32 %v7153_v14, %v5899_v62  ;;  %v3494_v48 = vmul.f32 %v7153_v14, %v5917_v8  ;;  %v3490_v60 = vmul.f32 %v7153_v14, %v5931_v13  ;;  %v5004_v49 = vld [vmem:[%s7698_s10 + $0x200] sm:$0xff]  ;;  %v5007_v21 = vld [vmem:[%s7698_s10 + $0x218] sm:$0xff] }
0x12aa   :  { %v7160_v28 = vsel %vm367_vm3, %v3477_v24, 0.0  ;;  %v3502_v40 = vmul.f32 %v7153_v14, %v5945_v19  ;;  %v3486_v52 = vmul.f32 %v7153_v14, %v5867_v30  ;;  %v5006_v24 = vld [vmem:[%s7698_s10 + $0x210] sm:$0xff] }
0x12ab   :  { %3543 = vrot.lane.b32.xlu0 %v3498_v3, %s5710_s25  ;;  %v3497_v27 = vmul.f32 %v7160_v28, %v5899_v62  ;;  %v3493_v34 = vmul.f32 %v7160_v28, %v5917_v8  ;;  %v3489_v61 = vmul.f32 %v7160_v28, %v5931_v13  ;;  %v3501_v45 = vmul.f32 %v7160_v28, %v5945_v19  ;;  %v5009_v3 = vld [vmem:[%s7698_s10 + $0x228] sm:$0xff] }
0x12ac   :  { %v3485_v31 = vmul.f32 %v7160_v28, %v5867_v30  ;;  %v5008_v28 = vld [vmem:[%s7698_s10 + $0x220] sm:$0xff] }
0x12ad   :  { %3541 = vrot.lane.b32.xlu1 %v3497_v27, %s5710_s25  ;;  %v5011_v27 = vld [vmem:[%s7698_s10 + $0x238] sm:$0xff] }
0x12af   :  { %3531 = vrot.lane.b32.xlu0 %v3496_v33, %s5711_s26  ;;  %v5010_v33 = vld [vmem:[%s7698_s10 + $0x230] sm:$0xff] }
0x12b1   :  { %3529 = vrot.lane.b32.xlu1 %v3495_v29, %s5711_s26  ;;  %v5013_v29 = vld [vmem:[%s7698_s10 + $0x248] sm:$0xff] }
0x12b3   :  { %3527 = vrot.lane.b32.xlu0 %v3494_v48, %s5711_s26  ;;  %v5012_v48 = vld [vmem:[%s7698_s10 + $0x240] sm:$0xff] }
0x12b5   :  { %3525 = vrot.lane.b32.xlu1 %v3493_v34, %s5711_s26  ;;  %v5015_v34 = vld [vmem:[%s7698_s10 + $0x258] sm:$0xff] }
0x12b7   :  { %3515 = vrot.lane.b32.xlu0 %v3492_v1, %s5712_s27  ;;  %v5014_v1 = vld [vmem:[%s7698_s10 + $0x250] sm:$0xff] }
0x12b9   :  { %3513 = vrot.lane.b32.xlu1 %v3491_v35, %s5712_s27  ;;  %v5017_v35 = vld [vmem:[%s7698_s10 + $0x268] sm:$0xff] }
0x12bb   :  { %3511 = vrot.lane.b32.xlu0 %v3490_v60, %s5712_s27  ;;  %v5016_v60 = vld [vmem:[%s7698_s10 + $0x260] sm:$0xff] }
0x12bd   :  { %3509 = vrot.lane.b32.xlu1 %v3489_v61, %s5712_s27  ;;  %v5019_v61 = vld [vmem:[%s7698_s10 + $0x278] sm:$0xff] }
0x12bf   :  { %3563 = vrot.lane.b32.xlu0 %v3504_v36, %s5713_s28  ;;  %v5018_v36 = vld [vmem:[%s7698_s10 + $0x270] sm:$0xff] }
0x12c1   :  { %3561 = vrot.lane.b32.xlu1 %v3503_v37, %s5713_s28  ;;  %v4982_v37 = vld [vmem:[%s7692_s4 + $0x50] sm:$0xff] }
0x12c2   :  { %5459 = vmatprep.mubr.msk.f32.mxu1 %vm84_vm0, %v4982_v37 }
0x12c3   :  { %3559 = vrot.lane.b32.xlu0 %v3502_v40, %s5713_s28  ;;  %5460 = vmatmul.mubr.msk.f32.gmra.mxu1 %vm84_vm0, %v4983_v38  ;;  %v5040_v40 = vld [vmem:[%s7701_s12 + $0x100] sm:$0xff] }
0x12c4   :  { %5480 = vmatprep.mubr.msk.f32.mxu1 %vm84_vm0, %v5040_v40 }
0x12c5   :  { %3557 = vrot.lane.b32.xlu1 %v3501_v45, %s5713_s28 }
0x12c7   :  { %3606 = vperm.xlu0 %5542, %v5027_v46  }
0x12c9   :  { %3601 = vperm.xlu1 %5543, %v5026_v47  }
0x12cb   :  { %3596 = vperm.xlu0 %5542, %v5025_v58  }
0x12cd   :  { %3591 = vperm.xlu1 %5543, %v5024_v54  }
0x12cf   :  { %3586 = vperm.xlu0 %5542, %v5023_v63  }
0x12d1   :  { %3581 = vperm.xlu1 %5543, %v5022_v56  }
0x12d3   :  { %3576 = vperm.xlu0 %5542, %v5021_v4  }
0x12d5   :  { %3571 = vperm.xlu1 %5543, %v5020_v0  }
0x12d7   :  { %3805 = vperm.xlu0 %5542, %v5051_v2  }
0x12d9   :  { %3800 = vperm.xlu1 %5543, %v5050_v5  }
0x12db   :  { %3795 = vperm.xlu0 %5542, %v5049_v50  }
0x12dd   :  { %3790 = vperm.xlu1 %5543, %v5048_v7  }
0x1319   :  { %v3548_v44 = vpop.permute.xlu0 %3547 }
0x131a   :  { %3634 = vmatpush1.msra.mxu0 %v3548_v44 }
0x131b   :  { %v3546_v15 = vpop.permute.xlu1 %3545  ;;  %3635 = vmatprep.subr.mxu0 %v5709_v55 }
0x131c   :  { %3636 = vmatpush1.msra.mxu0 %v3546_v15 }
0x131d   :  { %3637 = vmatprep.subr.mxu0 %v5709_v55  ;;  %v3544_v9 = vpop.permute.xlu0 %3543 }
0x131e   :  { %3638 = vmatpush1.msra.mxu0 %v3544_v9 }
0x131f   :  { %v3542_v42 = vpop.permute.xlu1 %3541  ;;  %3639 = vmatprep.subr.mxu0 %v5709_v55 }
0x1320   :  { %3640 = vmatpush1.msra.mxu0 %v3542_v42 }
0x1321   :  { %3641 = vmatprep.subr.mxu0 %v5709_v55  ;;  %v3532_v59 = vpop.permute.xlu0 %3531 }
0x1322   :  { %3642 = vmatpush1.msra.mxu0 %v3532_v59 }
0x1323   :  { %v3530_v11 = vpop.permute.xlu1 %3529  ;;  %3643 = vmatprep.subr.mxu0 %v5709_v55 }
0x1324   :  { %3644 = vmatpush1.msra.mxu0 %v3530_v11 }
0x1325   :  { %3645 = vmatprep.subr.mxu0 %v5709_v55  ;;  %v3528_v12 = vpop.permute.xlu0 %3527 }
0x1326   :  { %3646 = vmatpush1.msra.mxu0 %v3528_v12 }
0x1327   :  { %v3526_v17 = vpop.permute.xlu1 %3525  ;;  %3647 = vmatprep.subr.mxu0 %v5709_v55 }
0x1328   :  { %3648 = vmatpush1.msra.mxu0 %v3526_v17 }
0x1329   :  { %3649 = vmatprep.subr.mxu0 %v5709_v55  ;;  %v3516_v18 = vpop.permute.xlu0 %3515 }
0x132a   :  { %3650 = vmatpush1.msra.mxu0 %v3516_v18 }
0x132b   :  { %v3514_v41 = vpop.permute.xlu1 %3513  ;;  %3651 = vmatprep.subr.mxu0 %v5709_v55 }
0x132c   :  { %3652 = vmatpush1.msra.mxu0 %v3514_v41 }
0x132d   :  { %3653 = vmatprep.subr.mxu0 %v5709_v55  ;;  %v3512_v26 = vpop.permute.xlu0 %3511 }
0x132e   :  { %3654 = vmatpush1.msra.mxu0 %v3512_v26 }
0x132f   :  { %v3510_v20 = vpop.permute.xlu1 %3509  ;;  %3655 = vmatprep.subr.mxu0 %v5709_v55 }
0x1330   :  { %3656 = vmatpush1.msra.mxu0 %v3510_v20 }
0x1331   :  { %3657 = vmatprep.subr.mxu0 %v5709_v55  ;;  %v3564_v32 = vpop.permute.xlu0 %3563 }
0x1332   :  { %3658 = vmatpush1.msra.mxu0 %v3488_v16 }
0x1333   :  { %3659 = vmatprep.subr.mxu0 %v5709_v55  ;;  %v3562_v6 = vpop.permute.xlu1 %3561 }
0x1334   :  { %3660 = vmatpush1.msra.mxu0 %v3487_v51 }
0x1335   :  { %3661 = vmatprep.subr.mxu0 %v5709_v55  ;;  %v3560_v10 = vpop.permute.xlu0 %3559 }
0x1336   :  { %3662 = vmatpush1.msra.mxu0 %v3486_v52 }
0x1337   :  { %3663 = vmatprep.subr.mxu0 %v5709_v55  ;;  %v3558_v14 = vpop.permute.xlu1 %3557 }
0x1338   :  { %3664 = vmatpush1.msra.mxu0 %v3485_v31 }
0x1339   :  { %3689 = vmatprep.subr.mxu0 %v5709_v55 }
0x133a   :  { %3690 = vmatpush2.msra.mxu0 %v3564_v32 }
0x133b   :  { %3691 = vmatprep.subr.mxu0 %v5709_v55 }
0x133c   :  { %3692 = vmatpush2.msra.mxu0 %v3562_v6 }
0x133d   :  { %3693 = vmatprep.subr.mxu0 %v5709_v55 }
0x133e   :  { %3694 = vmatpush2.msra.mxu0 %v3560_v10 }
0x133f   :  { %3695 = vmatprep.subr.mxu0 %v5709_v55 }
0x1340   :  { %3696 = vmatpush2.msra.mxu0 %v3558_v14 }
0x1341   :  { %3698 = vmatmul.mubr.f32.vlgmr.msra.gmra.mxu0 %v5004_v49 }
0x1342   :  { %5029 = vmatprep.mubr.msk.f32.mxu0 %vm84_vm0, %v5007_v21  ;;  %v3607_v0 = vpop.permute.xlu0 %3606 }
0x1344   :  { %v3602_v5 = vpop.permute.xlu1 %3601 }
0x1345   :  { %3703 = vmatmul.mubr.f32.gmra.mxu0 %v5006_v24 }
0x1346   :  { %5030 = vmatprep.mubr.msk.f32.mxu0 %vm84_vm0, %v5009_v3  ;;  %v3597_v44 = vpop.permute.xlu0 %3596 }
0x1348   :  { %v3592_v9 = vpop.permute.xlu1 %3591 }
0x1349   :  { %3708 = vmatmul.mubr.f32.gmra.mxu0 %v5008_v28 }
0x134a   :  { %5031 = vmatprep.mubr.msk.f32.mxu0 %vm84_vm0, %v5011_v27  ;;  %v3587_v31 = vpop.permute.xlu0 %3586 }
0x134c   :  { %v3582_v49 = vpop.permute.xlu1 %3581 }
0x134d   :  { %3713 = vmatmul.mubr.f32.gmra.mxu0 %v5010_v33 }
0x134e   :  { %5032 = vmatprep.mubr.msk.f32.mxu0 %vm84_vm0, %v5013_v29  ;;  %v3577_v28 = vpop.permute.xlu0 %3576 }
0x1351   :  { %3718 = vmatmul.mubr.f32.gmra.mxu0 %v5012_v48 }
0x1352   :  { %5033 = vmatprep.mubr.msk.f32.mxu0 %vm84_vm0, %v5015_v34  ;;  %v3572_v34 = vpop.permute.xlu1 %3571 }
0x1355   :  { %3723 = vmatmul.mubr.f32.gmra.mxu0 %v5014_v1 }
0x1356   :  { %5034 = vmatprep.mubr.msk.f32.mxu0 %vm84_vm0, %v5017_v35 }
0x1359   :  { %3728 = vmatmul.mubr.f32.gmra.mxu0 %v5016_v60 }
0x135a   :  { %5035 = vmatprep.mubr.msk.f32.mxu0 %vm84_vm0, %v5019_v61 }
0x135d   :  { %3733 = vmatmul.mubr.f32.gmra.mxu0 %v5018_v36 }
0x1401   :  { %v3699_v45 = vpop.f32.mrf.mxu0 }
0x1402   :  { %v3700_v1 = vadd.f32 %v3699_v45, %v3572_v34 }
0x1403   :  { %v3701_v46 = vpop.f32.mrf.mxu0 }
0x1405   :  { %v3704_v47 = vpop.f32.mrf.mxu0 }
0x1406   :  { %v3705_v29 = vadd.f32 %v3704_v47, %v3577_v28 }
0x1407   :  { %v3706_v58 = vpop.f32.mrf.mxu0 }
0x1409   :  { %v3709_v54 = vpop.f32.mrf.mxu0 }
0x140a   :  { %v3710_v3 = vadd.f32 %v3709_v54, %v3582_v49 }
0x140b   :  { %v3711_v63 = vpop.f32.mrf.mxu0 }
0x140c   :  { %v5041_v63 = vld [vmem:[%s7701_s12 + $0x108] sm:$0xff] }
0x140d   :  { %v3714_v56 = vpop.f32.mrf.mxu0 }
0x140e   :  { %v3715_v6 = vadd.f32 %v3714_v56, %v3587_v31  ;;  %v5042_v56 = vld [vmem:[%s7701_s12 + $0x110] sm:$0xff] }
0x140f   :  { %v3716_v4 = vpop.f32.mrf.mxu0 }
0x1410   :  { %v5043_v4 = vld [vmem:[%s7701_s12 + $0x118] sm:$0xff] }
0x1411   :  { %v3719_v2 = vpop.f32.mrf.mxu0 }
0x1412   :  { %v3720_v59 = vadd.f32 %v3719_v2, %v3592_v9  ;;  %v5045_v2 = vld [vmem:[%s7701_s12 + $0x128] sm:$0xff]  ;;  %v3801_v9 = vpop.permute.xlu1 %3800 }
0x1413   :  { %v3721_v50 = vpop.f32.mrf.mxu0 }
0x1414   :  { %v5036_v26 = vmul.f32 -1.442695, %v3720_v59  ;;  %v5047_v50 = vld [vmem:[%s7701_s12 + $0x138] sm:$0xff] }
0x1415   :  { %v3724_v7 = vpop.f32.mrf.mxu0 }
0x1416   :  { %v3725_v42 = vadd.f32 %v3724_v7, %v3597_v44  ;;  %v7362_v7 = vpop.f32.mrf.mxu1  ;;  %v3806_v44 = vpop.permute.xlu0 %3805 }
0x1417   :  { %v3726_v15 = vpop.f32.mrf.mxu0 }
0x1418   :  { %v5037_v18 = vmul.f32 -1.442695, %v3725_v42  ;;  %v7364_v15 = vpop.f32.mrf.mxu1 }
0x1419   :  { %v3729_v11 = vpop.f32.mrf.mxu0 }
0x141a   :  { %v3730_v12 = vadd.f32 %v3729_v11, %v3602_v5  ;;  %v5046_v5 = vld [vmem:[%s7701_s12 + $0x130] sm:$0xff]  ;;  %v3796_v11 = vpop.permute.xlu0 %3795 }
0x141b   :  { %v3731_v17 = vpop.f32.mrf.mxu0 }
0x141c   :  { %v5038_v41 = vmul.f32 -1.442695, %v3730_v12 }
0x141d   :  { %v3734_v20 = vpop.f32.mrf.mxu0 }
0x141e   :  { %5648 = vpow2.f32 %v5038_v41  ;;  %v3735_v16 = vadd.f32 %v3734_v20, %v3607_v0  ;;  %v5044_v0 = vld [vmem:[%s7701_s12 + $0x120] sm:$0xff]  ;;  %v3791_v41 = vpop.permute.xlu1 %3790 }
0x141f   :  { %v3736_v51 = vpop.f32.mrf.mxu0  ;;  %5650 = vpow2.f32 %v5037_v18 }
0x1420   :  { %v5039_v52 = vmul.f32 -1.442695, %v3735_v16  ;;  %5652 = vpow2.f32 %v5036_v26 }
0x1422   :  { %5654 = vpow2.f32 %v5039_v52 }
0x1423   :  { %5656 = vtanh.f32 %v3715_v6 }
0x142b   :  { %v5649_v32 = vpop.eup %5648 }
0x142c   :  { %v5651_v10 = vpop.eup %5650  ;;  %v3756_v14 = vadd.f32 1.0, %v5649_v32 }
0x142d   :  { %v5653_v21 = vpop.eup %5652  ;;  %v3755_v27 = vadd.f32 1.0, %v5651_v10 }
0x142e   :  { %5658 = vrcp.f32 %v3756_v14  ;;  %v3754_v48 = vadd.f32 1.0, %v5653_v21 }
0x142f   :  { %v5655_v24 = vpop.eup %5654 }
0x1430   :  { %v3757_v33 = vadd.f32 1.0, %v5655_v24  ;;  %v5657_v35 = vpop.eup %5656 }
0x1432   :  { %5660 = vrcp.f32 %v3757_v33 }
0x1433   :  { %5662 = vtanh.f32 %v3710_v3 }
0x1434   :  { %5664 = vrcp.f32 %v3755_v27 }
0x1435   :  { %5666 = vtanh.f32 %v3705_v29 }
0x1436   :  { %5668 = vrcp.f32 %v3754_v48 }
0x1437   :  { %5670 = vtanh.f32 %v3700_v1 }
0x143b   :  { %v5659_v60 = vpop.eup %5658 }
0x143f   :  { %v5661_v61 = vpop.eup %5660 }
0x1440   :  { %v5663_v36 = vpop.eup %5662  ;;  %v3769_v37 = vmul.f32 %v5661_v61, %v5657_v35 }
0x1441   :  { %v5665_v38 = vpop.eup %5664  ;;  %v3768_v46 = vmul.f32 %v5663_v36, %v5659_v60 }
0x1442   :  { %v5667_v40 = vpop.eup %5666  ;;  %5472 = vmatprep.subr.mxu1 %v3769_v37 }
0x1443   :  { %v5669_v47 = vpop.eup %5668  ;;  %5473 = vmatpush3.msra.mxu1 %v3769_v37  ;;  %v3767_v58 = vmul.f32 %v5667_v40, %v5665_v38 }
0x1444   :  { %5474 = vmatprep.subr.mxu1 %v3768_v46  ;;  %v5671_v54 = vpop.eup %5670 }
0x1445   :  { %5475 = vmatpush3.msra.mxu1 %v3768_v46  ;;  %v3766_v45 = vmul.f32 %v5671_v54, %v5669_v47 }
0x1446   :  { %5476 = vmatprep.subr.mxu1 %v3767_v58 }
0x1447   :  { %5477 = vmatpush3.msra.mxu1 %v3767_v58  ;;  %v5065_v58 = vld [vmem:[%s7698_s10 + $0x288] sm:$0xff] }
0x1448   :  { %5478 = vmatprep.subr.mxu1 %v3766_v45 }
0x1449   :  { %5479 = vmatpush3.msra.mxu1 %v3766_v45  ;;  %v5087_v45 = vld [vmem:[%s7699_s11 + $0x178] sm:$0xff] }
0x144a   :  { %5481 = vmatmul.mubr.msk.f32.vlgmr.msra.gmra.mxu1 %vm84_vm0, %v5041_v63  ;;  %4167 = vmatprep.subr.mxu1 %v5709_v55  ;;  %v5086_v63 = vld [vmem:[%s7699_s11 + $0x170] sm:$0xff] }
0x144b   :  { %5483 = vmatprep.mubr.msk.f32.mxu1 %vm84_vm0, %v5042_v56  ;;  %v5085_v56 = vld [vmem:[%s7699_s11 + $0x168] sm:$0xff] }
0x144e   :  { %5484 = vmatmul.mubr.msk.f32.gmra.mxu1 %vm84_vm0, %v5043_v4  ;;  %v5083_v4 = vld [vmem:[%s7699_s11 + $0x158] sm:$0xff] }
0x144f   :  { %5486 = vmatprep.mubr.msk.f32.mxu1 %vm84_vm0, %v5044_v0  ;;  %v5082_v0 = vld [vmem:[%s7699_s11 + $0x150] sm:$0xff] }
0x1452   :  { %5487 = vmatmul.mubr.msk.f32.gmra.mxu1 %vm84_vm0, %v5045_v2  ;;  %v5081_v2 = vld [vmem:[%s7699_s11 + $0x148] sm:$0xff] }
0x1453   :  { %5489 = vmatprep.mubr.msk.f32.mxu1 %vm84_vm0, %v5046_v5  ;;  %v5080_v5 = vld [vmem:[%s7699_s11 + $0x140] sm:$0xff] }
0x1456   :  { %5490 = vmatmul.mubr.msk.f32.gmra.mxu1 %vm84_vm0, %v5047_v50  ;;  %v5055_v50 = vld [vmem:[%s7700_s13 + $0x138] sm:$0xff] }
0x1457   :  { %5088 = vmatprep.mubr.msk.f32.mxu1 %vm84_vm0, %v5065_v58  ;;  %v5078_v58 = vld [vmem:[%s7698_s10 + $0x2f0] sm:$0xff] }
0x150a   :  { %v5482_v42 = vpop.f32.mrf.mxu1 }
0x150b   :  { %v3924_v17 = vadd.f32 %v5482_v42, %v3796_v11  ;;  %v5110_v42 = vld [vmem:[%s7700_s13 + $0x150] sm:$0xff]  ;;  %v5109_v11 = vld [vmem:[%s7700_s13 + $0x148] sm:$0xff] }
0x150c   :  { %v3918_v59 = vpop.f32.mrf.mxu1 }
0x150d   :  { %v3919_v20 = vadd.f32 %v3918_v59, %v3791_v41  ;;  %v3958_v52 = vadd.f32 %v3924_v17, %v7127_v23  ;;  %v5053_v59 = vld [vmem:[%s7700_s13 + $0x128] sm:$0xff]  ;;  %v5108_v17 = vld [vmem:[%s7700_s13 + $0x140] sm:$0xff]  ;;  %v5131_v41 = vld [vmem:[%s7702_s9 + $0x58] sm:$0xff] }
0x150e   :  { %v5485_v12 = vpop.f32.mrf.mxu1 }
0x150f   :  { %v3934_v18 = vadd.f32 %v5485_v12, %v3806_v44  ;;  %v3957_v6 = vadd.f32 %v3919_v20, %v7132_v25  ;;  %v3962_v49 = vmul.f32 %v7023_v39, %v3958_v52  ;;  %v5111_v44 = vld [vmem:[%s7700_s13 + $0x158] sm:$0xff]  ;;  %v5052_v12 = vld [vmem:[%s7700_s13 + $0x120] sm:$0xff] }
0x1510   :  { %v3928_v26 = vpop.f32.mrf.mxu1  ;;  %v4987_v20 = vld [vmem:[%s7693_s5 + $0x58] sm:$0xff] }
0x1511   :  { %v3960_v16 = vadd.f32 %v3934_v18, %v7119_v53  ;;  %v3929_v51 = vadd.f32 %v3928_v26, %v3801_v9  ;;  %v3961_v14 = vmul.f32 %v7023_v39, %v3957_v6  ;;  %v5054_v9 = vld [vmem:[%s7700_s13 + $0x130] sm:$0xff] }
0x1512   :  { %v5130_v18 = vld [vmem:[%s7702_s9 + $0x50] sm:$0xff] }
0x1513   :  { %v3964_v31 = vmul.f32 %v7023_v39, %v3960_v16  ;;  %v3959_v32 = vadd.f32 %v3929_v51, %v7122_v43  ;;  %v4986_v26 = vld [vmem:[%s7693_s5 + $0x50] sm:$0xff]  ;;  %v5128_v16 = vld [vmem:[%s7702_s9 + $0x40] sm:$0xff]  ;;  %v5129_v51 = vld [vmem:[%s7702_s9 + $0x48] sm:$0xff] }
0x1515   :  { %v3963_v10 = vmul.f32 %v7023_v39, %v3959_v32  ;;  %4005 = vrot.lane.b32.xlu0 %v3964_v31, %s5705_s3 }
0x1517   :  { %4003 = vrot.lane.b32.xlu1 %v3963_v10, %s5705_s3 }
0x1519   :  { %4001 = vrot.lane.b32.xlu0 %v3962_v49, %s5705_s3 }
0x151b   :  { %3999 = vrot.lane.b32.xlu1 %v3961_v14, %s5705_s3 }
0x1587   :  { %v4006_v53 = vpop.permute.xlu0 %4005 }
0x1588   :  { %v4014_v23 = vsel %vm362_vm2, 0.0, %v4006_v53 }
0x1589   :  { %v7380_v43 = vsel %vm367_vm3, %v4014_v23, 0.0  ;;  %v4004_v25 = vpop.permute.xlu1 %4003 }
0x158a   :  { %v4013_v21 = vsel %vm362_vm2, 0.0, %v4004_v25  ;;  %v4034_v24 = vmul.f32 %v7380_v43, %v5899_v62  ;;  %v4030_v60 = vmul.f32 %v7380_v43, %v5917_v8  ;;  %v4026_v37 = vmul.f32 %v7380_v43, %v5931_v13 }
0x158b   :  { %v7386_v3 = vsel %vm367_vm3, %v4013_v21, 0.0  ;;  %v4002_v39 = vpop.permute.xlu0 %4001  ;;  %v4038_v46 = vmul.f32 %v7380_v43, %v5945_v19 }
0x158c   :  { %v4012_v28 = vsel %vm362_vm2, 0.0, %v4002_v39  ;;  %4081 = vrot.lane.b32.xlu0 %v4034_v24, %s5710_s25  ;;  %v4033_v27 = vmul.f32 %v7386_v3, %v5899_v62  ;;  %v4029_v61 = vmul.f32 %v7386_v3, %v5917_v8  ;;  %v4025_v38 = vmul.f32 %v7386_v3, %v5931_v13 }
0x158d   :  { %v7393_v33 = vsel %vm367_vm3, %v4012_v28, 0.0  ;;  %v4000_v29 = vpop.permute.xlu1 %3999  ;;  %v4037_v47 = vmul.f32 %v7386_v3, %v5945_v19  ;;  %v4022_v39 = vmul.f32 %v7380_v43, %v5867_v30  ;;  %v4021_v28 = vmul.f32 %v7386_v3, %v5867_v30 }
0x158e   :  { %v4011_v48 = vsel %vm362_vm2, 0.0, %v4000_v29  ;;  %4079 = vrot.lane.b32.xlu1 %v4033_v27, %s5710_s25  ;;  %v4032_v34 = vmul.f32 %v7393_v33, %v5899_v62  ;;  %v4028_v36 = vmul.f32 %v7393_v33, %v5917_v8  ;;  %v4024_v40 = vmul.f32 %v7393_v33, %v5931_v13 }
0x158f   :  { %v7400_v1 = vsel %vm367_vm3, %v4011_v48, 0.0  ;;  %v4036_v54 = vmul.f32 %v7393_v33, %v5945_v19  ;;  %v4020_v27 = vmul.f32 %v7393_v33, %v5867_v30  ;;  %v5064_v33 = vld [vmem:[%s7698_s10 + $0x280] sm:$0xff] }
0x1590   :  { %4077 = vrot.lane.b32.xlu0 %v4032_v34, %s5710_s25  ;;  %v4031_v35 = vmul.f32 %v7400_v1, %v5899_v62  ;;  %v4027_v62 = vmul.f32 %v7400_v1, %v5917_v8  ;;  %v4023_v8 = vmul.f32 %v7400_v1, %v5931_v13  ;;  %v4035_v13 = vmul.f32 %v7400_v1, %v5945_v19  ;;  %v5084_v19 = vld [vmem:[%s7699_s11 + $0x160] sm:$0xff]  ;;  %v5067_v34 = vld [vmem:[%s7698_s10 + $0x298] sm:$0xff] }
0x1591   :  { %v4019_v29 = vmul.f32 %v7400_v1, %v5867_v30  ;;  %v5066_v1 = vld [vmem:[%s7698_s10 + $0x290] sm:$0xff] }
0x1592   :  { %4075 = vrot.lane.b32.xlu1 %v4031_v35, %s5710_s25  ;;  %v5069_v35 = vld [vmem:[%s7698_s10 + $0x2a8] sm:$0xff] }
0x1594   :  { %4065 = vrot.lane.b32.xlu0 %v4030_v60, %s5711_s26  ;;  %v5068_v60 = vld [vmem:[%s7698_s10 + $0x2a0] sm:$0xff] }
0x1596   :  { %4063 = vrot.lane.b32.xlu1 %v4029_v61, %s5711_s26  ;;  %v5071_v61 = vld [vmem:[%s7698_s10 + $0x2b8] sm:$0xff] }
0x1598   :  { %4061 = vrot.lane.b32.xlu0 %v4028_v36, %s5711_s26  ;;  %v5070_v36 = vld [vmem:[%s7698_s10 + $0x2b0] sm:$0xff] }
0x159a   :  { %4059 = vrot.lane.b32.xlu1 %v4027_v62, %s5711_s26  ;;  %v5073_v62 = vld [vmem:[%s7698_s10 + $0x2c8] sm:$0xff] }
0x159c   :  { %4049 = vrot.lane.b32.xlu0 %v4026_v37, %s5712_s27  ;;  %v5072_v37 = vld [vmem:[%s7698_s10 + $0x2c0] sm:$0xff] }
0x159e   :  { %4047 = vrot.lane.b32.xlu1 %v4025_v38, %s5712_s27  ;;  %v5075_v38 = vld [vmem:[%s7698_s10 + $0x2d8] sm:$0xff] }
0x15a0   :  { %4045 = vrot.lane.b32.xlu0 %v4024_v40, %s5712_s27  ;;  %v5074_v40 = vld [vmem:[%s7698_s10 + $0x2d0] sm:$0xff] }
0x15a2   :  { %4043 = vrot.lane.b32.xlu1 %v4023_v8, %s5712_s27  ;;  %v5077_v8 = vld [vmem:[%s7698_s10 + $0x2e8] sm:$0xff] }
0x15a4   :  { %4097 = vrot.lane.b32.xlu0 %v4038_v46, %s5713_s28  ;;  %v5076_v46 = vld [vmem:[%s7698_s10 + $0x2e0] sm:$0xff] }
0x15a6   :  { %4095 = vrot.lane.b32.xlu1 %v4037_v47, %s5713_s28  ;;  %v5079_v47 = vld [vmem:[%s7698_s10 + $0x2f8] sm:$0xff] }
0x15a8   :  { %4093 = vrot.lane.b32.xlu0 %v4036_v54, %s5713_s28  ;;  %v5100_v54 = vld [vmem:[%s7701_s12 + $0x140] sm:$0xff] }
0x15a9   :  { %5500 = vmatprep.mubr.msk.f32.mxu0 %vm84_vm0, %v5100_v54 }
0x15aa   :  { %4091 = vrot.lane.b32.xlu1 %v4035_v13, %s5713_s28  ;;  %v7595_v13 = vpop.f32.mrf.mxu1 }
0x15ac   :  { %4140 = vperm.xlu0 %5542, %v5087_v45   ;;  %v7597_v45 = vpop.f32.mrf.mxu1 }
0x15ae   :  { %4135 = vperm.xlu1 %5543, %v5086_v63   ;;  %v7599_v63 = vpop.f32.mrf.mxu1 }
0x15b0   :  { %4130 = vperm.xlu0 %5542, %v5085_v56   ;;  %v7601_v56 = vpop.f32.mrf.mxu1 }
0x15b2   :  { %4125 = vperm.xlu1 %5543, %v5084_v19  }
0x15b4   :  { %4120 = vperm.xlu0 %5542, %v5083_v4  }
0x15b6   :  { %4115 = vperm.xlu1 %5543, %v5082_v0  }
0x15b8   :  { %4110 = vperm.xlu0 %5542, %v5081_v2  }
0x15ba   :  { %4105 = vperm.xlu1 %5543, %v5080_v5  }
0x15bc   :  { %3825 = vperm.xlu0 %5542, %v5055_v50  }
0x15be   :  { %4339 = vperm.xlu1 %5543, %v5111_v44  }
0x15c0   :  { %3820 = vperm.xlu0 %5542, %v5054_v9  }
0x15c2   :  { %4334 = vperm.xlu1 %5543, %v5110_v42  }
0x15c4   :  { %3815 = vperm.xlu0 %5542, %v5053_v59  }
0x15c6   :  { %4329 = vperm.xlu1 %5543, %v5109_v11  }
0x15c8   :  { %3810 = vperm.xlu0 %5542, %v5052_v12  }
0x15ca   :  { %4324 = vperm.xlu1 %5543, %v5108_v17  }
0x15cc   :  { %4513 = vperm.xlu0 %5542, %v5130_v18  }
0x15ce   :  { %4518 = vperm.xlu1 %5543, %v5131_v41  }
0x15d0   :  { %3195 = vperm.xlu0 %5542, %v4986_v26  }
0x15d2   :  { %3200 = vperm.xlu1 %5543, %v4987_v20  }
0x15d4   :  { %4503 = vperm.xlu0 %5542, %v5128_v16  }
0x15d6   :  { %4508 = vperm.xlu1 %5543, %v5129_v51  }
0x15fe   :  { %v4082_v52 = vpop.permute.xlu0 %4081 }
0x15ff   :  { %4168 = vmatpush1.msra.mxu1 %v4082_v52 }
0x1600   :  { %v4080_v31 = vpop.permute.xlu1 %4079  ;;  %4169 = vmatprep.subr.mxu1 %v5709_v55 }
0x1601   :  { %4170 = vmatpush1.msra.mxu1 %v4080_v31 }
0x1602   :  { %4171 = vmatprep.subr.mxu1 %v5709_v55  ;;  %v4078_v32 = vpop.permute.xlu0 %4077 }
0x1603   :  { %4172 = vmatpush1.msra.mxu1 %v4078_v32 }
0x1604   :  { %v4076_v6 = vpop.permute.xlu1 %4075  ;;  %4173 = vmatprep.subr.mxu1 %v5709_v55 }
0x1605   :  { %4174 = vmatpush1.msra.mxu1 %v4076_v6 }
0x1606   :  { %4175 = vmatprep.subr.mxu1 %v5709_v55  ;;  %v4066_v10 = vpop.permute.xlu0 %4065 }
0x1607   :  { %4176 = vmatpush1.msra.mxu1 %v4066_v10 }
0x1608   :  { %v4064_v49 = vpop.permute.xlu1 %4063  ;;  %4177 = vmatprep.subr.mxu1 %v5709_v55 }
0x1609   :  { %4178 = vmatpush1.msra.mxu1 %v4064_v49 }
0x160a   :  { %4179 = vmatprep.subr.mxu1 %v5709_v55  ;;  %v4062_v14 = vpop.permute.xlu0 %4061 }
0x160b   :  { %4180 = vmatpush1.msra.mxu1 %v4062_v14 }
0x160c   :  { %v4060_v53 = vpop.permute.xlu1 %4059  ;;  %4181 = vmatprep.subr.mxu1 %v5709_v55 }
0x160d   :  { %4182 = vmatpush1.msra.mxu1 %v4060_v53 }
0x160e   :  { %4183 = vmatprep.subr.mxu1 %v5709_v55  ;;  %v4050_v23 = vpop.permute.xlu0 %4049 }
0x160f   :  { %4184 = vmatpush1.msra.mxu1 %v4050_v23 }
0x1610   :  { %v4048_v25 = vpop.permute.xlu1 %4047  ;;  %4185 = vmatprep.subr.mxu1 %v5709_v55 }
0x1611   :  { %4186 = vmatpush1.msra.mxu1 %v4048_v25 }
0x1612   :  { %4187 = vmatprep.subr.mxu1 %v5709_v55  ;;  %v4046_v21 = vpop.permute.xlu0 %4045 }
0x1613   :  { %4188 = vmatpush1.msra.mxu1 %v4046_v21 }
0x1614   :  { %v4044_v24 = vpop.permute.xlu1 %4043  ;;  %4189 = vmatprep.subr.mxu1 %v5709_v55 }
0x1615   :  { %4190 = vmatpush1.msra.mxu1 %v4044_v24 }
0x1616   :  { %4191 = vmatprep.subr.mxu1 %v5709_v55  ;;  %v4098_v48 = vpop.permute.xlu0 %4097 }
0x1617   :  { %4192 = vmatpush1.msra.mxu1 %v4022_v39 }
0x1618   :  { %4193 = vmatprep.subr.mxu1 %v5709_v55  ;;  %v4096_v43 = vpop.permute.xlu1 %4095 }
0x1619   :  { %4194 = vmatpush1.msra.mxu1 %v4021_v28 }
0x161a   :  { %4195 = vmatprep.subr.mxu1 %v5709_v55  ;;  %v4094_v3 = vpop.permute.xlu0 %4093 }
0x161b   :  { %4196 = vmatpush1.msra.mxu1 %v4020_v27 }
0x161c   :  { %4197 = vmatprep.subr.mxu1 %v5709_v55  ;;  %v4092_v30 = vpop.permute.xlu1 %4091 }
0x161d   :  { %4198 = vmatpush1.msra.mxu1 %v4019_v29 }
0x161e   :  { %4223 = vmatprep.subr.mxu1 %v5709_v55 }
0x161f   :  { %4224 = vmatpush2.msra.mxu1 %v4098_v48 }
0x1620   :  { %4225 = vmatprep.subr.mxu1 %v5709_v55 }
0x1621   :  { %4226 = vmatpush2.msra.mxu1 %v4096_v43 }
0x1622   :  { %4227 = vmatprep.subr.mxu1 %v5709_v55 }
0x1623   :  { %4228 = vmatpush2.msra.mxu1 %v4094_v3 }
0x1624   :  { %4229 = vmatprep.subr.mxu1 %v5709_v55 }
0x1625   :  { %4230 = vmatpush2.msra.mxu1 %v4092_v30 }
0x1626   :  { %4232 = vmatmul.mubr.f32.vlgmr.msra.gmra.mxu1 %v5064_v33 }
0x1627   :  { %5089 = vmatprep.mubr.msk.f32.mxu1 %vm84_vm0, %v5067_v34  ;;  %v4141_v42 = vpop.permute.xlu0 %4140 }
0x1629   :  { %v4136_v11 = vpop.permute.xlu1 %4135 }
0x162a   :  { %4237 = vmatmul.mubr.f32.gmra.mxu1 %v5066_v1 }
0x162b   :  { %5090 = vmatprep.mubr.msk.f32.mxu1 %vm84_vm0, %v5069_v35  ;;  %v4131_v18 = vpop.permute.xlu0 %4130 }
0x162d   :  { %v4126_v26 = vpop.permute.xlu1 %4125 }
0x162e   :  { %4242 = vmatmul.mubr.f32.gmra.mxu1 %v5068_v60 }
0x162f   :  { %5091 = vmatprep.mubr.msk.f32.mxu1 %vm84_vm0, %v5071_v61  ;;  %v4121_v25 = vpop.permute.xlu0 %4120 }
0x1631   :  { %v4116_v28 = vpop.permute.xlu1 %4115 }
0x1632   :  { %4247 = vmatmul.mubr.f32.gmra.mxu1 %v5070_v36 }
0x1633   :  { %5092 = vmatprep.mubr.msk.f32.mxu1 %vm84_vm0, %v5073_v62  ;;  %v4111_v3 = vpop.permute.xlu0 %4110 }
0x1635   :  { %v4106_v35 = vpop.permute.xlu1 %4105 }
0x1636   :  { %4252 = vmatmul.mubr.f32.gmra.mxu1 %v5072_v37 }
0x1637   :  { %5093 = vmatprep.mubr.msk.f32.mxu1 %vm84_vm0, %v5075_v38 }
0x163a   :  { %4257 = vmatmul.mubr.f32.gmra.mxu1 %v5074_v40 }
0x163b   :  { %5094 = vmatprep.mubr.msk.f32.mxu1 %vm84_vm0, %v5077_v8 }
0x163e   :  { %4262 = vmatmul.mubr.f32.gmra.mxu1 %v5076_v46 }
0x163f   :  { %5095 = vmatprep.mubr.msk.f32.mxu1 %vm84_vm0, %v5079_v47 }
0x1642   :  { %4267 = vmatmul.mubr.f32.gmra.mxu1 %v5078_v58 }
0x16e6   :  { %v4233_v19 = vpop.f32.mrf.mxu1 }
0x16e7   :  { %v4234_v60 = vadd.f32 %v4233_v19, %v4106_v35 }
0x16e8   :  { %v4235_v4 = vpop.f32.mrf.mxu1 }
0x16e9   :  { %v5101_v4 = vld [vmem:[%s7701_s12 + $0x148] sm:$0xff] }
0x16ea   :  { %v4238_v0 = vpop.f32.mrf.mxu1 }
0x16eb   :  { %v4239_v34 = vadd.f32 %v4238_v0, %v4111_v3  ;;  %v5102_v0 = vld [vmem:[%s7701_s12 + $0x150] sm:$0xff]  ;;  %v5107_v3 = vld [vmem:[%s7701_s12 + $0x178] sm:$0xff] }
0x16ec   :  { %v4240_v2 = vpop.f32.mrf.mxu1 }
0x16ed   :  { %v5103_v2 = vld [vmem:[%s7701_s12 + $0x158] sm:$0xff] }
0x16ee   :  { %v4243_v5 = vpop.f32.mrf.mxu1 }
0x16ef   :  { %v4244_v43 = vadd.f32 %v4243_v5, %v4116_v28  ;;  %v5702_v5 = vld [vmem:[%s7704_s2] sm:$0x3]  ;;  %v5126_v28 = vld [vmem:[%s7703_s8 + $0x50] sm:$0xff] }
0x16f0   :  { %v4245_v50 = vpop.f32.mrf.mxu1 }
0x16f1   :  { %v5124_v50 = vld [vmem:[%s7703_s8 + $0x40] sm:$0xff] }
0x16f2   :  { %v4248_v44 = vpop.f32.mrf.mxu1  ;;  %5520 = vmatprep.mubr.msk.f32.mxu1 %vm84_vm0, %v5124_v50 }
0x16f3   :  { %v4249_v24 = vadd.f32 %v4248_v44, %v4121_v25  ;;  %v3826_v44 = vpop.permute.xlu0 %3825 }
0x16f4   :  { %v4250_v9 = vpop.f32.mrf.mxu1 }
0x16f5   :  { %v4340_v9 = vpop.permute.xlu1 %4339 }
0x16f6   :  { %v4253_v59 = vpop.f32.mrf.mxu1 }
0x16f7   :  { %v4254_v16 = vadd.f32 %v4253_v59, %v4126_v26  ;;  %v3954_v26 = vadd.f32 %v7599_v63, %v3826_v44  ;;  %v7631_v63 = vld [vmem:[%s7696_s1] ss:$0 sm:$0xff] }
0x16f8   :  { %v4255_v12 = vpop.f32.mrf.mxu1 }
0x16f9   :  { %v5096_v10 = vmul.f32 -1.442695, %v4254_v16  ;;  %v4335_v59 = vpop.permute.xlu1 %4334 }
0x16fa   :  { %v4258_v17 = vpop.f32.mrf.mxu1 }
0x16fb   :  { %v4259_v20 = vadd.f32 %v4258_v17, %v4131_v18 }
0x16fc   :  { %v4260_v41 = vpop.f32.mrf.mxu1 }
0x16fd   :  { %v5097_v32 = vmul.f32 -1.442695, %v4259_v20  ;;  %v4330_v12 = vpop.permute.xlu1 %4329 }
0x16fe   :  { %v4263_v51 = vpop.f32.mrf.mxu1 }
0x16ff   :  { %v4264_v52 = vadd.f32 %v4263_v51, %v4136_v11 }
0x1700   :  { %v4265_v31 = vpop.f32.mrf.mxu1 }
0x1701   :  { %v5098_v6 = vmul.f32 -1.442695, %v4264_v52  ;;  %v4325_v31 = vpop.permute.xlu1 %4324 }
0x1702   :  { %v4268_v49 = vpop.f32.mrf.mxu1 }
0x1703   :  { %5672 = vpow2.f32 %v5098_v6  ;;  %v4269_v14 = vadd.f32 %v4268_v49, %v4141_v42  ;;  %v3821_v42 = vpop.permute.xlu0 %3820 }
0x1704   :  { %v4270_v53 = vpop.f32.mrf.mxu1  ;;  %5674 = vpow2.f32 %v5097_v32  ;;  %v3949_v52 = vadd.f32 %v7601_v56, %v3821_v42 }
0x1705   :  { %v5099_v23 = vmul.f32 -1.442695, %v4269_v14  ;;  %5676 = vpow2.f32 %v5096_v10 }
0x1707   :  { %5678 = vpow2.f32 %v5099_v23  ;;  %v3816_v11 = vpop.permute.xlu0 %3815 }
0x1708   :  { %5680 = vtanh.f32 %v4249_v24  ;;  %v3944_v6 = vadd.f32 %v7595_v13, %v3816_v11 }
0x170b   :  { %v3811_v20 = vpop.permute.xlu0 %3810 }
0x170c   :  { %v3939_v53 = vadd.f32 %v7597_v45, %v3811_v20 }
0x1710   :  { %v5673_v21 = vpop.eup %5672 }
0x1711   :  { %v5675_v39 = vpop.eup %5674  ;;  %v4290_v27 = vadd.f32 1.0, %v5673_v21 }
0x1712   :  { %v5677_v29 = vpop.eup %5676  ;;  %v4289_v33 = vadd.f32 1.0, %v5675_v39  ;;  %v5125_v39 = vld [vmem:[%s7703_s8 + $0x48] sm:$0xff] }
0x1713   :  { %5682 = vrcp.f32 %v4290_v27  ;;  %v4288_v1 = vadd.f32 1.0, %v5677_v29  ;;  %v5127_v27 = vld [vmem:[%s7703_s8 + $0x58] sm:$0xff]  ;;  %v5104_v29 = vld [vmem:[%s7701_s12 + $0x160] sm:$0xff] }
0x1714   :  { %v5679_v48 = vpop.eup %5678 }
0x1715   :  { %v4291_v30 = vadd.f32 1.0, %v5679_v48  ;;  %v5681_v61 = vpop.eup %5680  ;;  %v5105_v48 = vld [vmem:[%s7701_s12 + $0x168] sm:$0xff] }
0x1717   :  { %5684 = vrcp.f32 %v4291_v30 }
0x1718   :  { %5686 = vtanh.f32 %v4244_v43  ;;  %v5106_v43 = vld [vmem:[%s7701_s12 + $0x170] sm:$0xff] }
0x1719   :  { %5688 = vrcp.f32 %v4289_v33 }
0x171a   :  { %5690 = vtanh.f32 %v4239_v34  ;;  %v4519_v34 = vpop.permute.xlu1 %4518 }
0x171b   :  { %5692 = vrcp.f32 %v4288_v1 }
0x171c   :  { %5694 = vtanh.f32 %v4234_v60  ;;  %v4514_v60 = vpop.permute.xlu0 %4513 }
0x1720   :  { %v5683_v36 = vpop.eup %5682 }
0x1724   :  { %v5685_v62 = vpop.eup %5684 }
0x1725   :  { %v5687_v37 = vpop.eup %5686  ;;  %v4303_v38 = vmul.f32 %v5685_v62, %v5681_v61 }
0x1726   :  { %v5689_v40 = vpop.eup %5688  ;;  %v4302_v46 = vmul.f32 %v5687_v37, %v5683_v36 }
0x1727   :  { %v5691_v8 = vpop.eup %5690  ;;  %5492 = vmatprep.subr.mxu0 %v4303_v38 }
0x1728   :  { %v5693_v47 = vpop.eup %5692  ;;  %5493 = vmatpush3.msra.mxu0 %v4303_v38  ;;  %v4301_v58 = vmul.f32 %v5691_v8, %v5689_v40 }
0x1729   :  { %5494 = vmatprep.subr.mxu0 %v4302_v46  ;;  %v5695_v54 = vpop.eup %5694 }
0x172a   :  { %5495 = vmatpush3.msra.mxu0 %v4302_v46  ;;  %v4300_v19 = vmul.f32 %v5695_v54, %v5693_v47  ;;  %v3201_v47 = vpop.permute.xlu1 %3200  ;;  %v3196_v54 = vpop.permute.xlu0 %3195 }
0x172b   :  { %5496 = vmatprep.subr.mxu0 %v4301_v58 }
0x172c   :  { %5497 = vmatpush3.msra.mxu0 %v4301_v58 }
0x172d   :  { %5498 = vmatprep.subr.mxu0 %v4300_v19 }
0x172e   :  { %5499 = vmatpush3.msra.mxu0 %v4300_v19 }
0x172f   :  { %5501 = vmatmul.mubr.msk.f32.vlgmr.msra.gmra.mxu0 %vm84_vm0, %v5101_v4  ;;  %5526 = vmatprep.subr.mxu0 %v5709_v55  ;;  %v3297_v4 = vadd.f32 %v7362_v7, %v3201_v47 }
0x1730   :  { %5503 = vmatprep.mubr.msk.f32.mxu0 %vm84_vm0, %v5102_v0  ;;  %5527 = vmatpush3.xpose.msk.msra.mxu0 %vm220_vm1, %v5702_v5 }
0x1731   :  { %v3303_v50 = vmul.f32 %v7631_v63, %v3297_v4 }
0x1733   :  { %5504 = vmatmul.mubr.msk.f32.gmra.mxu0 %vm84_vm0, %v5103_v2  ;;  %v3292_v2 = vadd.f32 %v7364_v15, %v3196_v54 }
0x1734   :  { %5506 = vmatprep.mubr.msk.f32.mxu0 %vm84_vm0, %v5104_v29 }
0x1737   :  { %5507 = vmatmul.mubr.msk.f32.gmra.mxu0 %vm84_vm0, %v5105_v48 }
0x1738   :  { %5509 = vmatprep.mubr.msk.f32.mxu0 %vm84_vm0, %v5106_v43 }
0x173b   :  { %5510 = vmatmul.mubr.msk.f32.gmra.mxu0 %vm84_vm0, %v5107_v3 }
0x173c   :  { %5528 = vmatprep.mubr.msk.f32.mxu0 %vm5714_vm4, %v5709_v55 }
0x17ef   :  { %v5502_v17 = vpop.f32.mrf.mxu0 }
0x17f0   :  { %v4454_v16 = vadd.f32 %v5502_v17, %v4330_v12 }
0x17f1   :  { %v4448_v18 = vpop.f32.mrf.mxu0 }
0x17f2   :  { %v4449_v10 = vadd.f32 %v4448_v18, %v4325_v31  ;;  %v4484_v23 = vadd.f32 %v4454_v16, %v3944_v6  ;;  %v4504_v18 = vpop.permute.xlu0 %4503 }
0x17f3   :  { %v5505_v41 = vpop.f32.mrf.mxu0 }
0x17f4   :  { %v4464_v51 = vadd.f32 %v5505_v41, %v4340_v9  ;;  %v4483_v24 = vadd.f32 %v4449_v10, %v3939_v53  ;;  %v4488_v13 = vmul.f32 %v7631_v63, %v4484_v23  ;;  %v4509_v9 = vpop.permute.xlu1 %4508  ;;  %v3170_v10 = vadd.f32 %v7065_v57, %v7093_v22 }
0x17f5   :  { %v4458_v32 = vpop.f32.mrf.mxu0 }
0x17f6   :  { %v4486_v49 = vadd.f32 %v4464_v51, %v3954_v26  ;;  %v4459_v14 = vadd.f32 %v4458_v32, %v4335_v59  ;;  %v4487_v45 = vmul.f32 %v7631_v63, %v4483_v24  ;;  %v3302_v59 = vmul.f32 %v7631_v63, %v3292_v2 }
0x17f8   :  { %v4485_v25 = vadd.f32 %v4459_v14, %v3949_v52  ;;  %v4490_v21 = vmul.f32 %v7631_v63, %v4486_v49  ;;  %v5508_v52 = vpop.f32.mrf.mxu0 }
0x17fa   :  { %5512 = vmatprep.subr.mxu1 %v4490_v21  ;;  %v4489_v56 = vmul.f32 %v7631_v63, %v4485_v25  ;;  %v4468_v31 = vpop.f32.mrf.mxu0 }
0x17fb   :  { %5513 = vmatpush3.msra.mxu1 %v4490_v21 }
0x17fc   :  { %5514 = vmatprep.subr.mxu1 %v4489_v56  ;;  %v5511_v32 = vpop.f32.mrf.mxu0 }
0x17fd   :  { %5515 = vmatpush3.msra.mxu1 %v4489_v56 }
0x17fe   :  { %5516 = vmatprep.subr.mxu1 %v4488_v13  ;;  %v4476_v6 = vpop.f32.mrf.mxu0 }
0x17ff   :  { %5517 = vmatpush3.msra.mxu1 %v4488_v13 }
0x1800   :  { %5518 = vmatprep.subr.mxu1 %v4487_v45 }
0x1801   :  { %5519 = vmatpush3.msra.mxu1 %v4487_v45 }
0x1802   :  { %5521 = vmatmul.mubr.msk.f32.vlgmr.msra.gmra.mxu1 %vm84_vm0, %v5125_v39 }
0x1803   :  { %5523 = vmatprep.mubr.msk.f32.mxu1 %vm84_vm0, %v5126_v28 }
0x1806   :  { %5524 = vmatmul.mubr.msk.f32.gmra.mxu1 %vm84_vm0, %v5127_v27 }
0x18c2   :  { %v5522_v33 = vpop.f32.mrf.mxu1 }
0x18c3   :  { %v4605_v11 = vadd.f32 %v5522_v33, %v4509_v9 }
0x18c4   :  { %v4599_v30 = vpop.f32.mrf.mxu1 }
0x18c5   :  { %v4600_v26 = vadd.f32 %v4599_v30, %v4504_v18 }
0x18c6   :  { %v5525_v1 = vpop.f32.mrf.mxu1 }
0x18c7   :  { %v4615_v35 = vadd.f32 %v5525_v1, %v4519_v34 }
0x18c8   :  { %v4609_v61 = vpop.f32.mrf.mxu1 }
0x18c9   :  { %v4620_v36 = vmul.f32 1.442695, %v4615_v35  ;;  %v4629_v62 = vmul.f32 %v7631_v63, %v4615_v35  ;;  %v4610_v37 = vadd.f32 %v4609_v61, %v4514_v60 }
0x18cb   :  { %5696 = vpow2.f32 %v4620_v36  ;;  %v4618_v38 = vmul.f32 1.442695, %v4610_v37  ;;  %v4628_v40 = vmul.f32 %v7631_v63, %v4610_v37  ;;  %v4631_v8 = vsel %vm220_vm1, %v4629_v62, 0.0 }
0x18cd   :  { %5698 = vpow2.f32 %v4618_v38  ;;  %v4630_v55 = vsel %vm220_vm1, %v4628_v40, 0.0 }
0x18ce   :  { %v4632_v46 = vadd.f32 %v4631_v8, %v4630_v55 }
0x18d0   :  { %v4633_v58 = vrot.slane %v4632_v46, 4 }
0x18d2   :  { %v4634_v19 = vadd.f32 %v4633_v58, %v4632_v46 }
0x18d4   :  { %v4635_v0 = vrot.slane %v4634_v19, 2 }
0x18d6   :  { %v4636_v5 = vadd.f32 %v4635_v0, %v4634_v19 }
0x18d8   :  { %v5697_v44 = vpop.eup %5696  ;;  %v4637_v42 = vrot.slane %v4636_v5, 1 }
0x18d9   :  { %v4623_v12 = vmul.f32 %v5697_v44, %v3303_v50 }
0x18da   :  { %v5699_v17 = vpop.eup %5698  ;;  %v4638_v41 = vadd.f32 %v4637_v42, %v4636_v5 }
0x18db   :  { %v4625_v20 = vadd.f32 %v4623_v12, %v4605_v11  ;;  %v4622_v16 = vmul.f32 %v5699_v17, %v3302_v59 }
0x18dc   :  { %5529 = vmatmul.mubr.msk.f32.vlgmr.msra.gmra.mxu0 %vm220_vm1, %v4638_v41 }
0x18dd   :  { %v4627_v7 = vmul.f32 %v7631_v63, %v4625_v20  ;;  %v4624_v15 = vadd.f32 %v4622_v16, %v4600_v26 }
0x18df   :  { %4716 = vst.msk [vmem:[%s7705_s14 + $0x18] sm:$0xff] %vm220_vm1, %v4627_v7  ;;  %v4626_v51 = vmul.f32 %v7631_v63, %v4624_v15 }
0x18e1   :  { %4715 = vst.msk [vmem:[%s7705_s14 + $0x10] sm:$0xff] %vm220_vm1, %v4626_v51 }
0x199c   :  { %v4708_v49 = vpop.f32.mrf.mxu0 }
0x199d   :  { %v4712_v14 = vadd.f32 %v4708_v49, %v3170_v10 }
0x199e   :  { %v5530_v53 = vpop.f32.mrf.mxu0 }
0x199f   :  { %4718 = vst.msk [vmem:[%s7706_s15] sm:$0x1] %vm4717_vm5, %v4712_v14 }

// kernel: glow_tts_forward.7
= control target key start
LH: loop header
LB: loop body
LE: loop exit
PB: predicated region body
PF: predicated region fallthrough
CT: control target
= control target key end

     0   :  { %12 = vsyncpa [#allocation3], 0  ;;  %vm34_vm0 = vcmask 64512   ;;  %vm197_vm1 = vcmask 130048   ;;  %s618_s0 = inlined_call_operand.vmem [shape: f32[2,8,16], index: 0, kind: input, shape index: {}]   ;;  %s619_s1 = inlined_call_operand.vmem [shape: f32[2,16,8], index: 1, kind: input, shape index: {}]   ;;  %s620_s2 = inlined_call_operand.vmem [shape: f32[2,16,8], index: 2, kind: input, shape index: {}]   ;;  %s621_s3 = inlined_call_operand.vmem [shape: f32[2,8,1], index: 3, kind: input, shape index: {}]   ;;  %s622_s4 = inlined_call_operand.hbm [shape: f32[2,16,16], index: 4, kind: output, shape index: {0}]   ;;  %s623_s5 = inlined_call_operand.hbm [shape: f32[2,16,16], index: 5, kind: output, shape index: {1}]   ;;  %s624_s6 = inlined_call_operand.vmem [shape: f32[2,8,1], index: 6, kind: output, shape index: {2}]  }
   0x1   :  { %v22_v0 = vld [vmem:[%s618_s0] sm:$0xff]  ;;  %v23_v1 = vld [vmem:[%s618_s0 + $0x8] sm:$0xff]  ;;  %v26_v3 = vld [vmem:[%s619_s1 + $0x10] sm:$0xff] }
   0x2   :  { %v24_v2 = vld [vmem:[%s619_s1] sm:$0xff]  ;;  %441 = vmatprep.subr.mxu0 %v22_v0  ;;  %446 = vmatprep.subr.mxu1 %v23_v1  ;;  %v25_v4 = vld [vmem:[%s619_s1 + $0x8] sm:$0xff]  ;;  %v27_v5 = vld [vmem:[%s619_s1 + $0x18] sm:$0xff] }
   0x3   :  { %442 = vmatpush3.msra.mxu0 %v22_v0  ;;  %443 = vmatprep.mubr.msk.f32.mxu0 %vm34_vm0, %v24_v2 }
   0x4   :  { %447 = vmatpush3.msra.mxu1 %v23_v1  ;;  %448 = vmatprep.mubr.msk.f32.mxu1 %vm34_vm0, %v26_v3 }
   0x5   :  { %13 = vsyncpa [#allocation5], 0  ;;  %444 = vmatmul.mubr.msk.f32.vlgmr.msra.gmra.mxu0 %vm34_vm0, %v25_v4  ;;  %449 = vmatmul.mubr.msk.f32.vlgmr.msra.gmra.mxu1 %vm34_vm0, %v27_v5  ;;  %v28_v6 = vld [vmem:[%s620_s2] sm:$0xff]  ;;  %v30_v7 = vld [vmem:[%s620_s2 + $0x10] sm:$0xff]  ;;  %v368_v10 = vsel %vm197_vm1, %v22_v0, 0.0  ;;  %v371_v11 = vsel %vm197_vm1, %v23_v1, 0.0 }
   0x6   :  { %451 = vmatprep.subr.mxu0 %v22_v0  ;;  %456 = vmatprep.subr.mxu1 %v23_v1  ;;  %v29_v8 = vld [vmem:[%s620_s2 + $0x8] sm:$0xff]  ;;  %v31_v9 = vld [vmem:[%s620_s2 + $0x18] sm:$0xff]  ;;  %v32_v17 = vld [vmem:[%s621_s3] sm:$0xff]  ;;  %vm382_vm2 = vcmask 7168   ;;  %s513_s22 = smov [#allocation2]  }
   0x7   :  { %452 = vmatpush3.msra.mxu0 %v22_v0  ;;  %457 = vmatpush3.msra.mxu1 %v23_v1  ;;  %v33_v21 = vld [vmem:[%s621_s3 + $0x8] sm:$0xff]  ;;  %s390_s23 = sshll.u32 %s513_s22, 4  ;;  %s514_s3 = smov [#allocation4]   ;;  %s391_s23 = int_to_ptr.vmem [resolvable:$true] %s390_s23 }
   0x8   :  { %453 = vmatprep.mubr.msk.f32.mxu0 %vm34_vm0, %v28_v6  ;;  %458 = vmatprep.mubr.msk.f32.mxu1 %vm34_vm0, %v30_v7  ;;  %s402_s24 = sshll.u32 %s514_s3, 4  ;;  %p474_p1 = scmp.lt.s32.totalorder %s391_s23, %s391_s23  ;;  %s403_s24 = int_to_ptr.vmem [resolvable:$true] %s402_s24 }
   0x9   :  { %454 = vmatmul.mubr.msk.f32.vlgmr.msra.gmra.mxu0 %vm34_vm0, %v29_v8  ;;  %459 = vmatmul.mubr.msk.f32.vlgmr.msra.gmra.mxu1 %vm34_vm0, %v31_v9 }
   0xa   :  { %369 = vadd.xlane.f32.xlu0 %v368_v10 }
   0xe   :  { %372 = vadd.xlane.f32.xlu0 %v371_v11 }
  0x93   :  { %v370_v12 = vpop.xlane.xlu0 %369 }
  0x94   :  { %v374_v13 = vadd.f32 1.0, %v370_v12 }
  0x96   :  { %465 = vlog2.f32 %v374_v13 }
  0x97   :  { %v373_v14 = vpop.xlane.xlu0 %372 }
  0x98   :  { %v375_v15 = vadd.f32 1.0, %v373_v14 }
  0x9a   :  { %467 = vlog2.f32 %v375_v15 }
  0xa3   :  { %v466_v16 = vpop.eup %465 }
  0xa4   :  { %v377_v18 = vmul.f32 0.6931472, %v466_v16 }
  0xa6   :  { %v380_v19 = vmul.f32 %v377_v18, %v32_v17 }
  0xa7   :  { %v468_v20 = vpop.eup %467 }
  0xa8   :  { %383 = vst.msk [vmem:[%s624_s6] sm:$0xff] %vm382_vm2, %v380_v19  ;;  %v379_v22 = vmul.f32 0.6931472, %v468_v20 }
  0xaa   :  { %v381_v23 = vmul.f32 %v379_v22, %v33_v21 }
  0xac   :  { %384 = vst.msk [vmem:[%s624_s6 + $0x8] sm:$0xff] %vm382_vm2, %v381_v23  ;;  %s469_s6 = scalar_lea.vmem %s391_s23, 512 }
  0xad   :  { %p470_p0 = scmp.ne.s32.totalorder %s391_s23, %s469_s6  ;;  %p475_p2 = scmp.lt.s32.totalorder %s469_s6, %s469_s6 }
  0xaf   :  { %p476_p3 = por %p475_p2, %p474_p1 }
  0xb1   :  { %p477_p4 = pnand %p476_p3, %p470_p0 }
  0xc5   :  { %v445_v24 = vpop.f32.mrf.mxu0  ;;  %v450_v25 = vpop.f32.mrf.mxu1 }
  0xc6   :  { %199 = vst.msk [vmem:[#allocation2 + $0x8] sm:$0xff] %vm197_vm1, %v445_v24  ;;  %201 = vst.msk [vmem:[#allocation2 + $0x18] sm:$0xff] %vm197_vm1, %v450_v25 }
  0xc7   :  { %v107_v26 = vpop.f32.mrf.mxu0  ;;  %v188_v27 = vpop.f32.mrf.mxu1 }
  0xc8   :  { %198 = vst.msk [vmem:[#allocation2] sm:$0xff] %vm197_vm1, %v107_v26  ;;  %200 = vst.msk [vmem:[#allocation2 + $0x10] sm:$0xff] %vm197_vm1, %v188_v27 }
  0xc9   :  { %v455_v28 = vpop.f32.mrf.mxu0  ;;  %v460_v29 = vpop.f32.mrf.mxu1 }
  0xca   :  { %480 = shalt.err (!%p477_p4)
}
  0xcb   :  { %s515_s25 = smov 128   ;;  %s516_s26 = smov 8   ;;  %365 = vst.msk [vmem:[#allocation4 + $0x8] sm:$0xff] %vm197_vm1, %v455_v28  ;;  %367 = vst.msk [vmem:[#allocation4 + $0x18] sm:$0xff] %vm197_vm1, %v460_v29  ;;  %v274_v30 = vpop.f32.mrf.mxu0  ;;  %v355_v31 = vpop.f32.mrf.mxu1 }
  0xcc   :  { %396 = dma.vmem_to_hbm [thread:$0]  %s391_s23, 512, %s622_s4, [#allocation3], %s515_s25, %s515_s25, %s516_s26   ;;  %364 = vst.msk [vmem:[#allocation4] sm:$0xff] %vm197_vm1, %v274_v30  ;;  %366 = vst.msk [vmem:[#allocation4 + $0x10] sm:$0xff] %vm197_vm1, %v355_v31 }
  0xcd   :  { %s489_s29 = scalar_lea.vmem %s403_s24, 512  ;;  %p494_p6 = scmp.lt.s32.totalorder %s403_s24, %s403_s24 }
  0xce   :  { %p490_p5 = scmp.ne.s32.totalorder %s403_s24, %s489_s29  ;;  %p495_p7 = scmp.lt.s32.totalorder %s489_s29, %s489_s29 }
  0xd0   :  { %p496_p8 = por %p495_p7, %p494_p6 }
  0xd2   :  { %p497_p9 = pnand %p496_p8, %p490_p5 }
  0xd4   :  { %500 = shalt.err (!%p497_p9)
}
  0xd5   :  { %408 = dma.vmem_to_hbm [thread:$0]  %s403_s24, 512, %s623_s5, [#allocation5], %s515_s25, %s515_s25, %s516_s26  }
  0xd6   :  { %509 = dma.done.wait [#allocation3], 512  }
  0xd7   :  { %510 = vsyncadd [#allocation3], 4294966784 }
  0xd8   :  { %511 = dma.done.wait [#allocation5], 512  }
  0xd9   :  { %512 = vsyncadd [#allocation5], 4294966784 }
  0xda   :  { %419 = vsyncpa [#allocation3], 1 }
  0xdb   :  { %420 = vsyncpa [#allocation5], 1 }

// kernel: glow_tts_forward.4
= control target key start
LH: loop header
LB: loop body
LE: loop exit
PB: predicated region body
PF: predicated region fallthrough
CT: control target
= control target key end

     0   :  { %v134_v0 = vlaneseq  ;;  %v5267_v1 = vmov 0   ;;  %s5268_s6 = smov 1   ;;  %s5269_s10 = smov 4   ;;  %vm227_vm0 = vcmask 261120   ;;  %vm421_vm1 = vcmask 130048   ;;  %s6722_s0 = inlined_call_operand.smem [shape: u32[31], index: -1, kind: input, shape index: {}] }
   0x1   :  { %s1_s5 = sld [smem:[%s6722_s0]]   ;;  %5217 = vset.pattern.permute.xlu0 %v5267_v1  ;;  %5218 = vset.pattern.permute.xlu1 %v5267_v1  ;;  %s5270_s14 = smov 5   ;;  %vm1106_vm2 = vcmask 7168   ;;  %vm1111_vm3 = vcmask 138240   ;;  %vm1220_vm4 = vcmask 785408   ;;  %vm1534_vm5 = vcmask 523264  }
   0x2   :  { %s5314_s9 = sld [smem:[%s6722_s0 + %s5268_s6]]   ;;  %v5316_v2 = vshrl.u32 %v134_v0, 7  ;;  %s5271_s18 = smov 2   ;;  %vm5299_vm6 = vmmov 0   ;;  %vm4527_vm7 = vcmask 122880  }
   0x3   :  { %s5321_s13 = sld [smem:[%s6722_s0 + %s5269_s10]]   ;;  %s5272_s22 = smov 7  }
   0x4   :  { %s5326_s17 = sld [smem:[%s6722_s0 + %s5270_s14]]   ;;  %v136_v3 = vsub.s32 0, %v5316_v2  ;;  %s5273_s26 = smov 8  }
   0x5   :  { %s5386_s21 = sld [smem:[%s6722_s0 + %s5271_s18]]   ;;  %s5274_s30 = smov 9  }
   0x6   :  { %s5418_s25 = sld [smem:[%s6722_s0 + %s5272_s22]]   ;;  %s5275_s4 = smov 6  }
   0x7   :  { %v128_v4 = vld [vmem:[%s1_s5 + $0x18] sm:$0xff]  ;;  %v127_v6 = vld [vmem:[%s1_s5 + $0x10] sm:$0xff]  ;;  %v126_v8 = vld [vmem:[%s1_s5 + $0x8] sm:$0xff]  ;;  %s5424_s29 = sld [smem:[%s6722_s0 + %s5273_s26]]   ;;  %s5276_s10 = smov 3  }
   0x8   :  { %v5330_v5 = vld [vmem:[%s5314_s9] ss:$0 sm:$0xff]  ;;  %s5430_s3 = sld [smem:[%s6722_s0 + %s5274_s30]]   ;;  %s5277_s15 = smov 126  }
   0x9   :  { %v143_v7 = vld [vmem:[%s5321_s13] sm:$0xff]  ;;  %v5336_v10 = vmul.f32 %v5330_v5, %v128_v4  ;;  %v5339_v11 = vmul.f32 %v5330_v5, %v127_v6  ;;  %v5345_v15 = vmul.f32 %v5330_v5, %v126_v8  ;;  %v144_v17 = vld [vmem:[%s5321_s13 + $0x8] sm:$0xff]  ;;  %v145_v18 = vld [vmem:[%s5321_s13 + $0x10] sm:$0xff]  ;;  %s5471_s8 = sld [smem:[%s6722_s0 + %s5275_s4]]   ;;  %s5278_s16 = smov 10  }
   0xa   :  { %4913 = vmatprep.mubr.msk.f32.mxu0 %vm227_vm0, %v143_v7  ;;  %v155_v9 = vld [vmem:[%s5326_s17] sm:$0xff]  ;;  %v160_v12 = vld [vmem:[%s5326_s17 + $0x28] sm:$0xff]  ;;  %v146_v19 = vld [vmem:[%s5321_s13 + $0x18] sm:$0xff]  ;;  %s4543_s14 = sld [smem:[%s6722_s0 + %s5276_s10]]   ;;  %s5279_s22 = smov 11  }
   0xb   :  { %169 = vperm.xlu0 %5217, %v155_v9   ;;  %v125_v13 = vld [vmem:[%s1_s5] sm:$0xff]  ;;  %v156_v14 = vld [vmem:[%s5326_s17 + $0x8] sm:$0xff]  ;;  %194 = vperm.xlu1 %5218, %v160_v12   ;;  %v149_v31 = vld [vmem:[%s5321_s13 + $0x30] sm:$0xff]  ;;  %s5559_s20 = sld [smem:[%s6722_s0 + %s5278_s16]]   ;;  %s5280_s27 = smov 127  }
   0xc   :  { %4905 = vmatprep.subr.mxu0 %v5336_v10  ;;  %v5350_v16 = vmul.f32 %v5330_v5, %v125_v13  ;;  %v147_v20 = vld [vmem:[%s5321_s13 + $0x20] sm:$0xff]  ;;  %v148_v21 = vld [vmem:[%s5321_s13 + $0x28] sm:$0xff]  ;;  %v150_v32 = vld [vmem:[%s5321_s13 + $0x38] sm:$0xff]  ;;  %s5567_s26 = sld [smem:[%s6722_s0 + %s5279_s22]]   ;;  %s5282_s28 = smov 13  }
   0xd   :  { %4906 = vmatpush3.msra.mxu0 %v5336_v10  ;;  %v159_v22 = vld [vmem:[%s5326_s17 + $0x20] sm:$0xff]  ;;  %v152_v38 = vld [vmem:[%s5321_s13 + $0x48] sm:$0xff]  ;;  %v157_v53 = vld [vmem:[%s5326_s17 + $0x10] sm:$0xff]  ;;  %s5706_s2 = sld [smem:[%s6722_s0 + %s5282_s28]]   ;;  %s5283_s4 = smov 12  }
   0xe   :  { %4907 = vmatprep.subr.mxu0 %v5339_v11  ;;  %v151_v33 = vld [vmem:[%s5321_s13 + $0x40] sm:$0xff]  ;;  %v5389_v44 = vld [vmem:[%s5386_s21 + $0x8] sm:$0xff]  ;;  %v158_v54 = vld [vmem:[%s5326_s17 + $0x18] sm:$0xff]  ;;  %s5720_s10 = sld [smem:[%s6722_s0 + %s5283_s4]]   ;;  %s5284_s11 = smov 14  }
   0xf   :  { %174 = vperm.xlu0 %5217, %v156_v14   ;;  %4908 = vmatpush3.msra.mxu0 %v5339_v11  ;;  %v5392_v47 = vld [vmem:[%s5386_s21] sm:$0xff]  ;;  %v164_v56 = vld [vmem:[%s5326_s17 + $0x48] sm:$0xff]  ;;  %v153_v57 = vld [vmem:[%s5321_s13 + $0x50] sm:$0xff]  ;;  %s5729_s16 = sld [smem:[%s6722_s0 + %s5284_s11]]   ;;  %s5288_s24 = smov 19  }
  0x10   :  { %4909 = vmatprep.subr.mxu0 %v5345_v15  ;;  %189 = vperm.xlu1 %5218, %v159_v22   ;;  %v163_v55 = vld [vmem:[%s5326_s17 + $0x40] sm:$0xff]  ;;  %v154_v58 = vld [vmem:[%s5321_s13 + $0x58] sm:$0xff]  ;;  %s4559_s30 = sld [smem:[%s6722_s0 + %s5288_s24]]   ;;  %s5289_s1 = smov 20  }
  0x11   :  { %4910 = vmatpush3.msra.mxu0 %v5345_v15  ;;  %s6308_s5 = sld [smem:[%s6722_s0 + %s5289_s1]]   ;;  %s5290_s7 = smov 21  }
  0x12   :  { %4911 = vmatprep.subr.mxu0 %v5350_v16  ;;  %s6313_s12 = sld [smem:[%s6722_s0 + %s5290_s7]]  }
  0x13   :  { %4912 = vmatpush3.msra.mxu0 %v5350_v16 }
  0x14   :  { %4914 = vmatmul.mubr.msk.f32.vlgmr.msra.gmra.mxu0 %vm227_vm0, %v144_v17 }
  0x15   :  { %4916 = vmatprep.mubr.msk.f32.mxu0 %vm227_vm0, %v145_v18  ;;  %v162_v18 = vld [vmem:[%s5326_s17 + $0x38] sm:$0xff] }
  0x18   :  { %4917 = vmatmul.mubr.msk.f32.gmra.mxu0 %vm227_vm0, %v146_v19  ;;  %v161_v19 = vld [vmem:[%s5326_s17 + $0x30] sm:$0xff] }
  0x19   :  { %4919 = vmatprep.mubr.msk.f32.mxu0 %vm227_vm0, %v147_v20 }
  0x1c   :  { %4920 = vmatmul.mubr.msk.f32.gmra.mxu0 %vm227_vm0, %v148_v21 }
  0x1d   :  { %4922 = vmatprep.mubr.msk.f32.mxu0 %vm227_vm0, %v149_v31 }
  0x20   :  { %4923 = vmatmul.mubr.msk.f32.gmra.mxu0 %vm227_vm0, %v150_v32 }
  0x21   :  { %4925 = vmatprep.mubr.msk.f32.mxu0 %vm227_vm0, %v151_v33 }
  0x24   :  { %4926 = vmatmul.mubr.msk.f32.gmra.mxu0 %vm227_vm0, %v152_v38 }
  0x25   :  { %4928 = vmatprep.mubr.msk.f32.mxu0 %vm227_vm0, %v153_v57 }
  0x28   :  { %4929 = vmatmul.mubr.msk.f32.gmra.mxu0 %vm227_vm0, %v154_v58 }
  0x86   :  { %v170_v23 = vpop.permute.xlu0 %169  ;;  %v195_v26 = vpop.permute.xlu1 %194 }
  0x8a   :  { %v175_v28 = vpop.permute.xlu0 %174 }
  0x8b   :  { %v190_v36 = vpop.permute.xlu1 %189 }
  0xd4   :  { %v4915_v24 = vpop.f32.mrf.mxu0 }
  0xd5   :  { %v336_v34 = vadd.f32 %v4915_v24, %v175_v28  ;;  %v165_v24 = vld [vmem:[%s5326_s17 + $0x50] sm:$0xff] }
  0xd6   :  { %v330_v25 = vpop.f32.mrf.mxu0  ;;  %v977_v28 = vld [vmem:[%s5430_s3 + $0x10] sm:$0xff] }
  0xd7   :  { %v331_v27 = vadd.f32 %v330_v25, %v170_v23  ;;  %v848_v25 = vld [vmem:[%s5418_s25 + $0x10] sm:$0xff] }
  0xd8   :  { %v5368_v29 = vpop.f32.mrf.mxu0 }
  0xd9   :  { %389 = vxpose.xlu0.b32.start [1/2] (short) (narrow) %v331_v27, 16  ;;  %v978_v27 = vld [vmem:[%s5430_s3 + $0x18] sm:$0xff] }
  0xda   :  { %v5370_v30 = vpop.f32.mrf.mxu0 }
  0xdc   :  { %v4921_v35 = vpop.f32.mrf.mxu0 }
  0xdd   :  { %390 = vxpose.xlu0.b32.end [2/2] (short) (narrow) %v336_v34, 16  ;;  %v356_v37 = vadd.f32 %v4921_v35, %v195_v26  ;;  %v974_v26 = vld [vmem:[%s5424_s29 + $0x18] sm:$0xff] }
  0xde   :  { %v350_v39 = vpop.f32.mrf.mxu0 }
  0xdf   :  { %v351_v40 = vadd.f32 %v350_v39, %v190_v36  ;;  %4931 = vmatprep.subr.mxu1 %v356_v37 }
  0xe0   :  { %4932 = vmatpush3.msra.mxu1 %v356_v37  ;;  %v4924_v59 = vpop.f32.mrf.mxu0 }
  0xe1   :  { %4933 = vmatprep.subr.mxu1 %v351_v40 }
  0xe2   :  { %4934 = vmatpush3.msra.mxu1 %v351_v40  ;;  %v5406_v61 = vpop.f32.mrf.mxu0 }
  0xe4   :  { %v4927_v4 = vpop.f32.mrf.mxu0 }
  0xe6   :  { %v370_v7 = vpop.f32.mrf.mxu0 }
 0x155   :  { %v405_v41 = vpop.trf.xlu0 }
 0x156   :  { %4935 = vmatprep.mubr.msk.f32.mxu1 %vm421_vm1, %v405_v41 }
 0x159   :  { %v406_v42 = vpop.trf.xlu0 }
 0x15a   :  { %4936 = vmatmul.mubr.msk.f32.vlgmr.msra.gmra.mxu1 %vm421_vm1, %v406_v42 }
 0x21a   :  { %v4937_v43 = vpop.f32.mrf.mxu1 }
 0x21b   :  { %v504_v45 = vmul.f32 0.25, %v4937_v43 }
 0x21c   :  { %v494_v46 = vpop.f32.mrf.mxu1 }
 0x21d   :  { %v503_v48 = vmul.f32 0.25, %v494_v46  ;;  %v506_v49 = vadd.f32 %v504_v45, %v5389_v44  ;;  %v4930_v45 = vpop.f32.mrf.mxu0 }
 0x21f   :  { %v510_v50 = vsel %vm421_vm1, %v506_v49, -inf  ;;  %v505_v51 = vadd.f32 %v503_v48, %v5392_v47  ;;  %v380_v46 = vpop.f32.mrf.mxu0 }
 0x220   :  { %511 = vmax.xlane.f32.xlu1 %v510_v50 }
 0x221   :  { %v507_v52 = vsel %vm421_vm1, %v505_v51, -inf }
 0x222   :  { %508 = vmax.xlane.f32.xlu0 %v507_v52 }
 0x231   :  { %179 = vperm.xlu1 %5218, %v157_v53  }
 0x235   :  { %184 = vperm.xlu1 %5218, %v158_v54  }
 0x238   :  { %209 = vperm.xlu0 %5217, %v163_v55  }
 0x23c   :  { %214 = vperm.xlu0 %5217, %v164_v56  }
 0x2a9   :  { %v512_v60 = vpop.xlane.xlu1 %511 }
 0x2aa   :  { %v514_v62 = vsub.f32 %v506_v49, %v512_v60 }
 0x2ab   :  { %v509_v63 = vpop.xlane.xlu0 %508 }
 0x2ac   :  { %v517_v0 = vmul.f32 1.442695, %v514_v62  ;;  %v513_v1 = vsub.f32 %v505_v51, %v509_v63 }
 0x2ad   :  { %v180_v20 = vpop.permute.xlu1 %179 }
 0x2ae   :  { %5219 = vpow2.f32 %v517_v0  ;;  %v515_v6 = vmul.f32 1.442695, %v513_v1  ;;  %v341_v21 = vadd.f32 %v5370_v30, %v180_v20 }
 0x2b0   :  { %5221 = vpow2.f32 %v515_v6 }
 0x2b1   :  { %v185_v22 = vpop.permute.xlu1 %184 }
 0x2b2   :  { %v346_v23 = vadd.f32 %v5368_v29, %v185_v22  ;;  %v976_v29 = vld [vmem:[%s5430_s3 + $0x8] sm:$0xff] }
 0x2b3   :  { %v210_v8 = vpop.permute.xlu0 %209 }
 0x2b4   :  { %v371_v9 = vadd.f32 %v370_v7, %v210_v8  ;;  %v166_v7 = vld [vmem:[%s5326_s17 + $0x58] sm:$0xff]  ;;  %v846_v8 = vld [vmem:[%s5418_s25] sm:$0xff] }
 0x2b6   :  { %4942 = vmatprep.mubr.msk.f32.mxu1 %vm421_vm1, %v371_v9  ;;  %v847_v9 = vld [vmem:[%s5418_s25 + $0x8] sm:$0xff] }
 0x2b7   :  { %v215_v30 = vpop.permute.xlu0 %214 }
 0x2b8   :  { %v376_v40 = vadd.f32 %v4927_v4, %v215_v30  ;;  %v843_v30 = vld [vmem:[%s5471_s8 + $0x8] sm:$0xff] }
 0x2bb   :  { %v5220_v12 = vpop.eup %5219 }
 0x2bc   :  { %v522_v13 = vsel %vm421_vm1, %v5220_v12, 0.0 }
 0x2bd   :  { %v5222_v14 = vpop.eup %5221  ;;  %523 = vadd.xlane.f32.xlu1 %v522_v13  ;;  %v973_v13 = vld [vmem:[%s5424_s29 + $0x10] sm:$0xff] }
 0x2be   :  { %v519_v17 = vsel %vm421_vm1, %v5222_v14, 0.0 }
 0x2bf   :  { %520 = vadd.xlane.f32.xlu0 %v519_v17  ;;  %v971_v17 = vld [vmem:[%s5424_s29] sm:$0xff] }
 0x2ce   :  { %204 = vperm.xlu1 %5218, %v162_v18   ;;  %v975_v18 = vld [vmem:[%s5430_s3] sm:$0xff] }
 0x2d5   :  { %199 = vperm.xlu0 %5217, %v161_v19  }
 0x2f7   :  { %616 = vxpose.xlu1.b32.start [1/2] (short) (narrow) %v341_v21, 16 }
 0x2fb   :  { %617 = vxpose.xlu1.b32.end [2/2] (short) (narrow) %v346_v23, 16 }
 0x319   :  { %219 = vperm.xlu1 %5218, %v165_v24  }
 0x31d   :  { %862 = vperm.xlu1 %5218, %v848_v25  }
 0x321   :  { %1039 = vperm.xlu1 %5218, %v974_v26  }
 0x325   :  { %1063 = vperm.xlu1 %5218, %v978_v27   ;;  %v842_v27 = vld [vmem:[%s5471_s8] sm:$0xff] }
 0x329   :  { %1058 = vperm.xlu1 %5218, %v977_v28  }
 0x32d   :  { %1053 = vperm.xlu1 %5218, %v976_v29  }
 0x346   :  { %v524_v31 = vpop.xlane.xlu1 %523 }
 0x347   :  { %5223 = vrcp.f32 %v524_v31  ;;  %v844_v31 = vld [vmem:[%s5471_s8 + $0x10] sm:$0xff] }
 0x348   :  { %v521_v32 = vpop.xlane.xlu0 %520 }
 0x349   :  { %5225 = vrcp.f32 %v521_v32  ;;  %v845_v32 = vld [vmem:[%s5471_s8 + $0x18] sm:$0xff] }
 0x34a   :  { %v205_v37 = vpop.permute.xlu1 %204 }
 0x34b   :  { %v366_v38 = vadd.f32 %v4924_v59, %v205_v37 }
 0x350   :  { %v200_v39 = vpop.permute.xlu0 %199 }
 0x351   :  { %v361_v41 = vadd.f32 %v5406_v61, %v200_v39 }
 0x354   :  { %v5224_v33 = vpop.eup %5223 }
 0x355   :  { %v528_v34 = vmul.f32 %v5224_v33, %v5220_v12  ;;  %v849_v12 = vld [vmem:[%s5418_s25 + $0x18] sm:$0xff] }
 0x356   :  { %v5226_v35 = vpop.eup %5225 }
 0x357   :  { %4938 = vmatprep.subr.msk.mxu1 %vm421_vm1, %v528_v34  ;;  %v527_v36 = vmul.f32 %v5226_v35, %v5222_v14  ;;  %v972_v14 = vld [vmem:[%s5424_s29 + $0x8] sm:$0xff] }
 0x358   :  { %4939 = vmatpush3.xpose.msk.msra.mxu1 %vm421_vm1, %v528_v34 }
 0x359   :  { %4940 = vmatprep.subr.msk.mxu1 %vm421_vm1, %v527_v36 }
 0x35c   :  { %4941 = vmatpush3.xpose.msk.msra.mxu1 %vm421_vm1, %v527_v36 }
 0x35d   :  { %4945 = vmatprep.subr.mxu1 %v366_v38 }
 0x35f   :  { %4943 = vmatmul.mubr.msk.f32.vlgmr.msra.gmra.mxu1 %vm421_vm1, %v376_v40 }
 0x360   :  { %4946 = vmatpush3.msra.mxu1 %v366_v38 }
 0x361   :  { %4947 = vmatprep.subr.mxu1 %v361_v41 }
 0x362   :  { %4948 = vmatpush3.msra.mxu1 %v361_v41 }
 0x373   :  { %v632_v42 = vpop.trf.xlu1 }
 0x374   :  { %4949 = vmatprep.mubr.msk.f32.mxu1 %vm421_vm1, %v632_v42 }
 0x377   :  { %v633_v43 = vpop.trf.xlu1 }
 0x378   :  { %4950 = vmatmul.mubr.msk.f32.vlgmr.msra.gmra.mxu1 %vm421_vm1, %v633_v43 }
 0x394   :  { %v220_v48 = vpop.permute.xlu1 %219 }
 0x395   :  { %v381_v49 = vadd.f32 %v380_v46, %v220_v48 }
 0x397   :  { %4956 = vmatprep.mubr.msk.f32.mxu1 %vm421_vm1, %v381_v49 }
 0x41f   :  { %v5445_v50 = vpop.f32.mrf.mxu1 }
 0x421   :  { %v5447_v51 = vpop.f32.mrf.mxu1 }
 0x438   :  { %v4951_v52 = vpop.f32.mrf.mxu1 }
 0x439   :  { %v730_v53 = vmul.f32 0.25, %v4951_v52 }
 0x43a   :  { %v720_v54 = vpop.f32.mrf.mxu1 }
 0x43b   :  { %v729_v55 = vmul.f32 0.25, %v720_v54  ;;  %v732_v56 = vadd.f32 %v730_v53, %v5389_v44 }
 0x43d   :  { %v736_v57 = vsel %vm421_vm1, %v732_v56, -inf  ;;  %v731_v58 = vadd.f32 %v729_v55, %v5392_v47 }
 0x43e   :  { %737 = vmax.xlane.f32.xlu0 %v736_v57 }
 0x43f   :  { %v733_v59 = vsel %vm421_vm1, %v731_v58, -inf }
 0x442   :  { %734 = vmax.xlane.f32.xlu0 %v733_v59 }
 0x4c7   :  { %v738_v60 = vpop.xlane.xlu0 %737 }
 0x4c8   :  { %v740_v61 = vsub.f32 %v732_v56, %v738_v60 }
 0x4ca   :  { %v743_v62 = vmul.f32 1.442695, %v740_v61 }
 0x4cb   :  { %v735_v63 = vpop.xlane.xlu0 %734 }
 0x4cc   :  { %5227 = vpow2.f32 %v743_v62  ;;  %v739_v0 = vsub.f32 %v731_v58, %v735_v63 }
 0x4ce   :  { %v741_v1 = vmul.f32 1.442695, %v739_v0 }
 0x4d0   :  { %5229 = vpow2.f32 %v741_v1 }
 0x4d9   :  { %v5228_v44 = vpop.eup %5227 }
 0x4da   :  { %v748_v47 = vsel %vm421_vm1, %v5228_v44, 0.0 }
 0x4db   :  { %749 = vadd.xlane.f32.xlu0 %v748_v47 }
 0x4dd   :  { %v5230_v4 = vpop.eup %5229 }
 0x4de   :  { %v745_v6 = vsel %vm421_vm1, %v5230_v4, 0.0 }
 0x4df   :  { %746 = vadd.xlane.f32.xlu0 %v745_v6 }
 0x4f5   :  { %224 = vperm.xlu0 %5217, %v166_v7  }
 0x4f9   :  { %852 = vperm.xlu0 %5217, %v846_v8  }
 0x4fd   :  { %857 = vperm.xlu0 %5217, %v847_v9  }
 0x501   :  { %867 = vperm.xlu0 %5217, %v849_v12  }
 0x505   :  { %1034 = vperm.xlu0 %5217, %v973_v13  }
 0x509   :  { %1029 = vperm.xlu0 %5217, %v972_v14  }
 0x50d   :  { %1024 = vperm.xlu0 %5217, %v971_v17  }
 0x511   :  { %1048 = vperm.xlu0 %5217, %v975_v18  }
 0x564   :  { %v750_v19 = vpop.xlane.xlu0 %749 }
 0x565   :  { %5231 = vrcp.f32 %v750_v19 }
 0x568   :  { %v747_v20 = vpop.xlane.xlu0 %746 }
 0x569   :  { %5233 = vrcp.f32 %v747_v20 }
 0x570   :  { %v225_v25 = vpop.permute.xlu0 %224 }
 0x571   :  { %v386_v26 = vadd.f32 %v4930_v45, %v225_v25  ;;  %v863_v45 = vpop.permute.xlu1 %862 }
 0x572   :  { %v5232_v21 = vpop.eup %5231 }
 0x573   :  { %v754_v22 = vmul.f32 %v5232_v21, %v5228_v44 }
 0x574   :  { %v853_v33 = vpop.permute.xlu0 %852 }
 0x575   :  { %4952 = vmatprep.subr.msk.mxu1 %vm421_vm1, %v754_v22  ;;  %v1040_v25 = vpop.permute.xlu1 %1039 }
 0x576   :  { %v5234_v23 = vpop.eup %5233  ;;  %4953 = vmatpush3.xpose.msk.msra.mxu1 %vm421_vm1, %v754_v22 }
 0x577   :  { %v753_v24 = vmul.f32 %v5234_v23, %v5230_v4 }
 0x578   :  { %v858_v34 = vpop.permute.xlu0 %857 }
 0x579   :  { %4954 = vmatprep.subr.msk.mxu1 %vm421_vm1, %v753_v24 }
 0x57a   :  { %4955 = vmatpush3.xpose.msk.msra.mxu1 %vm421_vm1, %v753_v24 }
 0x57c   :  { %v868_v39 = vpop.permute.xlu0 %867 }
 0x57d   :  { %4957 = vmatmul.mubr.msk.f32.vlgmr.msra.gmra.mxu1 %vm421_vm1, %v386_v26 }
 0x57e   :  { %4967 = vmatprep.mubr.msk.f32.mxu1 %vm227_vm0, %v842_v27  ;;  %v1064_v27 = vpop.permute.xlu1 %1063 }
 0x580   :  { %v1035_v26 = vpop.permute.xlu0 %1034 }
 0x63d   :  { %v4958_v28 = vpop.f32.mrf.mxu1 }
 0x63e   :  { %4959 = vmatprep.subr.mxu1 %v4958_v28 }
 0x63f   :  { %v833_v29 = vpop.f32.mrf.mxu1  ;;  %4960 = vmatpush3.msra.mxu1 %v4958_v28  ;;  %v1030_v28 = vpop.permute.xlu0 %1029 }
 0x640   :  { %4961 = vmatprep.subr.mxu1 %v833_v29 }
 0x641   :  { %4962 = vmatpush3.msra.mxu1 %v833_v29 }
 0x642   :  { %4963 = vmatprep.subr.mxu1 %v5445_v50 }
 0x643   :  { %4964 = vmatpush3.msra.mxu1 %v5445_v50 }
 0x644   :  { %4965 = vmatprep.subr.mxu1 %v5447_v51 }
 0x645   :  { %4966 = vmatpush3.msra.mxu1 %v5447_v51 }
 0x646   :  { %4968 = vmatmul.mubr.msk.f32.vlgmr.msra.gmra.mxu1 %vm227_vm0, %v843_v30  ;;  %v1059_v30 = vpop.permute.xlu1 %1058 }
 0x647   :  { %4970 = vmatprep.mubr.msk.f32.mxu1 %vm227_vm0, %v844_v31 }
 0x64a   :  { %4971 = vmatmul.mubr.msk.f32.gmra.mxu1 %vm227_vm0, %v845_v32 }
 0x706   :  { %v4969_v35 = vpop.f32.mrf.mxu1 }
 0x707   :  { %v954_v36 = vadd.f32 %v4969_v35, %v858_v34 }
 0x708   :  { %v948_v37 = vpop.f32.mrf.mxu1 }
 0x709   :  { %v949_v38 = vadd.f32 %v948_v37, %v853_v33  ;;  %v968_v41 = vadd.f32 %v954_v36, %v5345_v15 }
 0x70a   :  { %v4972_v40 = vpop.f32.mrf.mxu1 }
 0x70b   :  { %v967_v42 = vadd.f32 %v949_v38, %v5350_v16  ;;  %v964_v43 = vadd.f32 %v4972_v40, %v868_v39  ;;  %v980_v50 = vsel %vm421_vm1, %v968_v41, 0.0  ;;  %v1025_v38 = vpop.permute.xlu0 %1024 }
 0x70c   :  { %v958_v46 = vpop.f32.mrf.mxu1 }
 0x70d   :  { %v979_v48 = vsel %vm421_vm1, %v967_v42, 0.0  ;;  %v959_v49 = vadd.f32 %v958_v46, %v863_v45  ;;  %v970_v51 = vadd.f32 %v964_v43, %v5336_v10  ;;  %v5505_v43 = vld [vmem:[%s4543_s14] sm:$0x7]  ;;  %s5291_s14 = smov 27  }
 0x70e   :  { %v981_v53 = vadd.f32 %v980_v50, %v979_v48  ;;  %s4567_s19 = sld [smem:[%s6722_s0 + %s5291_s14]]  }
 0x70f   :  { %v969_v52 = vadd.f32 %v959_v49, %v5339_v11  ;;  %v984_v15 = vsel %vm421_vm1, %v970_v51, 0.0 }
 0x711   :  { %v982_v54 = vsel %vm421_vm1, %v969_v52, 0.0 }
 0x712   :  { %v983_v55 = vadd.f32 %v982_v54, %v981_v53 }
 0x714   :  { %v985_v56 = vadd.f32 %v984_v15, %v983_v55 }
 0x716   :  { %v986_v16 = vrot.slane %v985_v56, 4 }
 0x718   :  { %v987_v57 = vadd.f32 %v986_v16, %v985_v56 }
 0x71a   :  { %v988_v58 = vrot.slane %v987_v57, 2 }
 0x71c   :  { %v989_v59 = vadd.f32 %v988_v58, %v987_v57 }
 0x71e   :  { %v990_v60 = vrot.slane %v989_v59, 1 }
 0x720   :  { %v991_v61 = vadd.f32 %v990_v60, %v989_v59 }
 0x722   :  { %v993_v62 = vmul.f32 0.03125, %v991_v61 }
 0x724   :  { %v994_v63 = vsub.f32 %v967_v42, %v993_v62  ;;  %v995_v0 = vsub.f32 %v968_v41, %v993_v62  ;;  %v996_v1 = vsub.f32 %v969_v52, %v993_v62  ;;  %v997_v10 = vsub.f32 %v970_v51, %v993_v62  ;;  %v1054_v42 = vpop.permute.xlu1 %1053  ;;  %v1049_v52 = vpop.permute.xlu0 %1048 }
 0x725   :  { %v1138_v41 = vsub.s32 2, %v5316_v2  ;;  %v1126_v51 = vsub.s32 1, %v5316_v2 }
 0x726   :  { %v998_v44 = vmul.f32 %v994_v63, %v994_v63  ;;  %v999_v11 = vmul.f32 %v995_v0, %v995_v0  ;;  %v1000_v47 = vmul.f32 %v996_v1, %v996_v1  ;;  %v1001_v4 = vmul.f32 %v997_v10, %v997_v10 }
 0x727   :  { %v1139_v50 = vrot.slane %v5505_v43, %v1138_v41  ;;  %v1127_v55 = vrot.slane %v5505_v43, %v1126_v51  ;;  %v1076_v41 = vld [vmem:[%s5559_s20 + $0x10] sm:$0xff] }
 0x728   :  { %v1002_v6 = vsel %vm421_vm1, %v998_v44, 0.0  ;;  %v1003_v7 = vsel %vm421_vm1, %v999_v11, 0.0  ;;  %v1005_v9 = vsel %vm421_vm1, %v1000_v47, 0.0  ;;  %v1007_v13 = vsel %vm421_vm1, %v1001_v4, 0.0 }
 0x729   :  { %v1004_v8 = vadd.f32 %v1003_v7, %v1002_v6 }
 0x72b   :  { %v1006_v12 = vadd.f32 %v1005_v9, %v1004_v8 }
 0x72d   :  { %v1008_v14 = vadd.f32 %v1007_v13, %v1006_v12  ;;  %v1074_v12 = vld [vmem:[%s5559_s20] sm:$0xff] }
 0x72e   :  { %4997 = vmatprep.mubr.msk.f32.mxu1 %vm1220_vm4, %v1074_v12 }
 0x72f   :  { %v1009_v17 = vrot.slane %v1008_v14, 4 }
 0x731   :  { %v1010_v18 = vadd.f32 %v1009_v17, %v1008_v14  ;;  %v1089_v17 = vld [vmem:[%s5567_s26 + $0x38] sm:$0xff] }
 0x733   :  { %v1011_v19 = vrot.slane %v1010_v18, 2 }
 0x735   :  { %v1012_v20 = vadd.f32 %v1011_v19, %v1010_v18  ;;  %v1088_v18 = vld [vmem:[%s5567_s26 + $0x30] sm:$0xff]  ;;  %v1087_v19 = vld [vmem:[%s5567_s26 + $0x28] sm:$0xff] }
 0x737   :  { %v1013_v21 = vrot.slane %v1012_v20, 1 }
 0x739   :  { %v1014_v22 = vadd.f32 %v1013_v21, %v1012_v20  ;;  %v1086_v20 = vld [vmem:[%s5567_s26 + $0x20] sm:$0xff]  ;;  %v1085_v21 = vld [vmem:[%s5567_s26 + $0x18] sm:$0xff] }
 0x73b   :  { %v1015_v23 = vmul.f32 0.03125, %v1014_v22  ;;  %v1084_v22 = vld [vmem:[%s5567_s26 + $0x10] sm:$0xff] }
 0x73d   :  { %v1016_v24 = vadd.f32 0.0001, %v1015_v23  ;;  %v1083_v23 = vld [vmem:[%s5567_s26 + $0x8] sm:$0xff] }
 0x73f   :  { %5235 = vrsqrt.f32 %v1016_v24  ;;  %v1082_v24 = vld [vmem:[%s5567_s26] sm:$0xff] }
 0x74c   :  { %v5236_v29 = vpop.eup %5235 }
 0x74d   :  { %v1020_v31 = vmul.f32 %v5236_v29, %v996_v1  ;;  %v1021_v32 = vmul.f32 %v5236_v29, %v997_v10  ;;  %v1019_v33 = vmul.f32 %v5236_v29, %v995_v0  ;;  %v1018_v37 = vmul.f32 %v5236_v29, %v994_v63 }
 0x74f   :  { %v1045_v34 = vmul.f32 %v1040_v25, %v1021_v32  ;;  %v1044_v35 = vmul.f32 %v1035_v26, %v1020_v31  ;;  %v1043_v36 = vmul.f32 %v1030_v28, %v1019_v33  ;;  %v1042_v49 = vmul.f32 %v1025_v38, %v1018_v37  ;;  %v1075_v38 = vld [vmem:[%s5559_s20 + $0x8] sm:$0xff] }
 0x750   :  { %v5595_v31 = vrot.slane %v5505_v43, %v136_v3  ;;  %v1078_v43 = vld [vmem:[%s5559_s20 + $0x20] sm:$0xff] }
 0x751   :  { %v5500_v39 = vadd.f32 %v1064_v27, %v1045_v34  ;;  %v5502_v40 = vadd.f32 %v1059_v30, %v1044_v35  ;;  %v5511_v48 = vadd.f32 %v1054_v42, %v1043_v36  ;;  %v5519_v54 = vadd.f32 %v1049_v52, %v1042_v49  ;;  %v1077_v42 = vld [vmem:[%s5559_s20 + $0x18] sm:$0xff] }
 0x752   :  { %v1081_v49 = vld [vmem:[%s5559_s20 + $0x38] sm:$0xff] }
 0x753   :  { %v1073_v45 = vmul.f32 %v5330_v5, %v5500_v39  ;;  %v1072_v46 = vmul.f32 %v5330_v5, %v5502_v40  ;;  %v1071_v53 = vmul.f32 %v5330_v5, %v5511_v48  ;;  %v1070_v15 = vmul.f32 %v5330_v5, %v5519_v54 }
 0x755   :  { %1100 = vrot.lane.b32.xlu1 %v1073_v45, %s5268_s6  ;;  %1098 = vrot.lane.b32.xlu0 %v1072_v46, %s5268_s6  ;;  %v1079_v45 = vld [vmem:[%s5559_s20 + $0x28] sm:$0xff]  ;;  %v1080_v46 = vld [vmem:[%s5559_s20 + $0x30] sm:$0xff] }
 0x759   :  { %1141 = vrot.lane.b32.xlu1 %v1139_v50, %s5271_s18  ;;  %1096 = vrot.lane.b32.xlu0 %v1071_v53, %s5268_s6  ;;  %s5285_s18 = smov 15  }
 0x75a   :  { %s5738_s23 = sld [smem:[%s6722_s0 + %s5285_s18]]  }
 0x75d   :  { %1129 = vrot.lane.b32.xlu0 %v1127_v55, %s5268_s6  ;;  %1094 = vrot.lane.b32.xlu1 %v1070_v15, %s5268_s6 }
 0x7c7   :  { %v1101_v56 = vpop.permute.xlu1 %1100  ;;  %v1099_v16 = vpop.permute.xlu0 %1098 }
 0x7c8   :  { %v1110_v57 = vsel %vm1106_vm2, 0.0, %v1101_v56  ;;  %v1109_v58 = vsel %vm1106_vm2, 0.0, %v1099_v16 }
 0x7c9   :  { %v5531_v59 = vsel %vm1111_vm3, %v1110_v57, 0.0  ;;  %v5534_v60 = vsel %vm1111_vm3, %v1109_v58, 0.0 }
 0x7ca   :  { %v1123_v34 = vmul.f32 %v5595_v31, %v5531_v59  ;;  %v1122_v35 = vmul.f32 %v5595_v31, %v5534_v60 }
 0x7cb   :  { %v5536_v61 = vpop.permute.xlu1 %1141  ;;  %v1097_v62 = vpop.permute.xlu0 %1096 }
 0x7cc   :  { %v1108_v63 = vsel %vm1106_vm2, 0.0, %v1097_v62  ;;  %v1147_v0 = vmul.f32 %v5536_v61, %v5531_v59  ;;  %v1146_v1 = vmul.f32 %v5536_v61, %v5534_v60 }
 0x7cd   :  { %v5544_v10 = vsel %vm1111_vm3, %v1108_v63, 0.0 }
 0x7ce   :  { %1174 = vrot.lane.b32.xlu1 %v1147_v0, %s5277_s15  ;;  %1172 = vrot.lane.b32.xlu0 %v1146_v1, %s5277_s15  ;;  %v1145_v47 = vmul.f32 %v5536_v61, %v5544_v10  ;;  %v1121_v36 = vmul.f32 %v5595_v31, %v5544_v10 }
 0x7cf   :  { %v1095_v44 = vpop.permute.xlu1 %1094  ;;  %v5554_v6 = vpop.permute.xlu0 %1129 }
 0x7d0   :  { %v1107_v11 = vsel %vm1106_vm2, 0.0, %v1095_v44  ;;  %v1135_v8 = vmul.f32 %v5554_v6, %v5531_v59  ;;  %v1134_v9 = vmul.f32 %v5554_v6, %v5534_v60  ;;  %v1133_v13 = vmul.f32 %v5554_v6, %v5544_v10 }
 0x7d1   :  { %v5552_v4 = vsel %vm1111_vm3, %v1107_v11, 0.0 }
 0x7d2   :  { %1170 = vrot.lane.b32.xlu1 %v1145_v47, %s5277_s15  ;;  %v1144_v7 = vmul.f32 %v5536_v61, %v5552_v4  ;;  %v1132_v14 = vmul.f32 %v5554_v6, %v5552_v4  ;;  %v1120_v37 = vmul.f32 %v5595_v31, %v5552_v4 }
 0x7d4   :  { %1168 = vrot.lane.b32.xlu0 %v1144_v7, %s5277_s15 }
 0x7d6   :  { %1158 = vrot.lane.b32.xlu1 %v1135_v8, %s5280_s27 }
 0x7d8   :  { %1156 = vrot.lane.b32.xlu0 %v1134_v9, %s5280_s27 }
 0x7da   :  { %1154 = vrot.lane.b32.xlu1 %v1133_v13, %s5280_s27 }
 0x7dc   :  { %1152 = vrot.lane.b32.xlu0 %v1132_v14, %s5280_s27 }
 0x7de   :  { %1217 = vperm.xlu1 %5218, %v1089_v17  }
 0x7e0   :  { %1212 = vperm.xlu0 %5217, %v1088_v18  }
 0x7e2   :  { %1207 = vperm.xlu1 %5218, %v1087_v19  }
 0x7e4   :  { %1202 = vperm.xlu0 %5217, %v1086_v20  }
 0x7e6   :  { %1197 = vperm.xlu1 %5218, %v1085_v21  }
 0x7e8   :  { %1192 = vperm.xlu0 %5217, %v1084_v22  }
 0x7ea   :  { %1187 = vperm.xlu1 %5218, %v1083_v23  }
 0x7ec   :  { %1182 = vperm.xlu0 %5217, %v1082_v24  }
 0x840   :  { %v1175_v25 = vpop.permute.xlu1 %1174  ;;  %v1173_v26 = vpop.permute.xlu0 %1172 }
 0x841   :  { %4973 = vmatprep.subr.mxu1 %v1175_v25 }
 0x842   :  { %4974 = vmatpush3.msra.mxu1 %v1175_v25 }
 0x843   :  { %4975 = vmatprep.subr.mxu1 %v1173_v26 }
 0x844   :  { %v1171_v27 = vpop.permute.xlu1 %1170  ;;  %4976 = vmatpush3.msra.mxu1 %v1173_v26 }
 0x845   :  { %4977 = vmatprep.subr.mxu1 %v1171_v27 }
 0x846   :  { %4978 = vmatpush3.msra.mxu1 %v1171_v27  ;;  %v1169_v28 = vpop.permute.xlu0 %1168 }
 0x847   :  { %4979 = vmatprep.subr.mxu1 %v1169_v28 }
 0x848   :  { %v1159_v29 = vpop.permute.xlu1 %1158  ;;  %4980 = vmatpush3.msra.mxu1 %v1169_v28 }
 0x849   :  { %4981 = vmatprep.subr.mxu1 %v1159_v29 }
 0x84a   :  { %4982 = vmatpush3.msra.mxu1 %v1159_v29  ;;  %v1157_v30 = vpop.permute.xlu0 %1156 }
 0x84b   :  { %4983 = vmatprep.subr.mxu1 %v1157_v30 }
 0x84c   :  { %v1155_v32 = vpop.permute.xlu1 %1154  ;;  %4984 = vmatpush3.msra.mxu1 %v1157_v30  ;;  %v5281_v30 = vmov 0.0  }
 0x84d   :  { %4985 = vmatprep.subr.mxu1 %v1155_v32  ;;  %1547 = vmatprep.subr.mxu0 %v5281_v30 }
 0x84e   :  { %4986 = vmatpush3.msra.mxu1 %v1155_v32  ;;  %v1153_v33 = vpop.permute.xlu0 %1152 }
 0x84f   :  { %4987 = vmatprep.subr.mxu1 %v1153_v33 }
 0x850   :  { %4988 = vmatpush3.msra.mxu1 %v1153_v33 }
 0x851   :  { %4989 = vmatprep.subr.mxu1 %v1123_v34 }
 0x852   :  { %4990 = vmatpush3.msra.mxu1 %v1123_v34 }
 0x853   :  { %4991 = vmatprep.subr.mxu1 %v1122_v35 }
 0x854   :  { %4992 = vmatpush3.msra.mxu1 %v1122_v35 }
 0x855   :  { %4993 = vmatprep.subr.mxu1 %v1121_v36 }
 0x856   :  { %4994 = vmatpush3.msra.mxu1 %v1121_v36 }
 0x857   :  { %4995 = vmatprep.subr.mxu1 %v1120_v37 }
 0x858   :  { %4996 = vmatpush3.msra.mxu1 %v1120_v37 }
 0x859   :  { %4998 = vmatmul.mubr.msk.f32.vlgmr.msra.gmra.mxu1 %vm1220_vm4, %v1075_v38  ;;  %v1218_v51 = vpop.permute.xlu1 %1217 }
 0x85a   :  { %5000 = vmatprep.mubr.msk.f32.mxu1 %vm1220_vm4, %v1076_v41 }
 0x85b   :  { %v1213_v53 = vpop.permute.xlu0 %1212 }
 0x85d   :  { %5001 = vmatmul.mubr.msk.f32.gmra.mxu1 %vm1220_vm4, %v1077_v42  ;;  %v1208_v56 = vpop.permute.xlu1 %1207 }
 0x85e   :  { %5003 = vmatprep.mubr.msk.f32.mxu1 %vm1220_vm4, %v1078_v43 }
 0x85f   :  { %v1203_v57 = vpop.permute.xlu0 %1202 }
 0x861   :  { %5004 = vmatmul.mubr.msk.f32.gmra.mxu1 %vm1220_vm4, %v1079_v45  ;;  %v1198_v63 = vpop.permute.xlu1 %1197 }
 0x862   :  { %5006 = vmatprep.mubr.msk.f32.mxu1 %vm1220_vm4, %v1080_v46 }
 0x863   :  { %v1193_v11 = vpop.permute.xlu0 %1192 }
 0x865   :  { %5007 = vmatmul.mubr.msk.f32.gmra.mxu1 %vm1220_vm4, %v1081_v49  ;;  %v1188_v14 = vpop.permute.xlu1 %1187 }
 0x867   :  { %v1183_v20 = vpop.permute.xlu0 %1182 }
 0x919   :  { %v4999_v50 = vpop.f32.mrf.mxu1 }
 0x91a   :  { %v1317_v17 = vadd.f32 %v4999_v50, %v1188_v14 }
 0x91b   :  { %v1311_v52 = vpop.f32.mrf.mxu1 }
 0x91c   :  { %v1312_v21 = vadd.f32 %v1311_v52, %v1183_v20  ;;  %v1351_v24 = vmax.f32 %v1317_v17, 0.0  ;;  %v1374_v17 = vld [vmem:[%s5706_s2] sm:$0xff]  ;;  %v1376_v20 = vld [vmem:[%s5706_s2 + $0x10] sm:$0xff] }
 0x91d   :  { %v5002_v55 = vpop.f32.mrf.mxu1 }
 0x91e   :  { %v1327_v47 = vadd.f32 %v5002_v55, %v1198_v63  ;;  %v1350_v26 = vmax.f32 %v1312_v21, 0.0  ;;  %v1359_v28 = vmul.f32 %v5330_v5, %v1351_v24  ;;  %v1377_v21 = vld [vmem:[%s5706_s2 + $0x18] sm:$0xff] }
 0x91f   :  { %v1321_v15 = vpop.f32.mrf.mxu1  ;;  %v1647_v24 = vld [vmem:[%s5738_s23 + $0x18] sm:$0xff] }
 0x920   :  { %v1322_v9 = vadd.f32 %v1321_v15, %v1193_v11  ;;  %v1353_v18 = vmax.f32 %v1327_v47, 0.0  ;;  %v1358_v29 = vmul.f32 %v5330_v5, %v1350_v26  ;;  %v1646_v26 = vld [vmem:[%s5738_s23 + $0x10] sm:$0xff] }
 0x921   :  { %v5005_v16 = vpop.f32.mrf.mxu1 }
 0x922   :  { %v1337_v60 = vadd.f32 %v5005_v16, %v1208_v56  ;;  %v1352_v22 = vmax.f32 %v1322_v9, 0.0  ;;  %v1361_v25 = vmul.f32 %v5330_v5, %v1353_v18  ;;  %v1375_v18 = vld [vmem:[%s5706_s2 + $0x8] sm:$0xff] }
 0x923   :  { %v1331_v58 = vpop.f32.mrf.mxu1 }
 0x924   :  { %v1332_v1 = vadd.f32 %v1331_v58, %v1203_v57  ;;  %v1355_v4 = vmax.f32 %v1337_v60, 0.0  ;;  %v1360_v27 = vmul.f32 %v5330_v5, %v1352_v22  ;;  %v1643_v22 = vld [vmem:[%s5729_s16 + $0x18] sm:$0xff] }
 0x925   :  { %v5008_v59 = vpop.f32.mrf.mxu1 }
 0x926   :  { %v1347_v62 = vadd.f32 %v5008_v59, %v1218_v51  ;;  %v1354_v12 = vmax.f32 %v1332_v1, 0.0  ;;  %v1363_v19 = vmul.f32 %v5330_v5, %v1355_v4 }
 0x927   :  { %v1341_v0 = vpop.f32.mrf.mxu1 }
 0x928   :  { %v1357_v10 = vmax.f32 %v1347_v62, 0.0  ;;  %v1342_v44 = vadd.f32 %v1341_v0, %v1213_v53  ;;  %v1362_v23 = vmul.f32 %v5330_v5, %v1354_v12 }
 0x92a   :  { %v1365_v7 = vmul.f32 %v5330_v5, %v1357_v10  ;;  %v1356_v8 = vmax.f32 %v1342_v44, 0.0 }
 0x92c   :  { %v1364_v13 = vmul.f32 %v5330_v5, %v1356_v8  ;;  %1400 = vrot.lane.b32.xlu1 %v1365_v7, %s5268_s6 }
 0x92e   :  { %1398 = vrot.lane.b32.xlu0 %v1364_v13, %s5268_s6 }
 0x930   :  { %1396 = vrot.lane.b32.xlu1 %v1363_v19, %s5268_s6  ;;  %v1367_v19 = vld [vmem:[%s5720_s10 + $0x8] sm:$0xff] }
 0x931   :  { %4607 = vmatprep.mubr.msk.f32.mxu0 %vm1534_vm5, %v1367_v19 }
 0x932   :  { %1394 = vrot.lane.b32.xlu0 %v1362_v23, %s5268_s6  ;;  %v1642_v23 = vld [vmem:[%s5729_s16 + $0x10] sm:$0xff] }
 0x934   :  { %1392 = vrot.lane.b32.xlu1 %v1361_v25, %s5268_s6  ;;  %v1641_v25 = vld [vmem:[%s5729_s16 + $0x8] sm:$0xff] }
 0x936   :  { %1390 = vrot.lane.b32.xlu0 %v1360_v27, %s5268_s6  ;;  %v1640_v27 = vld [vmem:[%s5729_s16] sm:$0xff] }
 0x938   :  { %1388 = vrot.lane.b32.xlu1 %v1359_v28, %s5268_s6  ;;  %v1645_v28 = vld [vmem:[%s5738_s23 + $0x8] sm:$0xff] }
 0x93a   :  { %1386 = vrot.lane.b32.xlu0 %v1358_v29, %s5268_s6  ;;  %v1644_v29 = vld [vmem:[%s5738_s23] sm:$0xff] }
 0x99e   :  { %v1401_v32 = vpop.permute.xlu1 %1400 }
 0x99f   :  { %v1417_v33 = vsel %vm1106_vm2, 0.0, %v1401_v32  ;;  %v4623_v32 = vld [vmem:[%s5326_s17 + $0x60] sm:$0xff] }
 0x9a0   :  { %v5638_v34 = vsel %vm1111_vm3, %v1417_v33, 0.0  ;;  %v1399_v35 = vpop.permute.xlu0 %1398  ;;  %v4624_v33 = vld [vmem:[%s5326_s17 + $0x68] sm:$0xff] }
 0x9a1   :  { %v1416_v36 = vsel %vm1106_vm2, 0.0, %v1399_v35  ;;  %v1441_v37 = vmul.f32 %v5638_v34, %v5554_v6  ;;  %v1449_v47 = vmul.f32 %v5638_v34, %v5536_v61  ;;  %v4628_v35 = vld [vmem:[%s5326_s17 + $0x88] sm:$0xff] }
 0x9a2   :  { %v5644_v38 = vsel %vm1111_vm3, %v1416_v36, 0.0  ;;  %v1397_v41 = vpop.permute.xlu1 %1396  ;;  %v4627_v36 = vld [vmem:[%s5326_s17 + $0x80] sm:$0xff] }
 0x9a3   :  { %v1415_v42 = vsel %vm1106_vm2, 0.0, %v1397_v41  ;;  %1472 = vrot.lane.b32.xlu1 %v1441_v37, %s5280_s27  ;;  %v1440_v43 = vmul.f32 %v5644_v38, %v5554_v6  ;;  %v1448_v4 = vmul.f32 %v5644_v38, %v5536_v61 }
 0x9a4   :  { %v5651_v45 = vsel %vm1111_vm3, %v1415_v42, 0.0  ;;  %v1395_v46 = vpop.permute.xlu0 %1394 }
 0x9a5   :  { %v1414_v49 = vsel %vm1106_vm2, 0.0, %v1395_v46  ;;  %1470 = vrot.lane.b32.xlu0 %v1440_v43, %s5280_s27  ;;  %v1439_v50 = vmul.f32 %v5651_v45, %v5554_v6  ;;  %v1447_v7 = vmul.f32 %v5651_v45, %v5536_v61 }
 0x9a6   :  { %v5658_v51 = vsel %vm1111_vm3, %v1414_v49, 0.0  ;;  %v1393_v52 = vpop.permute.xlu1 %1392 }
 0x9a7   :  { %v1413_v53 = vsel %vm1106_vm2, 0.0, %v1393_v52  ;;  %1468 = vrot.lane.b32.xlu1 %v1439_v50, %s5280_s27  ;;  %v1438_v55 = vmul.f32 %v5658_v51, %v5554_v6  ;;  %v1446_v8 = vmul.f32 %v5658_v51, %v5536_v61 }
 0x9a8   :  { %v5665_v15 = vsel %vm1111_vm3, %v1413_v53, 0.0  ;;  %v1391_v56 = vpop.permute.xlu0 %1390  ;;  %v1433_v53 = vmul.f32 %v5638_v34, %v5595_v31 }
 0x9a9   :  { %v1412_v16 = vsel %vm1106_vm2, 0.0, %v1391_v56  ;;  %1466 = vrot.lane.b32.xlu0 %v1438_v55, %s5280_s27  ;;  %v1437_v57 = vmul.f32 %v5665_v15, %v5554_v6  ;;  %v1445_v9 = vmul.f32 %v5665_v15, %v5536_v61  ;;  %v1432_v55 = vmul.f32 %v5644_v38, %v5595_v31 }
 0x9aa   :  { %v5672_v58 = vsel %vm1111_vm3, %v1412_v16, 0.0  ;;  %v1389_v59 = vpop.permute.xlu1 %1388  ;;  %v1431_v56 = vmul.f32 %v5651_v45, %v5595_v31  ;;  %v1430_v16 = vmul.f32 %v5658_v51, %v5595_v31  ;;  %v1429_v34 = vmul.f32 %v5665_v15, %v5595_v31 }
 0x9ab   :  { %v1411_v60 = vsel %vm1106_vm2, 0.0, %v1389_v59  ;;  %1464 = vrot.lane.b32.xlu1 %v1437_v57, %s5280_s27  ;;  %v1436_v62 = vmul.f32 %v5672_v58, %v5554_v6  ;;  %v1444_v12 = vmul.f32 %v5672_v58, %v5536_v61  ;;  %v1428_v38 = vmul.f32 %v5672_v58, %v5595_v31 }
 0x9ac   :  { %v5679_v63 = vsel %vm1111_vm3, %v1411_v60, 0.0  ;;  %v1387_v0 = vpop.permute.xlu0 %1386 }
 0x9ad   :  { %v1410_v1 = vsel %vm1106_vm2, 0.0, %v1387_v0  ;;  %1462 = vrot.lane.b32.xlu0 %v1436_v62, %s5280_s27  ;;  %v1435_v10 = vmul.f32 %v5679_v63, %v5554_v6  ;;  %v1443_v13 = vmul.f32 %v5679_v63, %v5536_v61  ;;  %v1427_v57 = vmul.f32 %v5679_v63, %v5595_v31  ;;  %v1366_v0 = vld [vmem:[%s5720_s10] sm:$0xff] }
 0x9ae   :  { %v5686_v44 = vsel %vm1111_vm3, %v1410_v1, 0.0 }
 0x9af   :  { %1460 = vrot.lane.b32.xlu1 %v1435_v10, %s5280_s27  ;;  %v1434_v11 = vmul.f32 %v5686_v44, %v5554_v6  ;;  %v1442_v14 = vmul.f32 %v5686_v44, %v5536_v61  ;;  %v1426_v15 = vmul.f32 %v5686_v44, %v5595_v31  ;;  %v1369_v10 = vld [vmem:[%s5720_s10 + $0x18] sm:$0xff]  ;;  %v1368_v44 = vld [vmem:[%s5720_s10 + $0x10] sm:$0xff] }
 0x9b1   :  { %1458 = vrot.lane.b32.xlu0 %v1434_v11, %s5280_s27  ;;  %v1371_v11 = vld [vmem:[%s5720_s10 + $0x28] sm:$0xff] }
 0x9b3   :  { %1504 = vrot.lane.b32.xlu1 %v1449_v47, %s5277_s15  ;;  %v1370_v47 = vld [vmem:[%s5720_s10 + $0x20] sm:$0xff] }
 0x9b5   :  { %1502 = vrot.lane.b32.xlu0 %v1448_v4, %s5277_s15  ;;  %v1373_v4 = vld [vmem:[%s5720_s10 + $0x38] sm:$0xff] }
 0x9b7   :  { %1500 = vrot.lane.b32.xlu1 %v1447_v7, %s5277_s15  ;;  %v1372_v7 = vld [vmem:[%s5720_s10 + $0x30] sm:$0xff] }
 0x9b9   :  { %1498 = vrot.lane.b32.xlu0 %v1446_v8, %s5277_s15  ;;  %v4611_v8 = vld [vmem:[%s5321_s13 + $0x60] sm:$0xff] }
 0x9ba   :  { %5017 = vmatprep.mubr.msk.f32.mxu1 %vm227_vm0, %v4611_v8 }
 0x9bb   :  { %1496 = vrot.lane.b32.xlu1 %v1445_v9, %s5277_s15 }
 0x9bd   :  { %1494 = vrot.lane.b32.xlu0 %v1444_v12, %s5277_s15 }
 0x9bf   :  { %1492 = vrot.lane.b32.xlu1 %v1443_v13, %s5277_s15 }
 0x9c1   :  { %1490 = vrot.lane.b32.xlu0 %v1442_v14, %s5277_s15 }
 0x9c3   :  { %1516 = vperm.xlu1 %5218, %v1374_v17  }
 0x9c5   :  { %1521 = vperm.xlu0 %5217, %v1375_v18  }
 0x9c7   :  { %1526 = vperm.xlu1 %5218, %v1376_v20  }
 0x9c9   :  { %1531 = vperm.xlu0 %5217, %v1377_v21  }
 0x9cb   :  { %1707 = vperm.xlu1 %5218, %v1643_v22  }
 0x9cd   :  { %1702 = vperm.xlu0 %5217, %v1642_v23  }
 0x9cf   :  { %1731 = vperm.xlu1 %5218, %v1647_v24  }
 0x9d1   :  { %1697 = vperm.xlu0 %5217, %v1641_v25  }
 0x9d3   :  { %1726 = vperm.xlu1 %5218, %v1646_v26  }
 0x9d5   :  { %1692 = vperm.xlu0 %5217, %v1640_v27  }
 0x9d7   :  { %1721 = vperm.xlu1 %5218, %v1645_v28  }
 0x9d9   :  { %1716 = vperm.xlu0 %5217, %v1644_v29  }
 0x9db   :  { %1770 = vperm.xlu1 %5218, %v4623_v32  }
 0x9dd   :  { %1775 = vperm.xlu0 %5217, %v4624_v33  }
 0x9df   :  { %1795 = vperm.xlu1 %5218, %v4628_v35  }
 0x9e1   :  { %1790 = vperm.xlu0 %5217, %v4627_v36  }
 0xa15   :  { %v1473_v37 = vpop.permute.xlu1 %1472 }
 0xa16   :  { %1548 = vmatpush1.msra.mxu0 %v1473_v37 }
 0xa17   :  { %1549 = vmatprep.subr.mxu0 %v5281_v30  ;;  %v1471_v41 = vpop.permute.xlu0 %1470 }
 0xa18   :  { %1550 = vmatpush1.msra.mxu0 %v1471_v41 }
 0xa19   :  { %v1469_v42 = vpop.permute.xlu1 %1468  ;;  %1551 = vmatprep.subr.mxu0 %v5281_v30 }
 0xa1a   :  { %1552 = vmatpush1.msra.mxu0 %v1469_v42 }
 0xa1b   :  { %1553 = vmatprep.subr.mxu0 %v5281_v30  ;;  %v1467_v43 = vpop.permute.xlu0 %1466 }
 0xa1c   :  { %1554 = vmatpush1.msra.mxu0 %v1467_v43 }
 0xa1d   :  { %v1465_v46 = vpop.permute.xlu1 %1464  ;;  %1555 = vmatprep.subr.mxu0 %v5281_v30 }
 0xa1e   :  { %1556 = vmatpush1.msra.mxu0 %v1465_v46 }
 0xa1f   :  { %1557 = vmatprep.subr.mxu0 %v5281_v30  ;;  %v1463_v49 = vpop.permute.xlu0 %1462 }
 0xa20   :  { %1558 = vmatpush1.msra.mxu0 %v1463_v49 }
 0xa21   :  { %v1461_v50 = vpop.permute.xlu1 %1460  ;;  %1559 = vmatprep.subr.mxu0 %v5281_v30 }
 0xa22   :  { %1560 = vmatpush1.msra.mxu0 %v1461_v50 }
 0xa23   :  { %1561 = vmatprep.subr.mxu0 %v5281_v30  ;;  %v1459_v52 = vpop.permute.xlu0 %1458 }
 0xa24   :  { %1562 = vmatpush1.msra.mxu0 %v1459_v52 }
 0xa25   :  { %1563 = vmatprep.subr.mxu0 %v5281_v30  ;;  %v1505_v45 = vpop.permute.xlu1 %1504 }
 0xa26   :  { %1564 = vmatpush1.msra.mxu0 %v1433_v53 }
 0xa27   :  { %1565 = vmatprep.subr.mxu0 %v5281_v30  ;;  %v1503_v51 = vpop.permute.xlu0 %1502 }
 0xa28   :  { %1566 = vmatpush1.msra.mxu0 %v1432_v55 }
 0xa29   :  { %1567 = vmatprep.subr.mxu0 %v5281_v30  ;;  %v1501_v59 = vpop.permute.xlu1 %1500 }
 0xa2a   :  { %1568 = vmatpush1.msra.mxu0 %v1431_v56 }
 0xa2b   :  { %1569 = vmatprep.subr.mxu0 %v5281_v30  ;;  %v1499_v58 = vpop.permute.xlu0 %1498 }
 0xa2c   :  { %1570 = vmatpush1.msra.mxu0 %v1430_v16 }
 0xa2d   :  { %1571 = vmatprep.subr.mxu0 %v5281_v30  ;;  %v1497_v60 = vpop.permute.xlu1 %1496 }
 0xa2e   :  { %1572 = vmatpush1.msra.mxu0 %v1429_v34 }
 0xa2f   :  { %1573 = vmatprep.subr.mxu0 %v5281_v30  ;;  %v1495_v62 = vpop.permute.xlu0 %1494 }
 0xa30   :  { %1574 = vmatpush1.msra.mxu0 %v1428_v38 }
 0xa31   :  { %1575 = vmatprep.subr.mxu0 %v5281_v30  ;;  %v1493_v63 = vpop.permute.xlu1 %1492 }
 0xa32   :  { %1576 = vmatpush1.msra.mxu0 %v1427_v57 }
 0xa33   :  { %1577 = vmatprep.subr.mxu0 %v5281_v30  ;;  %v1491_v1 = vpop.permute.xlu0 %1490 }
 0xa34   :  { %1578 = vmatpush1.msra.mxu0 %v1426_v15 }
 0xa35   :  { %1595 = vmatprep.subr.mxu0 %v5281_v30 }
 0xa36   :  { %1596 = vmatpush2.msra.mxu0 %v1505_v45 }
 0xa37   :  { %1597 = vmatprep.subr.mxu0 %v5281_v30 }
 0xa38   :  { %1598 = vmatpush2.msra.mxu0 %v1503_v51 }
 0xa39   :  { %1599 = vmatprep.subr.mxu0 %v5281_v30 }
 0xa3a   :  { %1600 = vmatpush2.msra.mxu0 %v1501_v59 }
 0xa3b   :  { %1601 = vmatprep.subr.mxu0 %v5281_v30 }
 0xa3c   :  { %1602 = vmatpush2.msra.mxu0 %v1499_v58 }
 0xa3d   :  { %1603 = vmatprep.subr.mxu0 %v5281_v30 }
 0xa3e   :  { %1604 = vmatpush2.msra.mxu0 %v1497_v60  ;;  %v1517_v12 = vpop.permute.xlu1 %1516 }
 0xa3f   :  { %1605 = vmatprep.subr.mxu0 %v5281_v30 }
 0xa40   :  { %1606 = vmatpush2.msra.mxu0 %v1495_v62  ;;  %v1522_v17 = vpop.permute.xlu0 %1521 }
 0xa41   :  { %1607 = vmatprep.subr.mxu0 %v5281_v30 }
 0xa42   :  { %1608 = vmatpush2.msra.mxu0 %v1493_v63  ;;  %v1527_v23 = vpop.permute.xlu1 %1526 }
 0xa43   :  { %1609 = vmatprep.subr.mxu0 %v5281_v30 }
 0xa44   :  { %1610 = vmatpush2.msra.mxu0 %v1491_v1  ;;  %v1532_v32 = vpop.permute.xlu0 %1531 }
 0xa45   :  { %1612 = vmatmul.mubr.f32.vlgmr.msra.gmra.mxu0 %v1366_v0 }
 0xa46   :  { %4608 = vmatprep.mubr.msk.f32.mxu0 %vm1534_vm5, %v1369_v10 }
 0xa49   :  { %1617 = vmatmul.mubr.f32.gmra.mxu0 %v1368_v44 }
 0xa4a   :  { %4609 = vmatprep.mubr.msk.f32.mxu0 %vm1534_vm5, %v1371_v11 }
 0xa4d   :  { %1622 = vmatmul.mubr.f32.gmra.mxu0 %v1370_v47 }
 0xa4e   :  { %4610 = vmatprep.mubr.msk.f32.mxu0 %vm1534_vm5, %v1373_v4 }
 0xa51   :  { %1627 = vmatmul.mubr.f32.gmra.mxu0 %v1372_v7 }
 0xb05   :  { %v1613_v9 = vpop.f32.mrf.mxu0 }
 0xb06   :  { %v1614_v14 = vadd.f32 %v1613_v9, %v1517_v12 }
 0xb07   :  { %v1615_v13 = vpop.f32.mrf.mxu0 }
 0xb08   :  { %v1632_v21 = vmul.f32 %v5330_v5, %v1614_v14 }
 0xb09   :  { %v1618_v18 = vpop.f32.mrf.mxu0 }
 0xb0a   :  { %v1619_v19 = vadd.f32 %v1618_v18, %v1522_v17  ;;  %v1636_v28 = vadd.f32 %v1632_v21, %v5519_v54  ;;  %v1708_v17 = vpop.permute.xlu1 %1707  ;;  %v1703_v18 = vpop.permute.xlu0 %1702 }
 0xb0b   :  { %v1620_v20 = vpop.f32.mrf.mxu0 }
 0xb0c   :  { %v1633_v22 = vmul.f32 %v5330_v5, %v1619_v19  ;;  %v1648_v42 = vsel %vm421_vm1, %v1636_v28, 0.0 }
 0xb0d   :  { %v1623_v24 = vpop.f32.mrf.mxu0 }
 0xb0e   :  { %v1637_v25 = vadd.f32 %v1633_v22, %v5511_v48  ;;  %v1624_v26 = vadd.f32 %v1623_v24, %v1527_v23  ;;  %v1732_v19 = vpop.permute.xlu1 %1731  ;;  %v1698_v20 = vpop.permute.xlu0 %1697 }
 0xb0f   :  { %v1625_v27 = vpop.f32.mrf.mxu0 }
 0xb10   :  { %v1634_v29 = vmul.f32 %v5330_v5, %v1624_v26  ;;  %v1649_v35 = vsel %vm421_vm1, %v1637_v25, 0.0 }
 0xb11   :  { %v1628_v33 = vpop.f32.mrf.mxu0  ;;  %v1650_v46 = vadd.f32 %v1649_v35, %v1648_v42 }
 0xb12   :  { %v1638_v36 = vadd.f32 %v1634_v29, %v5502_v40  ;;  %v1629_v37 = vadd.f32 %v1628_v33, %v1532_v32  ;;  %v1727_v22 = vpop.permute.xlu1 %1726  ;;  %v1693_v27 = vpop.permute.xlu0 %1692 }
 0xb13   :  { %v1630_v41 = vpop.f32.mrf.mxu0 }
 0xb14   :  { %v1651_v43 = vsel %vm421_vm1, %v1638_v36, 0.0  ;;  %v1635_v48 = vmul.f32 %v5330_v5, %v1629_v37 }
 0xb15   :  { %v1652_v54 = vadd.f32 %v1651_v43, %v1650_v46 }
 0xb16   :  { %v1639_v49 = vadd.f32 %v1635_v48, %v5500_v39  ;;  %v1722_v37 = vpop.permute.xlu1 %1721  ;;  %v1717_v43 = vpop.permute.xlu0 %1716 }
 0xb18   :  { %v1653_v50 = vsel %vm421_vm1, %v1639_v49, 0.0 }
 0xb19   :  { %v1654_v52 = vadd.f32 %v1653_v50, %v1652_v54  ;;  %v4612_v50 = vld [vmem:[%s5321_s13 + $0x68] sm:$0xff] }
 0xb1b   :  { %v1655_v53 = vrot.slane %v1654_v52, 4 }
 0xb1d   :  { %v1656_v55 = vadd.f32 %v1655_v53, %v1654_v52  ;;  %v4613_v52 = vld [vmem:[%s5321_s13 + $0x70] sm:$0xff]  ;;  %v4614_v53 = vld [vmem:[%s5321_s13 + $0x78] sm:$0xff] }
 0xb1f   :  { %v1657_v56 = vrot.slane %v1656_v55, 2 }
 0xb21   :  { %v1658_v16 = vadd.f32 %v1657_v56, %v1656_v55  ;;  %v4615_v55 = vld [vmem:[%s5321_s13 + $0x80] sm:$0xff]  ;;  %v4616_v56 = vld [vmem:[%s5321_s13 + $0x88] sm:$0xff] }
 0xb23   :  { %v1659_v40 = vrot.slane %v1658_v16, 1 }
 0xb25   :  { %v1660_v34 = vadd.f32 %v1659_v40, %v1658_v16  ;;  %v4617_v16 = vld [vmem:[%s5321_s13 + $0x90] sm:$0xff]  ;;  %v4618_v40 = vld [vmem:[%s5321_s13 + $0x98] sm:$0xff] }
 0xb27   :  { %v1661_v38 = vmul.f32 0.03125, %v1660_v34  ;;  %v4619_v34 = vld [vmem:[%s5321_s13 + $0xa0] sm:$0xff] }
 0xb29   :  { %v1662_v45 = vsub.f32 %v1636_v28, %v1661_v38  ;;  %v1663_v57 = vsub.f32 %v1637_v25, %v1661_v38  ;;  %v1664_v51 = vsub.f32 %v1638_v36, %v1661_v38  ;;  %v1665_v15 = vsub.f32 %v1639_v49, %v1661_v38  ;;  %v4620_v38 = vld [vmem:[%s5321_s13 + $0xa8] sm:$0xff] }
 0xb2b   :  { %v1666_v59 = vmul.f32 %v1662_v45, %v1662_v45  ;;  %v1667_v58 = vmul.f32 %v1663_v57, %v1663_v57  ;;  %v1668_v60 = vmul.f32 %v1664_v51, %v1664_v51  ;;  %v1669_v62 = vmul.f32 %v1665_v15, %v1665_v15 }
 0xb2d   :  { %v1670_v39 = vsel %vm421_vm1, %v1666_v59, 0.0  ;;  %v1671_v63 = vsel %vm421_vm1, %v1667_v58, 0.0  ;;  %v1673_v1 = vsel %vm421_vm1, %v1668_v60, 0.0  ;;  %v1675_v44 = vsel %vm421_vm1, %v1669_v62, 0.0  ;;  %v1776_v60 = vpop.permute.xlu0 %1775 }
 0xb2e   :  { %v1672_v0 = vadd.f32 %v1671_v63, %v1670_v39 }
 0xb30   :  { %v1674_v10 = vadd.f32 %v1673_v1, %v1672_v0 }
 0xb32   :  { %v1676_v11 = vadd.f32 %v1675_v44, %v1674_v10  ;;  %v1791_v44 = vpop.permute.xlu0 %1790 }
 0xb34   :  { %v1677_v47 = vrot.slane %v1676_v11, 4 }
 0xb36   :  { %v1678_v4 = vadd.f32 %v1677_v47, %v1676_v11 }
 0xb38   :  { %v1679_v7 = vrot.slane %v1678_v4, 2 }
 0xb3a   :  { %v1680_v8 = vadd.f32 %v1679_v7, %v1678_v4  ;;  %v4626_v4 = vld [vmem:[%s5326_s17 + $0x78] sm:$0xff] }
 0xb3c   :  { %v1681_v9 = vrot.slane %v1680_v8, 1 }
 0xb3e   :  { %v1682_v12 = vadd.f32 %v1681_v9, %v1680_v8 }
 0xb40   :  { %v1683_v13 = vmul.f32 0.03125, %v1682_v12 }
 0xb42   :  { %v1684_v14 = vadd.f32 0.0001, %v1683_v13 }
 0xb44   :  { %5237 = vrsqrt.f32 %v1684_v14 }
 0xb51   :  { %v5238_v21 = vpop.eup %5237 }
 0xb52   :  { %v1689_v23 = vmul.f32 %v5238_v21, %v1665_v15  ;;  %v1688_v24 = vmul.f32 %v5238_v21, %v1664_v51  ;;  %v1687_v25 = vmul.f32 %v5238_v21, %v1663_v57  ;;  %v1686_v26 = vmul.f32 %v5238_v21, %v1662_v45  ;;  %v4621_v45 = vld [vmem:[%s5321_s13 + $0xb0] sm:$0xff]  ;;  %v4622_v57 = vld [vmem:[%s5321_s13 + $0xb8] sm:$0xff]  ;;  %v1771_v15 = vpop.permute.xlu1 %1770  ;;  %s5286_s13 = smov 16  }
 0xb54   :  { %v1713_v28 = vmul.f32 %v1708_v17, %v1689_v23  ;;  %v1712_v29 = vmul.f32 %v1703_v18, %v1688_v24  ;;  %v1711_v32 = vmul.f32 %v1698_v20, %v1687_v25  ;;  %v1710_v36 = vmul.f32 %v1693_v27, %v1686_v26  ;;  %v5885_v25 = vld [vmem:[%s5386_s21] sm:$0xff] }
 0xb56   :  { %v1737_v33 = vadd.f32 %v1732_v19, %v1713_v28  ;;  %v1736_v35 = vadd.f32 %v1727_v22, %v1712_v29  ;;  %v1735_v42 = vadd.f32 %v1722_v37, %v1711_v32  ;;  %v1734_v46 = vadd.f32 %v1717_v43, %v1710_v36  ;;  %v1796_v0 = vpop.permute.xlu1 %1795  ;;  %v5881_v22 = vld [vmem:[%s5386_s21 + $0x8] sm:$0xff]  ;;  %v4625_v29 = vld [vmem:[%s5326_s17 + $0x70] sm:$0xff]  ;;  %v4631_v32 = vld [vmem:[%s5326_s17 + $0xa0] sm:$0xff] }
 0xb58   :  { %v5822_v41 = vmul.f32 %v5330_v5, %v1737_v33  ;;  %v5826_v48 = vmul.f32 %v5330_v5, %v1736_v35  ;;  %v5831_v49 = vmul.f32 %v5330_v5, %v1735_v42  ;;  %v5836_v54 = vmul.f32 %v5330_v5, %v1734_v46  ;;  %v4630_v33 = vld [vmem:[%s5326_s17 + $0x98] sm:$0xff] }
 0xb5a   :  { %5009 = vmatprep.subr.mxu1 %v5822_v41 }
 0xb5b   :  { %5010 = vmatpush3.msra.mxu1 %v5822_v41 }
 0xb5c   :  { %5011 = vmatprep.subr.mxu1 %v5826_v48 }
 0xb5d   :  { %5012 = vmatpush3.msra.mxu1 %v5826_v48 }
 0xb5e   :  { %5013 = vmatprep.subr.mxu1 %v5831_v49 }
 0xb5f   :  { %5014 = vmatpush3.msra.mxu1 %v5831_v49 }
 0xb60   :  { %5015 = vmatprep.subr.mxu1 %v5836_v54 }
 0xb61   :  { %5016 = vmatpush3.msra.mxu1 %v5836_v54 }
 0xb62   :  { %5018 = vmatmul.mubr.msk.f32.vlgmr.msra.gmra.mxu1 %vm227_vm0, %v4612_v50 }
 0xb63   :  { %5020 = vmatprep.mubr.msk.f32.mxu1 %vm227_vm0, %v4613_v52 }
 0xb66   :  { %5021 = vmatmul.mubr.msk.f32.gmra.mxu1 %vm227_vm0, %v4614_v53 }
 0xb67   :  { %5023 = vmatprep.mubr.msk.f32.mxu1 %vm227_vm0, %v4615_v55 }
 0xb6a   :  { %5024 = vmatmul.mubr.msk.f32.gmra.mxu1 %vm227_vm0, %v4616_v56 }
 0xb6b   :  { %5026 = vmatprep.mubr.msk.f32.mxu1 %vm227_vm0, %v4617_v16 }
 0xb6e   :  { %5027 = vmatmul.mubr.msk.f32.gmra.mxu1 %vm227_vm0, %v4618_v40 }
 0xb6f   :  { %5029 = vmatprep.mubr.msk.f32.mxu1 %vm227_vm0, %v4619_v34  ;;  %v4632_v34 = vld [vmem:[%s5326_s17 + $0xa8] sm:$0xff] }
 0xb72   :  { %5030 = vmatmul.mubr.msk.f32.gmra.mxu1 %vm227_vm0, %v4620_v38  ;;  %v4629_v38 = vld [vmem:[%s5326_s17 + $0x90] sm:$0xff] }
 0xb73   :  { %5032 = vmatprep.mubr.msk.f32.mxu1 %vm227_vm0, %v4621_v45 }
 0xb76   :  { %5033 = vmatmul.mubr.msk.f32.gmra.mxu1 %vm227_vm0, %v4622_v57 }
 0xc22   :  { %v5019_v51 = vpop.f32.mrf.mxu1 }
 0xc23   :  { %v1936_v63 = vadd.f32 %v5019_v51, %v1776_v60 }
 0xc24   :  { %v1930_v59 = vpop.f32.mrf.mxu1 }
 0xc25   :  { %v1931_v58 = vadd.f32 %v1930_v59, %v1771_v15 }
 0xc26   :  { %v5863_v62 = vpop.f32.mrf.mxu1 }
 0xc27   :  { %1989 = vxpose.xlu1.b32.start [1/2] (short) (narrow) %v1931_v58, 16 }
 0xc28   :  { %v5865_v39 = vpop.f32.mrf.mxu1 }
 0xc2a   :  { %v5025_v1 = vpop.f32.mrf.mxu1 }
 0xc2b   :  { %v1956_v10 = vadd.f32 %v5025_v1, %v1796_v0  ;;  %1990 = vxpose.xlu1.b32.end [2/2] (short) (narrow) %v1936_v63, 16 }
 0xc2c   :  { %v1950_v11 = vpop.f32.mrf.mxu1 }
 0xc2d   :  { %v1951_v47 = vadd.f32 %v1950_v11, %v1791_v44  ;;  %5035 = vmatprep.subr.mxu1 %v1956_v10 }
 0xc2e   :  { %5036 = vmatpush3.msra.mxu1 %v1956_v10  ;;  %v5870_v9 = vpop.f32.mrf.mxu1 }
 0xc2f   :  { %5037 = vmatprep.subr.mxu1 %v1951_v47 }
 0xc30   :  { %5038 = vmatpush3.msra.mxu1 %v1951_v47  ;;  %v5872_v12 = vpop.f32.mrf.mxu1 }
 0xc32   :  { %v5874_v13 = vpop.f32.mrf.mxu1 }
 0xc34   :  { %v1970_v14 = vpop.f32.mrf.mxu1 }
 0xc36   :  { %v5876_v17 = vpop.f32.mrf.mxu1 }
 0xc38   :  { %v5878_v18 = vpop.f32.mrf.mxu1 }
 0xc49   :  { %1785 = vperm.xlu1 %5218, %v4626_v4  }
 0xca3   :  { %v2005_v7 = vpop.trf.xlu1 }
 0xca4   :  { %5039 = vmatprep.mubr.msk.f32.mxu1 %vm421_vm1, %v2005_v7 }
 0xca7   :  { %v2006_v8 = vpop.trf.xlu1 }
 0xca8   :  { %5040 = vmatmul.mubr.msk.f32.vlgmr.msra.gmra.mxu1 %vm421_vm1, %v2006_v8 }
 0xcc4   :  { %v1786_v57 = vpop.permute.xlu1 %1785 }
 0xcc5   :  { %v1946_v51 = vadd.f32 %v5863_v62, %v1786_v57 }
 0xd68   :  { %v5041_v19 = vpop.f32.mrf.mxu1 }
 0xd69   :  { %v2103_v20 = vmul.f32 0.25, %v5041_v19 }
 0xd6a   :  { %v2093_v21 = vpop.f32.mrf.mxu1 }
 0xd6b   :  { %v2105_v23 = vadd.f32 %v5881_v22, %v2103_v20  ;;  %v2102_v24 = vmul.f32 0.25, %v2093_v21 }
 0xd6d   :  { %v2104_v26 = vadd.f32 %v5885_v25, %v2102_v24  ;;  %v2109_v27 = vsel %vm421_vm1, %v2105_v23, -inf  ;;  %v4633_v24 = vld [vmem:[%s5326_s17 + $0xb0] sm:$0xff] }
 0xd6e   :  { %2110 = vmax.xlane.f32.xlu0 %v2109_v27  ;;  %v4677_v27 = vld [vmem:[%s5430_s3 + $0x30] sm:$0xff] }
 0xd6f   :  { %v2106_v28 = vsel %vm421_vm1, %v2104_v26, -inf }
 0xd72   :  { %2107 = vmax.xlane.f32.xlu0 %v2106_v28  ;;  %v4676_v28 = vld [vmem:[%s5430_s3 + $0x28] sm:$0xff] }
 0xd88   :  { %1780 = vperm.xlu0 %5217, %v4625_v29  }
 0xd8c   :  { %1810 = vperm.xlu0 %5217, %v4631_v32  }
 0xd90   :  { %1805 = vperm.xlu0 %5217, %v4630_v33  }
 0xdf7   :  { %v2111_v35 = vpop.xlane.xlu0 %2110 }
 0xdf8   :  { %v2113_v36 = vsub.f32 %v2105_v23, %v2111_v35 }
 0xdfa   :  { %v2116_v37 = vmul.f32 1.442695, %v2113_v36 }
 0xdfb   :  { %v2108_v42 = vpop.xlane.xlu0 %2107 }
 0xdfc   :  { %5239 = vpow2.f32 %v2116_v37  ;;  %v2112_v43 = vsub.f32 %v2104_v26, %v2108_v42  ;;  %v4665_v26 = vld [vmem:[%s5418_s25 + $0x30] sm:$0xff] }
 0xdfe   :  { %v2114_v46 = vmul.f32 1.442695, %v2112_v43 }
 0xe00   :  { %5241 = vpow2.f32 %v2114_v46 }
 0xe03   :  { %v1781_v50 = vpop.permute.xlu0 %1780 }
 0xe04   :  { %v1941_v45 = vadd.f32 %v5865_v39, %v1781_v50 }
 0xe07   :  { %v1811_v52 = vpop.permute.xlu0 %1810 }
 0xe08   :  { %v1971_v53 = vadd.f32 %v1970_v14, %v1811_v52  ;;  %v4634_v52 = vld [vmem:[%s5326_s17 + $0xb8] sm:$0xff] }
 0xe09   :  { %v5240_v55 = vpop.eup %5239 }
 0xe0a   :  { %5046 = vmatprep.mubr.msk.f32.mxu1 %vm421_vm1, %v1971_v53  ;;  %v2121_v56 = vsel %vm421_vm1, %v5240_v55, 0.0  ;;  %v4663_v53 = vld [vmem:[%s5418_s25 + $0x20] sm:$0xff] }
 0xe0b   :  { %2122 = vadd.xlane.f32.xlu0 %v2121_v56  ;;  %v1806_v15 = vpop.permute.xlu0 %1805  ;;  %v4674_v56 = vld [vmem:[%s5424_s29 + $0x38] sm:$0xff] }
 0xe0c   :  { %v1966_v39 = vadd.f32 %v5870_v9, %v1806_v15 }
 0xe0d   :  { %v5242_v16 = vpop.eup %5241 }
 0xe0e   :  { %v2118_v40 = vsel %vm421_vm1, %v5242_v16, 0.0 }
 0xe0f   :  { %2119 = vadd.xlane.f32.xlu1 %v2118_v40  ;;  %v4678_v40 = vld [vmem:[%s5430_s3 + $0x38] sm:$0xff] }
 0xe20   :  { %1815 = vperm.xlu1 %5218, %v4632_v34   ;;  %v4672_v34 = vld [vmem:[%s5424_s29 + $0x28] sm:$0xff] }
 0xe21   :  { %1800 = vperm.xlu0 %5217, %v4629_v38   ;;  %v4671_v38 = vld [vmem:[%s5424_s29 + $0x20] sm:$0xff] }
 0xe3f   :  { %2215 = vxpose.xlu0.b32.start [1/2] (short) (narrow) %v1941_v45, 16  ;;  %v4675_v45 = vld [vmem:[%s5430_s3 + $0x20] sm:$0xff] }
 0xe43   :  { %2216 = vxpose.xlu0.b32.end [2/2] (short) (narrow) %v1946_v51, 16 }
 0xe94   :  { %v2123_v59 = vpop.xlane.xlu0 %2122 }
 0xe95   :  { %5243 = vrcp.f32 %v2123_v59 }
 0xe98   :  { %v2120_v58 = vpop.xlane.xlu1 %2119 }
 0xe99   :  { %5245 = vrcp.f32 %v2120_v58 }
 0xe9c   :  { %v1816_v10 = vpop.permute.xlu1 %1815  ;;  %v1801_v62 = vpop.permute.xlu0 %1800 }
 0xe9d   :  { %v1976_v44 = vadd.f32 %v5874_v13, %v1816_v10  ;;  %v1961_v11 = vadd.f32 %v5872_v12, %v1801_v62  ;;  %v4660_v62 = vld [vmem:[%s5471_s8 + $0x28] sm:$0xff] }
 0xea2   :  { %v5244_v60 = vpop.eup %5243 }
 0xea3   :  { %v2127_v63 = vmul.f32 %v5244_v60, %v5240_v55  ;;  %v4666_v55 = vld [vmem:[%s5418_s25 + $0x38] sm:$0xff] }
 0xea5   :  { %5042 = vmatprep.subr.msk.mxu1 %vm421_vm1, %v2127_v63 }
 0xea6   :  { %v5246_v0 = vpop.eup %5245  ;;  %5043 = vmatpush3.xpose.msk.msra.mxu1 %vm421_vm1, %v2127_v63 }
 0xea7   :  { %v2126_v1 = vmul.f32 %v5246_v0, %v5242_v16  ;;  %v4673_v16 = vld [vmem:[%s5424_s29 + $0x30] sm:$0xff]  ;;  %s5287_s29 = smov 18  }
 0xea9   :  { %5044 = vmatprep.subr.msk.mxu1 %vm421_vm1, %v2126_v1 }
 0xeaa   :  { %5045 = vmatpush3.xpose.msk.msra.mxu1 %vm421_vm1, %v2126_v1  ;;  %v4659_v1 = vld [vmem:[%s5471_s8 + $0x20] sm:$0xff] }
 0xeab   :  { %5049 = vmatprep.subr.mxu1 %v1966_v39  ;;  %5071 = vmatprep.mubr.msk.f32.mxu0 %vm227_vm0, %v4659_v1 }
 0xead   :  { %5047 = vmatmul.mubr.msk.f32.vlgmr.msra.gmra.mxu1 %vm421_vm1, %v1976_v44  ;;  %v4662_v44 = vld [vmem:[%s5471_s8 + $0x38] sm:$0xff] }
 0xeae   :  { %5050 = vmatpush3.msra.mxu1 %v1966_v39 }
 0xeaf   :  { %5051 = vmatprep.subr.mxu1 %v1961_v11 }
 0xeb0   :  { %5052 = vmatpush3.msra.mxu1 %v1961_v11 }
 0xebb   :  { %v2231_v47 = vpop.trf.xlu0 }
 0xebc   :  { %5053 = vmatprep.mubr.msk.f32.mxu1 %vm421_vm1, %v2231_v47 }
 0xebf   :  { %v2232_v4 = vpop.trf.xlu0 }
 0xec0   :  { %5054 = vmatmul.mubr.msk.f32.vlgmr.msra.gmra.mxu1 %vm421_vm1, %v2232_v4 }
 0xf6d   :  { %v5910_v7 = vpop.f32.mrf.mxu1 }
 0xf6f   :  { %v5912_v8 = vpop.f32.mrf.mxu1 }
 0xf80   :  { %v5055_v9 = vpop.f32.mrf.mxu1 }
 0xf81   :  { %v2329_v12 = vmul.f32 0.25, %v5055_v9 }
 0xf82   :  { %v2319_v13 = vpop.f32.mrf.mxu1 }
 0xf83   :  { %v2331_v14 = vadd.f32 %v5881_v22, %v2329_v12  ;;  %v2328_v19 = vmul.f32 0.25, %v2319_v13 }
 0xf85   :  { %v2330_v20 = vadd.f32 %v5885_v25, %v2328_v19  ;;  %v2335_v21 = vsel %vm421_vm1, %v2331_v14, -inf }
 0xf86   :  { %2336 = vmax.xlane.f32.xlu1 %v2335_v21 }
 0xf87   :  { %v2332_v23 = vsel %vm421_vm1, %v2330_v20, -inf }
 0xf88   :  { %2333 = vmax.xlane.f32.xlu0 %v2332_v23 }
 0xf97   :  { %1820 = vperm.xlu1 %5218, %v4633_v24  }
 0xf9e   :  { %2463 = vperm.xlu0 %5217, %v4665_v26  }
 0xfa2   :  { %2660 = vperm.xlu0 %5217, %v4677_v27  }
 0xfa6   :  { %2655 = vperm.xlu0 %5217, %v4676_v28  }
0x100f   :  { %v2337_v29 = vpop.xlane.xlu1 %2336 }
0x1010   :  { %v2339_v32 = vsub.f32 %v2331_v14, %v2337_v29 }
0x1011   :  { %v2334_v22 = vpop.xlane.xlu0 %2333 }
0x1012   :  { %v2342_v33 = vmul.f32 1.442695, %v2339_v32  ;;  %v2338_v25 = vsub.f32 %v2330_v20, %v2334_v22 }
0x1013   :  { %v1821_v35 = vpop.permute.xlu1 %1820 }
0x1014   :  { %5247 = vpow2.f32 %v2342_v33  ;;  %v2340_v36 = vmul.f32 1.442695, %v2338_v25  ;;  %v1981_v37 = vadd.f32 %v5878_v18, %v1821_v35  ;;  %v4664_v18 = vld [vmem:[%s5418_s25 + $0x28] sm:$0xff]  ;;  %s6245_s25 = sld [smem:[%s6722_s0 + %s5286_s13]]   ;;  %s5293_s13 = smov 22  }
0x1016   :  { %5249 = vpow2.f32 %v2340_v36  ;;  %5060 = vmatprep.mubr.msk.f32.mxu1 %vm421_vm1, %v1981_v37 }
0x1019   :  { %v2464_v21 = vpop.permute.xlu0 %2463 }
0x1021   :  { %v5248_v42 = vpop.eup %5247 }
0x1022   :  { %v2347_v43 = vsel %vm421_vm1, %v5248_v42, 0.0 }
0x1023   :  { %v5250_v46 = vpop.eup %5249  ;;  %2348 = vadd.xlane.f32.xlu1 %v2347_v43 }
0x1024   :  { %v2344_v50 = vsel %vm421_vm1, %v5250_v46, 0.0 }
0x1027   :  { %2345 = vadd.xlane.f32.xlu1 %v2344_v50 }
0x1038   :  { %1825 = vperm.xlu1 %5218, %v4634_v52  }
0x103c   :  { %2453 = vperm.xlu1 %5218, %v4663_v53  }
0x1040   :  { %2458 = vperm.xlu1 %5218, %v4664_v18  }
0x1044   :  { %2468 = vperm.xlu1 %5218, %v4666_v55  }
0x1048   :  { %2641 = vperm.xlu1 %5218, %v4674_v56  }
0x104c   :  { %2636 = vperm.xlu1 %5218, %v4673_v16  }
0x1050   :  { %2665 = vperm.xlu1 %5218, %v4678_v40  }
0x1054   :  { %2631 = vperm.xlu1 %5218, %v4672_v34  }
0x1058   :  { %2626 = vperm.xlu1 %5218, %v4671_v38  }
0x105c   :  { %2650 = vperm.xlu1 %5218, %v4675_v45  }
0x10ac   :  { %v2349_v57 = vpop.xlane.xlu1 %2348 }
0x10ad   :  { %5251 = vrcp.f32 %v2349_v57 }
0x10b0   :  { %v2346_v51 = vpop.xlane.xlu1 %2345 }
0x10b1   :  { %5253 = vrcp.f32 %v2346_v51 }
0x10b4   :  { %v1826_v63 = vpop.permute.xlu1 %1825 }
0x10b5   :  { %v1986_v0 = vadd.f32 %v5876_v17, %v1826_v63  ;;  %v4661_v17 = vld [vmem:[%s5471_s8 + $0x30] sm:$0xff] }
0x10b8   :  { %v2454_v11 = vpop.permute.xlu1 %2453 }
0x10ba   :  { %v5252_v15 = vpop.eup %5251 }
0x10bb   :  { %v2353_v59 = vmul.f32 %v5252_v15, %v5248_v42 }
0x10bc   :  { %v2459_v47 = vpop.permute.xlu1 %2458 }
0x10bd   :  { %5056 = vmatprep.subr.msk.mxu1 %vm421_vm1, %v2353_v59 }
0x10be   :  { %v5254_v58 = vpop.eup %5253  ;;  %5057 = vmatpush3.xpose.msk.msra.mxu1 %vm421_vm1, %v2353_v59 }
0x10bf   :  { %v2352_v60 = vmul.f32 %v5254_v58, %v5250_v46 }
0x10c0   :  { %v2469_v13 = vpop.permute.xlu1 %2468 }
0x10c1   :  { %5058 = vmatprep.subr.msk.mxu1 %vm421_vm1, %v2352_v60 }
0x10c2   :  { %5059 = vmatpush3.xpose.msk.msra.mxu1 %vm421_vm1, %v2352_v60 }
0x10c4   :  { %v2642_v60 = vpop.permute.xlu1 %2641 }
0x10c5   :  { %5061 = vmatmul.mubr.msk.f32.vlgmr.msra.gmra.mxu1 %vm421_vm1, %v1986_v0 }
0x1185   :  { %v5062_v10 = vpop.f32.mrf.mxu1 }
0x1186   :  { %5063 = vmatprep.subr.mxu0 %v5062_v10 }
0x1187   :  { %v2432_v39 = vpop.f32.mrf.mxu1  ;;  %5064 = vmatpush3.msra.mxu0 %v5062_v10  ;;  %v2637_v10 = vpop.permute.xlu1 %2636 }
0x1188   :  { %5065 = vmatprep.subr.mxu0 %v2432_v39 }
0x1189   :  { %5066 = vmatpush3.msra.mxu0 %v2432_v39 }
0x118a   :  { %5067 = vmatprep.subr.mxu0 %v5910_v7 }
0x118b   :  { %5068 = vmatpush3.msra.mxu0 %v5910_v7 }
0x118c   :  { %5069 = vmatprep.subr.mxu0 %v5912_v8 }
0x118d   :  { %5070 = vmatpush3.msra.mxu0 %v5912_v8 }
0x118e   :  { %5072 = vmatmul.mubr.msk.f32.vlgmr.msra.gmra.mxu0 %vm227_vm0, %v4660_v62  ;;  %3129 = vmatprep.subr.mxu0 %v5281_v30 }
0x118f   :  { %5074 = vmatprep.mubr.msk.f32.mxu0 %vm227_vm0, %v4661_v17  ;;  %v2666_v17 = vpop.permute.xlu1 %2665 }
0x1192   :  { %5075 = vmatmul.mubr.msk.f32.gmra.mxu0 %vm227_vm0, %v4662_v44 }
0x1193   :  { %v2632_v44 = vpop.permute.xlu1 %2631 }
0x124e   :  { %v5073_v4 = vpop.f32.mrf.mxu0 }
0x124f   :  { %v2555_v9 = vadd.f32 %v5073_v4, %v2459_v47  ;;  %v2661_v47 = vpop.permute.xlu0 %2660  ;;  %v2627_v4 = vpop.permute.xlu1 %2626 }
0x1250   :  { %v2549_v7 = vpop.f32.mrf.mxu0 }
0x1251   :  { %v2550_v12 = vadd.f32 %v2549_v7, %v2454_v11  ;;  %v2569_v19 = vadd.f32 %v2555_v9, %v5831_v49 }
0x1252   :  { %v5076_v14 = vpop.f32.mrf.mxu0 }
0x1253   :  { %v2568_v8 = vadd.f32 %v2550_v12, %v5836_v54  ;;  %v2565_v20 = vadd.f32 %v5076_v14, %v2469_v13  ;;  %v2583_v27 = vsel %vm421_vm1, %v2569_v19, 0.0 }
0x1254   :  { %v2559_v23 = vpop.f32.mrf.mxu0 }
0x1255   :  { %v2582_v24 = vsel %vm421_vm1, %v2568_v8, 0.0  ;;  %v2560_v26 = vadd.f32 %v2559_v23, %v2464_v21  ;;  %v2571_v28 = vadd.f32 %v2565_v20, %v5822_v41 }
0x1256   :  { %v2584_v32 = vadd.f32 %v2583_v27, %v2582_v24  ;;  %v2656_v24 = vpop.permute.xlu0 %2655 }
0x1257   :  { %v2570_v29 = vadd.f32 %v2560_v26, %v5826_v48  ;;  %v2587_v49 = vsel %vm421_vm1, %v2571_v28, 0.0  ;;  %v2651_v26 = vpop.permute.xlu1 %2650 }
0x1259   :  { %v2585_v22 = vsel %vm421_vm1, %v2570_v29, 0.0 }
0x125a   :  { %v2586_v33 = vadd.f32 %v2585_v22, %v2584_v32 }
0x125c   :  { %v2588_v25 = vadd.f32 %v2587_v49, %v2586_v33 }
0x125e   :  { %v2589_v54 = vrot.slane %v2588_v25, 4 }
0x1260   :  { %v2590_v35 = vadd.f32 %v2589_v54, %v2588_v25 }
0x1262   :  { %v2591_v36 = vrot.slane %v2590_v35, 2 }
0x1264   :  { %v2592_v37 = vadd.f32 %v2591_v36, %v2590_v35 }
0x1266   :  { %v2593_v42 = vrot.slane %v2592_v37, 1 }
0x1268   :  { %v2594_v43 = vadd.f32 %v2593_v42, %v2592_v37 }
0x126a   :  { %v2595_v46 = vmul.f32 0.03125, %v2594_v43 }
0x126c   :  { %v2596_v50 = vsub.f32 %v2568_v8, %v2595_v46  ;;  %v2597_v52 = vsub.f32 %v2569_v19, %v2595_v46  ;;  %v2598_v53 = vsub.f32 %v2570_v29, %v2595_v46  ;;  %v2599_v41 = vsub.f32 %v2571_v28, %v2595_v46 }
0x126e   :  { %v2600_v18 = vmul.f32 %v2596_v50, %v2596_v50  ;;  %v2601_v48 = vmul.f32 %v2597_v52, %v2597_v52  ;;  %v2602_v55 = vmul.f32 %v2598_v53, %v2598_v53  ;;  %v2603_v56 = vmul.f32 %v2599_v41, %v2599_v41 }
0x1270   :  { %v2604_v16 = vsel %vm421_vm1, %v2600_v18, 0.0  ;;  %v2605_v40 = vsel %vm421_vm1, %v2601_v48, 0.0  ;;  %v2607_v38 = vsel %vm421_vm1, %v2602_v55, 0.0  ;;  %v2609_v57 = vsel %vm421_vm1, %v2603_v56, 0.0 }
0x1271   :  { %v2606_v34 = vadd.f32 %v2605_v40, %v2604_v16 }
0x1273   :  { %v2608_v45 = vadd.f32 %v2607_v38, %v2606_v34  ;;  %v4679_v38 = vld [vmem:[%s5559_s20 + $0x40] sm:$0xff] }
0x1274   :  { %5101 = vmatprep.mubr.msk.f32.mxu1 %vm1220_vm4, %v4679_v38 }
0x1275   :  { %v2610_v51 = vadd.f32 %v2609_v57, %v2608_v45  ;;  %v4693_v45 = vld [vmem:[%s5567_s26 + $0x70] sm:$0xff]  ;;  %v4694_v57 = vld [vmem:[%s5567_s26 + $0x78] sm:$0xff] }
0x1277   :  { %v2611_v15 = vrot.slane %v2610_v51, 4 }
0x1279   :  { %v2612_v59 = vadd.f32 %v2611_v15, %v2610_v51  ;;  %v4691_v51 = vld [vmem:[%s5567_s26 + $0x60] sm:$0xff]  ;;  %v4692_v15 = vld [vmem:[%s5567_s26 + $0x68] sm:$0xff] }
0x127b   :  { %v2613_v58 = vrot.slane %v2612_v59, 2 }
0x127d   :  { %v2614_v63 = vadd.f32 %v2613_v58, %v2612_v59  ;;  %v4689_v59 = vld [vmem:[%s5567_s26 + $0x50] sm:$0xff]  ;;  %v4690_v58 = vld [vmem:[%s5567_s26 + $0x58] sm:$0xff] }
0x127f   :  { %v2615_v0 = vrot.slane %v2614_v63, 1 }
0x1281   :  { %v2616_v1 = vadd.f32 %v2615_v0, %v2614_v63  ;;  %v4688_v63 = vld [vmem:[%s5567_s26 + $0x48] sm:$0xff] }
0x1283   :  { %v2617_v39 = vmul.f32 0.03125, %v2616_v1 }
0x1285   :  { %v2618_v62 = vadd.f32 0.0001, %v2617_v39 }
0x1287   :  { %5255 = vrsqrt.f32 %v2618_v62 }
0x1294   :  { %v5256_v11 = vpop.eup %5255 }
0x1295   :  { %v2622_v9 = vmul.f32 %v5256_v11, %v2598_v53  ;;  %v2623_v7 = vmul.f32 %v5256_v11, %v2599_v41  ;;  %v2620_v12 = vmul.f32 %v5256_v11, %v2596_v50  ;;  %v2621_v13 = vmul.f32 %v5256_v11, %v2597_v52 }
0x1297   :  { %v2646_v14 = vmul.f32 %v2637_v10, %v2622_v9  ;;  %v2647_v19 = vmul.f32 %v2642_v60, %v2623_v7  ;;  %v2644_v8 = vmul.f32 %v2627_v4, %v2620_v12  ;;  %v2645_v20 = vmul.f32 %v2632_v44, %v2621_v13  ;;  %v4687_v60 = vld [vmem:[%s5567_s26 + $0x40] sm:$0xff]  ;;  %v4680_v12 = vld [vmem:[%s5559_s20 + $0x48] sm:$0xff]  ;;  %v4681_v13 = vld [vmem:[%s5559_s20 + $0x50] sm:$0xff] }
0x1299   :  { %v5967_v21 = vadd.f32 %v2666_v17, %v2647_v19  ;;  %v5969_v23 = vadd.f32 %v2661_v47, %v2646_v14  ;;  %v5975_v29 = vadd.f32 %v2651_v26, %v2644_v8  ;;  %v5977_v32 = vadd.f32 %v2656_v24, %v2645_v20  ;;  %v4682_v14 = vld [vmem:[%s5559_s20 + $0x58] sm:$0xff]  ;;  %v4683_v19 = vld [vmem:[%s5559_s20 + $0x60] sm:$0xff]  ;;  %v4684_v8 = vld [vmem:[%s5559_s20 + $0x68] sm:$0xff] }
0x129a   :  { %v4685_v20 = vld [vmem:[%s5559_s20 + $0x70] sm:$0xff]  ;;  %v4686_v24 = vld [vmem:[%s5559_s20 + $0x78] sm:$0xff]  ;;  %s6282_s20 = sld [smem:[%s6722_s0 + %s5287_s29]]   ;;  %s5294_s29 = smov 24  }
0x129b   :  { %v2675_v27 = vmul.f32 %v5330_v5, %v5967_v21  ;;  %v2674_v28 = vmul.f32 %v5330_v5, %v5969_v23  ;;  %v2672_v22 = vmul.f32 %v5330_v5, %v5975_v29  ;;  %v2673_v33 = vmul.f32 %v5330_v5, %v5977_v32 }
0x129d   :  { %2704 = vrot.lane.b32.xlu0 %v2675_v27, %s5268_s6  ;;  %2702 = vrot.lane.b32.xlu1 %v2674_v28, %s5268_s6 }
0x12a1   :  { %2698 = vrot.lane.b32.xlu1 %v2672_v22, %s5268_s6  ;;  %2700 = vrot.lane.b32.xlu0 %v2673_v33, %s5268_s6 }
0x130f   :  { %v2703_v49 = vpop.permute.xlu1 %2702  ;;  %v2705_v25 = vpop.permute.xlu0 %2704 }
0x1310   :  { %v2712_v54 = vsel %vm1106_vm2, 0.0, %v2703_v49  ;;  %v2713_v35 = vsel %vm1106_vm2, 0.0, %v2705_v25 }
0x1311   :  { %v5990_v36 = vsel %vm1111_vm3, %v2712_v54, 0.0  ;;  %v5993_v37 = vsel %vm1111_vm3, %v2713_v35, 0.0 }
0x1312   :  { %v2728_v42 = vmul.f32 %v5990_v36, %v5536_v61  ;;  %v2729_v43 = vmul.f32 %v5993_v37, %v5536_v61  ;;  %v2724_v56 = vmul.f32 %v5990_v36, %v5554_v6  ;;  %v2725_v16 = vmul.f32 %v5993_v37, %v5554_v6 }
0x1313   :  { %v2699_v46 = vpop.permute.xlu1 %2698  ;;  %v2701_v50 = vpop.permute.xlu0 %2700  ;;  %v2721_v47 = vmul.f32 %v5993_v37, %v5595_v31  ;;  %v2720_v4 = vmul.f32 %v5990_v36, %v5595_v31 }
0x1314   :  { %v2710_v52 = vsel %vm1106_vm2, 0.0, %v2699_v46  ;;  %v2711_v53 = vsel %vm1106_vm2, 0.0, %v2701_v50  ;;  %2754 = vrot.lane.b32.xlu1 %v2728_v42, %s5277_s15  ;;  %2756 = vrot.lane.b32.xlu0 %v2729_v43, %s5277_s15 }
0x1315   :  { %v6004_v41 = vsel %vm1111_vm3, %v2710_v52, 0.0  ;;  %v2715_v18 = vsel %vm1111_vm3, %v2711_v53, 0.0 }
0x1316   :  { %v2726_v48 = vmul.f32 %v6004_v41, %v5536_v61  ;;  %v2727_v55 = vmul.f32 %v2715_v18, %v5536_v61  ;;  %v2722_v40 = vmul.f32 %v6004_v41, %v5554_v6  ;;  %v2723_v34 = vmul.f32 %v2715_v18, %v5554_v6 }
0x1317   :  { %v2719_v9 = vmul.f32 %v2715_v18, %v5595_v31  ;;  %v2718_v7 = vmul.f32 %v6004_v41, %v5595_v31 }
0x1318   :  { %2750 = vrot.lane.b32.xlu1 %v2726_v48, %s5277_s15  ;;  %2752 = vrot.lane.b32.xlu0 %v2727_v55, %s5277_s15 }
0x131c   :  { %2738 = vrot.lane.b32.xlu1 %v2724_v56, %s5280_s27  ;;  %2740 = vrot.lane.b32.xlu0 %v2725_v16, %s5280_s27 }
0x1320   :  { %2734 = vrot.lane.b32.xlu1 %v2722_v40, %s5280_s27  ;;  %2736 = vrot.lane.b32.xlu0 %v2723_v34, %s5280_s27 }
0x1324   :  { %2794 = vperm.xlu1 %5218, %v4693_v45   ;;  %2799 = vperm.xlu0 %5217, %v4694_v57  }
0x1328   :  { %2784 = vperm.xlu1 %5218, %v4691_v51   ;;  %2789 = vperm.xlu0 %5217, %v4692_v15  }
0x132c   :  { %2774 = vperm.xlu1 %5218, %v4689_v59   ;;  %2779 = vperm.xlu0 %5217, %v4690_v58  }
0x1330   :  { %2764 = vperm.xlu1 %5218, %v4687_v60   ;;  %2769 = vperm.xlu0 %5217, %v4688_v63  }
0x1386   :  { %v2755_v0 = vpop.permute.xlu1 %2754  ;;  %v2757_v1 = vpop.permute.xlu0 %2756 }
0x1387   :  { %5077 = vmatprep.subr.mxu1 %v2757_v1 }
0x1388   :  { %5078 = vmatpush3.msra.mxu1 %v2757_v1 }
0x1389   :  { %5079 = vmatprep.subr.mxu1 %v2755_v0 }
0x138a   :  { %v2751_v10 = vpop.permute.xlu1 %2750  ;;  %5080 = vmatpush3.msra.mxu1 %v2755_v0  ;;  %v2753_v39 = vpop.permute.xlu0 %2752 }
0x138b   :  { %5081 = vmatprep.subr.mxu1 %v2753_v39 }
0x138c   :  { %5082 = vmatpush3.msra.mxu1 %v2753_v39 }
0x138d   :  { %5083 = vmatprep.subr.mxu1 %v2751_v10 }
0x138e   :  { %v2739_v62 = vpop.permute.xlu1 %2738  ;;  %5084 = vmatpush3.msra.mxu1 %v2751_v10  ;;  %v2741_v17 = vpop.permute.xlu0 %2740 }
0x138f   :  { %5085 = vmatprep.subr.mxu1 %v2741_v17 }
0x1390   :  { %5086 = vmatpush3.msra.mxu1 %v2741_v17 }
0x1391   :  { %5087 = vmatprep.subr.mxu1 %v2739_v62 }
0x1392   :  { %5088 = vmatpush3.msra.mxu1 %v2739_v62  ;;  %v2737_v44 = vpop.permute.xlu0 %2736  ;;  %v2735_v11 = vpop.permute.xlu1 %2734 }
0x1393   :  { %5089 = vmatprep.subr.mxu1 %v2737_v44 }
0x1394   :  { %5090 = vmatpush3.msra.mxu1 %v2737_v44 }
0x1395   :  { %5091 = vmatprep.subr.mxu1 %v2735_v11 }
0x1396   :  { %5092 = vmatpush3.msra.mxu1 %v2735_v11 }
0x1397   :  { %5093 = vmatprep.subr.mxu1 %v2721_v47 }
0x1398   :  { %5094 = vmatpush3.msra.mxu1 %v2721_v47 }
0x1399   :  { %5095 = vmatprep.subr.mxu1 %v2720_v4 }
0x139a   :  { %5096 = vmatpush3.msra.mxu1 %v2720_v4 }
0x139b   :  { %5097 = vmatprep.subr.mxu1 %v2719_v9 }
0x139c   :  { %5098 = vmatpush3.msra.mxu1 %v2719_v9 }
0x139d   :  { %5099 = vmatprep.subr.mxu1 %v2718_v7 }
0x139e   :  { %5100 = vmatpush3.msra.mxu1 %v2718_v7 }
0x139f   :  { %5102 = vmatmul.mubr.msk.f32.vlgmr.msra.gmra.mxu1 %vm1220_vm4, %v4680_v12  ;;  %v2800_v27 = vpop.permute.xlu0 %2799  ;;  %v2795_v22 = vpop.permute.xlu1 %2794 }
0x13a0   :  { %5104 = vmatprep.mubr.msk.f32.mxu1 %vm1220_vm4, %v4681_v13 }
0x13a3   :  { %5105 = vmatmul.mubr.msk.f32.gmra.mxu1 %vm1220_vm4, %v4682_v14  ;;  %v2790_v25 = vpop.permute.xlu0 %2789  ;;  %v2785_v35 = vpop.permute.xlu1 %2784 }
0x13a4   :  { %5107 = vmatprep.mubr.msk.f32.mxu1 %vm1220_vm4, %v4683_v19 }
0x13a7   :  { %5108 = vmatmul.mubr.msk.f32.gmra.mxu1 %vm1220_vm4, %v4684_v8  ;;  %v2780_v46 = vpop.permute.xlu0 %2779  ;;  %v2775_v18 = vpop.permute.xlu1 %2774 }
0x13a8   :  { %5110 = vmatprep.mubr.msk.f32.mxu1 %vm1220_vm4, %v4685_v20 }
0x13ab   :  { %5111 = vmatmul.mubr.msk.f32.gmra.mxu1 %vm1220_vm4, %v4686_v24  ;;  %v2770_v45 = vpop.permute.xlu0 %2769  ;;  %v2765_v59 = vpop.permute.xlu1 %2764 }
0x145f   :  { %v5103_v26 = vpop.f32.mrf.mxu1 }
0x1460   :  { %v2898_v57 = vadd.f32 %v5103_v26, %v2770_v45 }
0x1461   :  { %v2892_v28 = vpop.f32.mrf.mxu1 }
0x1462   :  { %v2893_v58 = vadd.f32 %v2892_v28, %v2765_v59  ;;  %v2932_v0 = vmax.f32 %v2898_v57, 0.0  ;;  %v4711_v57 = vld [vmem:[%s5706_s2 + $0x20] sm:$0xff]  ;;  %v4713_v59 = vld [vmem:[%s5706_s2 + $0x30] sm:$0xff] }
0x1463   :  { %v5106_v33 = vpop.f32.mrf.mxu1 }
0x1464   :  { %v2908_v48 = vadd.f32 %v5106_v33, %v2780_v46  ;;  %v2931_v10 = vmax.f32 %v2893_v58, 0.0  ;;  %v2940_v62 = vmul.f32 %v5330_v5, %v2932_v0  ;;  %v4714_v58 = vld [vmem:[%s5706_s2 + $0x38] sm:$0xff] }
0x1465   :  { %v2902_v49 = vpop.f32.mrf.mxu1  ;;  %v4726_v0 = vld [vmem:[%s5738_s23 + $0x38] sm:$0xff] }
0x1466   :  { %v2903_v40 = vadd.f32 %v2902_v49, %v2775_v18  ;;  %v2934_v51 = vmax.f32 %v2908_v48, 0.0  ;;  %v2939_v17 = vmul.f32 %v5330_v5, %v2931_v10  ;;  %v4725_v10 = vld [vmem:[%s5738_s23 + $0x30] sm:$0xff] }
0x1467   :  { %v5109_v54 = vpop.f32.mrf.mxu1 }
0x1468   :  { %v2918_v42 = vadd.f32 %v5109_v54, %v2790_v25  ;;  %v2933_v60 = vmax.f32 %v2903_v40, 0.0  ;;  %v2942_v1 = vmul.f32 %v5330_v5, %v2934_v51  ;;  %v4712_v51 = vld [vmem:[%s5706_s2 + $0x28] sm:$0xff] }
0x1469   :  { %v2912_v36 = vpop.f32.mrf.mxu1 }
0x146a   :  { %v2913_v52 = vadd.f32 %v2912_v36, %v2785_v35  ;;  %v2936_v55 = vmax.f32 %v2918_v42, 0.0  ;;  %v2941_v39 = vmul.f32 %v5330_v5, %v2933_v60  ;;  %v4722_v60 = vld [vmem:[%s5729_s16 + $0x38] sm:$0xff] }
0x146b   :  { %v5112_v37 = vpop.f32.mrf.mxu1 }
0x146c   :  { %v2928_v43 = vadd.f32 %v5112_v37, %v2800_v27  ;;  %v2935_v34 = vmax.f32 %v2913_v52, 0.0  ;;  %v2944_v15 = vmul.f32 %v5330_v5, %v2936_v55 }
0x146d   :  { %v2922_v50 = vpop.f32.mrf.mxu1 }
0x146e   :  { %v2938_v53 = vmax.f32 %v2928_v43, 0.0  ;;  %v2923_v41 = vadd.f32 %v2922_v50, %v2795_v22  ;;  %v2943_v63 = vmul.f32 %v5330_v5, %v2935_v34 }
0x1470   :  { %v2946_v56 = vmul.f32 %v5330_v5, %v2938_v53  ;;  %v2937_v16 = vmax.f32 %v2923_v41, 0.0 }
0x1472   :  { %v2945_v38 = vmul.f32 %v5330_v5, %v2937_v16  ;;  %2983 = vrot.lane.b32.xlu0 %v2946_v56, %s5268_s6 }
0x1474   :  { %2981 = vrot.lane.b32.xlu1 %v2945_v38, %s5268_s6 }
0x1476   :  { %2979 = vrot.lane.b32.xlu0 %v2944_v15, %s5268_s6  ;;  %v4704_v15 = vld [vmem:[%s5720_s10 + $0x48] sm:$0xff] }
0x1477   :  { %4715 = vmatprep.mubr.msk.f32.mxu0 %vm1534_vm5, %v4704_v15 }
0x1478   :  { %2977 = vrot.lane.b32.xlu1 %v2943_v63, %s5268_s6  ;;  %v4721_v63 = vld [vmem:[%s5729_s16 + $0x30] sm:$0xff] }
0x147a   :  { %2975 = vrot.lane.b32.xlu0 %v2942_v1, %s5268_s6  ;;  %v4720_v1 = vld [vmem:[%s5729_s16 + $0x28] sm:$0xff] }
0x147c   :  { %2973 = vrot.lane.b32.xlu1 %v2941_v39, %s5268_s6  ;;  %v4719_v39 = vld [vmem:[%s5729_s16 + $0x20] sm:$0xff] }
0x147e   :  { %2971 = vrot.lane.b32.xlu0 %v2940_v62, %s5268_s6  ;;  %v4724_v62 = vld [vmem:[%s5738_s23 + $0x28] sm:$0xff] }
0x1480   :  { %2969 = vrot.lane.b32.xlu1 %v2939_v17, %s5268_s6  ;;  %v4723_v17 = vld [vmem:[%s5738_s23 + $0x20] sm:$0xff] }
0x14e4   :  { %v2984_v44 = vpop.permute.xlu0 %2983 }
0x14e5   :  { %v3000_v11 = vsel %vm1106_vm2, 0.0, %v2984_v44 }
0x14e6   :  { %v6072_v47 = vsel %vm1111_vm3, %v3000_v11, 0.0  ;;  %v2982_v4 = vpop.permute.xlu1 %2981 }
0x14e7   :  { %v3024_v9 = vmul.f32 %v6072_v47, %v5554_v6  ;;  %v2999_v7 = vsel %vm1106_vm2, 0.0, %v2982_v4  ;;  %v3032_v48 = vmul.f32 %v6072_v47, %v5536_v61 }
0x14e8   :  { %v6078_v12 = vsel %vm1111_vm3, %v2999_v7, 0.0  ;;  %v2980_v13 = vpop.permute.xlu0 %2979 }
0x14e9   :  { %v3023_v14 = vmul.f32 %v6078_v12, %v5554_v6  ;;  %v2998_v19 = vsel %vm1106_vm2, 0.0, %v2980_v13  ;;  %3055 = vrot.lane.b32.xlu0 %v3024_v9, %s5280_s27  ;;  %v3031_v55 = vmul.f32 %v6078_v12, %v5536_v61 }
0x14ea   :  { %v6085_v8 = vsel %vm1111_vm3, %v2998_v19, 0.0  ;;  %v2978_v20 = vpop.permute.xlu1 %2977 }
0x14eb   :  { %v3022_v24 = vmul.f32 %v6085_v8, %v5554_v6  ;;  %v2997_v26 = vsel %vm1106_vm2, 0.0, %v2978_v20  ;;  %3053 = vrot.lane.b32.xlu1 %v3023_v14, %s5280_s27  ;;  %v3030_v56 = vmul.f32 %v6085_v8, %v5536_v61  ;;  %v3016_v20 = vmul.f32 %v6072_v47, %v5595_v31 }
0x14ec   :  { %v6092_v27 = vsel %vm1111_vm3, %v2997_v26, 0.0  ;;  %v2976_v28 = vpop.permute.xlu0 %2975  ;;  %v3014_v26 = vmul.f32 %v6085_v8, %v5595_v31 }
0x14ed   :  { %v3021_v22 = vmul.f32 %v6092_v27, %v5554_v6  ;;  %v2996_v33 = vsel %vm1106_vm2, 0.0, %v2976_v28  ;;  %3051 = vrot.lane.b32.xlu0 %v3022_v24, %s5280_s27  ;;  %v3029_v16 = vmul.f32 %v6092_v27, %v5536_v61  ;;  %v3015_v24 = vmul.f32 %v6078_v12, %v5595_v31 }
0x14ee   :  { %v6099_v49 = vsel %vm1111_vm3, %v2996_v33, 0.0  ;;  %v2974_v25 = vpop.permute.xlu1 %2973  ;;  %v3013_v28 = vmul.f32 %v6092_v27, %v5595_v31 }
0x14ef   :  { %v3020_v54 = vmul.f32 %v6099_v49, %v5554_v6  ;;  %v2995_v35 = vsel %vm1106_vm2, 0.0, %v2974_v25  ;;  %3049 = vrot.lane.b32.xlu1 %v3021_v22, %s5280_s27  ;;  %v3028_v40 = vmul.f32 %v6099_v49, %v5536_v61  ;;  %v3012_v47 = vmul.f32 %v6099_v49, %v5595_v31 }
0x14f0   :  { %v6106_v36 = vsel %vm1111_vm3, %v2995_v35, 0.0  ;;  %v2972_v37 = vpop.permute.xlu0 %2971 }
0x14f1   :  { %v3019_v42 = vmul.f32 %v6106_v36, %v5554_v6  ;;  %v2994_v43 = vsel %vm1106_vm2, 0.0, %v2972_v37  ;;  %3047 = vrot.lane.b32.xlu0 %v3020_v54, %s5280_s27  ;;  %v3027_v34 = vmul.f32 %v6106_v36, %v5536_v61  ;;  %v3011_v12 = vmul.f32 %v6106_v36, %v5595_v31  ;;  %v4703_v37 = vld [vmem:[%s5720_s10 + $0x40] sm:$0xff] }
0x14f2   :  { %v6113_v46 = vsel %vm1111_vm3, %v2994_v43, 0.0  ;;  %v2970_v50 = vpop.permute.xlu1 %2969  ;;  %v4706_v43 = vld [vmem:[%s5720_s10 + $0x58] sm:$0xff] }
0x14f3   :  { %v3018_v52 = vmul.f32 %v6113_v46, %v5554_v6  ;;  %v2993_v53 = vsel %vm1106_vm2, 0.0, %v2970_v50  ;;  %3045 = vrot.lane.b32.xlu1 %v3019_v42, %s5280_s27  ;;  %v3026_v38 = vmul.f32 %v6113_v46, %v5536_v61  ;;  %v3010_v22 = vmul.f32 %v6113_v46, %v5595_v31  ;;  %v4705_v46 = vld [vmem:[%s5720_s10 + $0x50] sm:$0xff]  ;;  %v4708_v50 = vld [vmem:[%s5720_s10 + $0x68] sm:$0xff] }
0x14f4   :  { %v6120_v41 = vsel %vm1111_vm3, %v2993_v53, 0.0  ;;  %v4710_v53 = vld [vmem:[%s5720_s10 + $0x78] sm:$0xff] }
0x14f5   :  { %v3017_v18 = vmul.f32 %v6120_v41, %v5554_v6  ;;  %3043 = vrot.lane.b32.xlu0 %v3018_v52, %s5280_s27  ;;  %v3025_v45 = vmul.f32 %v6120_v41, %v5536_v61  ;;  %v3009_v33 = vmul.f32 %v6120_v41, %v5595_v31  ;;  %v4707_v52 = vld [vmem:[%s5720_s10 + $0x60] sm:$0xff]  ;;  %v4709_v41 = vld [vmem:[%s5720_s10 + $0x70] sm:$0xff] }
0x14f7   :  { %3041 = vrot.lane.b32.xlu1 %v3017_v18, %s5280_s27 }
0x14f9   :  { %3087 = vrot.lane.b32.xlu0 %v3032_v48, %s5277_s15 }
0x14fb   :  { %3085 = vrot.lane.b32.xlu1 %v3031_v55, %s5277_s15 }
0x14fd   :  { %3083 = vrot.lane.b32.xlu0 %v3030_v56, %s5277_s15 }
0x14ff   :  { %3081 = vrot.lane.b32.xlu1 %v3029_v16, %s5277_s15 }
0x1501   :  { %3079 = vrot.lane.b32.xlu0 %v3028_v40, %s5277_s15 }
0x1503   :  { %3077 = vrot.lane.b32.xlu1 %v3027_v34, %s5277_s15 }
0x1505   :  { %3075 = vrot.lane.b32.xlu0 %v3026_v38, %s5277_s15 }
0x1507   :  { %3073 = vrot.lane.b32.xlu1 %v3025_v45, %s5277_s15 }
0x1509   :  { %3099 = vperm.xlu0 %5217, %v4711_v57  }
0x150b   :  { %3104 = vperm.xlu1 %5218, %v4712_v51  }
0x150d   :  { %3109 = vperm.xlu0 %5217, %v4713_v59  }
0x150f   :  { %3114 = vperm.xlu1 %5218, %v4714_v58  }
0x1511   :  { %3291 = vperm.xlu0 %5217, %v4722_v60  }
0x1513   :  { %3286 = vperm.xlu1 %5218, %v4721_v63  }
0x1515   :  { %3315 = vperm.xlu0 %5217, %v4726_v0  }
0x1517   :  { %3281 = vperm.xlu1 %5218, %v4720_v1  }
0x1519   :  { %3310 = vperm.xlu0 %5217, %v4725_v10  }
0x151b   :  { %3276 = vperm.xlu1 %5218, %v4719_v39  }
0x151d   :  { %3305 = vperm.xlu0 %5217, %v4724_v62  }
0x151f   :  { %3300 = vperm.xlu1 %5218, %v4723_v17  }
0x155b   :  { %v3056_v44 = vpop.permute.xlu0 %3055 }
0x155c   :  { %3130 = vmatpush1.msra.mxu0 %v3056_v44 }
0x155d   :  { %v3054_v11 = vpop.permute.xlu1 %3053  ;;  %3131 = vmatprep.subr.mxu0 %v5281_v30 }
0x155e   :  { %3132 = vmatpush1.msra.mxu0 %v3054_v11 }
0x155f   :  { %3133 = vmatprep.subr.mxu0 %v5281_v30  ;;  %v3052_v4 = vpop.permute.xlu0 %3051 }
0x1560   :  { %3134 = vmatpush1.msra.mxu0 %v3052_v4 }
0x1561   :  { %v3050_v9 = vpop.permute.xlu1 %3049  ;;  %3135 = vmatprep.subr.mxu0 %v5281_v30 }
0x1562   :  { %3136 = vmatpush1.msra.mxu0 %v3050_v9 }
0x1563   :  { %3137 = vmatprep.subr.mxu0 %v5281_v30  ;;  %v3048_v7 = vpop.permute.xlu0 %3047 }
0x1564   :  { %3138 = vmatpush1.msra.mxu0 %v3048_v7 }
0x1565   :  { %v3046_v13 = vpop.permute.xlu1 %3045  ;;  %3139 = vmatprep.subr.mxu0 %v5281_v30 }
0x1566   :  { %3140 = vmatpush1.msra.mxu0 %v3046_v13 }
0x1567   :  { %3141 = vmatprep.subr.mxu0 %v5281_v30  ;;  %v3044_v14 = vpop.permute.xlu0 %3043 }
0x1568   :  { %3142 = vmatpush1.msra.mxu0 %v3044_v14 }
0x1569   :  { %v3042_v19 = vpop.permute.xlu1 %3041  ;;  %3143 = vmatprep.subr.mxu0 %v5281_v30 }
0x156a   :  { %3144 = vmatpush1.msra.mxu0 %v3042_v19 }
0x156b   :  { %3145 = vmatprep.subr.mxu0 %v5281_v30  ;;  %v3088_v8 = vpop.permute.xlu0 %3087 }
0x156c   :  { %3146 = vmatpush1.msra.mxu0 %v3016_v20 }
0x156d   :  { %3147 = vmatprep.subr.mxu0 %v5281_v30  ;;  %v3086_v27 = vpop.permute.xlu1 %3085 }
0x156e   :  { %3148 = vmatpush1.msra.mxu0 %v3015_v24 }
0x156f   :  { %3149 = vmatprep.subr.mxu0 %v5281_v30  ;;  %v3084_v49 = vpop.permute.xlu0 %3083 }
0x1570   :  { %3150 = vmatpush1.msra.mxu0 %v3014_v26 }
0x1571   :  { %3151 = vmatprep.subr.mxu0 %v5281_v30  ;;  %v3082_v25 = vpop.permute.xlu1 %3081 }
0x1572   :  { %3152 = vmatpush1.msra.mxu0 %v3013_v28 }
0x1573   :  { %3153 = vmatprep.subr.mxu0 %v5281_v30  ;;  %v3080_v54 = vpop.permute.xlu0 %3079 }
0x1574   :  { %3154 = vmatpush1.msra.mxu0 %v3012_v47 }
0x1575   :  { %3155 = vmatprep.subr.mxu0 %v5281_v30  ;;  %v3078_v35 = vpop.permute.xlu1 %3077 }
0x1576   :  { %3156 = vmatpush1.msra.mxu0 %v3011_v12 }
0x1577   :  { %3157 = vmatprep.subr.mxu0 %v5281_v30  ;;  %v3076_v36 = vpop.permute.xlu0 %3075 }
0x1578   :  { %3158 = vmatpush1.msra.mxu0 %v3010_v22 }
0x1579   :  { %3159 = vmatprep.subr.mxu0 %v5281_v30  ;;  %v3074_v42 = vpop.permute.xlu1 %3073 }
0x157a   :  { %3160 = vmatpush1.msra.mxu0 %v3009_v33 }
0x157b   :  { %3177 = vmatprep.subr.mxu0 %v5281_v30 }
0x157c   :  { %3178 = vmatpush2.msra.mxu0 %v3088_v8 }
0x157d   :  { %3179 = vmatprep.subr.mxu0 %v5281_v30 }
0x157e   :  { %3180 = vmatpush2.msra.mxu0 %v3086_v27 }
0x157f   :  { %3181 = vmatprep.subr.mxu0 %v5281_v30 }
0x1580   :  { %3182 = vmatpush2.msra.mxu0 %v3084_v49 }
0x1581   :  { %3183 = vmatprep.subr.mxu0 %v5281_v30 }
0x1582   :  { %3184 = vmatpush2.msra.mxu0 %v3082_v25 }
0x1583   :  { %3185 = vmatprep.subr.mxu0 %v5281_v30 }
0x1584   :  { %3186 = vmatpush2.msra.mxu0 %v3080_v54  ;;  %v3100_v48 = vpop.permute.xlu0 %3099 }
0x1585   :  { %3187 = vmatprep.subr.mxu0 %v5281_v30 }
0x1586   :  { %3188 = vmatpush2.msra.mxu0 %v3078_v35  ;;  %v3105_v16 = vpop.permute.xlu1 %3104 }
0x1587   :  { %3189 = vmatprep.subr.mxu0 %v5281_v30 }
0x1588   :  { %3190 = vmatpush2.msra.mxu0 %v3076_v36  ;;  %v3110_v51 = vpop.permute.xlu0 %3109 }
0x1589   :  { %3191 = vmatprep.subr.mxu0 %v5281_v30 }
0x158a   :  { %3192 = vmatpush2.msra.mxu0 %v3074_v42  ;;  %v3115_v1 = vpop.permute.xlu1 %3114 }
0x158b   :  { %3194 = vmatmul.mubr.f32.vlgmr.msra.gmra.mxu0 %v4703_v37  ;;  %4139 = vmatprep.subr.mxu0 %v5281_v30 }
0x158c   :  { %4716 = vmatprep.mubr.msk.f32.mxu0 %vm1534_vm5, %v4706_v43 }
0x158f   :  { %3199 = vmatmul.mubr.f32.gmra.mxu0 %v4705_v46 }
0x1590   :  { %4717 = vmatprep.mubr.msk.f32.mxu0 %vm1534_vm5, %v4708_v50 }
0x1593   :  { %3204 = vmatmul.mubr.f32.gmra.mxu0 %v4707_v52 }
0x1594   :  { %4718 = vmatprep.mubr.msk.f32.mxu0 %vm1534_vm5, %v4710_v53 }
0x1597   :  { %3209 = vmatmul.mubr.f32.gmra.mxu0 %v4709_v41 }
0x164b   :  { %v3195_v18 = vpop.f32.mrf.mxu0 }
0x164c   :  { %v3196_v56 = vadd.f32 %v3195_v18, %v3100_v48 }
0x164d   :  { %v3197_v55 = vpop.f32.mrf.mxu0 }
0x164e   :  { %v3214_v45 = vmul.f32 %v5330_v5, %v3196_v56 }
0x164f   :  { %v3200_v40 = vpop.f32.mrf.mxu0 }
0x1650   :  { %v3201_v34 = vadd.f32 %v3200_v40, %v3105_v16  ;;  %v3218_v63 = vadd.f32 %v3214_v45, %v5975_v29  ;;  %v3287_v16 = vpop.permute.xlu1 %3286  ;;  %v3292_v40 = vpop.permute.xlu0 %3291 }
0x1651   :  { %v3202_v38 = vpop.f32.mrf.mxu0 }
0x1652   :  { %v3215_v57 = vmul.f32 %v5330_v5, %v3201_v34  ;;  %v3232_v11 = vsel %vm421_vm1, %v3218_v63, 0.0 }
0x1653   :  { %v3205_v15 = vpop.f32.mrf.mxu0 }
0x1654   :  { %v3219_v59 = vadd.f32 %v3215_v57, %v5977_v32  ;;  %v3206_v58 = vadd.f32 %v3205_v15, %v3110_v51  ;;  %v3282_v34 = vpop.permute.xlu1 %3281  ;;  %v3316_v38 = vpop.permute.xlu0 %3315 }
0x1655   :  { %v3207_v60 = vpop.f32.mrf.mxu0 }
0x1656   :  { %v3216_v0 = vmul.f32 %v5330_v5, %v3206_v58  ;;  %v3233_v39 = vsel %vm421_vm1, %v3219_v59, 0.0 }
0x1657   :  { %v3210_v10 = vpop.f32.mrf.mxu0  ;;  %v3234_v9 = vadd.f32 %v3233_v39, %v3232_v11 }
0x1658   :  { %v3220_v62 = vadd.f32 %v3216_v0, %v5969_v23  ;;  %v3211_v17 = vadd.f32 %v3210_v10, %v3115_v1  ;;  %v3277_v45 = vpop.permute.xlu1 %3276  ;;  %v3311_v57 = vpop.permute.xlu0 %3310 }
0x1659   :  { %v3212_v44 = vpop.f32.mrf.mxu0 }
0x165a   :  { %v3235_v4 = vsel %vm421_vm1, %v3220_v62, 0.0  ;;  %v3217_v32 = vmul.f32 %v5330_v5, %v3211_v17 }
0x165b   :  { %v3236_v29 = vadd.f32 %v3235_v4, %v3234_v9 }
0x165c   :  { %v3221_v7 = vadd.f32 %v3217_v32, %v5967_v21  ;;  %v3301_v39 = vpop.permute.xlu1 %3300 }
0x165e   :  { %v3237_v13 = vsel %vm421_vm1, %v3221_v7, 0.0 }
0x165f   :  { %v3238_v14 = vadd.f32 %v3237_v13, %v3236_v29 }
0x1661   :  { %v3239_v19 = vrot.slane %v3238_v14, 4 }
0x1663   :  { %v3240_v20 = vadd.f32 %v3239_v19, %v3238_v14 }
0x1665   :  { %v3241_v24 = vrot.slane %v3240_v20, 2 }
0x1667   :  { %v3242_v26 = vadd.f32 %v3241_v24, %v3240_v20  ;;  %v3326_v24 = vld [vmem:[%s6245_s25] sm:$0xff] }
0x1668   :  { %5121 = vmatprep.mubr.msk.f32.mxu1 %vm227_vm0, %v3326_v24 }
0x1669   :  { %v3243_v23 = vrot.slane %v3242_v26, 1 }
0x166b   :  { %v3244_v28 = vadd.f32 %v3243_v23, %v3242_v26  ;;  %v3327_v26 = vld [vmem:[%s6245_s25 + $0x8] sm:$0xff] }
0x166d   :  { %v3245_v47 = vmul.f32 0.03125, %v3244_v28 }
0x166f   :  { %v3246_v12 = vsub.f32 %v3218_v63, %v3245_v47  ;;  %v3247_v8 = vsub.f32 %v3219_v59, %v3245_v47  ;;  %v3248_v22 = vsub.f32 %v3220_v62, %v3245_v47  ;;  %v3249_v27 = vsub.f32 %v3221_v7, %v3245_v47  ;;  %v3306_v62 = vpop.permute.xlu0 %3305 }
0x1671   :  { %v3250_v33 = vmul.f32 %v3246_v12, %v3246_v12  ;;  %v3251_v49 = vmul.f32 %v3247_v8, %v3247_v8  ;;  %v3252_v25 = vmul.f32 %v3248_v22, %v3248_v22  ;;  %v3253_v54 = vmul.f32 %v3249_v27, %v3249_v27 }
0x1673   :  { %v3254_v21 = vsel %vm421_vm1, %v3250_v33, 0.0  ;;  %v3255_v35 = vsel %vm421_vm1, %v3251_v49, 0.0  ;;  %v3257_v37 = vsel %vm421_vm1, %v3252_v25, 0.0  ;;  %v3259_v43 = vsel %vm421_vm1, %v3253_v54, 0.0 }
0x1674   :  { %v3256_v36 = vadd.f32 %v3255_v35, %v3254_v21 }
0x1676   :  { %v3258_v42 = vadd.f32 %v3257_v37, %v3256_v36 }
0x1678   :  { %v3260_v46 = vadd.f32 %v3259_v43, %v3258_v42  ;;  %v3328_v43 = vld [vmem:[%s6245_s25 + $0x10] sm:$0xff] }
0x167a   :  { %v3261_v50 = vrot.slane %v3260_v46, 4 }
0x167c   :  { %v3262_v52 = vadd.f32 %v3261_v50, %v3260_v46  ;;  %v3329_v46 = vld [vmem:[%s6245_s25 + $0x18] sm:$0xff]  ;;  %s6492_s25 = sld [smem:[%s6722_s0 + %s5293_s13]]  }
0x167e   :  { %v3263_v53 = vrot.slane %v3262_v52, 2 }
0x1680   :  { %v3264_v41 = vadd.f32 %v3263_v53, %v3262_v52 }
0x1682   :  { %v3265_v18 = vrot.slane %v3264_v41, 1 }
0x1684   :  { %v3266_v48 = vadd.f32 %v3265_v18, %v3264_v41  ;;  %v3463_v41 = vld [vmem:[%s6282_s20] sm:$0xff] }
0x1686   :  { %v3267_v55 = vmul.f32 0.03125, %v3266_v48  ;;  %v3472_v48 = vld [vmem:[%s4559_s30 + $0x8] sm:$0xff] }
0x1688   :  { %v3268_v56 = vadd.f32 0.0001, %v3267_v55  ;;  %v3471_v55 = vld [vmem:[%s4559_s30] sm:$0xff] }
0x168a   :  { %5257 = vrsqrt.f32 %v3268_v56  ;;  %v3474_v56 = vld [vmem:[%s4559_s30 + $0x18] sm:$0xff] }
0x1697   :  { %v5258_v51 = vpop.eup %5257 }
0x1698   :  { %v3273_v15 = vmul.f32 %v5258_v51, %v3249_v27  ;;  %v3272_v59 = vmul.f32 %v5258_v51, %v3248_v22  ;;  %v3271_v58 = vmul.f32 %v5258_v51, %v3247_v8  ;;  %v3270_v60 = vmul.f32 %v5258_v51, %v3246_v12  ;;  %v3731_v51 = vld [vmem:[%s6308_s5 + $0x38] sm:$0xff] }
0x169a   :  { %v3297_v63 = vmul.f32 %v3292_v40, %v3273_v15  ;;  %v3296_v0 = vmul.f32 %v3287_v16, %v3272_v59  ;;  %v3295_v1 = vmul.f32 %v3282_v34, %v3271_v58  ;;  %v3294_v10 = vmul.f32 %v3277_v45, %v3270_v60  ;;  %v3473_v16 = vld [vmem:[%s4559_s30 + $0x10] sm:$0xff]  ;;  %v3476_v40 = vld [vmem:[%s4559_s30 + $0x28] sm:$0xff]  ;;  %v3475_v34 = vld [vmem:[%s4559_s30 + $0x20] sm:$0xff] }
0x169b   :  { %v3477_v45 = vld [vmem:[%s4559_s30 + $0x30] sm:$0xff]  ;;  %v3729_v15 = vld [vmem:[%s6308_s5 + $0x28] sm:$0xff]  ;;  %v3739_v59 = vld [vmem:[%s6313_s12 + $0x38] sm:$0xff] }
0x169c   :  { %v3321_v17 = vadd.f32 %v3316_v38, %v3297_v63  ;;  %v3320_v44 = vadd.f32 %v3311_v57, %v3296_v0  ;;  %v3318_v11 = vadd.f32 %v3301_v39, %v3294_v10  ;;  %v3319_v4 = vadd.f32 %v3306_v62, %v3295_v1  ;;  %v3478_v38 = vld [vmem:[%s4559_s30 + $0x38] sm:$0xff]  ;;  %v3730_v57 = vld [vmem:[%s6308_s5 + $0x30] sm:$0xff]  ;;  %v3728_v58 = vld [vmem:[%s6308_s5 + $0x20] sm:$0xff]  ;;  %s5296_s30 = smov 17  }
0x169d   :  { %v3738_v60 = vld [vmem:[%s6313_s12 + $0x30] sm:$0xff]  ;;  %v3727_v63 = vld [vmem:[%s6308_s5 + $0x18] sm:$0xff]  ;;  %v3737_v0 = vld [vmem:[%s6313_s12 + $0x28] sm:$0xff]  ;;  %s4557_s4 = sld [smem:[%s6722_s0 + %s5296_s30]]  }
0x169e   :  { %v3325_v32 = vmul.f32 %v5330_v5, %v3321_v17  ;;  %v3324_v9 = vmul.f32 %v5330_v5, %v3320_v44  ;;  %v3322_v13 = vmul.f32 %v5330_v5, %v3318_v11  ;;  %v3323_v14 = vmul.f32 %v5330_v5, %v3319_v4  ;;  %v3726_v1 = vld [vmem:[%s6308_s5 + $0x10] sm:$0xff]  ;;  %v3736_v10 = vld [vmem:[%s6313_s12 + $0x20] sm:$0xff]  ;;  %v3725_v39 = vld [vmem:[%s6308_s5 + $0x8] sm:$0xff] }
0x169f   :  { %v3735_v62 = vld [vmem:[%s6313_s12 + $0x18] sm:$0xff]  ;;  %v3724_v17 = vld [vmem:[%s6308_s5] sm:$0xff]  ;;  %v3734_v44 = vld [vmem:[%s6313_s12 + $0x10] sm:$0xff]  ;;  %s5297_s5 = smov 28  }
0x16a0   :  { %5113 = vmatprep.subr.mxu1 %v3325_v32  ;;  %v3462_v7 = vmul.f32 %v5330_v5, %v3325_v32  ;;  %v3461_v29 = vmul.f32 %v5330_v5, %v3324_v9  ;;  %v3459_v19 = vmul.f32 %v5330_v5, %v3322_v13  ;;  %v3460_v20 = vmul.f32 %v5330_v5, %v3323_v14  ;;  %v3732_v11 = vld [vmem:[%s6313_s12] sm:$0xff]  ;;  %v3733_v4 = vld [vmem:[%s6313_s12 + $0x8] sm:$0xff]  ;;  %s4568_s11 = sld [smem:[%s6722_s0 + %s5297_s5]]   ;;  %s5298_s12 = smov 29  }
0x16a1   :  { %5114 = vmatpush3.msra.mxu1 %v3325_v32  ;;  %s4569_s18 = sld [smem:[%s6722_s0 + %s5298_s12]]  }
0x16a2   :  { %3489 = vrot.lane.b32.xlu0 %v3462_v7, %s5268_s6  ;;  %3487 = vrot.lane.b32.xlu1 %v3461_v29, %s5268_s6 }
0x16a3   :  { %5115 = vmatprep.subr.mxu1 %v3324_v9 }
0x16a4   :  { %5116 = vmatpush3.msra.mxu1 %v3324_v9 }
0x16a5   :  { %5117 = vmatprep.subr.mxu1 %v3323_v14 }
0x16a6   :  { %5118 = vmatpush3.msra.mxu1 %v3323_v14  ;;  %3483 = vrot.lane.b32.xlu1 %v3459_v19, %s5268_s6 }
0x16a7   :  { %3485 = vrot.lane.b32.xlu0 %v3460_v20, %s5268_s6  ;;  %5119 = vmatprep.subr.mxu1 %v3322_v13 }
0x16a8   :  { %5120 = vmatpush3.msra.mxu1 %v3322_v13 }
0x16a9   :  { %5122 = vmatmul.mubr.msk.f32.vlgmr.msra.gmra.mxu1 %vm227_vm0, %v3327_v26 }
0x16aa   :  { %5124 = vmatprep.mubr.msk.f32.mxu1 %vm227_vm0, %v3328_v43 }
0x16ad   :  { %5125 = vmatmul.mubr.msk.f32.gmra.mxu1 %vm227_vm0, %v3329_v46 }
0x16ae   :  { %5151 = vmatprep.mubr.msk.f32.mxu1 %vm1220_vm4, %v3463_v41 }
0x1714   :  { %v3488_v23 = vpop.permute.xlu1 %3487  ;;  %v3490_v28 = vpop.permute.xlu0 %3489 }
0x1715   :  { %v3497_v47 = vsel %vm1106_vm2, 0.0, %v3488_v23  ;;  %v3498_v12 = vsel %vm1106_vm2, 0.0, %v3490_v28 }
0x1716   :  { %v6254_v8 = vsel %vm1111_vm3, %v3497_v47, 0.0  ;;  %v6257_v22 = vsel %vm1111_vm3, %v3498_v12, 0.0  ;;  %v3464_v47 = vld [vmem:[%s6282_s20 + $0x8] sm:$0xff]  ;;  %v3465_v12 = vld [vmem:[%s6282_s20 + $0x10] sm:$0xff] }
0x1717   :  { %v3513_v27 = vmul.f32 %v6254_v8, %v5536_v61  ;;  %v3514_v33 = vmul.f32 %v6257_v22, %v5536_v61  ;;  %v3509_v50 = vmul.f32 %v6254_v8, %v5554_v6  ;;  %v3510_v52 = vmul.f32 %v6257_v22, %v5554_v6 }
0x1718   :  { %v3484_v49 = vpop.permute.xlu1 %3483  ;;  %v3506_v24 = vmul.f32 %v6257_v22, %v5595_v31  ;;  %v3505_v26 = vmul.f32 %v6254_v8, %v5595_v31  ;;  %v3466_v8 = vld [vmem:[%s6282_s20 + $0x18] sm:$0xff]  ;;  %v3467_v22 = vld [vmem:[%s6282_s20 + $0x20] sm:$0xff] }
0x1719   :  { %v3495_v25 = vsel %vm1106_vm2, 0.0, %v3484_v49  ;;  %v3486_v54 = vpop.permute.xlu0 %3485  ;;  %3539 = vrot.lane.b32.xlu1 %v3513_v27, %s5277_s15  ;;  %3541 = vrot.lane.b32.xlu0 %v3514_v33, %s5277_s15  ;;  %v3468_v27 = vld [vmem:[%s6282_s20 + $0x28] sm:$0xff]  ;;  %v3469_v33 = vld [vmem:[%s6282_s20 + $0x30] sm:$0xff] }
0x171a   :  { %v6266_v21 = vsel %vm1111_vm3, %v3495_v25, 0.0  ;;  %v3496_v35 = vsel %vm1106_vm2, 0.0, %v3486_v54  ;;  %v3470_v49 = vld [vmem:[%s6282_s20 + $0x38] sm:$0xff]  ;;  %s6500_s20 = sld [smem:[%s6722_s0 + %s5294_s29]]  }
0x171b   :  { %v3511_v36 = vmul.f32 %v6266_v21, %v5536_v61  ;;  %v6273_v37 = vsel %vm1111_vm3, %v3496_v35, 0.0  ;;  %v3507_v53 = vmul.f32 %v6266_v21, %v5554_v6  ;;  %v3503_v28 = vmul.f32 %v6266_v21, %v5595_v31 }
0x171c   :  { %v3512_v42 = vmul.f32 %v6273_v37, %v5536_v61  ;;  %v3508_v18 = vmul.f32 %v6273_v37, %v5554_v6  ;;  %v3504_v23 = vmul.f32 %v6273_v37, %v5595_v31 }
0x171d   :  { %3535 = vrot.lane.b32.xlu1 %v3511_v36, %s5277_s15 }
0x171e   :  { %3537 = vrot.lane.b32.xlu0 %v3512_v42, %s5277_s15 }
0x1721   :  { %3523 = vrot.lane.b32.xlu1 %v3509_v50, %s5280_s27 }
0x1722   :  { %3525 = vrot.lane.b32.xlu0 %v3510_v52, %s5280_s27 }
0x1725   :  { %3519 = vrot.lane.b32.xlu1 %v3507_v53, %s5280_s27 }
0x1726   :  { %3521 = vrot.lane.b32.xlu0 %v3508_v18, %s5280_s27 }
0x1729   :  { %3554 = vperm.xlu1 %5218, %v3472_v48  }
0x172a   :  { %3549 = vperm.xlu0 %5217, %v3471_v55  }
0x172d   :  { %3564 = vperm.xlu1 %5218, %v3474_v56  }
0x172e   :  { %3559 = vperm.xlu0 %5217, %v3473_v16  }
0x1731   :  { %3574 = vperm.xlu1 %5218, %v3476_v40  }
0x1732   :  { %3569 = vperm.xlu0 %5217, %v3475_v34  }
0x1735   :  { %3584 = vperm.xlu1 %5218, %v3478_v38  }
0x1736   :  { %3579 = vperm.xlu0 %5217, %v3477_v45  }
0x1739   :  { %3843 = vperm.xlu1 %5218, %v3730_v57  }
0x173a   :  { %3848 = vperm.xlu0 %5217, %v3731_v51  }
0x173d   :  { %3838 = vperm.xlu1 %5218, %v3729_v15  }
0x173e   :  { %3896 = vperm.xlu0 %5217, %v3739_v59  }
0x1741   :  { %3833 = vperm.xlu1 %5218, %v3728_v58  }
0x1742   :  { %3891 = vperm.xlu0 %5217, %v3738_v60  }
0x1745   :  { %3828 = vperm.xlu1 %5218, %v3727_v63  }
0x1746   :  { %3886 = vperm.xlu0 %5217, %v3737_v0  }
0x1749   :  { %3823 = vperm.xlu1 %5218, %v3726_v1  }
0x174a   :  { %3881 = vperm.xlu0 %5217, %v3736_v10  }
0x174d   :  { %3818 = vperm.xlu1 %5218, %v3725_v39  }
0x174e   :  { %3876 = vperm.xlu0 %5217, %v3735_v62  }
0x1751   :  { %3813 = vperm.xlu1 %5218, %v3724_v17  }
0x1752   :  { %3871 = vperm.xlu0 %5217, %v3734_v44  }
0x1755   :  { %3861 = vperm.xlu1 %5218, %v3732_v11  }
0x1756   :  { %3866 = vperm.xlu0 %5217, %v3733_v4  }
0x1769   :  { %v6354_v25 = vpop.f32.mrf.mxu1 }
0x176b   :  { %v6356_v54 = vpop.f32.mrf.mxu1 }
0x176d   :  { %v6358_v35 = vpop.f32.mrf.mxu1 }
0x176f   :  { %v6360_v37 = vpop.f32.mrf.mxu1 }
0x178b   :  { %v3540_v32 = vpop.permute.xlu1 %3539  ;;  %v3542_v9 = vpop.permute.xlu0 %3541 }
0x178c   :  { %5127 = vmatprep.subr.mxu1 %v3542_v9 }
0x178d   :  { %5128 = vmatpush3.msra.mxu1 %v3542_v9 }
0x178e   :  { %5129 = vmatprep.subr.mxu1 %v3540_v32 }
0x178f   :  { %v3536_v7 = vpop.permute.xlu1 %3535  ;;  %5130 = vmatpush3.msra.mxu1 %v3540_v32 }
0x1790   :  { %v3538_v29 = vpop.permute.xlu0 %3537 }
0x1791   :  { %5131 = vmatprep.subr.mxu1 %v3538_v29 }
0x1792   :  { %5132 = vmatpush3.msra.mxu1 %v3538_v29 }
0x1793   :  { %5133 = vmatprep.subr.mxu1 %v3536_v7  ;;  %v3524_v13 = vpop.permute.xlu1 %3523 }
0x1794   :  { %5134 = vmatpush3.msra.mxu1 %v3536_v7  ;;  %v3526_v14 = vpop.permute.xlu0 %3525 }
0x1795   :  { %5135 = vmatprep.subr.mxu1 %v3526_v14 }
0x1796   :  { %5136 = vmatpush3.msra.mxu1 %v3526_v14 }
0x1797   :  { %5137 = vmatprep.subr.mxu1 %v3524_v13  ;;  %v3520_v20 = vpop.permute.xlu1 %3519 }
0x1798   :  { %5138 = vmatpush3.msra.mxu1 %v3524_v13  ;;  %v3522_v19 = vpop.permute.xlu0 %3521 }
0x1799   :  { %5139 = vmatprep.subr.mxu1 %v3522_v19 }
0x179a   :  { %5140 = vmatpush3.msra.mxu1 %v3522_v19 }
0x179b   :  { %5141 = vmatprep.subr.mxu1 %v3520_v20 }
0x179c   :  { %5142 = vmatpush3.msra.mxu1 %v3520_v20 }
0x179d   :  { %5143 = vmatprep.subr.mxu1 %v3506_v24 }
0x179e   :  { %5144 = vmatpush3.msra.mxu1 %v3506_v24 }
0x179f   :  { %5145 = vmatprep.subr.mxu1 %v3505_v26 }
0x17a0   :  { %5146 = vmatpush3.msra.mxu1 %v3505_v26 }
0x17a1   :  { %5147 = vmatprep.subr.mxu1 %v3504_v23 }
0x17a2   :  { %5148 = vmatpush3.msra.mxu1 %v3504_v23 }
0x17a3   :  { %5149 = vmatprep.subr.mxu1 %v3503_v28 }
0x17a4   :  { %5150 = vmatpush3.msra.mxu1 %v3503_v28  ;;  %v3555_v21 = vpop.permute.xlu1 %3554 }
0x17a5   :  { %5152 = vmatmul.mubr.msk.f32.vlgmr.msra.gmra.mxu1 %vm1220_vm4, %v3464_v47  ;;  %5163 = vmatprep.subr.mxu1 %v5281_v30  ;;  %v3550_v36 = vpop.permute.xlu0 %3549 }
0x17a6   :  { %5154 = vmatprep.mubr.msk.f32.mxu1 %vm1220_vm4, %v3465_v12 }
0x17a8   :  { %v3565_v42 = vpop.permute.xlu1 %3564 }
0x17a9   :  { %5155 = vmatmul.mubr.msk.f32.gmra.mxu1 %vm1220_vm4, %v3466_v8  ;;  %v3560_v50 = vpop.permute.xlu0 %3559 }
0x17aa   :  { %5157 = vmatprep.mubr.msk.f32.mxu1 %vm1220_vm4, %v3467_v22 }
0x17ac   :  { %v3575_v56 = vpop.permute.xlu1 %3574 }
0x17ad   :  { %5158 = vmatmul.mubr.msk.f32.gmra.mxu1 %vm1220_vm4, %v3468_v27  ;;  %v3570_v38 = vpop.permute.xlu0 %3569 }
0x17ae   :  { %5160 = vmatprep.mubr.msk.f32.mxu1 %vm1220_vm4, %v3469_v33 }
0x17b0   :  { %v3585_v1 = vpop.permute.xlu1 %3584 }
0x17b1   :  { %5161 = vmatmul.mubr.msk.f32.gmra.mxu1 %vm1220_vm4, %v3470_v49  ;;  %v3580_v4 = vpop.permute.xlu0 %3579 }
0x17b2   :  { %5179 = vmatprep.mubr.msk.f32.mxu1 %vm5299_vm6, %v5281_v30 }
0x1865   :  { %v5153_v43 = vpop.f32.mrf.mxu1 }
0x1866   :  { %v3683_v46 = vadd.f32 %v5153_v43, %v3555_v21 }
0x1867   :  { %v3677_v52 = vpop.f32.mrf.mxu1 }
0x1868   :  { %v3678_v53 = vadd.f32 %v3677_v52, %v3550_v36  ;;  %v3717_v18 = vmax.f32 %v3683_v46, 0.0 }
0x1869   :  { %v5156_v41 = vpop.f32.mrf.mxu1 }
0x186a   :  { %v3716_v48 = vmax.f32 %v3678_v53, 0.0  ;;  %v3693_v55 = vadd.f32 %v5156_v41, %v3565_v42  ;;  %v3741_v57 = vsel %vm421_vm1, %v3717_v18, 0.0 }
0x186b   :  { %v3687_v16 = vpop.f32.mrf.mxu1 }
0x186c   :  { %v3740_v40 = vsel %vm421_vm1, %v3716_v48, 0.0  ;;  %v3688_v34 = vadd.f32 %v3687_v16, %v3560_v50  ;;  %v3719_v51 = vmax.f32 %v3693_v55, 0.0 }
0x186d   :  { %v5159_v45 = vpop.f32.mrf.mxu1  ;;  %v3742_v58 = vadd.f32 %v3741_v57, %v3740_v40 }
0x186e   :  { %v3718_v15 = vmax.f32 %v3688_v34, 0.0  ;;  %v3703_v59 = vadd.f32 %v5159_v45, %v3575_v56  ;;  %v3745_v62 = vsel %vm421_vm1, %v3719_v51, 0.0 }
0x186f   :  { %v3697_v60 = vpop.f32.mrf.mxu1 }
0x1870   :  { %v3743_v63 = vsel %vm421_vm1, %v3718_v15, 0.0  ;;  %v3698_v0 = vadd.f32 %v3697_v60, %v3570_v38  ;;  %v3721_v17 = vmax.f32 %v3703_v59, 0.0 }
0x1871   :  { %v3744_v10 = vadd.f32 %v3743_v63, %v3742_v58  ;;  %v5162_v39 = vpop.f32.mrf.mxu1 }
0x1872   :  { %v3720_v44 = vmax.f32 %v3698_v0, 0.0  ;;  %v3713_v11 = vadd.f32 %v5162_v39, %v3585_v1  ;;  %v3749_v14 = vsel %vm421_vm1, %v3721_v17, 0.0 }
0x1873   :  { %v3746_v32 = vadd.f32 %v3745_v62, %v3744_v10  ;;  %v3707_v9 = vpop.f32.mrf.mxu1 }
0x1874   :  { %v3747_v7 = vsel %vm421_vm1, %v3720_v44, 0.0  ;;  %v3708_v29 = vadd.f32 %v3707_v9, %v3580_v4  ;;  %v3723_v19 = vmax.f32 %v3713_v11, 0.0  ;;  %v3844_v4 = vpop.permute.xlu1 %3843 }
0x1875   :  { %v3748_v13 = vadd.f32 %v3747_v7, %v3746_v32  ;;  %v3849_v32 = vpop.permute.xlu0 %3848 }
0x1876   :  { %v3722_v20 = vmax.f32 %v3708_v29, 0.0  ;;  %v3753_v28 = vsel %vm421_vm1, %v3723_v19, 0.0 }
0x1877   :  { %v3750_v24 = vadd.f32 %v3749_v14, %v3748_v13 }
0x1878   :  { %v3751_v26 = vsel %vm421_vm1, %v3722_v20, 0.0  ;;  %v3839_v13 = vpop.permute.xlu1 %3838 }
0x1879   :  { %v3752_v23 = vadd.f32 %v3751_v26, %v3750_v24  ;;  %v3897_v14 = vpop.permute.xlu0 %3896 }
0x187b   :  { %v3754_v47 = vadd.f32 %v3753_v28, %v3752_v23 }
0x187c   :  { %v3834_v26 = vpop.permute.xlu1 %3833 }
0x187d   :  { %v3755_v12 = vrot.slane %v3754_v47, 4  ;;  %v3892_v23 = vpop.permute.xlu0 %3891 }
0x187f   :  { %v3756_v8 = vadd.f32 %v3755_v12, %v3754_v47 }
0x1880   :  { %v3829_v47 = vpop.permute.xlu1 %3828 }
0x1881   :  { %v3757_v22 = vrot.slane %v3756_v8, 2  ;;  %v3887_v12 = vpop.permute.xlu0 %3886 }
0x1883   :  { %v3758_v27 = vadd.f32 %v3757_v22, %v3756_v8 }
0x1884   :  { %v3824_v8 = vpop.permute.xlu1 %3823 }
0x1885   :  { %v3759_v33 = vrot.slane %v3758_v27, 1  ;;  %v3882_v22 = vpop.permute.xlu0 %3881 }
0x1887   :  { %v3760_v49 = vadd.f32 %v3759_v33, %v3758_v27 }
0x1889   :  { %v3762_v21 = vmul.f32 0.015625, %v3760_v49 }
0x188b   :  { %v6370_v36 = vsub.f32 %v3716_v48, %v3762_v21  ;;  %v6372_v42 = vsub.f32 %v3717_v18, %v3762_v21  ;;  %v3765_v43 = vsub.f32 %v3718_v15, %v3762_v21  ;;  %v3766_v46 = vsub.f32 %v3719_v51, %v3762_v21 }
0x188c   :  { %v3767_v50 = vsub.f32 %v3720_v44, %v3762_v21  ;;  %v3768_v55 = vsub.f32 %v3721_v17, %v3762_v21  ;;  %v3769_v34 = vsub.f32 %v3722_v20, %v3762_v21  ;;  %v3770_v57 = vsub.f32 %v3723_v19, %v3762_v21 }
0x188d   :  { %v3771_v52 = vmul.f32 %v6370_v36, %v6370_v36  ;;  %v3772_v53 = vmul.f32 %v6372_v42, %v6372_v42  ;;  %v3773_v41 = vmul.f32 %v3765_v43, %v3765_v43  ;;  %v3774_v56 = vmul.f32 %v3766_v46, %v3766_v46 }
0x188e   :  { %v3775_v18 = vmul.f32 %v3767_v50, %v3767_v50  ;;  %v3776_v51 = vmul.f32 %v3768_v55, %v3768_v55  ;;  %v3777_v58 = vmul.f32 %v3769_v34, %v3769_v34  ;;  %v3778_v0 = vmul.f32 %v3770_v57, %v3770_v57 }
0x188f   :  { %v3779_v16 = vsel %vm421_vm1, %v3771_v52, 0.0  ;;  %v3780_v40 = vsel %vm421_vm1, %v3772_v53, 0.0  ;;  %v3782_v38 = vsel %vm421_vm1, %v3773_v41, 0.0  ;;  %v3784_v15 = vsel %vm421_vm1, %v3774_v56, 0.0  ;;  %v3819_v53 = vpop.permute.xlu1 %3818  ;;  %v3877_v41 = vpop.permute.xlu0 %3876 }
0x1890   :  { %v3781_v48 = vadd.f32 %v3780_v40, %v3779_v16  ;;  %v3786_v60 = vsel %vm421_vm1, %v3775_v18, 0.0  ;;  %v3788_v1 = vsel %vm421_vm1, %v3776_v51, 0.0  ;;  %v3790_v39 = vsel %vm421_vm1, %v3777_v58, 0.0 }
0x1891   :  { %v3792_v17 = vsel %vm421_vm1, %v3778_v0, 0.0 }
0x1892   :  { %v3783_v45 = vadd.f32 %v3782_v38, %v3781_v48 }
0x1894   :  { %v3785_v59 = vadd.f32 %v3784_v15, %v3783_v45 }
0x1896   :  { %v3787_v63 = vadd.f32 %v3786_v60, %v3785_v59 }
0x1898   :  { %v3789_v10 = vadd.f32 %v3788_v1, %v3787_v63 }
0x189a   :  { %v3791_v62 = vadd.f32 %v3790_v39, %v3789_v10 }
0x189c   :  { %v3793_v44 = vadd.f32 %v3792_v17, %v3791_v62 }
0x189e   :  { %v3794_v11 = vrot.slane %v3793_v44, 4 }
0x18a0   :  { %v3795_v9 = vadd.f32 %v3794_v11, %v3793_v44 }
0x18a2   :  { %v3796_v7 = vrot.slane %v3795_v9, 2 }
0x18a4   :  { %v3797_v29 = vadd.f32 %v3796_v7, %v3795_v9  ;;  %v67_v7 = vstv %s4567_s19  ;;  %s5300_s19 = smov 26  }
0x18a5   :  { %68 = vst [vmem:[#allocation2] sm:$0x1] %v67_v7  ;;  %s4566_s22 = sld [smem:[%s6722_s0 + %s5300_s19]]  }
0x18a6   :  { %v3798_v19 = vrot.slane %v3797_v29, 1 }
0x18a8   :  { %v3799_v20 = vadd.f32 %v3798_v19, %v3797_v29 }
0x18aa   :  { %v3800_v24 = vmul.f32 0.015625, %v3799_v20 }
0x18ac   :  { %v3801_v28 = vadd.f32 0.0001, %v3800_v24 }
0x18ae   :  { %5259 = vrsqrt.f32 %v3801_v28 }
0x18bb   :  { %v5260_v27 = vpop.eup %5259 }
0x18bc   :  { %v3809_v33 = vmul.f32 %v5260_v27, %v3769_v34  ;;  %v3810_v49 = vmul.f32 %v5260_v27, %v3770_v57  ;;  %v3808_v21 = vmul.f32 %v5260_v27, %v3768_v55  ;;  %v3807_v52 = vmul.f32 %v5260_v27, %v3767_v50 }
0x18bd   :  { %v3806_v56 = vmul.f32 %v5260_v27, %v3766_v46  ;;  %v3805_v16 = vmul.f32 %v5260_v27, %v3765_v43  ;;  %v3803_v58 = vmul.f32 %v5260_v27, %v6370_v36  ;;  %v3804_v60 = vmul.f32 %v5260_v27, %v6372_v42  ;;  %v3814_v46 = vpop.permute.xlu1 %3813  ;;  %v3872_v43 = vpop.permute.xlu0 %3871 }
0x18be   :  { %v3857_v40 = vmul.f32 %v3844_v4, %v3809_v33  ;;  %v3858_v48 = vmul.f32 %v3849_v32, %v3810_v49  ;;  %v3856_v18 = vmul.f32 %v3839_v13, %v3808_v21  ;;  %v3855_v38 = vmul.f32 %v3834_v26, %v3807_v52 }
0x18bf   :  { %v3854_v15 = vmul.f32 %v3829_v47, %v3806_v56  ;;  %v3853_v59 = vmul.f32 %v3824_v8, %v3805_v16  ;;  %v3851_v63 = vmul.f32 %v3814_v46, %v3803_v58  ;;  %v3852_v0 = vmul.f32 %v3819_v53, %v3804_v60 }
0x18c0   :  { %v3905_v45 = vadd.f32 %v3892_v23, %v3857_v40  ;;  %v3906_v51 = vadd.f32 %v3897_v14, %v3858_v48  ;;  %v3904_v55 = vadd.f32 %v3887_v12, %v3856_v18  ;;  %v3903_v57 = vadd.f32 %v3882_v22, %v3855_v38 }
0x18c1   :  { %v3902_v10 = vadd.f32 %v3877_v41, %v3854_v15  ;;  %v3901_v42 = vadd.f32 %v3872_v43, %v3853_v59  ;;  %v3862_v39 = vpop.permute.xlu1 %3861  ;;  %v3867_v62 = vpop.permute.xlu0 %3866 }
0x18c2   :  { %v3914_v34 = vmul.f32 %v5330_v5, %v3906_v51  ;;  %v3913_v50 = vmul.f32 %v5330_v5, %v3905_v45  ;;  %v3912_v1 = vmul.f32 %v5330_v5, %v3904_v55  ;;  %v3911_v36 = vmul.f32 %v5330_v5, %v3903_v57 }
0x18c3   :  { %v3910_v17 = vmul.f32 %v5330_v5, %v3902_v10  ;;  %v3909_v44 = vmul.f32 %v5330_v5, %v3901_v42  ;;  %v3899_v11 = vadd.f32 %v3862_v39, %v3851_v63  ;;  %v3900_v4 = vadd.f32 %v3867_v62, %v3852_v0  ;;  %v3916_v42 = vld [vmem:[%s6492_s25 + $0x8] sm:$0xff] }
0x18c4   :  { %3961 = vrot.lane.b32.xlu0 %v3914_v34, %s5268_s6  ;;  %3959 = vrot.lane.b32.xlu1 %v3913_v50, %s5268_s6 }
0x18c5   :  { %v3907_v32 = vmul.f32 %v5330_v5, %v3899_v11  ;;  %v3908_v9 = vmul.f32 %v5330_v5, %v3900_v4  ;;  %4739 = vmatprep.mubr.msk.f32.mxu0 %vm1534_vm5, %v3916_v42  ;;  %v4259_v11 = vld [vmem:[%s6500_s20 + $0x38] sm:$0xff]  ;;  %v4257_v4 = vld [vmem:[%s6500_s20 + $0x28] sm:$0xff] }
0x18c8   :  { %3957 = vrot.lane.b32.xlu0 %v3912_v1, %s5268_s6  ;;  %3955 = vrot.lane.b32.xlu1 %v3911_v36, %s5268_s6 }
0x18cc   :  { %3953 = vrot.lane.b32.xlu0 %v3910_v17, %s5268_s6  ;;  %3951 = vrot.lane.b32.xlu1 %v3909_v44, %s5268_s6  ;;  %v4258_v44 = vld [vmem:[%s6500_s20 + $0x30] sm:$0xff] }
0x18d0   :  { %3947 = vrot.lane.b32.xlu1 %v3907_v32, %s5268_s6  ;;  %3949 = vrot.lane.b32.xlu0 %v3908_v9, %s5268_s6  ;;  %s5292_s6 = smov 23   ;;  %v4256_v9 = vld [vmem:[%s6500_s20 + $0x20] sm:$0xff] }
0x18d1   :  { %s4563_s23 = sld [smem:[%s6722_s0 + %s5292_s6]]  }
0x18d7   :  { %v3932_v0 = vld [vmem:[%s4563_s23 + $0x8] sm:$0xff]  ;;  %v3931_v1 = vld [vmem:[%s4563_s23] sm:$0xff]  ;;  %v3934_v36 = vld [vmem:[%s4563_s23 + $0x18] sm:$0xff] }
0x18d8   :  { %v3933_v10 = vld [vmem:[%s4563_s23 + $0x10] sm:$0xff]  ;;  %v3935_v39 = vld [vmem:[%s4563_s23 + $0x20] sm:$0xff]  ;;  %v3938_v62 = vld [vmem:[%s4563_s23 + $0x38] sm:$0xff] }
0x18d9   :  { %v3937_v17 = vld [vmem:[%s4563_s23 + $0x30] sm:$0xff] }
0x1936   :  { %v3960_v29 = vpop.permute.xlu1 %3959  ;;  %v3962_v13 = vpop.permute.xlu0 %3961 }
0x1937   :  { %v3977_v14 = vsel %vm1106_vm2, 0.0, %v3960_v29  ;;  %v3978_v19 = vsel %vm1106_vm2, 0.0, %v3962_v13  ;;  %v4255_v29 = vld [vmem:[%s6500_s20 + $0x18] sm:$0xff] }
0x1938   :  { %v6410_v20 = vsel %vm1111_vm3, %v3977_v14, 0.0  ;;  %v6413_v24 = vsel %vm1111_vm3, %v3978_v19, 0.0  ;;  %v4254_v14 = vld [vmem:[%s6500_s20 + $0x10] sm:$0xff] }
0x1939   :  { %v4001_v26 = vmul.f32 %v6410_v20, %v5554_v6  ;;  %v4002_v23 = vmul.f32 %v6413_v24, %v5554_v6  ;;  %v4009_v34 = vmul.f32 %v6410_v20, %v5536_v61  ;;  %v4010_v50 = vmul.f32 %v6413_v24, %v5536_v61 }
0x193a   :  { %v3956_v28 = vpop.permute.xlu1 %3955  ;;  %v3958_v47 = vpop.permute.xlu0 %3957 }
0x193b   :  { %v3975_v12 = vsel %vm1106_vm2, 0.0, %v3956_v28  ;;  %v3976_v8 = vsel %vm1106_vm2, 0.0, %v3958_v47  ;;  %4031 = vrot.lane.b32.xlu1 %v4001_v26, %s5280_s27  ;;  %4033 = vrot.lane.b32.xlu0 %v4002_v23, %s5280_s27  ;;  %v4253_v26 = vld [vmem:[%s6500_s20 + $0x8] sm:$0xff]  ;;  %v4252_v28 = vld [vmem:[%s6500_s20] sm:$0xff] }
0x193c   :  { %v6423_v22 = vsel %vm1111_vm3, %v3975_v12, 0.0  ;;  %v6426_v27 = vsel %vm1111_vm3, %v3976_v8, 0.0 }
0x193d   :  { %v3999_v33 = vmul.f32 %v6423_v22, %v5554_v6  ;;  %v4000_v49 = vmul.f32 %v6426_v27, %v5554_v6  ;;  %v4007_v55 = vmul.f32 %v6423_v22, %v5536_v61 }
0x193e   :  { %v3952_v21 = vpop.permute.xlu1 %3951  ;;  %v3954_v52 = vpop.permute.xlu0 %3953 }
0x193f   :  { %v3973_v53 = vsel %vm1106_vm2, 0.0, %v3952_v21  ;;  %v3974_v41 = vsel %vm1106_vm2, 0.0, %v3954_v52  ;;  %4027 = vrot.lane.b32.xlu1 %v3999_v33, %s5280_s27  ;;  %4029 = vrot.lane.b32.xlu0 %v4000_v49, %s5280_s27  ;;  %v3330_v33 = vld [vmem:[%s4557_s4] sm:$0xff]  ;;  %v3332_v21 = vld [vmem:[%s4557_s4 + $0x10] sm:$0xff] }
0x1940   :  { %v6437_v56 = vsel %vm1111_vm3, %v3973_v53, 0.0  ;;  %v6440_v16 = vsel %vm1111_vm3, %v3974_v41, 0.0  ;;  %v4443_v49 = vld [vmem:[#allocation2] sm:$0x1]  ;;  %v3331_v52 = vld [vmem:[%s4557_s4 + $0x8] sm:$0xff]  ;;  %v3333_v53 = vld [vmem:[%s4557_s4 + $0x18] sm:$0xff] }
0x1941   :  { %v3997_v40 = vmul.f32 %v6437_v56, %v5554_v6  ;;  %v3998_v48 = vmul.f32 %v6440_v16, %v5554_v6  ;;  %v4005_v57 = vmul.f32 %v6437_v56, %v5536_v61  ;;  %v4006_v46 = vmul.f32 %v6440_v16, %v5536_v61 }
0x1942   :  { %v3948_v18 = vpop.permute.xlu1 %3947  ;;  %v3950_v38 = vpop.permute.xlu0 %3949 }
0x1943   :  { %v3971_v45 = vsel %vm1106_vm2, 0.0, %v3948_v18  ;;  %v3972_v51 = vsel %vm1106_vm2, 0.0, %v3950_v38  ;;  %4023 = vrot.lane.b32.xlu1 %v3997_v40, %s5280_s27  ;;  %4025 = vrot.lane.b32.xlu0 %v3998_v48, %s5280_s27 }
0x1944   :  { %v6451_v15 = vsel %vm1111_vm3, %v3971_v45, 0.0  ;;  %v6454_v59 = vsel %vm1111_vm3, %v3972_v51, 0.0 }
0x1945   :  { %v3995_v58 = vmul.f32 %v6451_v15, %v5554_v6  ;;  %v3996_v60 = vmul.f32 %v6454_v59, %v5554_v6  ;;  %v4008_v6 = vmul.f32 %v6426_v27, %v5536_v61  ;;  %v4003_v43 = vmul.f32 %v6451_v15, %v5536_v61 }
0x1946   :  { %v4004_v63 = vmul.f32 %v6454_v59, %v5536_v61  ;;  %v3936_v61 = vld [vmem:[%s4563_s23 + $0x28] sm:$0xff]  ;;  %s5301_s23 = smov 30  }
0x1947   :  { %4019 = vrot.lane.b32.xlu1 %v3995_v58, %s5280_s27  ;;  %4021 = vrot.lane.b32.xlu0 %v3996_v60, %s5280_s27  ;;  %v3994_v60 = vmul.f32 %v6413_v24, %v5595_v31  ;;  %v3991_v24 = vmul.f32 %v6423_v22, %v5595_v31  ;;  %v3988_v22 = vmul.f32 %v6454_v59, %v5595_v31  ;;  %s4570_s21 = sld [smem:[%s6722_s0 + %s5301_s23]]  }
0x194b   :  { %4063 = vrot.lane.b32.xlu1 %v4009_v34, %s5277_s15  ;;  %4065 = vrot.lane.b32.xlu0 %v4010_v50, %s5277_s15  ;;  %v3993_v34 = vmul.f32 %v6410_v20, %v5595_v31  ;;  %v3990_v20 = vmul.f32 %v6440_v16, %v5595_v31  ;;  %v3987_v16 = vmul.f32 %v6451_v15, %v5595_v31 }
0x194f   :  { %4059 = vrot.lane.b32.xlu1 %v4007_v55, %s5277_s15  ;;  %4061 = vrot.lane.b32.xlu0 %v4008_v6, %s5277_s15  ;;  %v3992_v55 = vmul.f32 %v6426_v27, %v5595_v31  ;;  %v3989_v27 = vmul.f32 %v6437_v56, %v5595_v31 }
0x1953   :  { %4055 = vrot.lane.b32.xlu1 %v4005_v57, %s5277_s15  ;;  %4057 = vrot.lane.b32.xlu0 %v4006_v46, %s5277_s15 }
0x1957   :  { %4051 = vrot.lane.b32.xlu1 %v4003_v43, %s5277_s15  ;;  %4053 = vrot.lane.b32.xlu0 %v4004_v63, %s5277_s15  ;;  %s5295_s15 = smov 25  }
0x1958   :  { %s6505_s28 = sld [smem:[%s6722_s0 + %s5295_s15]]  }
0x195b   :  { %4082 = vperm.xlu1 %5218, %v3932_v0   ;;  %4077 = vperm.xlu0 %5217, %v3931_v1  }
0x195e   :  { %v4267_v32 = vld [vmem:[%s6505_s28 + $0x38] sm:$0xff]  ;;  %v4266_v7 = vld [vmem:[%s6505_s28 + $0x30] sm:$0xff]  ;;  %v4265_v13 = vld [vmem:[%s6505_s28 + $0x28] sm:$0xff] }
0x195f   :  { %4092 = vperm.xlu1 %5218, %v3934_v36   ;;  %4087 = vperm.xlu0 %5217, %v3933_v10   ;;  %v4264_v19 = vld [vmem:[%s6505_s28 + $0x20] sm:$0xff]  ;;  %v4263_v23 = vld [vmem:[%s6505_s28 + $0x18] sm:$0xff]  ;;  %v4262_v47 = vld [vmem:[%s6505_s28 + $0x10] sm:$0xff] }
0x1960   :  { %v4260_v12 = vld [vmem:[%s6505_s28] sm:$0xff]  ;;  %v4261_v8 = vld [vmem:[%s6505_s28 + $0x8] sm:$0xff]  ;;  %v3918_v10 = vld [vmem:[%s6492_s25 + $0x18] sm:$0xff] }
0x1961   :  { %v3915_v36 = vld [vmem:[%s6492_s25] sm:$0xff] }
0x1963   :  { %4102 = vperm.xlu1 %5218, %v3936_v61   ;;  %4097 = vperm.xlu0 %5217, %v3935_v39   ;;  %v3917_v39 = vld [vmem:[%s6492_s25 + $0x10] sm:$0xff] }
0x1967   :  { %4112 = vperm.xlu1 %5218, %v3938_v62   ;;  %4107 = vperm.xlu0 %5217, %v3937_v17   ;;  %v3920_v62 = vld [vmem:[%s6492_s25 + $0x28] sm:$0xff] }
0x196b   :  { %4370 = vperm.xlu1 %5218, %v4258_v44   ;;  %4375 = vperm.xlu0 %5217, %v4259_v11   ;;  %v3919_v11 = vld [vmem:[%s6492_s25 + $0x20] sm:$0xff] }
0x196f   :  { %4365 = vperm.xlu1 %5218, %v4257_v4   ;;  %4423 = vperm.xlu0 %5217, %v4267_v32   ;;  %v3922_v4 = vld [vmem:[%s6492_s25 + $0x38] sm:$0xff] }
0x1973   :  { %4360 = vperm.xlu1 %5218, %v4256_v9   ;;  %4418 = vperm.xlu0 %5217, %v4266_v7   ;;  %v3921_v7 = vld [vmem:[%s6492_s25 + $0x30] sm:$0xff] }
0x1977   :  { %4355 = vperm.xlu1 %5218, %v4255_v29   ;;  %4413 = vperm.xlu0 %5217, %v4265_v13   ;;  %v3924_v29 = vld [vmem:[%s6492_s25 + $0x48] sm:$0xff] }
0x197b   :  { %4350 = vperm.xlu1 %5218, %v4254_v14   ;;  %4408 = vperm.xlu0 %5217, %v4264_v19   ;;  %v3923_v19 = vld [vmem:[%s6492_s25 + $0x40] sm:$0xff] }
0x197f   :  { %4345 = vperm.xlu1 %5218, %v4253_v26   ;;  %4403 = vperm.xlu0 %5217, %v4263_v23   ;;  %v3926_v26 = vld [vmem:[%s6492_s25 + $0x58] sm:$0xff] }
0x1983   :  { %4340 = vperm.xlu1 %5218, %v4252_v28   ;;  %4398 = vperm.xlu0 %5217, %v4262_v47   ;;  %v3925_v47 = vld [vmem:[%s6492_s25 + $0x50] sm:$0xff] }
0x1987   :  { %4388 = vperm.xlu1 %5218, %v4260_v12   ;;  %4393 = vperm.xlu0 %5217, %v4261_v8   ;;  %v3928_v12 = vld [vmem:[%s6492_s25 + $0x68] sm:$0xff] }
0x198b   :  { %3336 = vperm.xlu1 %5218, %v3330_v33   ;;  %4446 = vperm.xlu0 %5217, %v4443_v49   ;;  %v3927_v49 = vld [vmem:[%s6492_s25 + $0x60] sm:$0xff] }
0x198f   :  { %3346 = vperm.xlu1 %5218, %v3332_v21   ;;  %3341 = vperm.xlu0 %5217, %v3331_v52   ;;  %v3930_v21 = vld [vmem:[%s6492_s25 + $0x78] sm:$0xff] }
0x1993   :  { %3351 = vperm.xlu0 %5217, %v3333_v53  }
0x19ad   :  { %v4032_v41 = vpop.permute.xlu1 %4031  ;;  %v4034_v40 = vpop.permute.xlu0 %4033 }
0x19ae   :  { %4140 = vmatpush1.msra.mxu0 %v4034_v40 }
0x19af   :  { %4141 = vmatprep.subr.mxu0 %v5281_v30 }
0x19b0   :  { %4142 = vmatpush1.msra.mxu0 %v4032_v41  ;;  %v3929_v41 = vld [vmem:[%s6492_s25 + $0x70] sm:$0xff] }
0x19b1   :  { %v4028_v48 = vpop.permute.xlu1 %4027  ;;  %4143 = vmatprep.subr.mxu0 %v5281_v30  ;;  %v4030_v18 = vpop.permute.xlu0 %4029 }
0x19b2   :  { %4144 = vmatpush1.msra.mxu0 %v4030_v18 }
0x19b3   :  { %4145 = vmatprep.subr.mxu0 %v5281_v30 }
0x19b4   :  { %4146 = vmatpush1.msra.mxu0 %v4028_v48 }
0x19b5   :  { %v4024_v38 = vpop.permute.xlu1 %4023  ;;  %4147 = vmatprep.subr.mxu0 %v5281_v30  ;;  %v4026_v45 = vpop.permute.xlu0 %4025 }
0x19b6   :  { %4148 = vmatpush1.msra.mxu0 %v4026_v45 }
0x19b7   :  { %4149 = vmatprep.subr.mxu0 %v5281_v30 }
0x19b8   :  { %4150 = vmatpush1.msra.mxu0 %v4024_v38 }
0x19b9   :  { %v4020_v51 = vpop.permute.xlu1 %4019  ;;  %4151 = vmatprep.subr.mxu0 %v5281_v30  ;;  %v4022_v58 = vpop.permute.xlu0 %4021 }
0x19ba   :  { %4152 = vmatpush1.msra.mxu0 %v4022_v58 }
0x19bb   :  { %4153 = vmatprep.subr.mxu0 %v5281_v30 }
0x19bc   :  { %4154 = vmatpush1.msra.mxu0 %v4020_v51 }
0x19bd   :  { %4155 = vmatprep.subr.mxu0 %v5281_v30  ;;  %v4064_v50 = vpop.permute.xlu1 %4063  ;;  %v4066_v6 = vpop.permute.xlu0 %4065 }
0x19be   :  { %4156 = vmatpush1.msra.mxu0 %v3994_v60 }
0x19bf   :  { %4157 = vmatprep.subr.mxu0 %v5281_v30 }
0x19c0   :  { %4158 = vmatpush1.msra.mxu0 %v3993_v34 }
0x19c1   :  { %4159 = vmatprep.subr.mxu0 %v5281_v30  ;;  %v4060_v57 = vpop.permute.xlu1 %4059  ;;  %v4062_v46 = vpop.permute.xlu0 %4061 }
0x19c2   :  { %4160 = vmatpush1.msra.mxu0 %v3992_v55 }
0x19c3   :  { %4161 = vmatprep.subr.mxu0 %v5281_v30 }
0x19c4   :  { %4162 = vmatpush1.msra.mxu0 %v3991_v24 }
0x19c5   :  { %4163 = vmatprep.subr.mxu0 %v5281_v30  ;;  %v4056_v43 = vpop.permute.xlu1 %4055  ;;  %v4058_v63 = vpop.permute.xlu0 %4057 }
0x19c6   :  { %4164 = vmatpush1.msra.mxu0 %v3990_v20 }
0x19c7   :  { %4165 = vmatprep.subr.mxu0 %v5281_v30 }
0x19c8   :  { %4166 = vmatpush1.msra.mxu0 %v3989_v27 }
0x19c9   :  { %4167 = vmatprep.subr.mxu0 %v5281_v30  ;;  %v4052_v56 = vpop.permute.xlu1 %4051  ;;  %v4054_v59 = vpop.permute.xlu0 %4053 }
0x19ca   :  { %4168 = vmatpush1.msra.mxu0 %v3988_v22 }
0x19cb   :  { %4169 = vmatprep.subr.mxu0 %v5281_v30 }
0x19cc   :  { %4170 = vmatpush1.msra.mxu0 %v3987_v16 }
0x19cd   :  { %4187 = vmatprep.subr.mxu0 %v5281_v30 }
0x19ce   :  { %4188 = vmatpush2.msra.mxu0 %v4066_v6 }
0x19cf   :  { %4189 = vmatprep.subr.mxu0 %v5281_v30 }
0x19d0   :  { %4190 = vmatpush2.msra.mxu0 %v4064_v50 }
0x19d1   :  { %4191 = vmatprep.subr.mxu0 %v5281_v30 }
0x19d2   :  { %4192 = vmatpush2.msra.mxu0 %v4062_v46 }
0x19d3   :  { %4193 = vmatprep.subr.mxu0 %v5281_v30 }
0x19d4   :  { %4194 = vmatpush2.msra.mxu0 %v4060_v57 }
0x19d5   :  { %4195 = vmatprep.subr.mxu0 %v5281_v30 }
0x19d6   :  { %v6562_v31 = vpop.permute.xlu1 %4082  ;;  %4196 = vmatpush2.msra.mxu0 %v4058_v63  ;;  %v6564_v15 = vpop.permute.xlu0 %4077 }
0x19d7   :  { %4197 = vmatprep.subr.mxu0 %v5281_v30 }
0x19d8   :  { %4198 = vmatpush2.msra.mxu0 %v4056_v43 }
0x19d9   :  { %4199 = vmatprep.subr.mxu0 %v5281_v30 }
0x19da   :  { %v6568_v0 = vpop.permute.xlu1 %4092  ;;  %4200 = vmatpush2.msra.mxu0 %v4054_v59  ;;  %v6570_v1 = vpop.permute.xlu0 %4087 }
0x19db   :  { %4201 = vmatprep.subr.mxu0 %v5281_v30 }
0x19dc   :  { %4202 = vmatpush2.msra.mxu0 %v4052_v56 }
0x19dd   :  { %4204 = vmatmul.mubr.f32.vlgmr.msra.gmra.mxu0 %v3915_v36 }
0x19de   :  { %v6575_v42 = vpop.permute.xlu1 %4102  ;;  %v6577_v61 = vpop.permute.xlu0 %4097  ;;  %4740 = vmatprep.mubr.msk.f32.mxu0 %vm1534_vm5, %v3918_v10 }
0x19e1   :  { %4209 = vmatmul.mubr.f32.gmra.mxu0 %v3917_v39 }
0x19e2   :  { %v6582_v17 = vpop.permute.xlu1 %4112  ;;  %v6584_v44 = vpop.permute.xlu0 %4107  ;;  %4741 = vmatprep.mubr.msk.f32.mxu0 %vm1534_vm5, %v3920_v62 }
0x19e5   :  { %4214 = vmatmul.mubr.f32.gmra.mxu0 %v3919_v11 }
0x19e6   :  { %v6589_v32 = vpop.permute.xlu1 %4370  ;;  %v6591_v9 = vpop.permute.xlu0 %4375  ;;  %4742 = vmatprep.mubr.msk.f32.mxu0 %vm1534_vm5, %v3922_v4 }
0x19e9   :  { %4219 = vmatmul.mubr.f32.gmra.mxu0 %v3921_v7 }
0x19ea   :  { %v6596_v13 = vpop.permute.xlu1 %4365  ;;  %v6598_v14 = vpop.permute.xlu0 %4423  ;;  %4743 = vmatprep.mubr.msk.f32.mxu0 %vm1534_vm5, %v3924_v29 }
0x19ed   :  { %4224 = vmatmul.mubr.f32.gmra.mxu0 %v3923_v19 }
0x19ee   :  { %v6603_v23 = vpop.permute.xlu1 %4360  ;;  %v6605_v28 = vpop.permute.xlu0 %4418  ;;  %4744 = vmatprep.mubr.msk.f32.mxu0 %vm1534_vm5, %v3926_v26 }
0x19f1   :  { %4229 = vmatmul.mubr.f32.gmra.mxu0 %v3925_v47 }
0x19f2   :  { %v6610_v8 = vpop.permute.xlu1 %4355  ;;  %v6612_v33 = vpop.permute.xlu0 %4413  ;;  %4745 = vmatprep.mubr.msk.f32.mxu0 %vm1534_vm5, %v3928_v12 }
0x19f5   :  { %4234 = vmatmul.mubr.f32.gmra.mxu0 %v3927_v49 }
0x19f6   :  { %v6617_v52 = vpop.permute.xlu1 %4350  ;;  %v6619_v53 = vpop.permute.xlu0 %4408  ;;  %4746 = vmatprep.mubr.msk.f32.mxu0 %vm1534_vm5, %v3930_v21 }
0x19f9   :  { %4239 = vmatmul.mubr.f32.gmra.mxu0 %v3929_v41 }
0x19fa   :  { %v6623_v40 = vpop.permute.xlu1 %4345  ;;  %v6625_v48 = vpop.permute.xlu0 %4403 }
0x19fe   :  { %v6627_v18 = vpop.permute.xlu1 %4340  ;;  %v6629_v38 = vpop.permute.xlu0 %4398 }
0x1a02   :  { %v6631_v45 = vpop.permute.xlu1 %4388  ;;  %v6633_v51 = vpop.permute.xlu0 %4393 }
0x1a06   :  { %v3337_v58 = vpop.permute.xlu1 %3336  ;;  %v6639_v34 = vpop.permute.xlu0 %4446 }
0x1a07   :  { %v3433_v60 = vadd.f32 %v6356_v54, %v3337_v58 }
0x1a09   :  { %v3451_v50 = vmul.f32 %v5330_v5, %v3433_v60 }
0x1a0a   :  { %v3347_v55 = vpop.permute.xlu1 %3346  ;;  %v3342_v24 = vpop.permute.xlu0 %3341 }
0x1a0b   :  { %3453 = vst.msk [vmem:[%s4568_s11] sm:$0xff] %vm421_vm1, %v3451_v50  ;;  %v3443_v6 = vadd.f32 %v6360_v37, %v3347_v55  ;;  %v3438_v20 = vadd.f32 %v6354_v25, %v3342_v24 }
0x1a0d   :  { %v3455_v57 = vmul.f32 %v5330_v5, %v3443_v6  ;;  %v3452_v54 = vmul.f32 %v5330_v5, %v3438_v20 }
0x1a0e   :  { %v3352_v27 = vpop.permute.xlu0 %3351 }
0x1a0f   :  { %3457 = vst.msk [vmem:[%s4569_s18] sm:$0xff] %vm421_vm1, %v3455_v57  ;;  %3454 = vst.msk [vmem:[%s4568_s11 + $0x8] sm:$0xff] %vm421_vm1, %v3452_v54  ;;  %v3448_v46 = vadd.f32 %v6358_v35, %v3352_v27 }
0x1a11   :  { %v3456_v22 = vmul.f32 %v5330_v5, %v3448_v46 }
0x1a13   :  { %3458 = vst.msk [vmem:[%s4569_s18 + $0x8] sm:$0xff] %vm421_vm1, %v3456_v22 }
0x1a9d   :  { %v4205_v37 = vpop.f32.mrf.mxu0 }
0x1a9e   :  { %v4206_v10 = vadd.f32 %v4205_v37, %v6564_v15 }
0x1a9f   :  { %v4207_v25 = vpop.f32.mrf.mxu0 }
0x1aa0   :  { %v4244_v7 = vmax.f32 %v4206_v10, 0.0 }
0x1aa1   :  { %v4210_v16 = vpop.f32.mrf.mxu0 }
0x1aa2   :  { %v4211_v59 = vadd.f32 %v4210_v16, %v6562_v31  ;;  %v4268_v31 = vsel %vm421_vm1, %v4244_v7, 0.0 }
0x1aa3   :  { %v4212_v43 = vpop.f32.mrf.mxu0 }
0x1aa4   :  { %v4245_v62 = vmax.f32 %v4211_v59, 0.0 }
0x1aa5   :  { %v4215_v63 = vpop.f32.mrf.mxu0 }
0x1aa6   :  { %v4216_v35 = vadd.f32 %v4215_v63, %v6570_v1  ;;  %v4269_v47 = vsel %vm421_vm1, %v4245_v62, 0.0 }
0x1aa7   :  { %v4217_v56 = vpop.f32.mrf.mxu0  ;;  %v4270_v41 = vadd.f32 %v4269_v47, %v4268_v31 }
0x1aa8   :  { %v4246_v29 = vmax.f32 %v4216_v35, 0.0 }
0x1aa9   :  { %v4220_v36 = vpop.f32.mrf.mxu0 }
0x1aaa   :  { %v4221_v11 = vadd.f32 %v4220_v36, %v6568_v0  ;;  %v4271_v15 = vsel %vm421_vm1, %v4246_v29, 0.0 }
0x1aab   :  { %v4222_v39 = vpop.f32.mrf.mxu0  ;;  %v4272_v50 = vadd.f32 %v4271_v15, %v4270_v41 }
0x1aac   :  { %v4247_v12 = vmax.f32 %v4221_v11, 0.0 }
0x1aad   :  { %v4225_v4 = vpop.f32.mrf.mxu0 }
0x1aae   :  { %v4226_v19 = vadd.f32 %v4225_v4, %v6577_v61  ;;  %v4273_v0 = vsel %vm421_vm1, %v4247_v12, 0.0 }
0x1aaf   :  { %v4227_v26 = vpop.f32.mrf.mxu0  ;;  %v4274_v24 = vadd.f32 %v4273_v0, %v4272_v50 }
0x1ab0   :  { %v4248_v21 = vmax.f32 %v4226_v19, 0.0 }
0x1ab1   :  { %v4230_v49 = vpop.f32.mrf.mxu0 }
0x1ab2   :  { %v4231_v1 = vadd.f32 %v4230_v49, %v6575_v42  ;;  %v4275_v61 = vsel %vm421_vm1, %v4248_v21, 0.0 }
0x1ab3   :  { %v4232_v58 = vpop.f32.mrf.mxu0  ;;  %v4276_v27 = vadd.f32 %v4275_v61, %v4274_v24 }
0x1ab4   :  { %v4249_v60 = vmax.f32 %v4231_v1, 0.0 }
0x1ab5   :  { %v4235_v55 = vpop.f32.mrf.mxu0 }
0x1ab6   :  { %v4236_v6 = vadd.f32 %v4235_v55, %v6584_v44  ;;  %v4277_v57 = vsel %vm421_vm1, %v4249_v60, 0.0 }
0x1ab7   :  { %v4237_v20 = vpop.f32.mrf.mxu0  ;;  %v4278_v37 = vadd.f32 %v4277_v57, %v4276_v27 }
0x1ab8   :  { %v4250_v54 = vmax.f32 %v4236_v6, 0.0 }
0x1ab9   :  { %v4240_v46 = vpop.f32.mrf.mxu0 }
0x1aba   :  { %v4279_v42 = vsel %vm421_vm1, %v4250_v54, 0.0  ;;  %v4241_v22 = vadd.f32 %v4240_v46, %v6582_v17 }
0x1abb   :  { %v4242_v25 = vpop.f32.mrf.mxu0  ;;  %v4280_v43 = vadd.f32 %v4279_v42, %v4278_v37 }
0x1abc   :  { %v4251_v16 = vmax.f32 %v4241_v22, 0.0 }
0x1abe   :  { %v4281_v63 = vsel %vm421_vm1, %v4251_v16, 0.0 }
0x1abf   :  { %v4282_v56 = vadd.f32 %v4281_v63, %v4280_v43 }
0x1ac1   :  { %v4283_v59 = vrot.slane %v4282_v56, 4 }
0x1ac3   :  { %v4284_v44 = vadd.f32 %v4283_v59, %v4282_v56 }
0x1ac5   :  { %v4285_v36 = vrot.slane %v4284_v44, 2 }
0x1ac7   :  { %v4286_v10 = vadd.f32 %v4285_v36, %v4284_v44 }
0x1ac9   :  { %v4287_v35 = vrot.slane %v4286_v10, 1 }
0x1acb   :  { %v4288_v39 = vadd.f32 %v4287_v35, %v4286_v10 }
0x1acd   :  { %v4289_v11 = vmul.f32 0.015625, %v4288_v39 }
0x1acf   :  { %v4290_v4 = vsub.f32 %v4244_v7, %v4289_v11  ;;  %v4291_v19 = vsub.f32 %v4245_v62, %v4289_v11  ;;  %v4292_v26 = vsub.f32 %v4246_v29, %v4289_v11  ;;  %v4293_v47 = vsub.f32 %v4247_v12, %v4289_v11 }
0x1ad0   :  { %v4294_v49 = vsub.f32 %v4248_v21, %v4289_v11  ;;  %v4295_v1 = vsub.f32 %v4249_v60, %v4289_v11  ;;  %v4296_v55 = vsub.f32 %v4250_v54, %v4289_v11  ;;  %v4297_v7 = vsub.f32 %v4251_v16, %v4289_v11 }
0x1ad1   :  { %v4298_v17 = vmul.f32 %v4290_v4, %v4290_v4  ;;  %v4299_v31 = vmul.f32 %v4291_v19, %v4291_v19  ;;  %v4300_v15 = vmul.f32 %v4292_v26, %v4292_v26  ;;  %v4301_v41 = vmul.f32 %v4293_v47, %v4293_v47 }
0x1ad2   :  { %v4302_v61 = vmul.f32 %v4294_v49, %v4294_v49  ;;  %v4303_v62 = vmul.f32 %v4295_v1, %v4295_v1  ;;  %v4304_v21 = vmul.f32 %v4296_v55, %v4296_v55  ;;  %v4305_v57 = vmul.f32 %v4297_v7, %v4297_v7 }
0x1ad3   :  { %v4306_v58 = vsel %vm421_vm1, %v4298_v17, 0.0  ;;  %v4307_v0 = vsel %vm421_vm1, %v4299_v31, 0.0  ;;  %v4309_v6 = vsel %vm421_vm1, %v4300_v15, 0.0  ;;  %v4311_v29 = vsel %vm421_vm1, %v4301_v41, 0.0 }
0x1ad4   :  { %v4308_v50 = vadd.f32 %v4307_v0, %v4306_v58  ;;  %v4313_v20 = vsel %vm421_vm1, %v4302_v61, 0.0  ;;  %v4315_v27 = vsel %vm421_vm1, %v4303_v62, 0.0  ;;  %v4317_v42 = vsel %vm421_vm1, %v4304_v21, 0.0 }
0x1ad5   :  { %v4319_v22 = vsel %vm421_vm1, %v4305_v57, 0.0 }
0x1ad6   :  { %v4310_v24 = vadd.f32 %v4309_v6, %v4308_v50 }
0x1ad8   :  { %v4312_v12 = vadd.f32 %v4311_v29, %v4310_v24 }
0x1ada   :  { %v4314_v60 = vadd.f32 %v4313_v20, %v4312_v12 }
0x1adc   :  { %v4316_v46 = vadd.f32 %v4315_v27, %v4314_v60 }
0x1ade   :  { %v4318_v54 = vadd.f32 %v4317_v42, %v4316_v46 }
0x1ae0   :  { %v4320_v37 = vadd.f32 %v4319_v22, %v4318_v54 }
0x1ae2   :  { %v4321_v25 = vrot.slane %v4320_v37, 4 }
0x1ae4   :  { %v4322_v16 = vadd.f32 %v4321_v25, %v4320_v37 }
0x1ae6   :  { %v4323_v43 = vrot.slane %v4322_v16, 2 }
0x1ae8   :  { %v4324_v63 = vadd.f32 %v4323_v43, %v4322_v16 }
0x1aea   :  { %v4325_v56 = vrot.slane %v4324_v63, 1 }
0x1aec   :  { %v4326_v59 = vadd.f32 %v4325_v56, %v4324_v63 }
0x1aee   :  { %v4327_v44 = vmul.f32 0.015625, %v4326_v59 }
0x1af0   :  { %v4328_v36 = vadd.f32 0.0001, %v4327_v44 }
0x1af2   :  { %5261 = vrsqrt.f32 %v4328_v36 }
0x1aff   :  { %v5262_v10 = vpop.eup %5261 }
0x1b00   :  { %v4337_v35 = vmul.f32 %v5262_v10, %v4297_v7  ;;  %v4336_v39 = vmul.f32 %v5262_v10, %v4296_v55  ;;  %v4335_v11 = vmul.f32 %v5262_v10, %v4295_v1  ;;  %v4334_v17 = vmul.f32 %v5262_v10, %v4294_v49 }
0x1b01   :  { %v4333_v58 = vmul.f32 %v5262_v10, %v4293_v47  ;;  %v4332_v6 = vmul.f32 %v5262_v10, %v4292_v26  ;;  %v4331_v1 = vmul.f32 %v5262_v10, %v4291_v19  ;;  %v4434_v26 = vld [vmem:[%s4566_s22] sm:$0x1] }
0x1b02   :  { %v4385_v31 = vmul.f32 %v6591_v9, %v4337_v35  ;;  %v4384_v15 = vmul.f32 %v6589_v32, %v4336_v39  ;;  %v4383_v41 = vmul.f32 %v6596_v13, %v4335_v11  ;;  %v4382_v61 = vmul.f32 %v6603_v23, %v4334_v17 }
0x1b03   :  { %v4381_v49 = vmul.f32 %v6610_v8, %v4333_v58  ;;  %v4380_v13 = vmul.f32 %v6617_v52, %v4332_v6 }
0x1b04   :  { %v4433_v0 = vadd.f32 %v6598_v14, %v4385_v31  ;;  %v4432_v50 = vadd.f32 %v6605_v28, %v4384_v15  ;;  %v4431_v55 = vadd.f32 %v6612_v33, %v4383_v41  ;;  %v4430_v9 = vadd.f32 %v6619_v53, %v4382_v61 }
0x1b05   :  { %v4330_v14 = vmul.f32 %v5262_v10, %v4290_v4  ;;  %v4429_v28 = vadd.f32 %v6625_v48, %v4381_v49  ;;  %v4379_v33 = vmul.f32 %v6623_v40, %v4331_v1  ;;  %v4428_v19 = vadd.f32 %v6629_v38, %v4380_v13 }
0x1b06   :  { %v4442_v24 = vmul.f32 %v5330_v5, %v4433_v0  ;;  %v4441_v32 = vmul.f32 %v5330_v5, %v4432_v50  ;;  %v4440_v23 = vmul.f32 %v5330_v5, %v4431_v55  ;;  %v4439_v8 = vmul.f32 %v5330_v5, %v4430_v9 }
0x1b07   :  { %v4378_v53 = vmul.f32 %v6627_v18, %v4330_v14  ;;  %v4438_v52 = vmul.f32 %v5330_v5, %v4429_v28  ;;  %v4427_v40 = vadd.f32 %v6633_v51, %v4379_v33  ;;  %v4437_v48 = vmul.f32 %v5330_v5, %v4428_v19 }
0x1b08   :  { %5164 = vmatpush3.msra.mxu1 %v4442_v24 }
0x1b09   :  { %5165 = vmatprep.subr.mxu1 %v5281_v30  ;;  %v4426_v38 = vadd.f32 %v6631_v45, %v4378_v53  ;;  %v4436_v18 = vmul.f32 %v5330_v5, %v4427_v40  ;;  %v4452_v45 = vrot.slane %v6639_v34, %v136_v3 }
0x1b0a   :  { %5166 = vmatpush3.msra.mxu1 %v4441_v32 }
0x1b0b   :  { %5167 = vmatprep.subr.mxu1 %v5281_v30  ;;  %v4435_v4 = vmul.f32 %v5330_v5, %v4426_v38  ;;  %v5265_v5 = vld [vmem:[%s5314_s9] sm:$0x1] }
0x1b0c   :  { %5168 = vmatpush3.msra.mxu1 %v4440_v23 }
0x1b0d   :  { %5169 = vmatprep.subr.mxu1 %v5281_v30 }
0x1b0e   :  { %5170 = vmatpush3.msra.mxu1 %v4439_v8 }
0x1b0f   :  { %5171 = vmatprep.subr.mxu1 %v5281_v30 }
0x1b10   :  { %5172 = vmatpush3.msra.mxu1 %v4438_v52 }
0x1b11   :  { %5173 = vmatprep.subr.mxu1 %v5281_v30 }
0x1b12   :  { %5174 = vmatpush3.msra.mxu1 %v4437_v48 }
0x1b13   :  { %5175 = vmatprep.subr.mxu1 %v5281_v30 }
0x1b14   :  { %5176 = vmatpush3.msra.mxu1 %v4436_v18 }
0x1b15   :  { %5177 = vmatprep.subr.mxu1 %v5281_v30 }
0x1b16   :  { %5178 = vmatpush3.msra.mxu1 %v4435_v4 }
0x1b17   :  { %5180 = vmatmul.mubr.msk.f32.vlgmr.msra.gmra.mxu1 %vm1534_vm5, %v4434_v26 }
0x1bd7   :  { %v4522_v51 = vpop.f32.mrf.mxu1 }
0x1bd8   :  { %v4523_v47 = vadd.f32 %v4522_v51, %v4452_v45 }
0x1bd9   :  { %v5181_v7 = vpop.f32.mrf.mxu1 }
0x1bda   :  { %v4526_v62 = vmul.f32 %v5265_v5, %v4523_v47 }
0x1bdc   :  { %4528 = vst.msk [vmem:[%s4570_s21] sm:$0x1] %vm4527_vm7, %v4526_v62 }

</bundles_post_ra>
